<compile_context>
chip_gen: v7x
topology: tpu7x:2x2x1
jax: 0.10.0
libtpu: 0.0.40
codegen_flags: <defaults>
</compile_context>

<pallas_src>
import functools

import jax
import jax.numpy as jnp
from jax.experimental import pallas as pl
from jax.experimental.pallas import tpu as pltpu


HIDDEN = 256
NUM_LAYERS = 8


# ---------------------------------------------------------------------------
# Fused Pallas kernel: 8 RNN layers + fc head, everything VMEM-resident
# ---------------------------------------------------------------------------
def _fused_rnn_kernel(x_ref, w0ih_ref, w0hh_ref, b0_ref,
                      wih_ref, whh_ref, bd_ref, fcw_ref, fcb_ref,
                      out_ref, seq_ref, *, t_steps, batch):
    """Whole model for one batch-chunk (rows ordered t*batch + b).

    x_ref   : (T*Bc, In)      time-major flattened input chunk
    w0ih_ref: (In, H)   bf16  layer-0 input->hidden weight (stored (in, H))
    w0hh_ref: (H, H)    bf16  layer-0 hidden->hidden weight
    b0_ref  : (1, H)    f32   layer-0 combined bias (b_ih + b_hh)
    wih_ref : (L-1,H,H) bf16  layers 1..7 input->hidden weights
    whh_ref : (L-1,H,H) bf16  layers 1..7 hidden->hidden weights
    bd_ref  : (L-1,1,H) f32   layers 1..7 combined biases
    fcw_ref : (H, Dout) bf16  fc1 weight (stored (in, out))
    fcb_ref : (1, Dout) f32   fc1 bias
    out_ref : (T*Bc, Dout)    time-major flattened output chunk
    seq_ref : (T*Bc, H) f32   scratch: current layer's output sequence
    """
    T, Bc = t_steps, batch

    def recur(whh_load):
        """h_t = tanh(seq[t] + h_{t-1} @ W_hh); seq[t] holds x@W_ih + b."""
        # t = 0: h_prev == 0 -> skip the zero matmul entirely.
        h = jnp.tanh(seq_ref[pl.ds(0, Bc), :])
        seq_ref[pl.ds(0, Bc), :] = h
        for t in range(1, T):                       # fully unrolled, static slices
            sl = pl.ds(t * Bc, Bc)
            h = jnp.tanh(seq_ref[sl, :]
                         + jnp.dot(h.astype(jnp.bfloat16), whh_load(),
                                   preferred_element_type=jnp.float32))
            seq_ref[sl, :] = h

    # ---- layer 0: hoisted input projection over all T*Bc rows (one MXU call) ----
    seq_ref[...] = (jnp.dot(x_ref[...].astype(jnp.bfloat16), w0ih_ref[...],
                            preferred_element_type=jnp.float32)
                    + b0_ref[...])
    recur(lambda: w0hh_ref[...])

    # ---- layers 1..L-1: hoisted (T*Bc,H)@(H,H) W_ih matmul, then serial W_hh ----
    n_deep = wih_ref.shape[0]
    for l in range(n_deep):
        # Full read of the previous layer's sequence happens before the
        # overwrite below (value is materialized by the dot) -> safe in place.
        xp = (jnp.dot(seq_ref[...].astype(jnp.bfloat16), wih_ref[l],
                      preferred_element_type=jnp.float32)
              + bd_ref[l])
        seq_ref[...] = xp
        recur(lambda l=l: whh_ref[l])

    # ---- fc head: single (T*Bc, H) @ (H, Dout) matmul straight off the scratch ----
    out = (jnp.dot(seq_ref[...].astype(jnp.bfloat16), fcw_ref[...],
                   preferred_element_type=jnp.float32)
           + fcb_ref[...])
    out_ref[...] = out.astype(out_ref.dtype)


# ---------------------------------------------------------------------------
# Parameters (PyTorch-style init, stored in the fused-kernel layout, bf16 weights)
# ---------------------------------------------------------------------------
def init_params(key, depth_dim, features_dim, num_layers=NUM_LAYERS, hidden=HIDDEN):
    """U(-1/sqrt(H), 1/sqrt(H)) init like torch.nn.RNN / Linear.

    Weights are stored (in, out) and cast to bf16 (f32 accumulation in-kernel);
    biases are b_ih + b_hh, kept in f32.
    TODO(synk): loading a real torch checkpoint requires transposing
                weight_ih_l*/weight_hh_l*/fc1.weight from (out, in) to (in, out)
                and summing b_ih + b_hh per layer.
    """
    in_dim = depth_dim * features_dim
    bound = 1.0 / jnp.sqrt(jnp.float32(hidden))

    key, k1, k2, k3, k4 = jax.random.split(key, 5)
    w0_ih = jax.random.uniform(k1, (in_dim, hidden), jnp.float32, -bound, bound)
    w0_hh = jax.random.uniform(k2, (hidden, hidden), jnp.float32, -bound, bound)
    b0 = (jax.random.uniform(k3, (hidden,), jnp.float32, -bound, bound)
          + jax.random.uniform(k4, (hidden,), jnp.float32, -bound, bound)).reshape(1, hidden)

    w_ih_deep, w_hh_deep, b_deep = [], [], []
    for _ in range(num_layers - 1):
        key, k1, k2, k3, k4 = jax.random.split(key, 5)
        w_ih_deep.append(jax.random.uniform(k1, (hidden, hidden), jnp.float32, -bound, bound))
        w_hh_deep.append(jax.random.uniform(k2, (hidden, hidden), jnp.float32, -bound, bound))
        b = (jax.random.uniform(k3, (hidden,), jnp.float32, -bound, bound)
             + jax.random.uniform(k4, (hidden,), jnp.float32, -bound, bound))
        b_deep.append(b.reshape(1, hidden))

    key, k5, k6 = jax.random.split(key, 3)
    fc_w = jax.random.uniform(k5, (hidden, in_dim), jnp.float32, -bound, bound)
    fc_b = jax.random.uniform(k6, (in_dim,), jnp.float32, -bound, bound).reshape(1, in_dim)

    return dict(
        w0_ih=w0_ih.astype(jnp.bfloat16),
        w0_hh=w0_hh.astype(jnp.bfloat16),
        b0=b0,
        w_ih_deep=jnp.stack(w_ih_deep).astype(jnp.bfloat16),   # (L-1, H, H)
        w_hh_deep=jnp.stack(w_hh_deep).astype(jnp.bfloat16),   # (L-1, H, H)
        b_deep=jnp.stack(b_deep),                               # (L-1, 1, H) f32
        fc_w=fc_w.astype(jnp.bfloat16),
        fc_b=fc_b,
    )


# ---------------------------------------------------------------------------
# Forward wrapper
# ---------------------------------------------------------------------------
@functools.partial(jax.jit, static_argnames=("temporal_dim", "depth_dim",
                                             "features_dim", "batch_split"))
def tiny_lstm_forward(params, x, *, temporal_dim, depth_dim, features_dim,
                      batch_split=1):
    """x: (B, T, D, F) float32 -> (B, T, D, F) float32.

    batch_split: number of batch chunks mapped onto a "parallel" grid axis.
    Use 2 on v7x (2 TensorCores/chip, weights replicated per core); keep 1 on
    v5e/v6e where a second grid step would only serialize the recurrence.
    """
    B = x.shape[0]
    T, D, F = temporal_dim, depth_dim, features_dim
    in_dim = D * F
    H = HIDDEN
    L = NUM_LAYERS

    C = batch_split if (batch_split >= 1 and B % batch_split == 0) else 1
    Bc = B // C

    # x.view(-1, T, D*F); tiny layout op -> chunk-major, time-major within chunk.
    x_l = (x.reshape(B, T, in_dim)
            .reshape(C, Bc, T, in_dim)
            .transpose(0, 2, 1, 3)
            .reshape(C * T * Bc, in_dim))

    kernel = functools.partial(_fused_rnn_kernel, t_steps=T, batch=Bc)

    out_flat = pl.pallas_call(
        kernel,
        out_shape=jax.ShapeDtypeStruct((C * T * Bc, in_dim), x.dtype),
        grid=(C,),
        in_specs=[
            pl.BlockSpec((T * Bc, in_dim), lambda c: (c, 0)),        # x (time-major chunk)
            pl.BlockSpec((in_dim, H), lambda c: (0, 0)),             # W_ih layer 0
            pl.BlockSpec((H, H), lambda c: (0, 0)),                  # W_hh layer 0
            pl.BlockSpec((1, H), lambda c: (0, 0)),                  # bias layer 0
            pl.BlockSpec((L - 1, H, H), lambda c: (0, 0, 0)),        # deep W_ih stack
            pl.BlockSpec((L - 1, H, H), lambda c: (0, 0, 0)),        # deep W_hh stack
            pl.BlockSpec((L - 1, 1, H), lambda c: (0, 0, 0)),        # deep biases
            pl.BlockSpec((H, in_dim), lambda c: (0, 0)),             # fc weight
            pl.BlockSpec((1, in_dim), lambda c: (0, 0)),             # fc bias
        ],
        out_specs=pl.BlockSpec((T * Bc, in_dim), lambda c: (c, 0)),
        scratch_shapes=[pltpu.VMEM((T * Bc, H), jnp.float32)],       # flat sequence
        compiler_params=pltpu.CompilerParams(
            dimension_semantics=("parallel",)),
    )(x_l, params["w0_ih"], params["w0_hh"], params["b0"],
      params["w_ih_deep"], params["w_hh_deep"], params["b_deep"],
      params["fc_w"], params["fc_b"])

    # rows are (chunk, t, b_within_chunk) -> back to (B, T, D, F)
    return (out_flat.reshape(C, T, Bc, in_dim)
                    .transpose(0, 2, 1, 3)
                    .reshape(B, T, D, F))


def _default_batch_split(batch: int) -> int:
    """2 on v7x (2 TensorCores per chip) when the batch divides, else 1."""
    try:
        kind = jax.devices()[0].device_kind.lower()
    except Exception:
        return 1
    if "v7" in kind and batch % 2 == 0:
        return 2
    return 1


if __name__ == "__main__":
    # input_shape = (temporal_dim, depth_dim, features_dim)
    T, D, F = 8, 4, 16
    B = 2

    key = jax.random.PRNGKey(0)
    key, pkey, xkey = jax.random.split(key, 3)
    params = init_params(pkey, D, F)
    x = jax.random.normal(xkey, (B, T, D, F), dtype=jnp.float32)

    split = _default_batch_split(B)
    y = tiny_lstm_forward(params, x, temporal_dim=T, depth_dim=D,
                          features_dim=F, batch_split=split)
    jax.block_until_ready(y)
    assert y.shape == (B, T, D, F), y.shape
    assert bool(jnp.all(jnp.isfinite(y))), "non-finite output"
    print("KERNEL_OK")
</pallas_src>

<mosaic_0001>
module attributes {stable_mosaic.version = 11 : i64} {
  func.func @_fused_rnn_kernel(%arg0: i32, %arg1: memref<16x64xf32, #tpu.memory_space<vmem>>, %arg2: memref<64x256xbf16, #tpu.memory_space<vmem>>, %arg3: memref<256x256xbf16, #tpu.memory_space<vmem>>, %arg4: memref<1x256xf32, #tpu.memory_space<vmem>>, %arg5: memref<7x256x256xbf16, #tpu.memory_space<vmem>>, %arg6: memref<7x256x256xbf16, #tpu.memory_space<vmem>>, %arg7: memref<7x1x256xf32, #tpu.memory_space<vmem>>, %arg8: memref<256x64xbf16, #tpu.memory_space<vmem>>, %arg9: memref<1x64xf32, #tpu.memory_space<vmem>>, %arg10: memref<16x64xf32, #tpu.memory_space<vmem>>, %arg11: memref<16x256xf32, #tpu.memory_space<vmem>>) attributes {dimension_semantics = [#tpu.dimension_semantics<parallel>], iteration_bounds = array<i64: 1>, scalar_prefetch = 0 : i64, scratch_operands = 1 : i64, tpu.core_type = #tpu.core_type<tc>, window_params = [{transform_indices = @transform_0, window_bounds = array<i64: 16, 64>}, {pipeline_mode = #tpu.pipeline_mode<synchronous>, transform_indices = @transform_1, window_bounds = array<i64: 64, 256>}, {pipeline_mode = #tpu.pipeline_mode<synchronous>, transform_indices = @transform_2, window_bounds = array<i64: 256, 256>}, {pipeline_mode = #tpu.pipeline_mode<synchronous>, transform_indices = @transform_3, window_bounds = array<i64: 1, 256>}, {pipeline_mode = #tpu.pipeline_mode<synchronous>, transform_indices = @transform_4, window_bounds = array<i64: 7, 256, 256>}, {pipeline_mode = #tpu.pipeline_mode<synchronous>, transform_indices = @transform_5, window_bounds = array<i64: 7, 256, 256>}, {pipeline_mode = #tpu.pipeline_mode<synchronous>, transform_indices = @transform_6, window_bounds = array<i64: 7, 1, 256>}, {pipeline_mode = #tpu.pipeline_mode<synchronous>, transform_indices = @transform_7, window_bounds = array<i64: 256, 64>}, {pipeline_mode = #tpu.pipeline_mode<synchronous>, transform_indices = @transform_8, window_bounds = array<i64: 1, 64>}, {transform_indices = @transform_9, window_bounds = array<i64: 16, 64>}]} {
    %c0 = arith.constant 0 : index
    %c0_0 = arith.constant 0 : index
    %0 = vector.load %arg1[%c0, %c0_0] : memref<16x64xf32, #tpu.memory_space<vmem>>, vector<16x64xf32>
    %1 = arith.truncf %0 : vector<16x64xf32> to vector<16x64xbf16>
    %c0_1 = arith.constant 0 : index
    %c0_2 = arith.constant 0 : index
    %2 = vector.load %arg2[%c0_1, %c0_2] : memref<64x256xbf16, #tpu.memory_space<vmem>>, vector<64x256xbf16>
    %cst = arith.constant dense<0.000000e+00> : vector<16x256xf32>
    %3 = tpu.matmul %1, %2, %cst {dimension_numbers = #tpu.dot_dimension_numbers<[1], [0], [0], [1], [0, 0, 1, 1], [], []>} : vector<16x64xbf16>, vector<64x256xbf16>, vector<16x256xf32> -> vector<16x256xf32>
    %c0_3 = arith.constant 0 : index
    %c0_4 = arith.constant 0 : index
    %4 = vector.load %arg4[%c0_3, %c0_4] : memref<1x256xf32, #tpu.memory_space<vmem>>, vector<1x256xf32>
    %5 = vector.broadcast %4 : vector<1x256xf32> to vector<16x256xf32>
    %6 = arith.addf %3, %5 : vector<16x256xf32>
    %c0_5 = arith.constant 0 : index
    %c0_6 = arith.constant 0 : index
    %7 = vector.load %arg11[%c0_5, %c0_6] : memref<16x256xf32, #tpu.memory_space<vmem>>, vector<16x256xf32>
    tpu.vector_store %arg11[%c0_5, %c0_6], %6 {strides = array<i32>} : memref<16x256xf32, #tpu.memory_space<vmem>>, vector<16x256xf32>,
    %c0_7 = arith.constant 0 : index
    %c0_8 = arith.constant 0 : index
    %8 = vector.load %arg11[%c0_7, %c0_8] : memref<16x256xf32, #tpu.memory_space<vmem>>, vector<2x256xf32>
    %9 = math.tanh %8 : vector<2x256xf32>
    %c0_9 = arith.constant 0 : index
    %c0_10 = arith.constant 0 : index
    %10 = vector.load %arg11[%c0_9, %c0_10] : memref<16x256xf32, #tpu.memory_space<vmem>>, vector<2x256xf32>
    tpu.vector_store %arg11[%c0_9, %c0_10], %9 {strides = array<i32>} : memref<16x256xf32, #tpu.memory_space<vmem>>, vector<2x256xf32>,
    %c2 = arith.constant 2 : index
    %c0_11 = arith.constant 0 : index
    %11 = vector.load %arg11[%c2, %c0_11] : memref<16x256xf32, #tpu.memory_space<vmem>>, vector<2x256xf32>
    %12 = arith.truncf %9 : vector<2x256xf32> to vector<2x256xbf16>
    %c0_12 = arith.constant 0 : index
    %c0_13 = arith.constant 0 : index
    %13 = vector.load %arg3[%c0_12, %c0_13] : memref<256x256xbf16, #tpu.memory_space<vmem>>, vector<256x256xbf16>
    %cst_14 = arith.constant dense<0.000000e+00> : vector<2x256xf32>
    %14 = tpu.matmul %12, %13, %cst_14 {dimension_numbers = #tpu.dot_dimension_numbers<[1], [0], [0], [1], [0, 0, 1, 1], [], []>} : vector<2x256xbf16>, vector<256x256xbf16>, vector<2x256xf32> -> vector<2x256xf32>
    %15 = arith.addf %11, %14 : vector<2x256xf32>
    %16 = math.tanh %15 : vector<2x256xf32>
    %c2_15 = arith.constant 2 : index
    %c0_16 = arith.constant 0 : index
    %17 = vector.load %arg11[%c2_15, %c0_16] : memref<16x256xf32, #tpu.memory_space<vmem>>, vector<2x256xf32>
    tpu.vector_store %arg11[%c2_15, %c0_16], %16 {strides = array<i32>} : memref<16x256xf32, #tpu.memory_space<vmem>>, vector<2x256xf32>,
    %c4 = arith.constant 4 : index
    %c0_17 = arith.constant 0 : index
    %18 = vector.load %arg11[%c4, %c0_17] : memref<16x256xf32, #tpu.memory_space<vmem>>, vector<2x256xf32>
    %19 = arith.truncf %16 : vector<2x256xf32> to vector<2x256xbf16>
    %c0_18 = arith.constant 0 : index
    %c0_19 = arith.constant 0 : index
    %20 = vector.load %arg3[%c0_18, %c0_19] : memref<256x256xbf16, #tpu.memory_space<vmem>>, vector<256x256xbf16>
    %cst_20 = arith.constant dense<0.000000e+00> : vector<2x256xf32>
    %21 = tpu.matmul %19, %20, %cst_20 {dimension_numbers = #tpu.dot_dimension_numbers<[1], [0], [0], [1], [0, 0, 1, 1], [], []>} : vector<2x256xbf16>, vector<256x256xbf16>, vector<2x256xf32> -> vector<2x256xf32>
    %22 = arith.addf %18, %21 : vector<2x256xf32>
    %23 = math.tanh %22 : vector<2x256xf32>
    %c4_21 = arith.constant 4 : index
    %c0_22 = arith.constant 0 : index
    %24 = vector.load %arg11[%c4_21, %c0_22] : memref<16x256xf32, #tpu.memory_space<vmem>>, vector<2x256xf32>
    tpu.vector_store %arg11[%c4_21, %c0_22], %23 {strides = array<i32>} : memref<16x256xf32, #tpu.memory_space<vmem>>, vector<2x256xf32>,
    %c6 = arith.constant 6 : index
    %c0_23 = arith.constant 0 : index
    %25 = vector.load %arg11[%c6, %c0_23] : memref<16x256xf32, #tpu.memory_space<vmem>>, vector<2x256xf32>
    %26 = arith.truncf %23 : vector<2x256xf32> to vector<2x256xbf16>
    %c0_24 = arith.constant 0 : index
    %c0_25 = arith.constant 0 : index
    %27 = vector.load %arg3[%c0_24, %c0_25] : memref<256x256xbf16, #tpu.memory_space<vmem>>, vector<256x256xbf16>
    %cst_26 = arith.constant dense<0.000000e+00> : vector<2x256xf32>
    %28 = tpu.matmul %26, %27, %cst_26 {dimension_numbers = #tpu.dot_dimension_numbers<[1], [0], [0], [1], [0, 0, 1, 1], [], []>} : vector<2x256xbf16>, vector<256x256xbf16>, vector<2x256xf32> -> vector<2x256xf32>
    %29 = arith.addf %25, %28 : vector<2x256xf32>
    %30 = math.tanh %29 : vector<2x256xf32>
    %c6_27 = arith.constant 6 : index
    %c0_28 = arith.constant 0 : index
    %31 = vector.load %arg11[%c6_27, %c0_28] : memref<16x256xf32, #tpu.memory_space<vmem>>, vector<2x256xf32>
    tpu.vector_store %arg11[%c6_27, %c0_28], %30 {strides = array<i32>} : memref<16x256xf32, #tpu.memory_space<vmem>>, vector<2x256xf32>,
    %c8 = arith.constant 8 : index
    %c0_29 = arith.constant 0 : index
    %32 = vector.load %arg11[%c8, %c0_29] : memref<16x256xf32, #tpu.memory_space<vmem>>, vector<2x256xf32>
    %33 = arith.truncf %30 : vector<2x256xf32> to vector<2x256xbf16>
    %c0_30 = arith.constant 0 : index
    %c0_31 = arith.constant 0 : index
    %34 = vector.load %arg3[%c0_30, %c0_31] : memref<256x256xbf16, #tpu.memory_space<vmem>>, vector<256x256xbf16>
    %cst_32 = arith.constant dense<0.000000e+00> : vector<2x256xf32>
    %35 = tpu.matmul %33, %34, %cst_32 {dimension_numbers = #tpu.dot_dimension_numbers<[1], [0], [0], [1], [0, 0, 1, 1], [], []>} : vector<2x256xbf16>, vector<256x256xbf16>, vector<2x256xf32> -> vector<2x256xf32>
    %36 = arith.addf %32, %35 : vector<2x256xf32>
    %37 = math.tanh %36 : vector<2x256xf32>
    %c8_33 = arith.constant 8 : index
    %c0_34 = arith.constant 0 : index
    %38 = vector.load %arg11[%c8_33, %c0_34] : memref<16x256xf32, #tpu.memory_space<vmem>>, vector<2x256xf32>
    tpu.vector_store %arg11[%c8_33, %c0_34], %37 {strides = array<i32>} : memref<16x256xf32, #tpu.memory_space<vmem>>, vector<2x256xf32>,
    %c10 = arith.constant 10 : index
    %c0_35 = arith.constant 0 : index
    %39 = vector.load %arg11[%c10, %c0_35] : memref<16x256xf32, #tpu.memory_space<vmem>>, vector<2x256xf32>
    %40 = arith.truncf %37 : vector<2x256xf32> to vector<2x256xbf16>
    %c0_36 = arith.constant 0 : index
    %c0_37 = arith.constant 0 : index
    %41 = vector.load %arg3[%c0_36, %c0_37] : memref<256x256xbf16, #tpu.memory_space<vmem>>, vector<256x256xbf16>
    %cst_38 = arith.constant dense<0.000000e+00> : vector<2x256xf32>
    %42 = tpu.matmul %40, %41, %cst_38 {dimension_numbers = #tpu.dot_dimension_numbers<[1], [0], [0], [1], [0, 0, 1, 1], [], []>} : vector<2x256xbf16>, vector<256x256xbf16>, vector<2x256xf32> -> vector<2x256xf32>
    %43 = arith.addf %39, %42 : vector<2x256xf32>
    %44 = math.tanh %43 : vector<2x256xf32>
    %c10_39 = arith.constant 10 : index
    %c0_40 = arith.constant 0 : index
    %45 = vector.load %arg11[%c10_39, %c0_40] : memref<16x256xf32, #tpu.memory_space<vmem>>, vector<2x256xf32>
    tpu.vector_store %arg11[%c10_39, %c0_40], %44 {strides = array<i32>} : memref<16x256xf32, #tpu.memory_space<vmem>>, vector<2x256xf32>,
    %c12 = arith.constant 12 : index
    %c0_41 = arith.constant 0 : index
    %46 = vector.load %arg11[%c12, %c0_41] : memref<16x256xf32, #tpu.memory_space<vmem>>, vector<2x256xf32>
    %47 = arith.truncf %44 : vector<2x256xf32> to vector<2x256xbf16>
    %c0_42 = arith.constant 0 : index
    %c0_43 = arith.constant 0 : index
    %48 = vector.load %arg3[%c0_42, %c0_43] : memref<256x256xbf16, #tpu.memory_space<vmem>>, vector<256x256xbf16>
    %cst_44 = arith.constant dense<0.000000e+00> : vector<2x256xf32>
    %49 = tpu.matmul %47, %48, %cst_44 {dimension_numbers = #tpu.dot_dimension_numbers<[1], [0], [0], [1], [0, 0, 1, 1], [], []>} : vector<2x256xbf16>, vector<256x256xbf16>, vector<2x256xf32> -> vector<2x256xf32>
    %50 = arith.addf %46, %49 : vector<2x256xf32>
    %51 = math.tanh %50 : vector<2x256xf32>
    %c12_45 = arith.constant 12 : index
    %c0_46 = arith.constant 0 : index
    %52 = vector.load %arg11[%c12_45, %c0_46] : memref<16x256xf32, #tpu.memory_space<vmem>>, vector<2x256xf32>
    tpu.vector_store %arg11[%c12_45, %c0_46], %51 {strides = array<i32>} : memref<16x256xf32, #tpu.memory_space<vmem>>, vector<2x256xf32>,
    %c14 = arith.constant 14 : index
    %c0_47 = arith.constant 0 : index
    %53 = vector.load %arg11[%c14, %c0_47] : memref<16x256xf32, #tpu.memory_space<vmem>>, vector<2x256xf32>
    %54 = arith.truncf %51 : vector<2x256xf32> to vector<2x256xbf16>
    %c0_48 = arith.constant 0 : index
    %c0_49 = arith.constant 0 : index
    %55 = vector.load %arg3[%c0_48, %c0_49] : memref<256x256xbf16, #tpu.memory_space<vmem>>, vector<256x256xbf16>
    %cst_50 = arith.constant dense<0.000000e+00> : vector<2x256xf32>
    %56 = tpu.matmul %54, %55, %cst_50 {dimension_numbers = #tpu.dot_dimension_numbers<[1], [0], [0], [1], [0, 0, 1, 1], [], []>} : vector<2x256xbf16>, vector<256x256xbf16>, vector<2x256xf32> -> vector<2x256xf32>
    %57 = arith.addf %53, %56 : vector<2x256xf32>
    %58 = math.tanh %57 : vector<2x256xf32>
    %c14_51 = arith.constant 14 : index
    %c0_52 = arith.constant 0 : index
    %59 = vector.load %arg11[%c14_51, %c0_52] : memref<16x256xf32, #tpu.memory_space<vmem>>, vector<2x256xf32>
    tpu.vector_store %arg11[%c14_51, %c0_52], %58 {strides = array<i32>} : memref<16x256xf32, #tpu.memory_space<vmem>>, vector<2x256xf32>,
    %c0_53 = arith.constant 0 : index
    %c0_54 = arith.constant 0 : index
    %60 = vector.load %arg11[%c0_53, %c0_54] : memref<16x256xf32, #tpu.memory_space<vmem>>, vector<16x256xf32>
    %61 = arith.truncf %60 : vector<16x256xf32> to vector<16x256xbf16>
    %c0_55 = arith.constant 0 : index
    %c0_56 = arith.constant 0 : index
    %c0_57 = arith.constant 0 : index
    %62 = vector.load %arg5[%c0_55, %c0_56, %c0_57] : memref<7x256x256xbf16, #tpu.memory_space<vmem>>, vector<1x256x256xbf16>
    %63 = vector.shape_cast %62 : vector<1x256x256xbf16> to vector<256x256xbf16>
    %cst_58 = arith.constant dense<0.000000e+00> : vector<16x256xf32>
    %64 = tpu.matmul %61, %63, %cst_58 {dimension_numbers = #tpu.dot_dimension_numbers<[1], [0], [0], [1], [0, 0, 1, 1], [], []>} : vector<16x256xbf16>, vector<256x256xbf16>, vector<16x256xf32> -> vector<16x256xf32>
    %c0_59 = arith.constant 0 : index
    %c0_60 = arith.constant 0 : index
    %c0_61 = arith.constant 0 : index
    %65 = vector.load %arg7[%c0_59, %c0_60, %c0_61] : memref<7x1x256xf32, #tpu.memory_space<vmem>>, vector<1x1x256xf32>
    %66 = vector.shape_cast %65 : vector<1x1x256xf32> to vector<1x256xf32>
    %67 = vector.broadcast %66 : vector<1x256xf32> to vector<16x256xf32>
    %68 = arith.addf %64, %67 : vector<16x256xf32>
    %c0_62 = arith.constant 0 : index
    %c0_63 = arith.constant 0 : index
    %69 = vector.load %arg11[%c0_62, %c0_63] : memref<16x256xf32, #tpu.memory_space<vmem>>, vector<16x256xf32>
    tpu.vector_store %arg11[%c0_62, %c0_63], %68 {strides = array<i32>} : memref<16x256xf32, #tpu.memory_space<vmem>>, vector<16x256xf32>,
    %c0_64 = arith.constant 0 : index
    %c0_65 = arith.constant 0 : index
    %70 = vector.load %arg11[%c0_64, %c0_65] : memref<16x256xf32, #tpu.memory_space<vmem>>, vector<2x256xf32>
    %71 = math.tanh %70 : vector<2x256xf32>
    %c0_66 = arith.constant 0 : index
    %c0_67 = arith.constant 0 : index
    %72 = vector.load %arg11[%c0_66, %c0_67] : memref<16x256xf32, #tpu.memory_space<vmem>>, vector<2x256xf32>
    tpu.vector_store %arg11[%c0_66, %c0_67], %71 {strides = array<i32>} : memref<16x256xf32, #tpu.memory_space<vmem>>, vector<2x256xf32>,
    %c2_68 = arith.constant 2 : index
    %c0_69 = arith.constant 0 : index
    %73 = vector.load %arg11[%c2_68, %c0_69] : memref<16x256xf32, #tpu.memory_space<vmem>>, vector<2x256xf32>
    %74 = arith.truncf %71 : vector<2x256xf32> to vector<2x256xbf16>
    %c0_70 = arith.constant 0 : index
    %c0_71 = arith.constant 0 : index
    %c0_72 = arith.constant 0 : index
    %75 = vector.load %arg6[%c0_70, %c0_71, %c0_72] : memref<7x256x256xbf16, #tpu.memory_space<vmem>>, vector<1x256x256xbf16>
    %76 = vector.shape_cast %75 : vector<1x256x256xbf16> to vector<256x256xbf16>
    %cst_73 = arith.constant dense<0.000000e+00> : vector<2x256xf32>
    %77 = tpu.matmul %74, %76, %cst_73 {dimension_numbers = #tpu.dot_dimension_numbers<[1], [0], [0], [1], [0, 0, 1, 1], [], []>} : vector<2x256xbf16>, vector<256x256xbf16>, vector<2x256xf32> -> vector<2x256xf32>
    %78 = arith.addf %73, %77 : vector<2x256xf32>
    %79 = math.tanh %78 : vector<2x256xf32>
    %c2_74 = arith.constant 2 : index
    %c0_75 = arith.constant 0 : index
    %80 = vector.load %arg11[%c2_74, %c0_75] : memref<16x256xf32, #tpu.memory_space<vmem>>, vector<2x256xf32>
    tpu.vector_store %arg11[%c2_74, %c0_75], %79 {strides = array<i32>} : memref<16x256xf32, #tpu.memory_space<vmem>>, vector<2x256xf32>,
    %c4_76 = arith.constant 4 : index
    %c0_77 = arith.constant 0 : index
    %81 = vector.load %arg11[%c4_76, %c0_77] : memref<16x256xf32, #tpu.memory_space<vmem>>, vector<2x256xf32>
    %82 = arith.truncf %79 : vector<2x256xf32> to vector<2x256xbf16>
    %c0_78 = arith.constant 0 : index
    %c0_79 = arith.constant 0 : index
    %c0_80 = arith.constant 0 : index
    %83 = vector.load %arg6[%c0_78, %c0_79, %c0_80] : memref<7x256x256xbf16, #tpu.memory_space<vmem>>, vector<1x256x256xbf16>
    %84 = vector.shape_cast %83 : vector<1x256x256xbf16> to vector<256x256xbf16>
    %cst_81 = arith.constant dense<0.000000e+00> : vector<2x256xf32>
    %85 = tpu.matmul %82, %84, %cst_81 {dimension_numbers = #tpu.dot_dimension_numbers<[1], [0], [0], [1], [0, 0, 1, 1], [], []>} : vector<2x256xbf16>, vector<256x256xbf16>, vector<2x256xf32> -> vector<2x256xf32>
    %86 = arith.addf %81, %85 : vector<2x256xf32>
    %87 = math.tanh %86 : vector<2x256xf32>
    %c4_82 = arith.constant 4 : index
    %c0_83 = arith.constant 0 : index
    %88 = vector.load %arg11[%c4_82, %c0_83] : memref<16x256xf32, #tpu.memory_space<vmem>>, vector<2x256xf32>
    tpu.vector_store %arg11[%c4_82, %c0_83], %87 {strides = array<i32>} : memref<16x256xf32, #tpu.memory_space<vmem>>, vector<2x256xf32>,
    %c6_84 = arith.constant 6 : index
    %c0_85 = arith.constant 0 : index
    %89 = vector.load %arg11[%c6_84, %c0_85] : memref<16x256xf32, #tpu.memory_space<vmem>>, vector<2x256xf32>
    %90 = arith.truncf %87 : vector<2x256xf32> to vector<2x256xbf16>
    %c0_86 = arith.constant 0 : index
    %c0_87 = arith.constant 0 : index
    %c0_88 = arith.constant 0 : index
    %91 = vector.load %arg6[%c0_86, %c0_87, %c0_88] : memref<7x256x256xbf16, #tpu.memory_space<vmem>>, vector<1x256x256xbf16>
    %92 = vector.shape_cast %91 : vector<1x256x256xbf16> to vector<256x256xbf16>
    %cst_89 = arith.constant dense<0.000000e+00> : vector<2x256xf32>
    %93 = tpu.matmul %90, %92, %cst_89 {dimension_numbers = #tpu.dot_dimension_numbers<[1], [0], [0], [1], [0, 0, 1, 1], [], []>} : vector<2x256xbf16>, vector<256x256xbf16>, vector<2x256xf32> -> vector<2x256xf32>
    %94 = arith.addf %89, %93 : vector<2x256xf32>
    %95 = math.tanh %94 : vector<2x256xf32>
    %c6_90 = arith.constant 6 : index
    %c0_91 = arith.constant 0 : index
    %96 = vector.load %arg11[%c6_90, %c0_91] : memref<16x256xf32, #tpu.memory_space<vmem>>, vector<2x256xf32>
    tpu.vector_store %arg11[%c6_90, %c0_91], %95 {strides = array<i32>} : memref<16x256xf32, #tpu.memory_space<vmem>>, vector<2x256xf32>,
    %c8_92 = arith.constant 8 : index
    %c0_93 = arith.constant 0 : index
    %97 = vector.load %arg11[%c8_92, %c0_93] : memref<16x256xf32, #tpu.memory_space<vmem>>, vector<2x256xf32>
    %98 = arith.truncf %95 : vector<2x256xf32> to vector<2x256xbf16>
    %c0_94 = arith.constant 0 : index
    %c0_95 = arith.constant 0 : index
    %c0_96 = arith.constant 0 : index
    %99 = vector.load %arg6[%c0_94, %c0_95, %c0_96] : memref<7x256x256xbf16, #tpu.memory_space<vmem>>, vector<1x256x256xbf16>
    %100 = vector.shape_cast %99 : vector<1x256x256xbf16> to vector<256x256xbf16>
    %cst_97 = arith.constant dense<0.000000e+00> : vector<2x256xf32>
    %101 = tpu.matmul %98, %100, %cst_97 {dimension_numbers = #tpu.dot_dimension_numbers<[1], [0], [0], [1], [0, 0, 1, 1], [], []>} : vector<2x256xbf16>, vector<256x256xbf16>, vector<2x256xf32> -> vector<2x256xf32>
    %102 = arith.addf %97, %101 : vector<2x256xf32>
    %103 = math.tanh %102 : vector<2x256xf32>
    %c8_98 = arith.constant 8 : index
    %c0_99 = arith.constant 0 : index
    %104 = vector.load %arg11[%c8_98, %c0_99] : memref<16x256xf32, #tpu.memory_space<vmem>>, vector<2x256xf32>
    tpu.vector_store %arg11[%c8_98, %c0_99], %103 {strides = array<i32>} : memref<16x256xf32, #tpu.memory_space<vmem>>, vector<2x256xf32>,
    %c10_100 = arith.constant 10 : index
    %c0_101 = arith.constant 0 : index
    %105 = vector.load %arg11[%c10_100, %c0_101] : memref<16x256xf32, #tpu.memory_space<vmem>>, vector<2x256xf32>
    %106 = arith.truncf %103 : vector<2x256xf32> to vector<2x256xbf16>
    %c0_102 = arith.constant 0 : index
    %c0_103 = arith.constant 0 : index
    %c0_104 = arith.constant 0 : index
    %107 = vector.load %arg6[%c0_102, %c0_103, %c0_104] : memref<7x256x256xbf16, #tpu.memory_space<vmem>>, vector<1x256x256xbf16>
    %108 = vector.shape_cast %107 : vector<1x256x256xbf16> to vector<256x256xbf16>
    %cst_105 = arith.constant dense<0.000000e+00> : vector<2x256xf32>
    %109 = tpu.matmul %106, %108, %cst_105 {dimension_numbers = #tpu.dot_dimension_numbers<[1], [0], [0], [1], [0, 0, 1, 1], [], []>} : vector<2x256xbf16>, vector<256x256xbf16>, vector<2x256xf32> -> vector<2x256xf32>
    %110 = arith.addf %105, %109 : vector<2x256xf32>
    %111 = math.tanh %110 : vector<2x256xf32>
    %c10_106 = arith.constant 10 : index
    %c0_107 = arith.constant 0 : index
    %112 = vector.load %arg11[%c10_106, %c0_107] : memref<16x256xf32, #tpu.memory_space<vmem>>, vector<2x256xf32>
    tpu.vector_store %arg11[%c10_106, %c0_107], %111 {strides = array<i32>} : memref<16x256xf32, #tpu.memory_space<vmem>>, vector<2x256xf32>,
    %c12_108 = arith.constant 12 : index
    %c0_109 = arith.constant 0 : index
    %113 = vector.load %arg11[%c12_108, %c0_109] : memref<16x256xf32, #tpu.memory_space<vmem>>, vector<2x256xf32>
    %114 = arith.truncf %111 : vector<2x256xf32> to vector<2x256xbf16>
    %c0_110 = arith.constant 0 : index
    %c0_111 = arith.constant 0 : index
    %c0_112 = arith.constant 0 : index
    %115 = vector.load %arg6[%c0_110, %c0_111, %c0_112] : memref<7x256x256xbf16, #tpu.memory_space<vmem>>, vector<1x256x256xbf16>
    %116 = vector.shape_cast %115 : vector<1x256x256xbf16> to vector<256x256xbf16>
    %cst_113 = arith.constant dense<0.000000e+00> : vector<2x256xf32>
    %117 = tpu.matmul %114, %116, %cst_113 {dimension_numbers = #tpu.dot_dimension_numbers<[1], [0], [0], [1], [0, 0, 1, 1], [], []>} : vector<2x256xbf16>, vector<256x256xbf16>, vector<2x256xf32> -> vector<2x256xf32>
    %118 = arith.addf %113, %117 : vector<2x256xf32>
    %119 = math.tanh %118 : vector<2x256xf32>
    %c12_114 = arith.constant 12 : index
    %c0_115 = arith.constant 0 : index
    %120 = vector.load %arg11[%c12_114, %c0_115] : memref<16x256xf32, #tpu.memory_space<vmem>>, vector<2x256xf32>
    tpu.vector_store %arg11[%c12_114, %c0_115], %119 {strides = array<i32>} : memref<16x256xf32, #tpu.memory_space<vmem>>, vector<2x256xf32>,
    %c14_116 = arith.constant 14 : index
    %c0_117 = arith.constant 0 : index
    %121 = vector.load %arg11[%c14_116, %c0_117] : memref<16x256xf32, #tpu.memory_space<vmem>>, vector<2x256xf32>
    %122 = arith.truncf %119 : vector<2x256xf32> to vector<2x256xbf16>
    %c0_118 = arith.constant 0 : index
    %c0_119 = arith.constant 0 : index
    %c0_120 = arith.constant 0 : index
    %123 = vector.load %arg6[%c0_118, %c0_119, %c0_120] : memref<7x256x256xbf16, #tpu.memory_space<vmem>>, vector<1x256x256xbf16>
    %124 = vector.shape_cast %123 : vector<1x256x256xbf16> to vector<256x256xbf16>
    %cst_121 = arith.constant dense<0.000000e+00> : vector<2x256xf32>
    %125 = tpu.matmul %122, %124, %cst_121 {dimension_numbers = #tpu.dot_dimension_numbers<[1], [0], [0], [1], [0, 0, 1, 1], [], []>} : vector<2x256xbf16>, vector<256x256xbf16>, vector<2x256xf32> -> vector<2x256xf32>
    %126 = arith.addf %121, %125 : vector<2x256xf32>
    %127 = math.tanh %126 : vector<2x256xf32>
    %c14_122 = arith.constant 14 : index
    %c0_123 = arith.constant 0 : index
    %128 = vector.load %arg11[%c14_122, %c0_123] : memref<16x256xf32, #tpu.memory_space<vmem>>, vector<2x256xf32>
    tpu.vector_store %arg11[%c14_122, %c0_123], %127 {strides = array<i32>} : memref<16x256xf32, #tpu.memory_space<vmem>>, vector<2x256xf32>,
    %c0_124 = arith.constant 0 : index
    %c0_125 = arith.constant 0 : index
    %129 = vector.load %arg11[%c0_124, %c0_125] : memref<16x256xf32, #tpu.memory_space<vmem>>, vector<16x256xf32>
    %130 = arith.truncf %129 : vector<16x256xf32> to vector<16x256xbf16>
    %c1 = arith.constant 1 : index
    %c0_126 = arith.constant 0 : index
    %c0_127 = arith.constant 0 : index
    %131 = vector.load %arg5[%c1, %c0_126, %c0_127] : memref<7x256x256xbf16, #tpu.memory_space<vmem>>, vector<1x256x256xbf16>
    %132 = vector.shape_cast %131 : vector<1x256x256xbf16> to vector<256x256xbf16>
    %cst_128 = arith.constant dense<0.000000e+00> : vector<16x256xf32>
    %133 = tpu.matmul %130, %132, %cst_128 {dimension_numbers = #tpu.dot_dimension_numbers<[1], [0], [0], [1], [0, 0, 1, 1], [], []>} : vector<16x256xbf16>, vector<256x256xbf16>, vector<16x256xf32> -> vector<16x256xf32>
    %c1_129 = arith.constant 1 : index
    %c0_130 = arith.constant 0 : index
    %c0_131 = arith.constant 0 : index
    %134 = vector.load %arg7[%c1_129, %c0_130, %c0_131] : memref<7x1x256xf32, #tpu.memory_space<vmem>>, vector<1x1x256xf32>
    %135 = vector.shape_cast %134 : vector<1x1x256xf32> to vector<1x256xf32>
    %136 = vector.broadcast %135 : vector<1x256xf32> to vector<16x256xf32>
    %137 = arith.addf %133, %136 : vector<16x256xf32>
    %c0_132 = arith.constant 0 : index
    %c0_133 = arith.constant 0 : index
    %138 = vector.load %arg11[%c0_132, %c0_133] : memref<16x256xf32, #tpu.memory_space<vmem>>, vector<16x256xf32>
    tpu.vector_store %arg11[%c0_132, %c0_133], %137 {strides = array<i32>} : memref<16x256xf32, #tpu.memory_space<vmem>>, vector<16x256xf32>,
    %c0_134 = arith.constant 0 : index
    %c0_135 = arith.constant 0 : index
    %139 = vector.load %arg11[%c0_134, %c0_135] : memref<16x256xf32, #tpu.memory_space<vmem>>, vector<2x256xf32>
    %140 = math.tanh %139 : vector<2x256xf32>
    %c0_136 = arith.constant 0 : index
    %c0_137 = arith.constant 0 : index
    %141 = vector.load %arg11[%c0_136, %c0_137] : memref<16x256xf32, #tpu.memory_space<vmem>>, vector<2x256xf32>
    tpu.vector_store %arg11[%c0_136, %c0_137], %140 {strides = array<i32>} : memref<16x256xf32, #tpu.memory_space<vmem>>, vector<2x256xf32>,
    %c2_138 = arith.constant 2 : index
    %c0_139 = arith.constant 0 : index
    %142 = vector.load %arg11[%c2_138, %c0_139] : memref<16x256xf32, #tpu.memory_space<vmem>>, vector<2x256xf32>
    %143 = arith.truncf %140 : vector<2x256xf32> to vector<2x256xbf16>
    %c1_140 = arith.constant 1 : index
    %c0_141 = arith.constant 0 : index
    %c0_142 = arith.constant 0 : index
    %144 = vector.load %arg6[%c1_140, %c0_141, %c0_142] : memref<7x256x256xbf16, #tpu.memory_space<vmem>>, vector<1x256x256xbf16>
    %145 = vector.shape_cast %144 : vector<1x256x256xbf16> to vector<256x256xbf16>
    %cst_143 = arith.constant dense<0.000000e+00> : vector<2x256xf32>
    %146 = tpu.matmul %143, %145, %cst_143 {dimension_numbers = #tpu.dot_dimension_numbers<[1], [0], [0], [1], [0, 0, 1, 1], [], []>} : vector<2x256xbf16>, vector<256x256xbf16>, vector<2x256xf32> -> vector<2x256xf32>
    %147 = arith.addf %142, %146 : vector<2x256xf32>
    %148 = math.tanh %147 : vector<2x256xf32>
    %c2_144 = arith.constant 2 : index
    %c0_145 = arith.constant 0 : index
    %149 = vector.load %arg11[%c2_144, %c0_145] : memref<16x256xf32, #tpu.memory_space<vmem>>, vector<2x256xf32>
    tpu.vector_store %arg11[%c2_144, %c0_145], %148 {strides = array<i32>} : memref<16x256xf32, #tpu.memory_space<vmem>>, vector<2x256xf32>,
    %c4_146 = arith.constant 4 : index
    %c0_147 = arith.constant 0 : index
    %150 = vector.load %arg11[%c4_146, %c0_147] : memref<16x256xf32, #tpu.memory_space<vmem>>, vector<2x256xf32>
    %151 = arith.truncf %148 : vector<2x256xf32> to vector<2x256xbf16>
    %c1_148 = arith.constant 1 : index
    %c0_149 = arith.constant 0 : index
    %c0_150 = arith.constant 0 : index
    %152 = vector.load %arg6[%c1_148, %c0_149, %c0_150] : memref<7x256x256xbf16, #tpu.memory_space<vmem>>, vector<1x256x256xbf16>
    %153 = vector.shape_cast %152 : vector<1x256x256xbf16> to vector<256x256xbf16>
    %cst_151 = arith.constant dense<0.000000e+00> : vector<2x256xf32>
    %154 = tpu.matmul %151, %153, %cst_151 {dimension_numbers = #tpu.dot_dimension_numbers<[1], [0], [0], [1], [0, 0, 1, 1], [], []>} : vector<2x256xbf16>, vector<256x256xbf16>, vector<2x256xf32> -> vector<2x256xf32>
    %155 = arith.addf %150, %154 : vector<2x256xf32>
    %156 = math.tanh %155 : vector<2x256xf32>
    %c4_152 = arith.constant 4 : index
    %c0_153 = arith.constant 0 : index
    %157 = vector.load %arg11[%c4_152, %c0_153] : memref<16x256xf32, #tpu.memory_space<vmem>>, vector<2x256xf32>
    tpu.vector_store %arg11[%c4_152, %c0_153], %156 {strides = array<i32>} : memref<16x256xf32, #tpu.memory_space<vmem>>, vector<2x256xf32>,
    %c6_154 = arith.constant 6 : index
    %c0_155 = arith.constant 0 : index
    %158 = vector.load %arg11[%c6_154, %c0_155] : memref<16x256xf32, #tpu.memory_space<vmem>>, vector<2x256xf32>
    %159 = arith.truncf %156 : vector<2x256xf32> to vector<2x256xbf16>
    %c1_156 = arith.constant 1 : index
    %c0_157 = arith.constant 0 : index
    %c0_158 = arith.constant 0 : index
    %160 = vector.load %arg6[%c1_156, %c0_157, %c0_158] : memref<7x256x256xbf16, #tpu.memory_space<vmem>>, vector<1x256x256xbf16>
    %161 = vector.shape_cast %160 : vector<1x256x256xbf16> to vector<256x256xbf16>
    %cst_159 = arith.constant dense<0.000000e+00> : vector<2x256xf32>
    %162 = tpu.matmul %159, %161, %cst_159 {dimension_numbers = #tpu.dot_dimension_numbers<[1], [0], [0], [1], [0, 0, 1, 1], [], []>} : vector<2x256xbf16>, vector<256x256xbf16>, vector<2x256xf32> -> vector<2x256xf32>
    %163 = arith.addf %158, %162 : vector<2x256xf32>
    %164 = math.tanh %163 : vector<2x256xf32>
    %c6_160 = arith.constant 6 : index
    %c0_161 = arith.constant 0 : index
    %165 = vector.load %arg11[%c6_160, %c0_161] : memref<16x256xf32, #tpu.memory_space<vmem>>, vector<2x256xf32>
    tpu.vector_store %arg11[%c6_160, %c0_161], %164 {strides = array<i32>} : memref<16x256xf32, #tpu.memory_space<vmem>>, vector<2x256xf32>,
    %c8_162 = arith.constant 8 : index
    %c0_163 = arith.constant 0 : index
    %166 = vector.load %arg11[%c8_162, %c0_163] : memref<16x256xf32, #tpu.memory_space<vmem>>, vector<2x256xf32>
    %167 = arith.truncf %164 : vector<2x256xf32> to vector<2x256xbf16>
    %c1_164 = arith.constant 1 : index
    %c0_165 = arith.constant 0 : index
    %c0_166 = arith.constant 0 : index
    %168 = vector.load %arg6[%c1_164, %c0_165, %c0_166] : memref<7x256x256xbf16, #tpu.memory_space<vmem>>, vector<1x256x256xbf16>
    %169 = vector.shape_cast %168 : vector<1x256x256xbf16> to vector<256x256xbf16>
    %cst_167 = arith.constant dense<0.000000e+00> : vector<2x256xf32>
    %170 = tpu.matmul %167, %169, %cst_167 {dimension_numbers = #tpu.dot_dimension_numbers<[1], [0], [0], [1], [0, 0, 1, 1], [], []>} : vector<2x256xbf16>, vector<256x256xbf16>, vector<2x256xf32> -> vector<2x256xf32>
    %171 = arith.addf %166, %170 : vector<2x256xf32>
    %172 = math.tanh %171 : vector<2x256xf32>
    %c8_168 = arith.constant 8 : index
    %c0_169 = arith.constant 0 : index
    %173 = vector.load %arg11[%c8_168, %c0_169] : memref<16x256xf32, #tpu.memory_space<vmem>>, vector<2x256xf32>
    tpu.vector_store %arg11[%c8_168, %c0_169], %172 {strides = array<i32>} : memref<16x256xf32, #tpu.memory_space<vmem>>, vector<2x256xf32>,
    %c10_170 = arith.constant 10 : index
    %c0_171 = arith.constant 0 : index
    %174 = vector.load %arg11[%c10_170, %c0_171] : memref<16x256xf32, #tpu.memory_space<vmem>>, vector<2x256xf32>
    %175 = arith.truncf %172 : vector<2x256xf32> to vector<2x256xbf16>
    %c1_172 = arith.constant 1 : index
    %c0_173 = arith.constant 0 : index
    %c0_174 = arith.constant 0 : index
    %176 = vector.load %arg6[%c1_172, %c0_173, %c0_174] : memref<7x256x256xbf16, #tpu.memory_space<vmem>>, vector<1x256x256xbf16>
    %177 = vector.shape_cast %176 : vector<1x256x256xbf16> to vector<256x256xbf16>
    %cst_175 = arith.constant dense<0.000000e+00> : vector<2x256xf32>
    %178 = tpu.matmul %175, %177, %cst_175 {dimension_numbers = #tpu.dot_dimension_numbers<[1], [0], [0], [1], [0, 0, 1, 1], [], []>} : vector<2x256xbf16>, vector<256x256xbf16>, vector<2x256xf32> -> vector<2x256xf32>
    %179 = arith.addf %174, %178 : vector<2x256xf32>
    %180 = math.tanh %179 : vector<2x256xf32>
    %c10_176 = arith.constant 10 : index
    %c0_177 = arith.constant 0 : index
    %181 = vector.load %arg11[%c10_176, %c0_177] : memref<16x256xf32, #tpu.memory_space<vmem>>, vector<2x256xf32>
    tpu.vector_store %arg11[%c10_176, %c0_177], %180 {strides = array<i32>} : memref<16x256xf32, #tpu.memory_space<vmem>>, vector<2x256xf32>,
    %c12_178 = arith.constant 12 : index
    %c0_179 = arith.constant 0 : index
    %182 = vector.load %arg11[%c12_178, %c0_179] : memref<16x256xf32, #tpu.memory_space<vmem>>, vector<2x256xf32>
    %183 = arith.truncf %180 : vector<2x256xf32> to vector<2x256xbf16>
    %c1_180 = arith.constant 1 : index
    %c0_181 = arith.constant 0 : index
    %c0_182 = arith.constant 0 : index
    %184 = vector.load %arg6[%c1_180, %c0_181, %c0_182] : memref<7x256x256xbf16, #tpu.memory_space<vmem>>, vector<1x256x256xbf16>
    %185 = vector.shape_cast %184 : vector<1x256x256xbf16> to vector<256x256xbf16>
    %cst_183 = arith.constant dense<0.000000e+00> : vector<2x256xf32>
    %186 = tpu.matmul %183, %185, %cst_183 {dimension_numbers = #tpu.dot_dimension_numbers<[1], [0], [0], [1], [0, 0, 1, 1], [], []>} : vector<2x256xbf16>, vector<256x256xbf16>, vector<2x256xf32> -> vector<2x256xf32>
    %187 = arith.addf %182, %186 : vector<2x256xf32>
    %188 = math.tanh %187 : vector<2x256xf32>
    %c12_184 = arith.constant 12 : index
    %c0_185 = arith.constant 0 : index
    %189 = vector.load %arg11[%c12_184, %c0_185] : memref<16x256xf32, #tpu.memory_space<vmem>>, vector<2x256xf32>
    tpu.vector_store %arg11[%c12_184, %c0_185], %188 {strides = array<i32>} : memref<16x256xf32, #tpu.memory_space<vmem>>, vector<2x256xf32>,
    %c14_186 = arith.constant 14 : index
    %c0_187 = arith.constant 0 : index
    %190 = vector.load %arg11[%c14_186, %c0_187] : memref<16x256xf32, #tpu.memory_space<vmem>>, vector<2x256xf32>
    %191 = arith.truncf %188 : vector<2x256xf32> to vector<2x256xbf16>
    %c1_188 = arith.constant 1 : index
    %c0_189 = arith.constant 0 : index
    %c0_190 = arith.constant 0 : index
    %192 = vector.load %arg6[%c1_188, %c0_189, %c0_190] : memref<7x256x256xbf16, #tpu.memory_space<vmem>>, vector<1x256x256xbf16>
    %193 = vector.shape_cast %192 : vector<1x256x256xbf16> to vector<256x256xbf16>
    %cst_191 = arith.constant dense<0.000000e+00> : vector<2x256xf32>
    %194 = tpu.matmul %191, %193, %cst_191 {dimension_numbers = #tpu.dot_dimension_numbers<[1], [0], [0], [1], [0, 0, 1, 1], [], []>} : vector<2x256xbf16>, vector<256x256xbf16>, vector<2x256xf32> -> vector<2x256xf32>
    %195 = arith.addf %190, %194 : vector<2x256xf32>
    %196 = math.tanh %195 : vector<2x256xf32>
    %c14_192 = arith.constant 14 : index
    %c0_193 = arith.constant 0 : index
    %197 = vector.load %arg11[%c14_192, %c0_193] : memref<16x256xf32, #tpu.memory_space<vmem>>, vector<2x256xf32>
    tpu.vector_store %arg11[%c14_192, %c0_193], %196 {strides = array<i32>} : memref<16x256xf32, #tpu.memory_space<vmem>>, vector<2x256xf32>,
    %c0_194 = arith.constant 0 : index
    %c0_195 = arith.constant 0 : index
    %198 = vector.load %arg11[%c0_194, %c0_195] : memref<16x256xf32, #tpu.memory_space<vmem>>, vector<16x256xf32>
    %199 = arith.truncf %198 : vector<16x256xf32> to vector<16x256xbf16>
    %c2_196 = arith.constant 2 : index
    %c0_197 = arith.constant 0 : index
    %c0_198 = arith.constant 0 : index
    %200 = vector.load %arg5[%c2_196, %c0_197, %c0_198] : memref<7x256x256xbf16, #tpu.memory_space<vmem>>, vector<1x256x256xbf16>
    %201 = vector.shape_cast %200 : vector<1x256x256xbf16> to vector<256x256xbf16>
    %cst_199 = arith.constant dense<0.000000e+00> : vector<16x256xf32>
    %202 = tpu.matmul %199, %201, %cst_199 {dimension_numbers = #tpu.dot_dimension_numbers<[1], [0], [0], [1], [0, 0, 1, 1], [], []>} : vector<16x256xbf16>, vector<256x256xbf16>, vector<16x256xf32> -> vector<16x256xf32>
    %c2_200 = arith.constant 2 : index
    %c0_201 = arith.constant 0 : index
    %c0_202 = arith.constant 0 : index
    %203 = vector.load %arg7[%c2_200, %c0_201, %c0_202] : memref<7x1x256xf32, #tpu.memory_space<vmem>>, vector<1x1x256xf32>
    %204 = vector.shape_cast %203 : vector<1x1x256xf32> to vector<1x256xf32>
    %205 = vector.broadcast %204 : vector<1x256xf32> to vector<16x256xf32>
    %206 = arith.addf %202, %205 : vector<16x256xf32>
    %c0_203 = arith.constant 0 : index
    %c0_204 = arith.constant 0 : index
    %207 = vector.load %arg11[%c0_203, %c0_204] : memref<16x256xf32, #tpu.memory_space<vmem>>, vector<16x256xf32>
    tpu.vector_store %arg11[%c0_203, %c0_204], %206 {strides = array<i32>} : memref<16x256xf32, #tpu.memory_space<vmem>>, vector<16x256xf32>,
    %c0_205 = arith.constant 0 : index
    %c0_206 = arith.constant 0 : index
    %208 = vector.load %arg11[%c0_205, %c0_206] : memref<16x256xf32, #tpu.memory_space<vmem>>, vector<2x256xf32>
    %209 = math.tanh %208 : vector<2x256xf32>
    %c0_207 = arith.constant 0 : index
    %c0_208 = arith.constant 0 : index
    %210 = vector.load %arg11[%c0_207, %c0_208] : memref<16x256xf32, #tpu.memory_space<vmem>>, vector<2x256xf32>
    tpu.vector_store %arg11[%c0_207, %c0_208], %209 {strides = array<i32>} : memref<16x256xf32, #tpu.memory_space<vmem>>, vector<2x256xf32>,
    %c2_209 = arith.constant 2 : index
    %c0_210 = arith.constant 0 : index
    %211 = vector.load %arg11[%c2_209, %c0_210] : memref<16x256xf32, #tpu.memory_space<vmem>>, vector<2x256xf32>
    %212 = arith.truncf %209 : vector<2x256xf32> to vector<2x256xbf16>
    %c2_211 = arith.constant 2 : index
    %c0_212 = arith.constant 0 : index
    %c0_213 = arith.constant 0 : index
    %213 = vector.load %arg6[%c2_211, %c0_212, %c0_213] : memref<7x256x256xbf16, #tpu.memory_space<vmem>>, vector<1x256x256xbf16>
    %214 = vector.shape_cast %213 : vector<1x256x256xbf16> to vector<256x256xbf16>
    %cst_214 = arith.constant dense<0.000000e+00> : vector<2x256xf32>
    %215 = tpu.matmul %212, %214, %cst_214 {dimension_numbers = #tpu.dot_dimension_numbers<[1], [0], [0], [1], [0, 0, 1, 1], [], []>} : vector<2x256xbf16>, vector<256x256xbf16>, vector<2x256xf32> -> vector<2x256xf32>
    %216 = arith.addf %211, %215 : vector<2x256xf32>
    %217 = math.tanh %216 : vector<2x256xf32>
    %c2_215 = arith.constant 2 : index
    %c0_216 = arith.constant 0 : index
    %218 = vector.load %arg11[%c2_215, %c0_216] : memref<16x256xf32, #tpu.memory_space<vmem>>, vector<2x256xf32>
    tpu.vector_store %arg11[%c2_215, %c0_216], %217 {strides = array<i32>} : memref<16x256xf32, #tpu.memory_space<vmem>>, vector<2x256xf32>,
    %c4_217 = arith.constant 4 : index
    %c0_218 = arith.constant 0 : index
    %219 = vector.load %arg11[%c4_217, %c0_218] : memref<16x256xf32, #tpu.memory_space<vmem>>, vector<2x256xf32>
    %220 = arith.truncf %217 : vector<2x256xf32> to vector<2x256xbf16>
    %c2_219 = arith.constant 2 : index
    %c0_220 = arith.constant 0 : index
    %c0_221 = arith.constant 0 : index
    %221 = vector.load %arg6[%c2_219, %c0_220, %c0_221] : memref<7x256x256xbf16, #tpu.memory_space<vmem>>, vector<1x256x256xbf16>
    %222 = vector.shape_cast %221 : vector<1x256x256xbf16> to vector<256x256xbf16>
    %cst_222 = arith.constant dense<0.000000e+00> : vector<2x256xf32>
    %223 = tpu.matmul %220, %222, %cst_222 {dimension_numbers = #tpu.dot_dimension_numbers<[1], [0], [0], [1], [0, 0, 1, 1], [], []>} : vector<2x256xbf16>, vector<256x256xbf16>, vector<2x256xf32> -> vector<2x256xf32>
    %224 = arith.addf %219, %223 : vector<2x256xf32>
    %225 = math.tanh %224 : vector<2x256xf32>
    %c4_223 = arith.constant 4 : index
    %c0_224 = arith.constant 0 : index
    %226 = vector.load %arg11[%c4_223, %c0_224] : memref<16x256xf32, #tpu.memory_space<vmem>>, vector<2x256xf32>
    tpu.vector_store %arg11[%c4_223, %c0_224], %225 {strides = array<i32>} : memref<16x256xf32, #tpu.memory_space<vmem>>, vector<2x256xf32>,
    %c6_225 = arith.constant 6 : index
    %c0_226 = arith.constant 0 : index
    %227 = vector.load %arg11[%c6_225, %c0_226] : memref<16x256xf32, #tpu.memory_space<vmem>>, vector<2x256xf32>
    %228 = arith.truncf %225 : vector<2x256xf32> to vector<2x256xbf16>
    %c2_227 = arith.constant 2 : index
    %c0_228 = arith.constant 0 : index
    %c0_229 = arith.constant 0 : index
    %229 = vector.load %arg6[%c2_227, %c0_228, %c0_229] : memref<7x256x256xbf16, #tpu.memory_space<vmem>>, vector<1x256x256xbf16>
    %230 = vector.shape_cast %229 : vector<1x256x256xbf16> to vector<256x256xbf16>
    %cst_230 = arith.constant dense<0.000000e+00> : vector<2x256xf32>
    %231 = tpu.matmul %228, %230, %cst_230 {dimension_numbers = #tpu.dot_dimension_numbers<[1], [0], [0], [1], [0, 0, 1, 1], [], []>} : vector<2x256xbf16>, vector<256x256xbf16>, vector<2x256xf32> -> vector<2x256xf32>
    %232 = arith.addf %227, %231 : vector<2x256xf32>
    %233 = math.tanh %232 : vector<2x256xf32>
    %c6_231 = arith.constant 6 : index
    %c0_232 = arith.constant 0 : index
    %234 = vector.load %arg11[%c6_231, %c0_232] : memref<16x256xf32, #tpu.memory_space<vmem>>, vector<2x256xf32>
    tpu.vector_store %arg11[%c6_231, %c0_232], %233 {strides = array<i32>} : memref<16x256xf32, #tpu.memory_space<vmem>>, vector<2x256xf32>,
    %c8_233 = arith.constant 8 : index
    %c0_234 = arith.constant 0 : index
    %235 = vector.load %arg11[%c8_233, %c0_234] : memref<16x256xf32, #tpu.memory_space<vmem>>, vector<2x256xf32>
    %236 = arith.truncf %233 : vector<2x256xf32> to vector<2x256xbf16>
    %c2_235 = arith.constant 2 : index
    %c0_236 = arith.constant 0 : index
    %c0_237 = arith.constant 0 : index
    %237 = vector.load %arg6[%c2_235, %c0_236, %c0_237] : memref<7x256x256xbf16, #tpu.memory_space<vmem>>, vector<1x256x256xbf16>
    %238 = vector.shape_cast %237 : vector<1x256x256xbf16> to vector<256x256xbf16>
    %cst_238 = arith.constant dense<0.000000e+00> : vector<2x256xf32>
    %239 = tpu.matmul %236, %238, %cst_238 {dimension_numbers = #tpu.dot_dimension_numbers<[1], [0], [0], [1], [0, 0, 1, 1], [], []>} : vector<2x256xbf16>, vector<256x256xbf16>, vector<2x256xf32> -> vector<2x256xf32>
    %240 = arith.addf %235, %239 : vector<2x256xf32>
    %241 = math.tanh %240 : vector<2x256xf32>
    %c8_239 = arith.constant 8 : index
    %c0_240 = arith.constant 0 : index
    %242 = vector.load %arg11[%c8_239, %c0_240] : memref<16x256xf32, #tpu.memory_space<vmem>>, vector<2x256xf32>
    tpu.vector_store %arg11[%c8_239, %c0_240], %241 {strides = array<i32>} : memref<16x256xf32, #tpu.memory_space<vmem>>, vector<2x256xf32>,
    %c10_241 = arith.constant 10 : index
    %c0_242 = arith.constant 0 : index
    %243 = vector.load %arg11[%c10_241, %c0_242] : memref<16x256xf32, #tpu.memory_space<vmem>>, vector<2x256xf32>
    %244 = arith.truncf %241 : vector<2x256xf32> to vector<2x256xbf16>
    %c2_243 = arith.constant 2 : index
    %c0_244 = arith.constant 0 : index
    %c0_245 = arith.constant 0 : index
    %245 = vector.load %arg6[%c2_243, %c0_244, %c0_245] : memref<7x256x256xbf16, #tpu.memory_space<vmem>>, vector<1x256x256xbf16>
    %246 = vector.shape_cast %245 : vector<1x256x256xbf16> to vector<256x256xbf16>
    %cst_246 = arith.constant dense<0.000000e+00> : vector<2x256xf32>
    %247 = tpu.matmul %244, %246, %cst_246 {dimension_numbers = #tpu.dot_dimension_numbers<[1], [0], [0], [1], [0, 0, 1, 1], [], []>} : vector<2x256xbf16>, vector<256x256xbf16>, vector<2x256xf32> -> vector<2x256xf32>
    %248 = arith.addf %243, %247 : vector<2x256xf32>
    %249 = math.tanh %248 : vector<2x256xf32>
    %c10_247 = arith.constant 10 : index
    %c0_248 = arith.constant 0 : index
    %250 = vector.load %arg11[%c10_247, %c0_248] : memref<16x256xf32, #tpu.memory_space<vmem>>, vector<2x256xf32>
    tpu.vector_store %arg11[%c10_247, %c0_248], %249 {strides = array<i32>} : memref<16x256xf32, #tpu.memory_space<vmem>>, vector<2x256xf32>,
    %c12_249 = arith.constant 12 : index
    %c0_250 = arith.constant 0 : index
    %251 = vector.load %arg11[%c12_249, %c0_250] : memref<16x256xf32, #tpu.memory_space<vmem>>, vector<2x256xf32>
    %252 = arith.truncf %249 : vector<2x256xf32> to vector<2x256xbf16>
    %c2_251 = arith.constant 2 : index
    %c0_252 = arith.constant 0 : index
    %c0_253 = arith.constant 0 : index
    %253 = vector.load %arg6[%c2_251, %c0_252, %c0_253] : memref<7x256x256xbf16, #tpu.memory_space<vmem>>, vector<1x256x256xbf16>
    %254 = vector.shape_cast %253 : vector<1x256x256xbf16> to vector<256x256xbf16>
    %cst_254 = arith.constant dense<0.000000e+00> : vector<2x256xf32>
    %255 = tpu.matmul %252, %254, %cst_254 {dimension_numbers = #tpu.dot_dimension_numbers<[1], [0], [0], [1], [0, 0, 1, 1], [], []>} : vector<2x256xbf16>, vector<256x256xbf16>, vector<2x256xf32> -> vector<2x256xf32>
    %256 = arith.addf %251, %255 : vector<2x256xf32>
    %257 = math.tanh %256 : vector<2x256xf32>
    %c12_255 = arith.constant 12 : index
    %c0_256 = arith.constant 0 : index
    %258 = vector.load %arg11[%c12_255, %c0_256] : memref<16x256xf32, #tpu.memory_space<vmem>>, vector<2x256xf32>
    tpu.vector_store %arg11[%c12_255, %c0_256], %257 {strides = array<i32>} : memref<16x256xf32, #tpu.memory_space<vmem>>, vector<2x256xf32>,
    %c14_257 = arith.constant 14 : index
    %c0_258 = arith.constant 0 : index
    %259 = vector.load %arg11[%c14_257, %c0_258] : memref<16x256xf32, #tpu.memory_space<vmem>>, vector<2x256xf32>
    %260 = arith.truncf %257 : vector<2x256xf32> to vector<2x256xbf16>
    %c2_259 = arith.constant 2 : index
    %c0_260 = arith.constant 0 : index
    %c0_261 = arith.constant 0 : index
    %261 = vector.load %arg6[%c2_259, %c0_260, %c0_261] : memref<7x256x256xbf16, #tpu.memory_space<vmem>>, vector<1x256x256xbf16>
    %262 = vector.shape_cast %261 : vector<1x256x256xbf16> to vector<256x256xbf16>
    %cst_262 = arith.constant dense<0.000000e+00> : vector<2x256xf32>
    %263 = tpu.matmul %260, %262, %cst_262 {dimension_numbers = #tpu.dot_dimension_numbers<[1], [0], [0], [1], [0, 0, 1, 1], [], []>} : vector<2x256xbf16>, vector<256x256xbf16>, vector<2x256xf32> -> vector<2x256xf32>
    %264 = arith.addf %259, %263 : vector<2x256xf32>
    %265 = math.tanh %264 : vector<2x256xf32>
    %c14_263 = arith.constant 14 : index
    %c0_264 = arith.constant 0 : index
    %266 = vector.load %arg11[%c14_263, %c0_264] : memref<16x256xf32, #tpu.memory_space<vmem>>, vector<2x256xf32>
    tpu.vector_store %arg11[%c14_263, %c0_264], %265 {strides = array<i32>} : memref<16x256xf32, #tpu.memory_space<vmem>>, vector<2x256xf32>,
    %c0_265 = arith.constant 0 : index
    %c0_266 = arith.constant 0 : index
    %267 = vector.load %arg11[%c0_265, %c0_266] : memref<16x256xf32, #tpu.memory_space<vmem>>, vector<16x256xf32>
    %268 = arith.truncf %267 : vector<16x256xf32> to vector<16x256xbf16>
    %c3 = arith.constant 3 : index
    %c0_267 = arith.constant 0 : index
    %c0_268 = arith.constant 0 : index
    %269 = vector.load %arg5[%c3, %c0_267, %c0_268] : memref<7x256x256xbf16, #tpu.memory_space<vmem>>, vector<1x256x256xbf16>
    %270 = vector.shape_cast %269 : vector<1x256x256xbf16> to vector<256x256xbf16>
    %cst_269 = arith.constant dense<0.000000e+00> : vector<16x256xf32>
    %271 = tpu.matmul %268, %270, %cst_269 {dimension_numbers = #tpu.dot_dimension_numbers<[1], [0], [0], [1], [0, 0, 1, 1], [], []>} : vector<16x256xbf16>, vector<256x256xbf16>, vector<16x256xf32> -> vector<16x256xf32>
    %c3_270 = arith.constant 3 : index
    %c0_271 = arith.constant 0 : index
    %c0_272 = arith.constant 0 : index
    %272 = vector.load %arg7[%c3_270, %c0_271, %c0_272] : memref<7x1x256xf32, #tpu.memory_space<vmem>>, vector<1x1x256xf32>
    %273 = vector.shape_cast %272 : vector<1x1x256xf32> to vector<1x256xf32>
    %274 = vector.broadcast %273 : vector<1x256xf32> to vector<16x256xf32>
    %275 = arith.addf %271, %274 : vector<16x256xf32>
    %c0_273 = arith.constant 0 : index
    %c0_274 = arith.constant 0 : index
    %276 = vector.load %arg11[%c0_273, %c0_274] : memref<16x256xf32, #tpu.memory_space<vmem>>, vector<16x256xf32>
    tpu.vector_store %arg11[%c0_273, %c0_274], %275 {strides = array<i32>} : memref<16x256xf32, #tpu.memory_space<vmem>>, vector<16x256xf32>,
    %c0_275 = arith.constant 0 : index
    %c0_276 = arith.constant 0 : index
    %277 = vector.load %arg11[%c0_275, %c0_276] : memref<16x256xf32, #tpu.memory_space<vmem>>, vector<2x256xf32>
    %278 = math.tanh %277 : vector<2x256xf32>
    %c0_277 = arith.constant 0 : index
    %c0_278 = arith.constant 0 : index
    %279 = vector.load %arg11[%c0_277, %c0_278] : memref<16x256xf32, #tpu.memory_space<vmem>>, vector<2x256xf32>
    tpu.vector_store %arg11[%c0_277, %c0_278], %278 {strides = array<i32>} : memref<16x256xf32, #tpu.memory_space<vmem>>, vector<2x256xf32>,
    %c2_279 = arith.constant 2 : index
    %c0_280 = arith.constant 0 : index
    %280 = vector.load %arg11[%c2_279, %c0_280] : memref<16x256xf32, #tpu.memory_space<vmem>>, vector<2x256xf32>
    %281 = arith.truncf %278 : vector<2x256xf32> to vector<2x256xbf16>
    %c3_281 = arith.constant 3 : index
    %c0_282 = arith.constant 0 : index
    %c0_283 = arith.constant 0 : index
    %282 = vector.load %arg6[%c3_281, %c0_282, %c0_283] : memref<7x256x256xbf16, #tpu.memory_space<vmem>>, vector<1x256x256xbf16>
    %283 = vector.shape_cast %282 : vector<1x256x256xbf16> to vector<256x256xbf16>
    %cst_284 = arith.constant dense<0.000000e+00> : vector<2x256xf32>
    %284 = tpu.matmul %281, %283, %cst_284 {dimension_numbers = #tpu.dot_dimension_numbers<[1], [0], [0], [1], [0, 0, 1, 1], [], []>} : vector<2x256xbf16>, vector<256x256xbf16>, vector<2x256xf32> -> vector<2x256xf32>
    %285 = arith.addf %280, %284 : vector<2x256xf32>
    %286 = math.tanh %285 : vector<2x256xf32>
    %c2_285 = arith.constant 2 : index
    %c0_286 = arith.constant 0 : index
    %287 = vector.load %arg11[%c2_285, %c0_286] : memref<16x256xf32, #tpu.memory_space<vmem>>, vector<2x256xf32>
    tpu.vector_store %arg11[%c2_285, %c0_286], %286 {strides = array<i32>} : memref<16x256xf32, #tpu.memory_space<vmem>>, vector<2x256xf32>,
    %c4_287 = arith.constant 4 : index
    %c0_288 = arith.constant 0 : index
    %288 = vector.load %arg11[%c4_287, %c0_288] : memref<16x256xf32, #tpu.memory_space<vmem>>, vector<2x256xf32>
    %289 = arith.truncf %286 : vector<2x256xf32> to vector<2x256xbf16>
    %c3_289 = arith.constant 3 : index
    %c0_290 = arith.constant 0 : index
    %c0_291 = arith.constant 0 : index
    %290 = vector.load %arg6[%c3_289, %c0_290, %c0_291] : memref<7x256x256xbf16, #tpu.memory_space<vmem>>, vector<1x256x256xbf16>
    %291 = vector.shape_cast %290 : vector<1x256x256xbf16> to vector<256x256xbf16>
    %cst_292 = arith.constant dense<0.000000e+00> : vector<2x256xf32>
    %292 = tpu.matmul %289, %291, %cst_292 {dimension_numbers = #tpu.dot_dimension_numbers<[1], [0], [0], [1], [0, 0, 1, 1], [], []>} : vector<2x256xbf16>, vector<256x256xbf16>, vector<2x256xf32> -> vector<2x256xf32>
    %293 = arith.addf %288, %292 : vector<2x256xf32>
    %294 = math.tanh %293 : vector<2x256xf32>
    %c4_293 = arith.constant 4 : index
    %c0_294 = arith.constant 0 : index
    %295 = vector.load %arg11[%c4_293, %c0_294] : memref<16x256xf32, #tpu.memory_space<vmem>>, vector<2x256xf32>
    tpu.vector_store %arg11[%c4_293, %c0_294], %294 {strides = array<i32>} : memref<16x256xf32, #tpu.memory_space<vmem>>, vector<2x256xf32>,
    %c6_295 = arith.constant 6 : index
    %c0_296 = arith.constant 0 : index
    %296 = vector.load %arg11[%c6_295, %c0_296] : memref<16x256xf32, #tpu.memory_space<vmem>>, vector<2x256xf32>
    %297 = arith.truncf %294 : vector<2x256xf32> to vector<2x256xbf16>
    %c3_297 = arith.constant 3 : index
    %c0_298 = arith.constant 0 : index
    %c0_299 = arith.constant 0 : index
    %298 = vector.load %arg6[%c3_297, %c0_298, %c0_299] : memref<7x256x256xbf16, #tpu.memory_space<vmem>>, vector<1x256x256xbf16>
    %299 = vector.shape_cast %298 : vector<1x256x256xbf16> to vector<256x256xbf16>
    %cst_300 = arith.constant dense<0.000000e+00> : vector<2x256xf32>
    %300 = tpu.matmul %297, %299, %cst_300 {dimension_numbers = #tpu.dot_dimension_numbers<[1], [0], [0], [1], [0, 0, 1, 1], [], []>} : vector<2x256xbf16>, vector<256x256xbf16>, vector<2x256xf32> -> vector<2x256xf32>
    %301 = arith.addf %296, %300 : vector<2x256xf32>
    %302 = math.tanh %301 : vector<2x256xf32>
    %c6_301 = arith.constant 6 : index
    %c0_302 = arith.constant 0 : index
    %303 = vector.load %arg11[%c6_301, %c0_302] : memref<16x256xf32, #tpu.memory_space<vmem>>, vector<2x256xf32>
    tpu.vector_store %arg11[%c6_301, %c0_302], %302 {strides = array<i32>} : memref<16x256xf32, #tpu.memory_space<vmem>>, vector<2x256xf32>,
    %c8_303 = arith.constant 8 : index
    %c0_304 = arith.constant 0 : index
    %304 = vector.load %arg11[%c8_303, %c0_304] : memref<16x256xf32, #tpu.memory_space<vmem>>, vector<2x256xf32>
    %305 = arith.truncf %302 : vector<2x256xf32> to vector<2x256xbf16>
    %c3_305 = arith.constant 3 : index
    %c0_306 = arith.constant 0 : index
    %c0_307 = arith.constant 0 : index
    %306 = vector.load %arg6[%c3_305, %c0_306, %c0_307] : memref<7x256x256xbf16, #tpu.memory_space<vmem>>, vector<1x256x256xbf16>
    %307 = vector.shape_cast %306 : vector<1x256x256xbf16> to vector<256x256xbf16>
    %cst_308 = arith.constant dense<0.000000e+00> : vector<2x256xf32>
    %308 = tpu.matmul %305, %307, %cst_308 {dimension_numbers = #tpu.dot_dimension_numbers<[1], [0], [0], [1], [0, 0, 1, 1], [], []>} : vector<2x256xbf16>, vector<256x256xbf16>, vector<2x256xf32> -> vector<2x256xf32>
    %309 = arith.addf %304, %308 : vector<2x256xf32>
    %310 = math.tanh %309 : vector<2x256xf32>
    %c8_309 = arith.constant 8 : index
    %c0_310 = arith.constant 0 : index
    %311 = vector.load %arg11[%c8_309, %c0_310] : memref<16x256xf32, #tpu.memory_space<vmem>>, vector<2x256xf32>
    tpu.vector_store %arg11[%c8_309, %c0_310], %310 {strides = array<i32>} : memref<16x256xf32, #tpu.memory_space<vmem>>, vector<2x256xf32>,
    %c10_311 = arith.constant 10 : index
    %c0_312 = arith.constant 0 : index
    %312 = vector.load %arg11[%c10_311, %c0_312] : memref<16x256xf32, #tpu.memory_space<vmem>>, vector<2x256xf32>
    %313 = arith.truncf %310 : vector<2x256xf32> to vector<2x256xbf16>
    %c3_313 = arith.constant 3 : index
    %c0_314 = arith.constant 0 : index
    %c0_315 = arith.constant 0 : index
    %314 = vector.load %arg6[%c3_313, %c0_314, %c0_315] : memref<7x256x256xbf16, #tpu.memory_space<vmem>>, vector<1x256x256xbf16>
    %315 = vector.shape_cast %314 : vector<1x256x256xbf16> to vector<256x256xbf16>
    %cst_316 = arith.constant dense<0.000000e+00> : vector<2x256xf32>
    %316 = tpu.matmul %313, %315, %cst_316 {dimension_numbers = #tpu.dot_dimension_numbers<[1], [0], [0], [1], [0, 0, 1, 1], [], []>} : vector<2x256xbf16>, vector<256x256xbf16>, vector<2x256xf32> -> vector<2x256xf32>
    %317 = arith.addf %312, %316 : vector<2x256xf32>
    %318 = math.tanh %317 : vector<2x256xf32>
    %c10_317 = arith.constant 10 : index
    %c0_318 = arith.constant 0 : index
    %319 = vector.load %arg11[%c10_317, %c0_318] : memref<16x256xf32, #tpu.memory_space<vmem>>, vector<2x256xf32>
    tpu.vector_store %arg11[%c10_317, %c0_318], %318 {strides = array<i32>} : memref<16x256xf32, #tpu.memory_space<vmem>>, vector<2x256xf32>,
    %c12_319 = arith.constant 12 : index
    %c0_320 = arith.constant 0 : index
    %320 = vector.load %arg11[%c12_319, %c0_320] : memref<16x256xf32, #tpu.memory_space<vmem>>, vector<2x256xf32>
    %321 = arith.truncf %318 : vector<2x256xf32> to vector<2x256xbf16>
    %c3_321 = arith.constant 3 : index
    %c0_322 = arith.constant 0 : index
    %c0_323 = arith.constant 0 : index
    %322 = vector.load %arg6[%c3_321, %c0_322, %c0_323] : memref<7x256x256xbf16, #tpu.memory_space<vmem>>, vector<1x256x256xbf16>
    %323 = vector.shape_cast %322 : vector<1x256x256xbf16> to vector<256x256xbf16>
    %cst_324 = arith.constant dense<0.000000e+00> : vector<2x256xf32>
    %324 = tpu.matmul %321, %323, %cst_324 {dimension_numbers = #tpu.dot_dimension_numbers<[1], [0], [0], [1], [0, 0, 1, 1], [], []>} : vector<2x256xbf16>, vector<256x256xbf16>, vector<2x256xf32> -> vector<2x256xf32>
    %325 = arith.addf %320, %324 : vector<2x256xf32>
    %326 = math.tanh %325 : vector<2x256xf32>
    %c12_325 = arith.constant 12 : index
    %c0_326 = arith.constant 0 : index
    %327 = vector.load %arg11[%c12_325, %c0_326] : memref<16x256xf32, #tpu.memory_space<vmem>>, vector<2x256xf32>
    tpu.vector_store %arg11[%c12_325, %c0_326], %326 {strides = array<i32>} : memref<16x256xf32, #tpu.memory_space<vmem>>, vector<2x256xf32>,
    %c14_327 = arith.constant 14 : index
    %c0_328 = arith.constant 0 : index
    %328 = vector.load %arg11[%c14_327, %c0_328] : memref<16x256xf32, #tpu.memory_space<vmem>>, vector<2x256xf32>
    %329 = arith.truncf %326 : vector<2x256xf32> to vector<2x256xbf16>
    %c3_329 = arith.constant 3 : index
    %c0_330 = arith.constant 0 : index
    %c0_331 = arith.constant 0 : index
    %330 = vector.load %arg6[%c3_329, %c0_330, %c0_331] : memref<7x256x256xbf16, #tpu.memory_space<vmem>>, vector<1x256x256xbf16>
    %331 = vector.shape_cast %330 : vector<1x256x256xbf16> to vector<256x256xbf16>
    %cst_332 = arith.constant dense<0.000000e+00> : vector<2x256xf32>
    %332 = tpu.matmul %329, %331, %cst_332 {dimension_numbers = #tpu.dot_dimension_numbers<[1], [0], [0], [1], [0, 0, 1, 1], [], []>} : vector<2x256xbf16>, vector<256x256xbf16>, vector<2x256xf32> -> vector<2x256xf32>
    %333 = arith.addf %328, %332 : vector<2x256xf32>
    %334 = math.tanh %333 : vector<2x256xf32>
    %c14_333 = arith.constant 14 : index
    %c0_334 = arith.constant 0 : index
    %335 = vector.load %arg11[%c14_333, %c0_334] : memref<16x256xf32, #tpu.memory_space<vmem>>, vector<2x256xf32>
    tpu.vector_store %arg11[%c14_333, %c0_334], %334 {strides = array<i32>} : memref<16x256xf32, #tpu.memory_space<vmem>>, vector<2x256xf32>,
    %c0_335 = arith.constant 0 : index
    %c0_336 = arith.constant 0 : index
    %336 = vector.load %arg11[%c0_335, %c0_336] : memref<16x256xf32, #tpu.memory_space<vmem>>, vector<16x256xf32>
    %337 = arith.truncf %336 : vector<16x256xf32> to vector<16x256xbf16>
    %c4_337 = arith.constant 4 : index
    %c0_338 = arith.constant 0 : index
    %c0_339 = arith.constant 0 : index
    %338 = vector.load %arg5[%c4_337, %c0_338, %c0_339] : memref<7x256x256xbf16, #tpu.memory_space<vmem>>, vector<1x256x256xbf16>
    %339 = vector.shape_cast %338 : vector<1x256x256xbf16> to vector<256x256xbf16>
    %cst_340 = arith.constant dense<0.000000e+00> : vector<16x256xf32>
    %340 = tpu.matmul %337, %339, %cst_340 {dimension_numbers = #tpu.dot_dimension_numbers<[1], [0], [0], [1], [0, 0, 1, 1], [], []>} : vector<16x256xbf16>, vector<256x256xbf16>, vector<16x256xf32> -> vector<16x256xf32>
    %c4_341 = arith.constant 4 : index
    %c0_342 = arith.constant 0 : index
    %c0_343 = arith.constant 0 : index
    %341 = vector.load %arg7[%c4_341, %c0_342, %c0_343] : memref<7x1x256xf32, #tpu.memory_space<vmem>>, vector<1x1x256xf32>
    %342 = vector.shape_cast %341 : vector<1x1x256xf32> to vector<1x256xf32>
    %343 = vector.broadcast %342 : vector<1x256xf32> to vector<16x256xf32>
    %344 = arith.addf %340, %343 : vector<16x256xf32>
    %c0_344 = arith.constant 0 : index
    %c0_345 = arith.constant 0 : index
    %345 = vector.load %arg11[%c0_344, %c0_345] : memref<16x256xf32, #tpu.memory_space<vmem>>, vector<16x256xf32>
    tpu.vector_store %arg11[%c0_344, %c0_345], %344 {strides = array<i32>} : memref<16x256xf32, #tpu.memory_space<vmem>>, vector<16x256xf32>,
    %c0_346 = arith.constant 0 : index
    %c0_347 = arith.constant 0 : index
    %346 = vector.load %arg11[%c0_346, %c0_347] : memref<16x256xf32, #tpu.memory_space<vmem>>, vector<2x256xf32>
    %347 = math.tanh %346 : vector<2x256xf32>
    %c0_348 = arith.constant 0 : index
    %c0_349 = arith.constant 0 : index
    %348 = vector.load %arg11[%c0_348, %c0_349] : memref<16x256xf32, #tpu.memory_space<vmem>>, vector<2x256xf32>
    tpu.vector_store %arg11[%c0_348, %c0_349], %347 {strides = array<i32>} : memref<16x256xf32, #tpu.memory_space<vmem>>, vector<2x256xf32>,
    %c2_350 = arith.constant 2 : index
    %c0_351 = arith.constant 0 : index
    %349 = vector.load %arg11[%c2_350, %c0_351] : memref<16x256xf32, #tpu.memory_space<vmem>>, vector<2x256xf32>
    %350 = arith.truncf %347 : vector<2x256xf32> to vector<2x256xbf16>
    %c4_352 = arith.constant 4 : index
    %c0_353 = arith.constant 0 : index
    %c0_354 = arith.constant 0 : index
    %351 = vector.load %arg6[%c4_352, %c0_353, %c0_354] : memref<7x256x256xbf16, #tpu.memory_space<vmem>>, vector<1x256x256xbf16>
    %352 = vector.shape_cast %351 : vector<1x256x256xbf16> to vector<256x256xbf16>
    %cst_355 = arith.constant dense<0.000000e+00> : vector<2x256xf32>
    %353 = tpu.matmul %350, %352, %cst_355 {dimension_numbers = #tpu.dot_dimension_numbers<[1], [0], [0], [1], [0, 0, 1, 1], [], []>} : vector<2x256xbf16>, vector<256x256xbf16>, vector<2x256xf32> -> vector<2x256xf32>
    %354 = arith.addf %349, %353 : vector<2x256xf32>
    %355 = math.tanh %354 : vector<2x256xf32>
    %c2_356 = arith.constant 2 : index
    %c0_357 = arith.constant 0 : index
    %356 = vector.load %arg11[%c2_356, %c0_357] : memref<16x256xf32, #tpu.memory_space<vmem>>, vector<2x256xf32>
    tpu.vector_store %arg11[%c2_356, %c0_357], %355 {strides = array<i32>} : memref<16x256xf32, #tpu.memory_space<vmem>>, vector<2x256xf32>,
    %c4_358 = arith.constant 4 : index
    %c0_359 = arith.constant 0 : index
    %357 = vector.load %arg11[%c4_358, %c0_359] : memref<16x256xf32, #tpu.memory_space<vmem>>, vector<2x256xf32>
    %358 = arith.truncf %355 : vector<2x256xf32> to vector<2x256xbf16>
    %c4_360 = arith.constant 4 : index
    %c0_361 = arith.constant 0 : index
    %c0_362 = arith.constant 0 : index
    %359 = vector.load %arg6[%c4_360, %c0_361, %c0_362] : memref<7x256x256xbf16, #tpu.memory_space<vmem>>, vector<1x256x256xbf16>
    %360 = vector.shape_cast %359 : vector<1x256x256xbf16> to vector<256x256xbf16>
    %cst_363 = arith.constant dense<0.000000e+00> : vector<2x256xf32>
    %361 = tpu.matmul %358, %360, %cst_363 {dimension_numbers = #tpu.dot_dimension_numbers<[1], [0], [0], [1], [0, 0, 1, 1], [], []>} : vector<2x256xbf16>, vector<256x256xbf16>, vector<2x256xf32> -> vector<2x256xf32>
    %362 = arith.addf %357, %361 : vector<2x256xf32>
    %363 = math.tanh %362 : vector<2x256xf32>
    %c4_364 = arith.constant 4 : index
    %c0_365 = arith.constant 0 : index
    %364 = vector.load %arg11[%c4_364, %c0_365] : memref<16x256xf32, #tpu.memory_space<vmem>>, vector<2x256xf32>
    tpu.vector_store %arg11[%c4_364, %c0_365], %363 {strides = array<i32>} : memref<16x256xf32, #tpu.memory_space<vmem>>, vector<2x256xf32>,
    %c6_366 = arith.constant 6 : index
    %c0_367 = arith.constant 0 : index
    %365 = vector.load %arg11[%c6_366, %c0_367] : memref<16x256xf32, #tpu.memory_space<vmem>>, vector<2x256xf32>
    %366 = arith.truncf %363 : vector<2x256xf32> to vector<2x256xbf16>
    %c4_368 = arith.constant 4 : index
    %c0_369 = arith.constant 0 : index
    %c0_370 = arith.constant 0 : index
    %367 = vector.load %arg6[%c4_368, %c0_369, %c0_370] : memref<7x256x256xbf16, #tpu.memory_space<vmem>>, vector<1x256x256xbf16>
    %368 = vector.shape_cast %367 : vector<1x256x256xbf16> to vector<256x256xbf16>
    %cst_371 = arith.constant dense<0.000000e+00> : vector<2x256xf32>
    %369 = tpu.matmul %366, %368, %cst_371 {dimension_numbers = #tpu.dot_dimension_numbers<[1], [0], [0], [1], [0, 0, 1, 1], [], []>} : vector<2x256xbf16>, vector<256x256xbf16>, vector<2x256xf32> -> vector<2x256xf32>
    %370 = arith.addf %365, %369 : vector<2x256xf32>
    %371 = math.tanh %370 : vector<2x256xf32>
    %c6_372 = arith.constant 6 : index
    %c0_373 = arith.constant 0 : index
    %372 = vector.load %arg11[%c6_372, %c0_373] : memref<16x256xf32, #tpu.memory_space<vmem>>, vector<2x256xf32>
    tpu.vector_store %arg11[%c6_372, %c0_373], %371 {strides = array<i32>} : memref<16x256xf32, #tpu.memory_space<vmem>>, vector<2x256xf32>,
    %c8_374 = arith.constant 8 : index
    %c0_375 = arith.constant 0 : index
    %373 = vector.load %arg11[%c8_374, %c0_375] : memref<16x256xf32, #tpu.memory_space<vmem>>, vector<2x256xf32>
    %374 = arith.truncf %371 : vector<2x256xf32> to vector<2x256xbf16>
    %c4_376 = arith.constant 4 : index
    %c0_377 = arith.constant 0 : index
    %c0_378 = arith.constant 0 : index
    %375 = vector.load %arg6[%c4_376, %c0_377, %c0_378] : memref<7x256x256xbf16, #tpu.memory_space<vmem>>, vector<1x256x256xbf16>
    %376 = vector.shape_cast %375 : vector<1x256x256xbf16> to vector<256x256xbf16>
    %cst_379 = arith.constant dense<0.000000e+00> : vector<2x256xf32>
    %377 = tpu.matmul %374, %376, %cst_379 {dimension_numbers = #tpu.dot_dimension_numbers<[1], [0], [0], [1], [0, 0, 1, 1], [], []>} : vector<2x256xbf16>, vector<256x256xbf16>, vector<2x256xf32> -> vector<2x256xf32>
    %378 = arith.addf %373, %377 : vector<2x256xf32>
    %379 = math.tanh %378 : vector<2x256xf32>
    %c8_380 = arith.constant 8 : index
    %c0_381 = arith.constant 0 : index
    %380 = vector.load %arg11[%c8_380, %c0_381] : memref<16x256xf32, #tpu.memory_space<vmem>>, vector<2x256xf32>
    tpu.vector_store %arg11[%c8_380, %c0_381], %379 {strides = array<i32>} : memref<16x256xf32, #tpu.memory_space<vmem>>, vector<2x256xf32>,
    %c10_382 = arith.constant 10 : index
    %c0_383 = arith.constant 0 : index
    %381 = vector.load %arg11[%c10_382, %c0_383] : memref<16x256xf32, #tpu.memory_space<vmem>>, vector<2x256xf32>
    %382 = arith.truncf %379 : vector<2x256xf32> to vector<2x256xbf16>
    %c4_384 = arith.constant 4 : index
    %c0_385 = arith.constant 0 : index
    %c0_386 = arith.constant 0 : index
    %383 = vector.load %arg6[%c4_384, %c0_385, %c0_386] : memref<7x256x256xbf16, #tpu.memory_space<vmem>>, vector<1x256x256xbf16>
    %384 = vector.shape_cast %383 : vector<1x256x256xbf16> to vector<256x256xbf16>
    %cst_387 = arith.constant dense<0.000000e+00> : vector<2x256xf32>
    %385 = tpu.matmul %382, %384, %cst_387 {dimension_numbers = #tpu.dot_dimension_numbers<[1], [0], [0], [1], [0, 0, 1, 1], [], []>} : vector<2x256xbf16>, vector<256x256xbf16>, vector<2x256xf32> -> vector<2x256xf32>
    %386 = arith.addf %381, %385 : vector<2x256xf32>
    %387 = math.tanh %386 : vector<2x256xf32>
    %c10_388 = arith.constant 10 : index
    %c0_389 = arith.constant 0 : index
    %388 = vector.load %arg11[%c10_388, %c0_389] : memref<16x256xf32, #tpu.memory_space<vmem>>, vector<2x256xf32>
    tpu.vector_store %arg11[%c10_388, %c0_389], %387 {strides = array<i32>} : memref<16x256xf32, #tpu.memory_space<vmem>>, vector<2x256xf32>,
    %c12_390 = arith.constant 12 : index
    %c0_391 = arith.constant 0 : index
    %389 = vector.load %arg11[%c12_390, %c0_391] : memref<16x256xf32, #tpu.memory_space<vmem>>, vector<2x256xf32>
    %390 = arith.truncf %387 : vector<2x256xf32> to vector<2x256xbf16>
    %c4_392 = arith.constant 4 : index
    %c0_393 = arith.constant 0 : index
    %c0_394 = arith.constant 0 : index
    %391 = vector.load %arg6[%c4_392, %c0_393, %c0_394] : memref<7x256x256xbf16, #tpu.memory_space<vmem>>, vector<1x256x256xbf16>
    %392 = vector.shape_cast %391 : vector<1x256x256xbf16> to vector<256x256xbf16>
    %cst_395 = arith.constant dense<0.000000e+00> : vector<2x256xf32>
    %393 = tpu.matmul %390, %392, %cst_395 {dimension_numbers = #tpu.dot_dimension_numbers<[1], [0], [0], [1], [0, 0, 1, 1], [], []>} : vector<2x256xbf16>, vector<256x256xbf16>, vector<2x256xf32> -> vector<2x256xf32>
    %394 = arith.addf %389, %393 : vector<2x256xf32>
    %395 = math.tanh %394 : vector<2x256xf32>
    %c12_396 = arith.constant 12 : index
    %c0_397 = arith.constant 0 : index
    %396 = vector.load %arg11[%c12_396, %c0_397] : memref<16x256xf32, #tpu.memory_space<vmem>>, vector<2x256xf32>
    tpu.vector_store %arg11[%c12_396, %c0_397], %395 {strides = array<i32>} : memref<16x256xf32, #tpu.memory_space<vmem>>, vector<2x256xf32>,
    %c14_398 = arith.constant 14 : index
    %c0_399 = arith.constant 0 : index
    %397 = vector.load %arg11[%c14_398, %c0_399] : memref<16x256xf32, #tpu.memory_space<vmem>>, vector<2x256xf32>
    %398 = arith.truncf %395 : vector<2x256xf32> to vector<2x256xbf16>
    %c4_400 = arith.constant 4 : index
    %c0_401 = arith.constant 0 : index
    %c0_402 = arith.constant 0 : index
    %399 = vector.load %arg6[%c4_400, %c0_401, %c0_402] : memref<7x256x256xbf16, #tpu.memory_space<vmem>>, vector<1x256x256xbf16>
    %400 = vector.shape_cast %399 : vector<1x256x256xbf16> to vector<256x256xbf16>
    %cst_403 = arith.constant dense<0.000000e+00> : vector<2x256xf32>
    %401 = tpu.matmul %398, %400, %cst_403 {dimension_numbers = #tpu.dot_dimension_numbers<[1], [0], [0], [1], [0, 0, 1, 1], [], []>} : vector<2x256xbf16>, vector<256x256xbf16>, vector<2x256xf32> -> vector<2x256xf32>
    %402 = arith.addf %397, %401 : vector<2x256xf32>
    %403 = math.tanh %402 : vector<2x256xf32>
    %c14_404 = arith.constant 14 : index
    %c0_405 = arith.constant 0 : index
    %404 = vector.load %arg11[%c14_404, %c0_405] : memref<16x256xf32, #tpu.memory_space<vmem>>, vector<2x256xf32>
    tpu.vector_store %arg11[%c14_404, %c0_405], %403 {strides = array<i32>} : memref<16x256xf32, #tpu.memory_space<vmem>>, vector<2x256xf32>,
    %c0_406 = arith.constant 0 : index
    %c0_407 = arith.constant 0 : index
    %405 = vector.load %arg11[%c0_406, %c0_407] : memref<16x256xf32, #tpu.memory_space<vmem>>, vector<16x256xf32>
    %406 = arith.truncf %405 : vector<16x256xf32> to vector<16x256xbf16>
    %c5 = arith.constant 5 : index
    %c0_408 = arith.constant 0 : index
    %c0_409 = arith.constant 0 : index
    %407 = vector.load %arg5[%c5, %c0_408, %c0_409] : memref<7x256x256xbf16, #tpu.memory_space<vmem>>, vector<1x256x256xbf16>
    %408 = vector.shape_cast %407 : vector<1x256x256xbf16> to vector<256x256xbf16>
    %cst_410 = arith.constant dense<0.000000e+00> : vector<16x256xf32>
    %409 = tpu.matmul %406, %408, %cst_410 {dimension_numbers = #tpu.dot_dimension_numbers<[1], [0], [0], [1], [0, 0, 1, 1], [], []>} : vector<16x256xbf16>, vector<256x256xbf16>, vector<16x256xf32> -> vector<16x256xf32>
    %c5_411 = arith.constant 5 : index
    %c0_412 = arith.constant 0 : index
    %c0_413 = arith.constant 0 : index
    %410 = vector.load %arg7[%c5_411, %c0_412, %c0_413] : memref<7x1x256xf32, #tpu.memory_space<vmem>>, vector<1x1x256xf32>
    %411 = vector.shape_cast %410 : vector<1x1x256xf32> to vector<1x256xf32>
    %412 = vector.broadcast %411 : vector<1x256xf32> to vector<16x256xf32>
    %413 = arith.addf %409, %412 : vector<16x256xf32>
    %c0_414 = arith.constant 0 : index
    %c0_415 = arith.constant 0 : index
    %414 = vector.load %arg11[%c0_414, %c0_415] : memref<16x256xf32, #tpu.memory_space<vmem>>, vector<16x256xf32>
    tpu.vector_store %arg11[%c0_414, %c0_415], %413 {strides = array<i32>} : memref<16x256xf32, #tpu.memory_space<vmem>>, vector<16x256xf32>,
    %c0_416 = arith.constant 0 : index
    %c0_417 = arith.constant 0 : index
    %415 = vector.load %arg11[%c0_416, %c0_417] : memref<16x256xf32, #tpu.memory_space<vmem>>, vector<2x256xf32>
    %416 = math.tanh %415 : vector<2x256xf32>
    %c0_418 = arith.constant 0 : index
    %c0_419 = arith.constant 0 : index
    %417 = vector.load %arg11[%c0_418, %c0_419] : memref<16x256xf32, #tpu.memory_space<vmem>>, vector<2x256xf32>
    tpu.vector_store %arg11[%c0_418, %c0_419], %416 {strides = array<i32>} : memref<16x256xf32, #tpu.memory_space<vmem>>, vector<2x256xf32>,
    %c2_420 = arith.constant 2 : index
    %c0_421 = arith.constant 0 : index
    %418 = vector.load %arg11[%c2_420, %c0_421] : memref<16x256xf32, #tpu.memory_space<vmem>>, vector<2x256xf32>
    %419 = arith.truncf %416 : vector<2x256xf32> to vector<2x256xbf16>
    %c5_422 = arith.constant 5 : index
    %c0_423 = arith.constant 0 : index
    %c0_424 = arith.constant 0 : index
    %420 = vector.load %arg6[%c5_422, %c0_423, %c0_424] : memref<7x256x256xbf16, #tpu.memory_space<vmem>>, vector<1x256x256xbf16>
    %421 = vector.shape_cast %420 : vector<1x256x256xbf16> to vector<256x256xbf16>
    %cst_425 = arith.constant dense<0.000000e+00> : vector<2x256xf32>
    %422 = tpu.matmul %419, %421, %cst_425 {dimension_numbers = #tpu.dot_dimension_numbers<[1], [0], [0], [1], [0, 0, 1, 1], [], []>} : vector<2x256xbf16>, vector<256x256xbf16>, vector<2x256xf32> -> vector<2x256xf32>
    %423 = arith.addf %418, %422 : vector<2x256xf32>
    %424 = math.tanh %423 : vector<2x256xf32>
    %c2_426 = arith.constant 2 : index
    %c0_427 = arith.constant 0 : index
    %425 = vector.load %arg11[%c2_426, %c0_427] : memref<16x256xf32, #tpu.memory_space<vmem>>, vector<2x256xf32>
    tpu.vector_store %arg11[%c2_426, %c0_427], %424 {strides = array<i32>} : memref<16x256xf32, #tpu.memory_space<vmem>>, vector<2x256xf32>,
    %c4_428 = arith.constant 4 : index
    %c0_429 = arith.constant 0 : index
    %426 = vector.load %arg11[%c4_428, %c0_429] : memref<16x256xf32, #tpu.memory_space<vmem>>, vector<2x256xf32>
    %427 = arith.truncf %424 : vector<2x256xf32> to vector<2x256xbf16>
    %c5_430 = arith.constant 5 : index
    %c0_431 = arith.constant 0 : index
    %c0_432 = arith.constant 0 : index
    %428 = vector.load %arg6[%c5_430, %c0_431, %c0_432] : memref<7x256x256xbf16, #tpu.memory_space<vmem>>, vector<1x256x256xbf16>
    %429 = vector.shape_cast %428 : vector<1x256x256xbf16> to vector<256x256xbf16>
    %cst_433 = arith.constant dense<0.000000e+00> : vector<2x256xf32>
    %430 = tpu.matmul %427, %429, %cst_433 {dimension_numbers = #tpu.dot_dimension_numbers<[1], [0], [0], [1], [0, 0, 1, 1], [], []>} : vector<2x256xbf16>, vector<256x256xbf16>, vector<2x256xf32> -> vector<2x256xf32>
    %431 = arith.addf %426, %430 : vector<2x256xf32>
    %432 = math.tanh %431 : vector<2x256xf32>
    %c4_434 = arith.constant 4 : index
    %c0_435 = arith.constant 0 : index
    %433 = vector.load %arg11[%c4_434, %c0_435] : memref<16x256xf32, #tpu.memory_space<vmem>>, vector<2x256xf32>
    tpu.vector_store %arg11[%c4_434, %c0_435], %432 {strides = array<i32>} : memref<16x256xf32, #tpu.memory_space<vmem>>, vector<2x256xf32>,
    %c6_436 = arith.constant 6 : index
    %c0_437 = arith.constant 0 : index
    %434 = vector.load %arg11[%c6_436, %c0_437] : memref<16x256xf32, #tpu.memory_space<vmem>>, vector<2x256xf32>
    %435 = arith.truncf %432 : vector<2x256xf32> to vector<2x256xbf16>
    %c5_438 = arith.constant 5 : index
    %c0_439 = arith.constant 0 : index
    %c0_440 = arith.constant 0 : index
    %436 = vector.load %arg6[%c5_438, %c0_439, %c0_440] : memref<7x256x256xbf16, #tpu.memory_space<vmem>>, vector<1x256x256xbf16>
    %437 = vector.shape_cast %436 : vector<1x256x256xbf16> to vector<256x256xbf16>
    %cst_441 = arith.constant dense<0.000000e+00> : vector<2x256xf32>
    %438 = tpu.matmul %435, %437, %cst_441 {dimension_numbers = #tpu.dot_dimension_numbers<[1], [0], [0], [1], [0, 0, 1, 1], [], []>} : vector<2x256xbf16>, vector<256x256xbf16>, vector<2x256xf32> -> vector<2x256xf32>
    %439 = arith.addf %434, %438 : vector<2x256xf32>
    %440 = math.tanh %439 : vector<2x256xf32>
    %c6_442 = arith.constant 6 : index
    %c0_443 = arith.constant 0 : index
    %441 = vector.load %arg11[%c6_442, %c0_443] : memref<16x256xf32, #tpu.memory_space<vmem>>, vector<2x256xf32>
    tpu.vector_store %arg11[%c6_442, %c0_443], %440 {strides = array<i32>} : memref<16x256xf32, #tpu.memory_space<vmem>>, vector<2x256xf32>,
    %c8_444 = arith.constant 8 : index
    %c0_445 = arith.constant 0 : index
    %442 = vector.load %arg11[%c8_444, %c0_445] : memref<16x256xf32, #tpu.memory_space<vmem>>, vector<2x256xf32>
    %443 = arith.truncf %440 : vector<2x256xf32> to vector<2x256xbf16>
    %c5_446 = arith.constant 5 : index
    %c0_447 = arith.constant 0 : index
    %c0_448 = arith.constant 0 : index
    %444 = vector.load %arg6[%c5_446, %c0_447, %c0_448] : memref<7x256x256xbf16, #tpu.memory_space<vmem>>, vector<1x256x256xbf16>
    %445 = vector.shape_cast %444 : vector<1x256x256xbf16> to vector<256x256xbf16>
    %cst_449 = arith.constant dense<0.000000e+00> : vector<2x256xf32>
    %446 = tpu.matmul %443, %445, %cst_449 {dimension_numbers = #tpu.dot_dimension_numbers<[1], [0], [0], [1], [0, 0, 1, 1], [], []>} : vector<2x256xbf16>, vector<256x256xbf16>, vector<2x256xf32> -> vector<2x256xf32>
    %447 = arith.addf %442, %446 : vector<2x256xf32>
    %448 = math.tanh %447 : vector<2x256xf32>
    %c8_450 = arith.constant 8 : index
    %c0_451 = arith.constant 0 : index
    %449 = vector.load %arg11[%c8_450, %c0_451] : memref<16x256xf32, #tpu.memory_space<vmem>>, vector<2x256xf32>
    tpu.vector_store %arg11[%c8_450, %c0_451], %448 {strides = array<i32>} : memref<16x256xf32, #tpu.memory_space<vmem>>, vector<2x256xf32>,
    %c10_452 = arith.constant 10 : index
    %c0_453 = arith.constant 0 : index
    %450 = vector.load %arg11[%c10_452, %c0_453] : memref<16x256xf32, #tpu.memory_space<vmem>>, vector<2x256xf32>
    %451 = arith.truncf %448 : vector<2x256xf32> to vector<2x256xbf16>
    %c5_454 = arith.constant 5 : index
    %c0_455 = arith.constant 0 : index
    %c0_456 = arith.constant 0 : index
    %452 = vector.load %arg6[%c5_454, %c0_455, %c0_456] : memref<7x256x256xbf16, #tpu.memory_space<vmem>>, vector<1x256x256xbf16>
    %453 = vector.shape_cast %452 : vector<1x256x256xbf16> to vector<256x256xbf16>
    %cst_457 = arith.constant dense<0.000000e+00> : vector<2x256xf32>
    %454 = tpu.matmul %451, %453, %cst_457 {dimension_numbers = #tpu.dot_dimension_numbers<[1], [0], [0], [1], [0, 0, 1, 1], [], []>} : vector<2x256xbf16>, vector<256x256xbf16>, vector<2x256xf32> -> vector<2x256xf32>
    %455 = arith.addf %450, %454 : vector<2x256xf32>
    %456 = math.tanh %455 : vector<2x256xf32>
    %c10_458 = arith.constant 10 : index
    %c0_459 = arith.constant 0 : index
    %457 = vector.load %arg11[%c10_458, %c0_459] : memref<16x256xf32, #tpu.memory_space<vmem>>, vector<2x256xf32>
    tpu.vector_store %arg11[%c10_458, %c0_459], %456 {strides = array<i32>} : memref<16x256xf32, #tpu.memory_space<vmem>>, vector<2x256xf32>,
    %c12_460 = arith.constant 12 : index
    %c0_461 = arith.constant 0 : index
    %458 = vector.load %arg11[%c12_460, %c0_461] : memref<16x256xf32, #tpu.memory_space<vmem>>, vector<2x256xf32>
    %459 = arith.truncf %456 : vector<2x256xf32> to vector<2x256xbf16>
    %c5_462 = arith.constant 5 : index
    %c0_463 = arith.constant 0 : index
    %c0_464 = arith.constant 0 : index
    %460 = vector.load %arg6[%c5_462, %c0_463, %c0_464] : memref<7x256x256xbf16, #tpu.memory_space<vmem>>, vector<1x256x256xbf16>
    %461 = vector.shape_cast %460 : vector<1x256x256xbf16> to vector<256x256xbf16>
    %cst_465 = arith.constant dense<0.000000e+00> : vector<2x256xf32>
    %462 = tpu.matmul %459, %461, %cst_465 {dimension_numbers = #tpu.dot_dimension_numbers<[1], [0], [0], [1], [0, 0, 1, 1], [], []>} : vector<2x256xbf16>, vector<256x256xbf16>, vector<2x256xf32> -> vector<2x256xf32>
    %463 = arith.addf %458, %462 : vector<2x256xf32>
    %464 = math.tanh %463 : vector<2x256xf32>
    %c12_466 = arith.constant 12 : index
    %c0_467 = arith.constant 0 : index
    %465 = vector.load %arg11[%c12_466, %c0_467] : memref<16x256xf32, #tpu.memory_space<vmem>>, vector<2x256xf32>
    tpu.vector_store %arg11[%c12_466, %c0_467], %464 {strides = array<i32>} : memref<16x256xf32, #tpu.memory_space<vmem>>, vector<2x256xf32>,
    %c14_468 = arith.constant 14 : index
    %c0_469 = arith.constant 0 : index
    %466 = vector.load %arg11[%c14_468, %c0_469] : memref<16x256xf32, #tpu.memory_space<vmem>>, vector<2x256xf32>
    %467 = arith.truncf %464 : vector<2x256xf32> to vector<2x256xbf16>
    %c5_470 = arith.constant 5 : index
    %c0_471 = arith.constant 0 : index
    %c0_472 = arith.constant 0 : index
    %468 = vector.load %arg6[%c5_470, %c0_471, %c0_472] : memref<7x256x256xbf16, #tpu.memory_space<vmem>>, vector<1x256x256xbf16>
    %469 = vector.shape_cast %468 : vector<1x256x256xbf16> to vector<256x256xbf16>
    %cst_473 = arith.constant dense<0.000000e+00> : vector<2x256xf32>
    %470 = tpu.matmul %467, %469, %cst_473 {dimension_numbers = #tpu.dot_dimension_numbers<[1], [0], [0], [1], [0, 0, 1, 1], [], []>} : vector<2x256xbf16>, vector<256x256xbf16>, vector<2x256xf32> -> vector<2x256xf32>
    %471 = arith.addf %466, %470 : vector<2x256xf32>
    %472 = math.tanh %471 : vector<2x256xf32>
    %c14_474 = arith.constant 14 : index
    %c0_475 = arith.constant 0 : index
    %473 = vector.load %arg11[%c14_474, %c0_475] : memref<16x256xf32, #tpu.memory_space<vmem>>, vector<2x256xf32>
    tpu.vector_store %arg11[%c14_474, %c0_475], %472 {strides = array<i32>} : memref<16x256xf32, #tpu.memory_space<vmem>>, vector<2x256xf32>,
    %c0_476 = arith.constant 0 : index
    %c0_477 = arith.constant 0 : index
    %474 = vector.load %arg11[%c0_476, %c0_477] : memref<16x256xf32, #tpu.memory_space<vmem>>, vector<16x256xf32>
    %475 = arith.truncf %474 : vector<16x256xf32> to vector<16x256xbf16>
    %c6_478 = arith.constant 6 : index
    %c0_479 = arith.constant 0 : index
    %c0_480 = arith.constant 0 : index
    %476 = vector.load %arg5[%c6_478, %c0_479, %c0_480] : memref<7x256x256xbf16, #tpu.memory_space<vmem>>, vector<1x256x256xbf16>
    %477 = vector.shape_cast %476 : vector<1x256x256xbf16> to vector<256x256xbf16>
    %cst_481 = arith.constant dense<0.000000e+00> : vector<16x256xf32>
    %478 = tpu.matmul %475, %477, %cst_481 {dimension_numbers = #tpu.dot_dimension_numbers<[1], [0], [0], [1], [0, 0, 1, 1], [], []>} : vector<16x256xbf16>, vector<256x256xbf16>, vector<16x256xf32> -> vector<16x256xf32>
    %c6_482 = arith.constant 6 : index
    %c0_483 = arith.constant 0 : index
    %c0_484 = arith.constant 0 : index
    %479 = vector.load %arg7[%c6_482, %c0_483, %c0_484] : memref<7x1x256xf32, #tpu.memory_space<vmem>>, vector<1x1x256xf32>
    %480 = vector.shape_cast %479 : vector<1x1x256xf32> to vector<1x256xf32>
    %481 = vector.broadcast %480 : vector<1x256xf32> to vector<16x256xf32>
    %482 = arith.addf %478, %481 : vector<16x256xf32>
    %c0_485 = arith.constant 0 : index
    %c0_486 = arith.constant 0 : index
    %483 = vector.load %arg11[%c0_485, %c0_486] : memref<16x256xf32, #tpu.memory_space<vmem>>, vector<16x256xf32>
    tpu.vector_store %arg11[%c0_485, %c0_486], %482 {strides = array<i32>} : memref<16x256xf32, #tpu.memory_space<vmem>>, vector<16x256xf32>,
    %c0_487 = arith.constant 0 : index
    %c0_488 = arith.constant 0 : index
    %484 = vector.load %arg11[%c0_487, %c0_488] : memref<16x256xf32, #tpu.memory_space<vmem>>, vector<2x256xf32>
    %485 = math.tanh %484 : vector<2x256xf32>
    %c0_489 = arith.constant 0 : index
    %c0_490 = arith.constant 0 : index
    %486 = vector.load %arg11[%c0_489, %c0_490] : memref<16x256xf32, #tpu.memory_space<vmem>>, vector<2x256xf32>
    tpu.vector_store %arg11[%c0_489, %c0_490], %485 {strides = array<i32>} : memref<16x256xf32, #tpu.memory_space<vmem>>, vector<2x256xf32>,
    %c2_491 = arith.constant 2 : index
    %c0_492 = arith.constant 0 : index
    %487 = vector.load %arg11[%c2_491, %c0_492] : memref<16x256xf32, #tpu.memory_space<vmem>>, vector<2x256xf32>
    %488 = arith.truncf %485 : vector<2x256xf32> to vector<2x256xbf16>
    %c6_493 = arith.constant 6 : index
    %c0_494 = arith.constant 0 : index
    %c0_495 = arith.constant 0 : index
    %489 = vector.load %arg6[%c6_493, %c0_494, %c0_495] : memref<7x256x256xbf16, #tpu.memory_space<vmem>>, vector<1x256x256xbf16>
    %490 = vector.shape_cast %489 : vector<1x256x256xbf16> to vector<256x256xbf16>
    %cst_496 = arith.constant dense<0.000000e+00> : vector<2x256xf32>
    %491 = tpu.matmul %488, %490, %cst_496 {dimension_numbers = #tpu.dot_dimension_numbers<[1], [0], [0], [1], [0, 0, 1, 1], [], []>} : vector<2x256xbf16>, vector<256x256xbf16>, vector<2x256xf32> -> vector<2x256xf32>
    %492 = arith.addf %487, %491 : vector<2x256xf32>
    %493 = math.tanh %492 : vector<2x256xf32>
    %c2_497 = arith.constant 2 : index
    %c0_498 = arith.constant 0 : index
    %494 = vector.load %arg11[%c2_497, %c0_498] : memref<16x256xf32, #tpu.memory_space<vmem>>, vector<2x256xf32>
    tpu.vector_store %arg11[%c2_497, %c0_498], %493 {strides = array<i32>} : memref<16x256xf32, #tpu.memory_space<vmem>>, vector<2x256xf32>,
    %c4_499 = arith.constant 4 : index
    %c0_500 = arith.constant 0 : index
    %495 = vector.load %arg11[%c4_499, %c0_500] : memref<16x256xf32, #tpu.memory_space<vmem>>, vector<2x256xf32>
    %496 = arith.truncf %493 : vector<2x256xf32> to vector<2x256xbf16>
    %c6_501 = arith.constant 6 : index
    %c0_502 = arith.constant 0 : index
    %c0_503 = arith.constant 0 : index
    %497 = vector.load %arg6[%c6_501, %c0_502, %c0_503] : memref<7x256x256xbf16, #tpu.memory_space<vmem>>, vector<1x256x256xbf16>
    %498 = vector.shape_cast %497 : vector<1x256x256xbf16> to vector<256x256xbf16>
    %cst_504 = arith.constant dense<0.000000e+00> : vector<2x256xf32>
    %499 = tpu.matmul %496, %498, %cst_504 {dimension_numbers = #tpu.dot_dimension_numbers<[1], [0], [0], [1], [0, 0, 1, 1], [], []>} : vector<2x256xbf16>, vector<256x256xbf16>, vector<2x256xf32> -> vector<2x256xf32>
    %500 = arith.addf %495, %499 : vector<2x256xf32>
    %501 = math.tanh %500 : vector<2x256xf32>
    %c4_505 = arith.constant 4 : index
    %c0_506 = arith.constant 0 : index
    %502 = vector.load %arg11[%c4_505, %c0_506] : memref<16x256xf32, #tpu.memory_space<vmem>>, vector<2x256xf32>
    tpu.vector_store %arg11[%c4_505, %c0_506], %501 {strides = array<i32>} : memref<16x256xf32, #tpu.memory_space<vmem>>, vector<2x256xf32>,
    %c6_507 = arith.constant 6 : index
    %c0_508 = arith.constant 0 : index
    %503 = vector.load %arg11[%c6_507, %c0_508] : memref<16x256xf32, #tpu.memory_space<vmem>>, vector<2x256xf32>
    %504 = arith.truncf %501 : vector<2x256xf32> to vector<2x256xbf16>
    %c6_509 = arith.constant 6 : index
    %c0_510 = arith.constant 0 : index
    %c0_511 = arith.constant 0 : index
    %505 = vector.load %arg6[%c6_509, %c0_510, %c0_511] : memref<7x256x256xbf16, #tpu.memory_space<vmem>>, vector<1x256x256xbf16>
    %506 = vector.shape_cast %505 : vector<1x256x256xbf16> to vector<256x256xbf16>
    %cst_512 = arith.constant dense<0.000000e+00> : vector<2x256xf32>
    %507 = tpu.matmul %504, %506, %cst_512 {dimension_numbers = #tpu.dot_dimension_numbers<[1], [0], [0], [1], [0, 0, 1, 1], [], []>} : vector<2x256xbf16>, vector<256x256xbf16>, vector<2x256xf32> -> vector<2x256xf32>
    %508 = arith.addf %503, %507 : vector<2x256xf32>
    %509 = math.tanh %508 : vector<2x256xf32>
    %c6_513 = arith.constant 6 : index
    %c0_514 = arith.constant 0 : index
    %510 = vector.load %arg11[%c6_513, %c0_514] : memref<16x256xf32, #tpu.memory_space<vmem>>, vector<2x256xf32>
    tpu.vector_store %arg11[%c6_513, %c0_514], %509 {strides = array<i32>} : memref<16x256xf32, #tpu.memory_space<vmem>>, vector<2x256xf32>,
    %c8_515 = arith.constant 8 : index
    %c0_516 = arith.constant 0 : index
    %511 = vector.load %arg11[%c8_515, %c0_516] : memref<16x256xf32, #tpu.memory_space<vmem>>, vector<2x256xf32>
    %512 = arith.truncf %509 : vector<2x256xf32> to vector<2x256xbf16>
    %c6_517 = arith.constant 6 : index
    %c0_518 = arith.constant 0 : index
    %c0_519 = arith.constant 0 : index
    %513 = vector.load %arg6[%c6_517, %c0_518, %c0_519] : memref<7x256x256xbf16, #tpu.memory_space<vmem>>, vector<1x256x256xbf16>
    %514 = vector.shape_cast %513 : vector<1x256x256xbf16> to vector<256x256xbf16>
    %cst_520 = arith.constant dense<0.000000e+00> : vector<2x256xf32>
    %515 = tpu.matmul %512, %514, %cst_520 {dimension_numbers = #tpu.dot_dimension_numbers<[1], [0], [0], [1], [0, 0, 1, 1], [], []>} : vector<2x256xbf16>, vector<256x256xbf16>, vector<2x256xf32> -> vector<2x256xf32>
    %516 = arith.addf %511, %515 : vector<2x256xf32>
    %517 = math.tanh %516 : vector<2x256xf32>
    %c8_521 = arith.constant 8 : index
    %c0_522 = arith.constant 0 : index
    %518 = vector.load %arg11[%c8_521, %c0_522] : memref<16x256xf32, #tpu.memory_space<vmem>>, vector<2x256xf32>
    tpu.vector_store %arg11[%c8_521, %c0_522], %517 {strides = array<i32>} : memref<16x256xf32, #tpu.memory_space<vmem>>, vector<2x256xf32>,
    %c10_523 = arith.constant 10 : index
    %c0_524 = arith.constant 0 : index
    %519 = vector.load %arg11[%c10_523, %c0_524] : memref<16x256xf32, #tpu.memory_space<vmem>>, vector<2x256xf32>
    %520 = arith.truncf %517 : vector<2x256xf32> to vector<2x256xbf16>
    %c6_525 = arith.constant 6 : index
    %c0_526 = arith.constant 0 : index
    %c0_527 = arith.constant 0 : index
    %521 = vector.load %arg6[%c6_525, %c0_526, %c0_527] : memref<7x256x256xbf16, #tpu.memory_space<vmem>>, vector<1x256x256xbf16>
    %522 = vector.shape_cast %521 : vector<1x256x256xbf16> to vector<256x256xbf16>
    %cst_528 = arith.constant dense<0.000000e+00> : vector<2x256xf32>
    %523 = tpu.matmul %520, %522, %cst_528 {dimension_numbers = #tpu.dot_dimension_numbers<[1], [0], [0], [1], [0, 0, 1, 1], [], []>} : vector<2x256xbf16>, vector<256x256xbf16>, vector<2x256xf32> -> vector<2x256xf32>
    %524 = arith.addf %519, %523 : vector<2x256xf32>
    %525 = math.tanh %524 : vector<2x256xf32>
    %c10_529 = arith.constant 10 : index
    %c0_530 = arith.constant 0 : index
    %526 = vector.load %arg11[%c10_529, %c0_530] : memref<16x256xf32, #tpu.memory_space<vmem>>, vector<2x256xf32>
    tpu.vector_store %arg11[%c10_529, %c0_530], %525 {strides = array<i32>} : memref<16x256xf32, #tpu.memory_space<vmem>>, vector<2x256xf32>,
    %c12_531 = arith.constant 12 : index
    %c0_532 = arith.constant 0 : index
    %527 = vector.load %arg11[%c12_531, %c0_532] : memref<16x256xf32, #tpu.memory_space<vmem>>, vector<2x256xf32>
    %528 = arith.truncf %525 : vector<2x256xf32> to vector<2x256xbf16>
    %c6_533 = arith.constant 6 : index
    %c0_534 = arith.constant 0 : index
    %c0_535 = arith.constant 0 : index
    %529 = vector.load %arg6[%c6_533, %c0_534, %c0_535] : memref<7x256x256xbf16, #tpu.memory_space<vmem>>, vector<1x256x256xbf16>
    %530 = vector.shape_cast %529 : vector<1x256x256xbf16> to vector<256x256xbf16>
    %cst_536 = arith.constant dense<0.000000e+00> : vector<2x256xf32>
    %531 = tpu.matmul %528, %530, %cst_536 {dimension_numbers = #tpu.dot_dimension_numbers<[1], [0], [0], [1], [0, 0, 1, 1], [], []>} : vector<2x256xbf16>, vector<256x256xbf16>, vector<2x256xf32> -> vector<2x256xf32>
    %532 = arith.addf %527, %531 : vector<2x256xf32>
    %533 = math.tanh %532 : vector<2x256xf32>
    %c12_537 = arith.constant 12 : index
    %c0_538 = arith.constant 0 : index
    %534 = vector.load %arg11[%c12_537, %c0_538] : memref<16x256xf32, #tpu.memory_space<vmem>>, vector<2x256xf32>
    tpu.vector_store %arg11[%c12_537, %c0_538], %533 {strides = array<i32>} : memref<16x256xf32, #tpu.memory_space<vmem>>, vector<2x256xf32>,
    %c14_539 = arith.constant 14 : index
    %c0_540 = arith.constant 0 : index
    %535 = vector.load %arg11[%c14_539, %c0_540] : memref<16x256xf32, #tpu.memory_space<vmem>>, vector<2x256xf32>
    %536 = arith.truncf %533 : vector<2x256xf32> to vector<2x256xbf16>
    %c6_541 = arith.constant 6 : index
    %c0_542 = arith.constant 0 : index
    %c0_543 = arith.constant 0 : index
    %537 = vector.load %arg6[%c6_541, %c0_542, %c0_543] : memref<7x256x256xbf16, #tpu.memory_space<vmem>>, vector<1x256x256xbf16>
    %538 = vector.shape_cast %537 : vector<1x256x256xbf16> to vector<256x256xbf16>
    %cst_544 = arith.constant dense<0.000000e+00> : vector<2x256xf32>
    %539 = tpu.matmul %536, %538, %cst_544 {dimension_numbers = #tpu.dot_dimension_numbers<[1], [0], [0], [1], [0, 0, 1, 1], [], []>} : vector<2x256xbf16>, vector<256x256xbf16>, vector<2x256xf32> -> vector<2x256xf32>
    %540 = arith.addf %535, %539 : vector<2x256xf32>
    %541 = math.tanh %540 : vector<2x256xf32>
    %c14_545 = arith.constant 14 : index
    %c0_546 = arith.constant 0 : index
    %542 = vector.load %arg11[%c14_545, %c0_546] : memref<16x256xf32, #tpu.memory_space<vmem>>, vector<2x256xf32>
    tpu.vector_store %arg11[%c14_545, %c0_546], %541 {strides = array<i32>} : memref<16x256xf32, #tpu.memory_space<vmem>>, vector<2x256xf32>,
    %c0_547 = arith.constant 0 : index
    %c0_548 = arith.constant 0 : index
    %543 = vector.load %arg11[%c0_547, %c0_548] : memref<16x256xf32, #tpu.memory_space<vmem>>, vector<16x256xf32>
    %544 = arith.truncf %543 : vector<16x256xf32> to vector<16x256xbf16>
    %c0_549 = arith.constant 0 : index
    %c0_550 = arith.constant 0 : index
    %545 = vector.load %arg8[%c0_549, %c0_550] : memref<256x64xbf16, #tpu.memory_space<vmem>>, vector<256x64xbf16>
    %cst_551 = arith.constant dense<0.000000e+00> : vector<16x64xf32>
    %546 = tpu.matmul %544, %545, %cst_551 {dimension_numbers = #tpu.dot_dimension_numbers<[1], [0], [0], [1], [0, 0, 1, 1], [], []>} : vector<16x256xbf16>, vector<256x64xbf16>, vector<16x64xf32> -> vector<16x64xf32>
    %c0_552 = arith.constant 0 : index
    %c0_553 = arith.constant 0 : index
    %547 = vector.load %arg9[%c0_552, %c0_553] : memref<1x64xf32, #tpu.memory_space<vmem>>, vector<1x64xf32>
    %548 = vector.broadcast %547 : vector<1x64xf32> to vector<16x64xf32>
    %549 = arith.addf %546, %548 : vector<16x64xf32>
    %c0_554 = arith.constant 0 : index
    %c0_555 = arith.constant 0 : index
    %550 = vector.load %arg10[%c0_554, %c0_555] : memref<16x64xf32, #tpu.memory_space<vmem>>, vector<16x64xf32>
    tpu.vector_store %arg10[%c0_554, %c0_555], %549 {strides = array<i32>} : memref<16x64xf32, #tpu.memory_space<vmem>>, vector<16x64xf32>,
    return
  }
  func.func @transform_0(%arg0: i32) -> (i32, i32) {
    %c0_i32 = arith.constant 0 : i32
    %c0_i32_0 = arith.constant 0 : i32
    return %arg0, %c0_i32 : i32, i32
  }
  func.func @transform_1(%arg0: i32) -> (i32, i32) {
    %c0_i32 = arith.constant 0 : i32
    %c0_i32_0 = arith.constant 0 : i32
    %c0_i32_1 = arith.constant 0 : i32
    return %c0_i32, %c0_i32_0 : i32, i32
  }
  func.func @transform_2(%arg0: i32) -> (i32, i32) {
    %c0_i32 = arith.constant 0 : i32
    %c0_i32_0 = arith.constant 0 : i32
    %c0_i32_1 = arith.constant 0 : i32
    return %c0_i32, %c0_i32_0 : i32, i32
  }
  func.func @transform_3(%arg0: i32) -> (i32, i32) {
    %c0_i32 = arith.constant 0 : i32
    %c0_i32_0 = arith.constant 0 : i32
    %c0_i32_1 = arith.constant 0 : i32
    return %c0_i32, %c0_i32_0 : i32, i32
  }
  func.func @transform_4(%arg0: i32) -> (i32, i32, i32) {
    %c0_i32 = arith.constant 0 : i32
    %c0_i32_0 = arith.constant 0 : i32
    %c0_i32_1 = arith.constant 0 : i32
    %c0_i32_2 = arith.constant 0 : i32
    return %c0_i32, %c0_i32_0, %c0_i32_1 : i32, i32, i32
  }
  func.func @transform_5(%arg0: i32) -> (i32, i32, i32) {
    %c0_i32 = arith.constant 0 : i32
    %c0_i32_0 = arith.constant 0 : i32
    %c0_i32_1 = arith.constant 0 : i32
    %c0_i32_2 = arith.constant 0 : i32
    return %c0_i32, %c0_i32_0, %c0_i32_1 : i32, i32, i32
  }
  func.func @transform_6(%arg0: i32) -> (i32, i32, i32) {
    %c0_i32 = arith.constant 0 : i32
    %c0_i32_0 = arith.constant 0 : i32
    %c0_i32_1 = arith.constant 0 : i32
    %c0_i32_2 = arith.constant 0 : i32
    return %c0_i32, %c0_i32_0, %c0_i32_1 : i32, i32, i32
  }
  func.func @transform_7(%arg0: i32) -> (i32, i32) {
    %c0_i32 = arith.constant 0 : i32
    %c0_i32_0 = arith.constant 0 : i32
    %c0_i32_1 = arith.constant 0 : i32
    return %c0_i32, %c0_i32_0 : i32, i32
  }
  func.func @transform_8(%arg0: i32) -> (i32, i32) {
    %c0_i32 = arith.constant 0 : i32
    %c0_i32_0 = arith.constant 0 : i32
    %c0_i32_1 = arith.constant 0 : i32
    return %c0_i32, %c0_i32_0 : i32, i32
  }
  func.func @transform_9(%arg0: i32) -> (i32, i32) {
    %c0_i32 = arith.constant 0 : i32
    %c0_i32_0 = arith.constant 0 : i32
    return %arg0, %c0_i32 : i32, i32
  }
}

</mosaic_0001>

<bundles_post_ra>
// kernel: tiny_lstm_forward.1
= control target key start
LH: loop header
LB: loop body
LE: loop exit
PB: predicated region body
PF: predicated region fallthrough
CT: control target
= control target key end

     0   :  { %14 = vsyncpa [#allocation4], 0  ;;  %s22220_s0 = inlined_call_operand.vmem [shape: f32[16,64], index: 0, kind: input, shape index: {}]   ;;  %s22221_s1 = inlined_call_operand.vmem [shape: bf16[64,256], index: 1, kind: input, shape index: {}]   ;;  %s22222_s2 = inlined_call_operand.vmem [shape: bf16[256,256], index: 2, kind: input, shape index: {}]   ;;  %s22223_s3 = inlined_call_operand.vmem [shape: f32[1,256], index: 3, kind: input, shape index: {}]   ;;  %s22224_s4 = inlined_call_operand.hbm [shape: bf16[7,256,256], index: 4, kind: input, shape index: {}]   ;;  %s22225_s5 = inlined_call_operand.hbm [shape: bf16[7,256,256], index: 5, kind: input, shape index: {}]   ;;  %s22226_s6 = inlined_call_operand.hbm [shape: f32[7,1,256], index: 6, kind: input, shape index: {}]   ;;  %s22227_s7 = inlined_call_operand.vmem [shape: bf16[256,64], index: 7, kind: input, shape index: {}]   ;;  %s22228_s8 = inlined_call_operand.hbm [shape: f32[1,64], index: 8, kind: input, shape index: {}]   ;;  %s22229_s9 = inlined_call_operand.vmem [shape: f32[16,64], index: 9, kind: output, shape index: {}]  }
   0x1   :  { %15 = vsyncpa [#allocation6], 0 }
   0x2   :  { %16 = vsyncpa [#allocation9], 0  ;;  %s19979_s30 = smov [#allocation5]   ;;  %s19980_s11 = smov [#allocation3]  }
   0x3   :  { %s42_s10 = sshll.u32 %s19979_s30, 4  ;;  %s30_s12 = sshll.u32 %s19980_s11, 4  ;;  %s43_s10 = int_to_ptr.vmem [resolvable:$true] %s42_s10  ;;  %s20038_s12 = int_to_ptr.vmem [resolvable:$true] %s30_s12 }
   0x4   :  { %s19885_s15 = scalar_lea.hbm %s22225_s5, 28672 }
   0x5   :  { %p19886_p0 = scmp.ne.s32.totalorder %s22225_s5, %s19885_s15  ;;  %p19889_p1 = scmp.lt.u32.totalorder %s19885_s15, %s22225_s5 }
   0x7   :  { %p19891_p2 = pnand %p19889_p1, %p19886_p0 }
   0x9   :  { %19894 = shalt.err (!%p19891_p2)
}
   0xa   :  { %s19895_s20 = scalar_lea.vmem %s43_s10, 28672  ;;  %p19900_p4 = scmp.lt.s32.totalorder %s43_s10, %s43_s10 }
   0xb   :  { %p19896_p3 = scmp.ne.s32.totalorder %s43_s10, %s19895_s20  ;;  %p19901_p5 = scmp.lt.s32.totalorder %s19895_s20, %s19895_s20 }
   0xd   :  { %p19902_p6 = por %p19901_p5, %p19900_p4 }
   0xf   :  { %p19903_p7 = pnand %p19902_p6, %p19896_p3 }
  0x11   :  { %19906 = shalt.err (!%p19903_p7)
}
  0x12   :  { %s19981_s21 = smov 128   ;;  %s19982_s22 = smov 8  }
  0x13   :  { %48 = dma.hbm_to_vmem [thread:$0]  %s22225_s5, 28672, %s43_s10, [#allocation6], %s19981_s21, %s19981_s21, %s19982_s22  }
  0x14   :  { %s19907_s27 = scalar_lea.hbm %s22224_s4, 28672 }
  0x15   :  { %p19908_p8 = scmp.ne.s32.totalorder %s22224_s4, %s19907_s27  ;;  %p19911_p9 = scmp.lt.u32.totalorder %s19907_s27, %s22224_s4 }
  0x17   :  { %p19913_p10 = pnand %p19911_p9, %p19908_p8 }
  0x19   :  { %19916 = shalt.err (!%p19913_p10)
}
  0x1a   :  { %s19917_s13 = scalar_lea.vmem %s20038_s12, 28672  ;;  %p19922_p12 = scmp.lt.s32.totalorder %s20038_s12, %s20038_s12 }
  0x1b   :  { %p19918_p11 = scmp.ne.s32.totalorder %s20038_s12, %s19917_s13  ;;  %p19923_p13 = scmp.lt.s32.totalorder %s19917_s13, %s19917_s13 }
  0x1d   :  { %p19924_p0 = por %p19923_p13, %p19922_p12 }
  0x1f   :  { %p19925_p1 = pnand %p19924_p0, %p19918_p11 }
  0x21   :  { %19928 = shalt.err (!%p19925_p1)
}
  0x22   :  { %36 = dma.hbm_to_vmem [thread:$0]  %s22224_s4, 28672, %s20038_s12, [#allocation4], %s19981_s21, %s19981_s21, %s19982_s22  }
  0x23   :  { %s19983_s14 = smov [#allocation7]   ;;  %s19929_s18 = scalar_lea.hbm %s22226_s6, 224 }
  0x24   :  { %s54_s15 = sshll.u32 %s19983_s14, 4  ;;  %p19930_p2 = scmp.ne.s32.totalorder %s22226_s6, %s19929_s18  ;;  %s55_s15 = int_to_ptr.vmem [resolvable:$true] %s54_s15 }
  0x25   :  { %p19933_p3 = scmp.lt.u32.totalorder %s19929_s18, %s22226_s6 }
  0x27   :  { %p19935_p4 = pnand %p19933_p3, %p19930_p2 }
  0x29   :  { %19938 = shalt.err (!%p19935_p4)
}
  0x2a   :  { %s19939_s25 = scalar_lea.vmem %s55_s15, 224  ;;  %p19944_p6 = scmp.lt.s32.totalorder %s55_s15, %s55_s15 }
  0x2b   :  { %p19940_p5 = scmp.ne.s32.totalorder %s55_s15, %s19939_s25  ;;  %p19945_p7 = scmp.lt.s32.totalorder %s19939_s25, %s19939_s25 }
  0x2d   :  { %p19946_p8 = por %p19945_p7, %p19944_p6 }
  0x2f   :  { %p19947_p9 = pnand %p19946_p8, %p19940_p5 }
  0x31   :  { %19950 = shalt.err (!%p19947_p9)
}
  0x32   :  { %s19984_s4 = smov 32   ;;  %s19985_s12 = smov 2  }
  0x33   :  { %60 = dma.hbm_to_vmem [thread:$0]  %s22226_s6, 224, %s55_s15, [#allocation6], %s19984_s4, %s19984_s4, %s19985_s12  }
  0x34   :  { %s19986_s26 = smov [#allocation8]   ;;  %s19951_s30 = scalar_lea.hbm %s22228_s8, 16 }
  0x35   :  { %s69_s27 = sshll.u32 %s19986_s26, 4  ;;  %p19952_p10 = scmp.ne.s32.totalorder %s22228_s8, %s19951_s30  ;;  %s70_s27 = int_to_ptr.vmem [resolvable:$true] %s69_s27 }
  0x36   :  { %p19955_p11 = scmp.lt.u32.totalorder %s19951_s30, %s22228_s8 }
  0x38   :  { %p19957_p12 = pnand %p19955_p11, %p19952_p10 }
  0x3a   :  { %19960 = shalt.err (!%p19957_p12)
}
  0x3b   :  { %s19961_s14 = scalar_lea.vmem %s70_s27, 16  ;;  %s19965_s6 = scalar_lea.vmem %s70_s27, 32 }
  0x3c   :  { %p19962_p13 = scmp.ne.s32.totalorder %s70_s27, %s19961_s14  ;;  %p19966_p0 = scmp.lt.s32.totalorder %s70_s27, %s70_s27 }
  0x3d   :  { %p19967_p1 = scmp.lt.s32.totalorder %s19965_s6, %s19961_s14 }
  0x3f   :  { %p19968_p2 = por %p19967_p1, %p19966_p0 }
  0x41   :  { %p19969_p3 = pnand %p19968_p2, %p19962_p13 }
  0x43   :  { %19972 = shalt.err (!%p19969_p3)
}
  0x44   :  { %72 = dma.hbm_to_vmem [thread:$0]  %s22228_s8, 16, %s70_s27, [#allocation9]  }
  0x45   :  { %19973 = dma.done.wait [#allocation4], 28672  }
  0x46   :  { %19974 = vsyncadd [#allocation4], 4294938624 }
  0x47   :  { %19975 = dma.done.wait [#allocation6], 28896  }
  0x48   :  { %19976 = vsyncadd [#allocation6], 4294938400 }
  0x49   :  { %19977 = dma.done.wait [#allocation9], 16  }
  0x4a   :  { %19978 = vsyncadd [#allocation9], 4294967280  ;;  %v19987_v0 = vmov 0   ;;  %v18465_v1 = vld [vmem:[%s22221_s1 + $0x4] ss:$8 sps:$4 sm:$0xff]   ;;  %vm149_vm0 = vcmask 523264   ;;  %v99_v44 = vlaneseq }
  0x4b   :  { %185 = vmatprep.mubr.bf16.mxu0 %v19987_v0  ;;  %v18467_v2 = vld [vmem:[%s22221_s1] ss:$8 sps:$4 sm:$0xff]   ;;  %153 = vmatprep.subr.bf16.mxu0 %v18465_v1  ;;  %v18468_v3 = vld [vmem:[%s22221_s1 + $0x14] ss:$8 sps:$4 sm:$0xff]   ;;  %v18470_v4 = vld [vmem:[%s22221_s1 + $0x10] ss:$8 sps:$4 sm:$0xff]  }
  0x4c   :  { %154 = vmatpush1.bf16.msra.mxu0 %v18467_v2  ;;  %v18471_v5 = vld [vmem:[%s22221_s1 + $0x24] ss:$8 sps:$4 sm:$0xff]   ;;  %v18473_v6 = vld [vmem:[%s22221_s1 + $0x20] ss:$8 sps:$4 sm:$0xff]   ;;  %v18474_v9 = vld [vmem:[%s22221_s1 + $0x34] ss:$8 sps:$4 sm:$0xff]  }
  0x4d   :  { %155 = vmatprep.subr.bf16.mxu0 %v18468_v3  ;;  %v20114_v7 = vld [vmem:[%s22222_s2 + $0x4] ss:$8 sps:$4 sm:$0xff]   ;;  %v18479_v8 = vld [vmem:[%s22222_s2] ss:$8 sps:$4 sm:$0xff]   ;;  %v18480_v10 = vld [vmem:[%s22222_s2 + $0x14] ss:$8 sps:$4 sm:$0xff]  }
  0x4e   :  { %402 = vmatprep.subr.bf16.mxu1 %v20114_v7  ;;  %v18476_v11 = vld [vmem:[%s22221_s1 + $0x30] ss:$8 sps:$4 sm:$0xff]   ;;  %v86_v12 = vld [vmem:[%s22220_s0] sm:$0xff]  ;;  %v87_v15 = vld [vmem:[%s22220_s0 + $0x8] sm:$0xff]  ;;  %v100_v45 = vshrl.u32 %v99_v44, 7 }
  0x4f   :  { %403 = vmatpush1.bf16.msra.mxu1 %v18479_v8  ;;  %v18482_v13 = vld [vmem:[%s22222_s2 + $0x10] ss:$8 sps:$4 sm:$0xff]   ;;  %v18483_v14 = vld [vmem:[%s22222_s2 + $0x24] ss:$8 sps:$4 sm:$0xff]   ;;  %v18485_v16 = vld [vmem:[%s22222_s2 + $0x20] ss:$8 sps:$4 sm:$0xff]   ;;  %v88_v17 = vpack.c.bf16 %v87_v15, %v86_v12 }
  0x50   :  { %156 = vmatpush1.bf16.msra.mxu0 %v18470_v4  ;;  %404 = vmatprep.subr.bf16.mxu1 %v18480_v10  ;;  %v18486_v18 = vld [vmem:[%s22222_s2 + $0x34] ss:$8 sps:$4 sm:$0xff]   ;;  %v18488_v19 = vld [vmem:[%s22222_s2 + $0x30] ss:$8 sps:$4 sm:$0xff]   ;;  %v18489_v20 = vld [vmem:[%s22222_s2 + $0x44] ss:$8 sps:$4 sm:$0xff]  }
  0x51   :  { %157 = vmatprep.subr.bf16.mxu0 %v18471_v5  ;;  %v18491_v21 = vld [vmem:[%s22222_s2 + $0x40] ss:$8 sps:$4 sm:$0xff]   ;;  %v18492_v22 = vld [vmem:[%s22222_s2 + $0x54] ss:$8 sps:$4 sm:$0xff]   ;;  %v18494_v23 = vld [vmem:[%s22222_s2 + $0x50] ss:$8 sps:$4 sm:$0xff]  }
  0x52   :  { %v18495_v24 = vld [vmem:[%s22222_s2 + $0x64] ss:$8 sps:$4 sm:$0xff]   ;;  %v18497_v25 = vld [vmem:[%s22222_s2 + $0x60] ss:$8 sps:$4 sm:$0xff]   ;;  %v18498_v26 = vld [vmem:[%s22222_s2 + $0x74] ss:$8 sps:$4 sm:$0xff]  }
  0x53   :  { %405 = vmatpush1.bf16.msra.mxu1 %v18482_v13  ;;  %v18500_v27 = vld [vmem:[%s22222_s2 + $0x70] ss:$8 sps:$4 sm:$0xff]   ;;  %v18501_v28 = vld [vmem:[%s22222_s2 + $0x84] ss:$8 sps:$4 sm:$0xff]   ;;  %v18503_v29 = vld [vmem:[%s22222_s2 + $0x80] ss:$8 sps:$4 sm:$0xff]  }
  0x54   :  { %158 = vmatpush1.bf16.msra.mxu0 %v18473_v6  ;;  %406 = vmatprep.subr.bf16.mxu1 %v18483_v14  ;;  %v18504_v30 = vld [vmem:[%s22222_s2 + $0x94] ss:$8 sps:$4 sm:$0xff]   ;;  %v18506_v31 = vld [vmem:[%s22222_s2 + $0x90] ss:$8 sps:$4 sm:$0xff]   ;;  %v18507_v32 = vld [vmem:[%s22222_s2 + $0xa4] ss:$8 sps:$4 sm:$0xff]  }
  0x55   :  { %159 = vmatprep.subr.bf16.mxu0 %v18474_v9  ;;  %v18509_v33 = vld [vmem:[%s22222_s2 + $0xa0] ss:$8 sps:$4 sm:$0xff]   ;;  %v18510_v34 = vld [vmem:[%s22222_s2 + $0xb4] ss:$8 sps:$4 sm:$0xff]   ;;  %v18512_v35 = vld [vmem:[%s22222_s2 + $0xb0] ss:$8 sps:$4 sm:$0xff]  }
  0x56   :  { %v18513_v36 = vld [vmem:[%s22222_s2 + $0xc4] ss:$8 sps:$4 sm:$0xff]   ;;  %v18515_v37 = vld [vmem:[%s22222_s2 + $0xc0] ss:$8 sps:$4 sm:$0xff]   ;;  %v18516_v38 = vld [vmem:[%s22222_s2 + $0xd4] ss:$8 sps:$4 sm:$0xff]  }
  0x57   :  { %407 = vmatpush1.bf16.msra.mxu1 %v18485_v16  ;;  %v18518_v39 = vld [vmem:[%s22222_s2 + $0xd0] ss:$8 sps:$4 sm:$0xff]   ;;  %v18519_v40 = vld [vmem:[%s22222_s2 + $0xe4] ss:$8 sps:$4 sm:$0xff]   ;;  %v18521_v41 = vld [vmem:[%s22222_s2 + $0xe0] ss:$8 sps:$4 sm:$0xff]  }
  0x58   :  { %160 = vmatpush1.bf16.msra.mxu0 %v18476_v11  ;;  %408 = vmatprep.subr.bf16.mxu1 %v18486_v18  ;;  %v18522_v42 = vld [vmem:[%s22222_s2 + $0xf4] ss:$8 sps:$4 sm:$0xff]   ;;  %v18524_v43 = vld [vmem:[%s22222_s2 + $0xf0] ss:$8 sps:$4 sm:$0xff]   ;;  %v97_v46 = vld [vmem:[%s22223_s3] sm:$0x3] }
  0x59   :  { %657 = vmatprep.subr.bf16.mxu0 %v20114_v7  ;;  %v20229_v47 = vsub.s32 0, %v100_v45  ;;  %v20231_v48 = vsub.s32 1, %v100_v45  ;;  %v20238_v1 = vld [vmem:[%s22222_s2] ss:$8 sps:$4 sm:$0xff]   ;;  %v20244_v2 = vld [vmem:[%s22222_s2 + $0x14] ss:$8 sps:$4 sm:$0xff]  }
  0x5a   :  { %v20250_v3 = vld [vmem:[%s22222_s2 + $0x10] ss:$8 sps:$4 sm:$0xff]   ;;  %v20256_v4 = vld [vmem:[%s22222_s2 + $0x24] ss:$8 sps:$4 sm:$0xff]   ;;  %v20262_v5 = vld [vmem:[%s22222_s2 + $0x20] ss:$8 sps:$4 sm:$0xff]  }
  0x5b   :  { %16400 = vmatmul.mubr.msk.bf16.vlgmr.msra.gmra.mrb[0].mxu0 %vm149_vm0, %v88_v17  ;;  %409 = vmatpush1.bf16.msra.mxu1 %v18488_v19  ;;  %v102_v49 = vrot.slane %v97_v46, %v20229_v47  ;;  %v106_v50 = vrot.slane %v97_v46, %v20231_v48  ;;  %v20268_v6 = vld [vmem:[%s22222_s2 + $0x34] ss:$8 sps:$4 sm:$0xff]   ;;  %v20286_v9 = vld [vmem:[%s22222_s2 + $0x40] ss:$8 sps:$4 sm:$0xff]   ;;  %v20298_v11 = vld [vmem:[%s22222_s2 + $0x50] ss:$8 sps:$4 sm:$0xff]  }
  0x5c   :  { %658 = vmatpush1.bf16.msra.mxu0 %v18479_v8  ;;  %410 = vmatprep.subr.bf16.mxu1 %v18489_v20  ;;  %v20280_v8 = vld [vmem:[%s22222_s2 + $0x44] ss:$8 sps:$4 sm:$0xff]   ;;  %v20322_v15 = vld [vmem:[%s22222_s2 + $0x70] ss:$8 sps:$4 sm:$0xff]   ;;  %v20334_v17 = vld [vmem:[%s22222_s2 + $0x80] ss:$8 sps:$4 sm:$0xff]  }
  0x5d   :  { %659 = vmatprep.subr.bf16.mxu0 %v18480_v10  ;;  %v20292_v10 = vld [vmem:[%s22222_s2 + $0x54] ss:$8 sps:$4 sm:$0xff]   ;;  %v20304_v12 = vld [vmem:[%s22222_s2 + $0x64] ss:$8 sps:$4 sm:$0xff]  }
  0x5f   :  { %411 = vmatpush1.bf16.msra.mxu1 %v18491_v21 }
  0x60   :  { %660 = vmatpush1.bf16.msra.mxu0 %v18482_v13  ;;  %412 = vmatprep.subr.bf16.mxu1 %v18492_v22  ;;  %v20310_v13 = vld [vmem:[%s22222_s2 + $0x60] ss:$8 sps:$4 sm:$0xff]  }
  0x61   :  { %661 = vmatprep.subr.bf16.mxu0 %v18483_v14  ;;  %v20316_v14 = vld [vmem:[%s22222_s2 + $0x74] ss:$8 sps:$4 sm:$0xff]  }
  0x63   :  { %413 = vmatpush1.bf16.msra.mxu1 %v18494_v23 }
  0x64   :  { %662 = vmatpush1.bf16.msra.mxu0 %v18485_v16  ;;  %414 = vmatprep.subr.bf16.mxu1 %v18495_v24  ;;  %v20328_v16 = vld [vmem:[%s22222_s2 + $0x84] ss:$8 sps:$4 sm:$0xff]  }
  0x65   :  { %663 = vmatprep.subr.bf16.mxu0 %v18486_v18  ;;  %v20340_v18 = vld [vmem:[%s22222_s2 + $0x94] ss:$8 sps:$4 sm:$0xff]  }
  0x67   :  { %415 = vmatpush1.bf16.msra.mxu1 %v18497_v25 }
  0x68   :  { %664 = vmatpush1.bf16.msra.mxu0 %v18488_v19  ;;  %416 = vmatprep.subr.bf16.mxu1 %v18498_v26  ;;  %v20346_v19 = vld [vmem:[%s22222_s2 + $0x90] ss:$8 sps:$4 sm:$0xff]  }
  0x69   :  { %665 = vmatprep.subr.bf16.mxu0 %v18489_v20  ;;  %v20352_v20 = vld [vmem:[%s22222_s2 + $0xa4] ss:$8 sps:$4 sm:$0xff]  }
  0x6b   :  { %417 = vmatpush1.bf16.msra.mxu1 %v18500_v27 }
  0x6c   :  { %666 = vmatpush1.bf16.msra.mxu0 %v18491_v21  ;;  %418 = vmatprep.subr.bf16.mxu1 %v18501_v28  ;;  %v20358_v21 = vld [vmem:[%s22222_s2 + $0xa0] ss:$8 sps:$4 sm:$0xff]  }
  0x6d   :  { %667 = vmatprep.subr.bf16.mxu0 %v18492_v22  ;;  %v20364_v22 = vld [vmem:[%s22222_s2 + $0xb4] ss:$8 sps:$4 sm:$0xff]  }
  0x6f   :  { %419 = vmatpush1.bf16.msra.mxu1 %v18503_v29 }
  0x70   :  { %668 = vmatpush1.bf16.msra.mxu0 %v18494_v23  ;;  %420 = vmatprep.subr.bf16.mxu1 %v18504_v30  ;;  %v20370_v23 = vld [vmem:[%s22222_s2 + $0xb0] ss:$8 sps:$4 sm:$0xff]  }
  0x71   :  { %669 = vmatprep.subr.bf16.mxu0 %v18495_v24  ;;  %v20376_v24 = vld [vmem:[%s22222_s2 + $0xc4] ss:$8 sps:$4 sm:$0xff]  }
  0x73   :  { %421 = vmatpush1.bf16.msra.mxu1 %v18506_v31 }
  0x74   :  { %670 = vmatpush1.bf16.msra.mxu0 %v18497_v25  ;;  %422 = vmatprep.subr.bf16.mxu1 %v18507_v32  ;;  %v20382_v25 = vld [vmem:[%s22222_s2 + $0xc0] ss:$8 sps:$4 sm:$0xff]  }
  0x75   :  { %671 = vmatprep.subr.bf16.mxu0 %v18498_v26  ;;  %v20388_v26 = vld [vmem:[%s22222_s2 + $0xd4] ss:$8 sps:$4 sm:$0xff]  }
  0x77   :  { %423 = vmatpush1.bf16.msra.mxu1 %v18509_v33 }
  0x78   :  { %672 = vmatpush1.bf16.msra.mxu0 %v18500_v27  ;;  %424 = vmatprep.subr.bf16.mxu1 %v18510_v34  ;;  %v20394_v27 = vld [vmem:[%s22222_s2 + $0xd0] ss:$8 sps:$4 sm:$0xff]  }
  0x79   :  { %673 = vmatprep.subr.bf16.mxu0 %v18501_v28  ;;  %v20400_v28 = vld [vmem:[%s22222_s2 + $0xe4] ss:$8 sps:$4 sm:$0xff]  }
  0x7b   :  { %425 = vmatpush1.bf16.msra.mxu1 %v18512_v35 }
  0x7c   :  { %674 = vmatpush1.bf16.msra.mxu0 %v18503_v29  ;;  %426 = vmatprep.subr.bf16.mxu1 %v18513_v36  ;;  %v20406_v29 = vld [vmem:[%s22222_s2 + $0xe0] ss:$8 sps:$4 sm:$0xff]  }
  0x7d   :  { %675 = vmatprep.subr.bf16.mxu0 %v18504_v30  ;;  %v20412_v30 = vld [vmem:[%s22222_s2 + $0xf4] ss:$8 sps:$4 sm:$0xff]  }
  0x7f   :  { %427 = vmatpush1.bf16.msra.mxu1 %v18515_v37 }
  0x80   :  { %676 = vmatpush1.bf16.msra.mxu0 %v18506_v31  ;;  %428 = vmatprep.subr.bf16.mxu1 %v18516_v38  ;;  %v20418_v31 = vld [vmem:[%s22222_s2 + $0xf0] ss:$8 sps:$4 sm:$0xff]  }
  0x81   :  { %677 = vmatprep.subr.bf16.mxu0 %v18507_v32  ;;  %v19884_v32 = vld [vmem:[%s22222_s2 + $0x4] ss:$8 sps:$4 sm:$0xff]  }
  0x83   :  { %429 = vmatpush1.bf16.msra.mxu1 %v18518_v39 }
  0x84   :  { %678 = vmatpush1.bf16.msra.mxu0 %v18509_v33  ;;  %430 = vmatprep.subr.bf16.mxu1 %v18519_v40 }
  0x85   :  { %679 = vmatprep.subr.bf16.mxu0 %v18510_v34 }
  0x87   :  { %431 = vmatpush1.bf16.msra.mxu1 %v18521_v41 }
  0x88   :  { %680 = vmatpush1.bf16.msra.mxu0 %v18512_v35  ;;  %432 = vmatprep.subr.bf16.mxu1 %v18522_v42 }
  0x89   :  { %681 = vmatprep.subr.bf16.mxu0 %v18513_v36 }
  0x8b   :  { %433 = vmatpush1.bf16.msra.mxu1 %v18524_v43 }
  0x8c   :  { %682 = vmatpush1.bf16.msra.mxu0 %v18515_v37  ;;  %912 = vmatprep.subr.bf16.mxu1 %v20114_v7 }
  0x8d   :  { %683 = vmatprep.subr.bf16.mxu0 %v18516_v38 }
  0x90   :  { %684 = vmatpush1.bf16.msra.mxu0 %v18518_v39 }
  0x91   :  { %685 = vmatprep.subr.bf16.mxu0 %v18519_v40 }
  0x94   :  { %686 = vmatpush1.bf16.msra.mxu0 %v18521_v41 }
  0x95   :  { %687 = vmatprep.subr.bf16.mxu0 %v18522_v42 }
  0x98   :  { %688 = vmatpush1.bf16.msra.mxu0 %v18524_v43 }
  0x99   :  { %1167 = vmatprep.subr.bf16.mxu0 %v20114_v7  ;;  %v20274_v7 = vld [vmem:[%s22222_s2 + $0x30] ss:$8 sps:$4 sm:$0xff]  }
 0x12e   :  { %v187_v51 = vpop.f32.mrb[0].mxu0 }
 0x12f   :  { %v188_v52 = vadd.f32 %v187_v51, %v102_v49  ;;  %v189_v53 = vpop.f32.mrb[1].mxu0 }
 0x130   :  { %v190_v54 = vadd.f32 %v189_v53, %v106_v50  ;;  %v191_v55 = vpop.f32.mrb[2].mxu0 }
 0x131   :  { %196 = vst [vmem:[#allocation2] sm:$0xff] %v188_v52  ;;  %v192_v56 = vadd.f32 %v191_v55, %v102_v49  ;;  %v193_v57 = vpop.f32.mrb[3].mxu0 }
 0x132   :  { %197 = vst [vmem:[#allocation2 + $0x8] sm:$0xff] %v190_v54  ;;  %v194_v58 = vadd.f32 %v193_v57, %v106_v50 }
 0x133   :  { %198 = vst [vmem:[#allocation2 + $0x10] sm:$0xff] %v192_v56 }
 0x134   :  { %199 = vst [vmem:[#allocation2 + $0x18] sm:$0xff] %v194_v58 }
 0x138   :  { %v200_v60 = vld [vmem:[#allocation2] sm:$0x3]  ;;  %v206_v36 = vld [vmem:[#allocation2] sm:$0xc]  ;;  %v455_v54 = vld [vmem:[#allocation2] sm:$0x30] }
 0x139   :  { %v201_v59 = vld [vmem:[#allocation2 + $0x8] sm:$0x3]  ;;  %v207_v39 = vld [vmem:[#allocation2 + $0x8] sm:$0xc]  ;;  %v456_v57 = vld [vmem:[#allocation2 + $0x8] sm:$0x30] }
 0x13a   :  { %19597 = vtanh.f32 %v201_v59 }
 0x13b   :  { %19599 = vtanh.f32 %v200_v60 }
 0x144   :  { %v19598_v61 = vpop.eup %19597 }
 0x145   :  { %v19600_v62 = vpop.eup %19599  ;;  %205 = vst [vmem:[#allocation2 + $0x8] sm:$0x3] %v19598_v61  ;;  %v209_v63 = vpack.c.bf16 %v19598_v61, %v19598_v61 }
 0x146   :  { %204 = vst [vmem:[#allocation2] sm:$0x3] %v19600_v62  ;;  %v208_v0 = vpack.c.bf16 %v19600_v62, %v19600_v62 }
 0x147   :  { %434 = vmatprep.mubr.bf16.mxu1 %v209_v63 }
 0x148   :  { %435 = vmatmul.mubr.bf16.vlgmr.msra.gmra.mrb[0].mxu1 %v208_v0 }
 0x149   :  { %913 = vmatpush1.bf16.msra.mxu1 %v20238_v1 }
 0x14a   :  { %914 = vmatprep.subr.bf16.mxu1 %v20244_v2 }
 0x14d   :  { %915 = vmatpush1.bf16.msra.mxu1 %v20250_v3 }
 0x14e   :  { %916 = vmatprep.subr.bf16.mxu1 %v20256_v4 }
 0x151   :  { %917 = vmatpush1.bf16.msra.mxu1 %v20262_v5 }
 0x152   :  { %918 = vmatprep.subr.bf16.mxu1 %v20268_v6 }
 0x155   :  { %919 = vmatpush1.bf16.msra.mxu1 %v20274_v7 }
 0x156   :  { %920 = vmatprep.subr.bf16.mxu1 %v20280_v8 }
 0x159   :  { %921 = vmatpush1.bf16.msra.mxu1 %v20286_v9 }
 0x15a   :  { %922 = vmatprep.subr.bf16.mxu1 %v20292_v10 }
 0x15d   :  { %923 = vmatpush1.bf16.msra.mxu1 %v20298_v11 }
 0x15e   :  { %924 = vmatprep.subr.bf16.mxu1 %v20304_v12 }
 0x161   :  { %925 = vmatpush1.bf16.msra.mxu1 %v20310_v13 }
 0x162   :  { %926 = vmatprep.subr.bf16.mxu1 %v20316_v14 }
 0x165   :  { %927 = vmatpush1.bf16.msra.mxu1 %v20322_v15 }
 0x166   :  { %928 = vmatprep.subr.bf16.mxu1 %v20328_v16 }
 0x169   :  { %929 = vmatpush1.bf16.msra.mxu1 %v20334_v17 }
 0x16a   :  { %930 = vmatprep.subr.bf16.mxu1 %v20340_v18 }
 0x16d   :  { %931 = vmatpush1.bf16.msra.mxu1 %v20346_v19 }
 0x16e   :  { %932 = vmatprep.subr.bf16.mxu1 %v20352_v20 }
 0x171   :  { %933 = vmatpush1.bf16.msra.mxu1 %v20358_v21 }
 0x172   :  { %934 = vmatprep.subr.bf16.mxu1 %v20364_v22 }
 0x175   :  { %935 = vmatpush1.bf16.msra.mxu1 %v20370_v23 }
 0x176   :  { %936 = vmatprep.subr.bf16.mxu1 %v20376_v24 }
 0x179   :  { %937 = vmatpush1.bf16.msra.mxu1 %v20382_v25 }
 0x17a   :  { %938 = vmatprep.subr.bf16.mxu1 %v20388_v26 }
 0x17d   :  { %939 = vmatpush1.bf16.msra.mxu1 %v20394_v27 }
 0x17e   :  { %940 = vmatprep.subr.bf16.mxu1 %v20400_v28 }
 0x181   :  { %941 = vmatpush1.bf16.msra.mxu1 %v20406_v29 }
 0x182   :  { %942 = vmatprep.subr.bf16.mxu1 %v20412_v30 }
 0x185   :  { %943 = vmatpush1.bf16.msra.mxu1 %v20418_v31 }
 0x186   :  { %1410 = vmatprep.subr.bf16.mxu1 %v19884_v32 }
 0x21b   :  { %v436_v33 = vpop.f32.mrb[0].mxu1 }
 0x21c   :  { %v445_v34 = vrot.slane %v436_v33, 6  ;;  %v438_v35 = vpop.f32.mrb[1].mxu1 }
 0x21d   :  { %v446_v37 = vrot.slane %v438_v35, 6  ;;  %v440_v38 = vpop.f32.mrb[2].mxu1  ;;  %v18551_v35 = vld [vmem:[%s22222_s2 + $0x84] ss:$8 sps:$4 sm:$0xff]  }
 0x21e   :  { %v449_v40 = vadd.f32 %v445_v34, %v206_v36  ;;  %v441_v41 = vpop.f32.mrb[3].mxu1  ;;  %v18546_v34 = vld [vmem:[%s22222_s2 + $0x70] ss:$8 sps:$4 sm:$0xff]   ;;  %v18549_v36 = vld [vmem:[%s22222_s2 + $0x80] ss:$8 sps:$4 sm:$0xff]  }
 0x21f   :  { %v450_v42 = vadd.f32 %v446_v37, %v207_v39  ;;  %v18554_v37 = vld [vmem:[%s22222_s2 + $0x94] ss:$8 sps:$4 sm:$0xff]   ;;  %v18552_v38 = vld [vmem:[%s22222_s2 + $0x90] ss:$8 sps:$4 sm:$0xff]   ;;  %v18557_v39 = vld [vmem:[%s22222_s2 + $0xa4] ss:$8 sps:$4 sm:$0xff]  }
 0x220   :  { %19601 = vtanh.f32 %v449_v40  ;;  %v18555_v40 = vld [vmem:[%s22222_s2 + $0xa0] ss:$8 sps:$4 sm:$0xff]   ;;  %v965_v41 = vld [vmem:[#allocation2 + $0x10] sm:$0x3] }
 0x221   :  { %19603 = vtanh.f32 %v450_v42 }
 0x22a   :  { %v19602_v43 = vpop.eup %19601 }
 0x22b   :  { %v19604_v44 = vpop.eup %19603  ;;  %453 = vst [vmem:[#allocation2] sm:$0xc] %v19602_v43  ;;  %v457_v45 = vpack.c.bf16 %v19602_v43, %v19602_v43 }
 0x22c   :  { %454 = vst [vmem:[#allocation2 + $0x8] sm:$0xc] %v19604_v44  ;;  %v458_v46 = vpack.c.bf16 %v19604_v44, %v19604_v44  ;;  %v966_v44 = vld [vmem:[#allocation2 + $0x18] sm:$0x3] }
 0x22d   :  { %v493_v50 = vrot.slane %v457_v45, 1 }
 0x22e   :  { %v494_v49 = vrot.slane %v458_v46, 1 }
 0x230   :  { %689 = vmatprep.mubr.bf16.mxu0 %v494_v49 }
 0x231   :  { %690 = vmatmul.mubr.bf16.vlgmr.msra.gmra.mrb[4].mxu0 %v493_v50 }
 0x232   :  { %1168 = vmatpush1.bf16.msra.mxu0 %v20238_v1 }
 0x233   :  { %1169 = vmatprep.subr.bf16.mxu0 %v20244_v2 }
 0x236   :  { %1170 = vmatpush1.bf16.msra.mxu0 %v20250_v3 }
 0x237   :  { %1171 = vmatprep.subr.bf16.mxu0 %v20256_v4 }
 0x23a   :  { %1172 = vmatpush1.bf16.msra.mxu0 %v20262_v5 }
 0x23b   :  { %1173 = vmatprep.subr.bf16.mxu0 %v20268_v6 }
 0x23e   :  { %1174 = vmatpush1.bf16.msra.mxu0 %v20274_v7 }
 0x23f   :  { %1175 = vmatprep.subr.bf16.mxu0 %v20280_v8 }
 0x242   :  { %1176 = vmatpush1.bf16.msra.mxu0 %v20286_v9 }
 0x243   :  { %1177 = vmatprep.subr.bf16.mxu0 %v20292_v10 }
 0x246   :  { %1178 = vmatpush1.bf16.msra.mxu0 %v20298_v11 }
 0x247   :  { %1179 = vmatprep.subr.bf16.mxu0 %v20304_v12 }
 0x24a   :  { %1180 = vmatpush1.bf16.msra.mxu0 %v20310_v13 }
 0x24b   :  { %1181 = vmatprep.subr.bf16.mxu0 %v20316_v14 }
 0x24e   :  { %1182 = vmatpush1.bf16.msra.mxu0 %v20322_v15 }
 0x24f   :  { %1183 = vmatprep.subr.bf16.mxu0 %v20328_v16 }
 0x252   :  { %1184 = vmatpush1.bf16.msra.mxu0 %v20334_v17 }
 0x253   :  { %1185 = vmatprep.subr.bf16.mxu0 %v20340_v18 }
 0x256   :  { %1186 = vmatpush1.bf16.msra.mxu0 %v20346_v19 }
 0x257   :  { %1187 = vmatprep.subr.bf16.mxu0 %v20352_v20 }
 0x25a   :  { %1188 = vmatpush1.bf16.msra.mxu0 %v20358_v21 }
 0x25b   :  { %1189 = vmatprep.subr.bf16.mxu0 %v20364_v22 }
 0x25e   :  { %1190 = vmatpush1.bf16.msra.mxu0 %v20370_v23 }
 0x25f   :  { %1191 = vmatprep.subr.bf16.mxu0 %v20376_v24 }
 0x262   :  { %1192 = vmatpush1.bf16.msra.mxu0 %v20382_v25 }
 0x263   :  { %1193 = vmatprep.subr.bf16.mxu0 %v20388_v26 }
 0x266   :  { %1194 = vmatpush1.bf16.msra.mxu0 %v20394_v27 }
 0x267   :  { %1195 = vmatprep.subr.bf16.mxu0 %v20400_v28 }
 0x26a   :  { %1196 = vmatpush1.bf16.msra.mxu0 %v20406_v29 }
 0x26b   :  { %1197 = vmatprep.subr.bf16.mxu0 %v20412_v30 }
 0x26e   :  { %1198 = vmatpush1.bf16.msra.mxu0 %v20418_v31 }
 0x304   :  { %v691_v51 = vpop.f32.mrb[4].mxu0 }
 0x305   :  { %v700_v52 = vrot.slane %v691_v51, 4  ;;  %v693_v53 = vpop.f32.mrb[5].mxu0 }
 0x306   :  { %v701_v55 = vrot.slane %v693_v53, 4  ;;  %v695_v56 = vpop.f32.mrb[6].mxu0 }
 0x307   :  { %v704_v58 = vadd.f32 %v700_v52, %v455_v54  ;;  %v696_v59 = vpop.f32.mrb[7].mxu0  ;;  %v18558_v56 = vld [vmem:[%s22222_s2 + $0xb0] ss:$8 sps:$4 sm:$0xff]  }
 0x308   :  { %v705_v60 = vadd.f32 %v701_v55, %v456_v57  ;;  %v18560_v55 = vld [vmem:[%s22222_s2 + $0xb4] ss:$8 sps:$4 sm:$0xff]   ;;  %v18563_v57 = vld [vmem:[%s22222_s2 + $0xc4] ss:$8 sps:$4 sm:$0xff]  }
 0x309   :  { %19605 = vtanh.f32 %v704_v58  ;;  %v18561_v58 = vld [vmem:[%s22222_s2 + $0xc0] ss:$8 sps:$4 sm:$0xff]   ;;  %v18566_v59 = vld [vmem:[%s22222_s2 + $0xd4] ss:$8 sps:$4 sm:$0xff]  }
 0x30a   :  { %19607 = vtanh.f32 %v705_v60  ;;  %v18564_v60 = vld [vmem:[%s22222_s2 + $0xd0] ss:$8 sps:$4 sm:$0xff]  }
 0x313   :  { %v19606_v61 = vpop.eup %19605 }
 0x314   :  { %v19608_v62 = vpop.eup %19607  ;;  %708 = vst [vmem:[#allocation2] sm:$0x30] %v19606_v61  ;;  %v712_v63 = vpack.c.bf16 %v19606_v61, %v19606_v61  ;;  %v18569_v61 = vld [vmem:[%s22222_s2 + $0xe4] ss:$8 sps:$4 sm:$0xff]  }
 0x315   :  { %709 = vst [vmem:[#allocation2 + $0x8] sm:$0x30] %v19608_v62  ;;  %v713_v0 = vpack.c.bf16 %v19608_v62, %v19608_v62  ;;  %v18567_v62 = vld [vmem:[%s22222_s2 + $0xe0] ss:$8 sps:$4 sm:$0xff]  }
 0x316   :  { %v748_v33 = vrot.slane %v712_v63, 2  ;;  %v18570_v63 = vld [vmem:[%s22222_s2 + $0xf0] ss:$8 sps:$4 sm:$0xff]  }
 0x317   :  { %v749_v32 = vrot.slane %v713_v0, 2  ;;  %v18572_v0 = vld [vmem:[%s22222_s2 + $0xf4] ss:$8 sps:$4 sm:$0xff]  }
 0x319   :  { %944 = vmatprep.mubr.bf16.mxu1 %v749_v32 }
 0x31a   :  { %945 = vmatmul.mubr.bf16.vlgmr.msra.gmra.mrb[4].mxu1 %v748_v33 }
 0x31b   :  { %1411 = vmatpush1.bf16.msra.mxu1 %v20238_v1 }
 0x31c   :  { %1412 = vmatprep.subr.bf16.mxu1 %v20244_v2 }
 0x31f   :  { %1413 = vmatpush1.bf16.msra.mxu1 %v20250_v3 }
 0x320   :  { %1414 = vmatprep.subr.bf16.mxu1 %v20256_v4  ;;  %v710_v4 = vld [vmem:[#allocation2] sm:$0xc0] }
 0x323   :  { %1415 = vmatpush1.bf16.msra.mxu1 %v20262_v5 }
 0x324   :  { %1416 = vmatprep.subr.bf16.mxu1 %v20268_v6 }
 0x327   :  { %1417 = vmatpush1.bf16.msra.mxu1 %v20274_v7  ;;  %v711_v7 = vld [vmem:[#allocation2 + $0x8] sm:$0xc0] }
 0x328   :  { %1418 = vmatprep.subr.bf16.mxu1 %v20280_v8 }
 0x32b   :  { %1419 = vmatpush1.bf16.msra.mxu1 %v20286_v9 }
 0x32c   :  { %1420 = vmatprep.subr.bf16.mxu1 %v20292_v10 }
 0x32f   :  { %1421 = vmatpush1.bf16.msra.mxu1 %v20298_v11 }
 0x330   :  { %1422 = vmatprep.subr.bf16.mxu1 %v20304_v12 }
 0x333   :  { %1423 = vmatpush1.bf16.msra.mxu1 %v20310_v13 }
 0x334   :  { %1424 = vmatprep.subr.bf16.mxu1 %v20316_v14 }
 0x337   :  { %1425 = vmatpush1.bf16.msra.mxu1 %v20322_v15 }
 0x338   :  { %1426 = vmatprep.subr.bf16.mxu1 %v20328_v16 }
 0x33b   :  { %1427 = vmatpush1.bf16.msra.mxu1 %v20334_v17  ;;  %v18525_v17 = vld [vmem:[%s22222_s2] ss:$8 sps:$4 sm:$0xff]  }
 0x33c   :  { %1428 = vmatprep.subr.bf16.mxu1 %v20340_v18  ;;  %v18527_v18 = vld [vmem:[%s22222_s2 + $0x4] ss:$8 sps:$4 sm:$0xff]  }
 0x33d   :  { %1665 = vmatprep.subr.bf16.mxu0 %v18527_v18 }
 0x33f   :  { %1429 = vmatpush1.bf16.msra.mxu1 %v20346_v19  ;;  %v18530_v19 = vld [vmem:[%s22222_s2 + $0x14] ss:$8 sps:$4 sm:$0xff]  }
 0x340   :  { %1430 = vmatprep.subr.bf16.mxu1 %v20352_v20  ;;  %v18528_v20 = vld [vmem:[%s22222_s2 + $0x10] ss:$8 sps:$4 sm:$0xff]  }
 0x343   :  { %1431 = vmatpush1.bf16.msra.mxu1 %v20358_v21  ;;  %v18533_v21 = vld [vmem:[%s22222_s2 + $0x24] ss:$8 sps:$4 sm:$0xff]  }
 0x344   :  { %1432 = vmatprep.subr.bf16.mxu1 %v20364_v22  ;;  %v18531_v22 = vld [vmem:[%s22222_s2 + $0x20] ss:$8 sps:$4 sm:$0xff]  }
 0x347   :  { %1433 = vmatpush1.bf16.msra.mxu1 %v20370_v23  ;;  %v18536_v23 = vld [vmem:[%s22222_s2 + $0x34] ss:$8 sps:$4 sm:$0xff]  }
 0x348   :  { %1434 = vmatprep.subr.bf16.mxu1 %v20376_v24  ;;  %v18534_v24 = vld [vmem:[%s22222_s2 + $0x30] ss:$8 sps:$4 sm:$0xff]  }
 0x34b   :  { %1435 = vmatpush1.bf16.msra.mxu1 %v20382_v25  ;;  %v18539_v25 = vld [vmem:[%s22222_s2 + $0x44] ss:$8 sps:$4 sm:$0xff]  }
 0x34c   :  { %1436 = vmatprep.subr.bf16.mxu1 %v20388_v26  ;;  %v18537_v26 = vld [vmem:[%s22222_s2 + $0x40] ss:$8 sps:$4 sm:$0xff]  }
 0x34f   :  { %1437 = vmatpush1.bf16.msra.mxu1 %v20394_v27  ;;  %v18542_v27 = vld [vmem:[%s22222_s2 + $0x54] ss:$8 sps:$4 sm:$0xff]  }
 0x350   :  { %1438 = vmatprep.subr.bf16.mxu1 %v20400_v28  ;;  %v18540_v28 = vld [vmem:[%s22222_s2 + $0x50] ss:$8 sps:$4 sm:$0xff]  }
 0x353   :  { %1439 = vmatpush1.bf16.msra.mxu1 %v20406_v29  ;;  %v18545_v29 = vld [vmem:[%s22222_s2 + $0x64] ss:$8 sps:$4 sm:$0xff]  }
 0x354   :  { %1440 = vmatprep.subr.bf16.mxu1 %v20412_v30  ;;  %v18543_v30 = vld [vmem:[%s22222_s2 + $0x60] ss:$8 sps:$4 sm:$0xff]  }
 0x357   :  { %1441 = vmatpush1.bf16.msra.mxu1 %v20418_v31  ;;  %v18548_v31 = vld [vmem:[%s22222_s2 + $0x74] ss:$8 sps:$4 sm:$0xff]  }
 0x358   :  { %1920 = vmatprep.subr.bf16.mxu1 %v18527_v18  ;;  %v18576_v18 = vld [vmem:[#allocation3 + $0x10] ss:$8 sps:$4 sm:$0xff]  }
 0x3ed   :  { %v946_v1 = vpop.f32.mrb[4].mxu1 }
 0x3ee   :  { %v955_v2 = vrot.slane %v946_v1, 2  ;;  %v948_v3 = vpop.f32.mrb[5].mxu1 }
 0x3ef   :  { %v956_v5 = vrot.slane %v948_v3, 2  ;;  %v950_v6 = vpop.f32.mrb[6].mxu1 }
 0x3f0   :  { %v959_v8 = vadd.f32 %v955_v2, %v710_v4  ;;  %v951_v9 = vpop.f32.mrb[7].mxu1  ;;  %v1214_v2 = vld [vmem:[#allocation2 + $0x10] sm:$0xc] }
 0x3f1   :  { %v960_v10 = vadd.f32 %v956_v5, %v711_v7  ;;  %v1215_v5 = vld [vmem:[#allocation2 + $0x18] sm:$0xc] }
 0x3f2   :  { %19609 = vtanh.f32 %v959_v8 }
 0x3f3   :  { %19611 = vtanh.f32 %v960_v10 }
 0x3fc   :  { %v19610_v11 = vpop.eup %19609 }
 0x3fd   :  { %v19612_v12 = vpop.eup %19611  ;;  %963 = vst [vmem:[#allocation2] sm:$0xc0] %v19610_v11  ;;  %v967_v13 = vpack.c.bf16 %v19610_v11, %v19610_v11 }
 0x3fe   :  { %964 = vst [vmem:[#allocation2 + $0x8] sm:$0xc0] %v19612_v12  ;;  %v968_v14 = vpack.c.bf16 %v19612_v12, %v19612_v12 }
 0x3ff   :  { %v1003_v16 = vrot.slane %v967_v13, 3 }
 0x400   :  { %v1004_v15 = vrot.slane %v968_v14, 3 }
 0x402   :  { %1199 = vmatprep.mubr.bf16.mxu0 %v1004_v15  ;;  %v18573_v15 = vld [vmem:[#allocation3] ss:$8 sps:$4 sm:$0xff]  }
 0x403   :  { %1200 = vmatmul.mubr.bf16.vlgmr.msra.gmra.mrb[8].mxu0 %v1003_v16  ;;  %v18575_v16 = vld [vmem:[#allocation3 + $0x4] ss:$8 sps:$4 sm:$0xff]  }
 0x404   :  { %1666 = vmatpush1.bf16.msra.mxu0 %v18525_v17 }
 0x405   :  { %1667 = vmatprep.subr.bf16.mxu0 %v18530_v19 }
 0x408   :  { %1668 = vmatpush1.bf16.msra.mxu0 %v18528_v20 }
 0x409   :  { %1669 = vmatprep.subr.bf16.mxu0 %v18533_v21 }
 0x40c   :  { %1670 = vmatpush1.bf16.msra.mxu0 %v18531_v22 }
 0x40d   :  { %1671 = vmatprep.subr.bf16.mxu0 %v18536_v23 }
 0x410   :  { %1672 = vmatpush1.bf16.msra.mxu0 %v18534_v24 }
 0x411   :  { %1673 = vmatprep.subr.bf16.mxu0 %v18539_v25 }
 0x414   :  { %1674 = vmatpush1.bf16.msra.mxu0 %v18537_v26 }
 0x415   :  { %1675 = vmatprep.subr.bf16.mxu0 %v18542_v27 }
 0x418   :  { %1676 = vmatpush1.bf16.msra.mxu0 %v18540_v28 }
 0x419   :  { %1677 = vmatprep.subr.bf16.mxu0 %v18545_v29 }
 0x41c   :  { %1678 = vmatpush1.bf16.msra.mxu0 %v18543_v30 }
 0x41d   :  { %1679 = vmatprep.subr.bf16.mxu0 %v18548_v31 }
 0x420   :  { %1680 = vmatpush1.bf16.msra.mxu0 %v18546_v34 }
 0x421   :  { %1681 = vmatprep.subr.bf16.mxu0 %v18551_v35 }
 0x424   :  { %1682 = vmatpush1.bf16.msra.mxu0 %v18549_v36 }
 0x425   :  { %1683 = vmatprep.subr.bf16.mxu0 %v18554_v37 }
 0x428   :  { %1684 = vmatpush1.bf16.msra.mxu0 %v18552_v38 }
 0x429   :  { %1685 = vmatprep.subr.bf16.mxu0 %v18557_v39 }
 0x42c   :  { %1686 = vmatpush1.bf16.msra.mxu0 %v18555_v40 }
 0x42d   :  { %1687 = vmatprep.subr.bf16.mxu0 %v18560_v55 }
 0x430   :  { %1688 = vmatpush1.bf16.msra.mxu0 %v18558_v56 }
 0x431   :  { %1689 = vmatprep.subr.bf16.mxu0 %v18563_v57 }
 0x434   :  { %1690 = vmatpush1.bf16.msra.mxu0 %v18561_v58 }
 0x435   :  { %1691 = vmatprep.subr.bf16.mxu0 %v18566_v59 }
 0x438   :  { %1692 = vmatpush1.bf16.msra.mxu0 %v18564_v60 }
 0x439   :  { %1693 = vmatprep.subr.bf16.mxu0 %v18569_v61 }
 0x43c   :  { %1694 = vmatpush1.bf16.msra.mxu0 %v18567_v62 }
 0x43d   :  { %1695 = vmatprep.subr.bf16.mxu0 %v18572_v0 }
 0x440   :  { %1696 = vmatpush1.bf16.msra.mxu0 %v18570_v63 }
 0x441   :  { %2183 = vmatprep.subr.bf16.mxu0 %v18575_v16  ;;  %v20627_v16 = vld [vmem:[#allocation5 + $0x70] ss:$8 sps:$4 sm:$0xff]  }
 0x4d6   :  { %v1201_v42 = vpop.f32.mrb[8].mxu0 }
 0x4d7   :  { %v1208_v43 = vadd.f32 %v1201_v42, %v965_v41  ;;  %v1203_v45 = vpop.f32.mrb[9].mxu0  ;;  %v1464_v41 = vld [vmem:[#allocation2 + $0x18] sm:$0x30] }
 0x4d8   :  { %v1209_v46 = vadd.f32 %v1203_v45, %v966_v44  ;;  %v1205_v49 = vpop.f32.mrb[10].mxu0 }
 0x4d9   :  { %19613 = vtanh.f32 %v1208_v43  ;;  %v1206_v50 = vpop.f32.mrb[11].mxu0 }
 0x4da   :  { %19615 = vtanh.f32 %v1209_v46 }
 0x4e3   :  { %v19614_v51 = vpop.eup %19613 }
 0x4e4   :  { %v19616_v52 = vpop.eup %19615  ;;  %1212 = vst [vmem:[#allocation2 + $0x10] sm:$0x3] %v19614_v51  ;;  %v1216_v54 = vpack.c.bf16 %v19614_v51, %v19614_v51 }
 0x4e5   :  { %1213 = vst [vmem:[#allocation2 + $0x18] sm:$0x3] %v19616_v52  ;;  %v1217_v53 = vpack.c.bf16 %v19616_v52, %v19616_v52 }
 0x4e7   :  { %1442 = vmatprep.mubr.bf16.mxu1 %v1217_v53  ;;  %v18602_v53 = vld [vmem:[#allocation3 + $0x94] ss:$8 sps:$4 sm:$0xff]  }
 0x4e8   :  { %1443 = vmatmul.mubr.bf16.vlgmr.msra.gmra.mrb[8].mxu1 %v1216_v54  ;;  %v18600_v54 = vld [vmem:[#allocation3 + $0x90] ss:$8 sps:$4 sm:$0xff]  }
 0x4e9   :  { %1921 = vmatpush1.bf16.msra.mxu1 %v18525_v17  ;;  %v18578_v17 = vld [vmem:[#allocation3 + $0x14] ss:$8 sps:$4 sm:$0xff]  }
 0x4ea   :  { %1922 = vmatprep.subr.bf16.mxu1 %v18530_v19  ;;  %v18581_v19 = vld [vmem:[#allocation3 + $0x24] ss:$8 sps:$4 sm:$0xff]  }
 0x4ed   :  { %1923 = vmatpush1.bf16.msra.mxu1 %v18528_v20  ;;  %v18579_v20 = vld [vmem:[#allocation3 + $0x20] ss:$8 sps:$4 sm:$0xff]  }
 0x4ee   :  { %1924 = vmatprep.subr.bf16.mxu1 %v18533_v21  ;;  %v18584_v21 = vld [vmem:[#allocation3 + $0x34] ss:$8 sps:$4 sm:$0xff]  }
 0x4f1   :  { %1925 = vmatpush1.bf16.msra.mxu1 %v18531_v22  ;;  %v18582_v22 = vld [vmem:[#allocation3 + $0x30] ss:$8 sps:$4 sm:$0xff]  }
 0x4f2   :  { %1926 = vmatprep.subr.bf16.mxu1 %v18536_v23  ;;  %v18587_v23 = vld [vmem:[#allocation3 + $0x44] ss:$8 sps:$4 sm:$0xff]  }
 0x4f5   :  { %1927 = vmatpush1.bf16.msra.mxu1 %v18534_v24  ;;  %v18585_v24 = vld [vmem:[#allocation3 + $0x40] ss:$8 sps:$4 sm:$0xff]  }
 0x4f6   :  { %1928 = vmatprep.subr.bf16.mxu1 %v18539_v25  ;;  %v18590_v25 = vld [vmem:[#allocation3 + $0x54] ss:$8 sps:$4 sm:$0xff]  }
 0x4f9   :  { %1929 = vmatpush1.bf16.msra.mxu1 %v18537_v26  ;;  %v18588_v26 = vld [vmem:[#allocation3 + $0x50] ss:$8 sps:$4 sm:$0xff]  }
 0x4fa   :  { %1930 = vmatprep.subr.bf16.mxu1 %v18542_v27  ;;  %v18593_v27 = vld [vmem:[#allocation3 + $0x64] ss:$8 sps:$4 sm:$0xff]  }
 0x4fd   :  { %1931 = vmatpush1.bf16.msra.mxu1 %v18540_v28  ;;  %v18591_v28 = vld [vmem:[#allocation3 + $0x60] ss:$8 sps:$4 sm:$0xff]  }
 0x4fe   :  { %1932 = vmatprep.subr.bf16.mxu1 %v18545_v29  ;;  %v18596_v29 = vld [vmem:[#allocation3 + $0x74] ss:$8 sps:$4 sm:$0xff]  }
 0x501   :  { %1933 = vmatpush1.bf16.msra.mxu1 %v18543_v30  ;;  %v18594_v30 = vld [vmem:[#allocation3 + $0x70] ss:$8 sps:$4 sm:$0xff]  }
 0x502   :  { %1934 = vmatprep.subr.bf16.mxu1 %v18548_v31  ;;  %v18599_v31 = vld [vmem:[#allocation3 + $0x84] ss:$8 sps:$4 sm:$0xff]  }
 0x505   :  { %1935 = vmatpush1.bf16.msra.mxu1 %v18546_v34  ;;  %v18597_v34 = vld [vmem:[#allocation3 + $0x80] ss:$8 sps:$4 sm:$0xff]  }
 0x506   :  { %1936 = vmatprep.subr.bf16.mxu1 %v18551_v35 }
 0x509   :  { %1937 = vmatpush1.bf16.msra.mxu1 %v18549_v36 }
 0x50a   :  { %1938 = vmatprep.subr.bf16.mxu1 %v18554_v37 }
 0x50d   :  { %1939 = vmatpush1.bf16.msra.mxu1 %v18552_v38  ;;  %v1463_v38 = vld [vmem:[#allocation2 + $0x10] sm:$0x30] }
 0x50e   :  { %1940 = vmatprep.subr.bf16.mxu1 %v18557_v39 }
 0x511   :  { %1941 = vmatpush1.bf16.msra.mxu1 %v18555_v40 }
 0x512   :  { %1942 = vmatprep.subr.bf16.mxu1 %v18560_v55  ;;  %v18605_v55 = vld [vmem:[#allocation3 + $0xa4] ss:$8 sps:$4 sm:$0xff]  }
 0x515   :  { %1943 = vmatpush1.bf16.msra.mxu1 %v18558_v56  ;;  %v18603_v56 = vld [vmem:[#allocation3 + $0xa0] ss:$8 sps:$4 sm:$0xff]  }
 0x516   :  { %1944 = vmatprep.subr.bf16.mxu1 %v18563_v57  ;;  %v18608_v57 = vld [vmem:[#allocation3 + $0xb4] ss:$8 sps:$4 sm:$0xff]  }
 0x519   :  { %1945 = vmatpush1.bf16.msra.mxu1 %v18561_v58  ;;  %v18606_v58 = vld [vmem:[#allocation3 + $0xb0] ss:$8 sps:$4 sm:$0xff]  }
 0x51a   :  { %1946 = vmatprep.subr.bf16.mxu1 %v18566_v59  ;;  %v18611_v59 = vld [vmem:[#allocation3 + $0xc4] ss:$8 sps:$4 sm:$0xff]  }
 0x51d   :  { %1947 = vmatpush1.bf16.msra.mxu1 %v18564_v60  ;;  %v18609_v60 = vld [vmem:[#allocation3 + $0xc0] ss:$8 sps:$4 sm:$0xff]  }
 0x51e   :  { %1948 = vmatprep.subr.bf16.mxu1 %v18569_v61  ;;  %v18614_v61 = vld [vmem:[#allocation3 + $0xd4] ss:$8 sps:$4 sm:$0xff]  }
 0x521   :  { %1949 = vmatpush1.bf16.msra.mxu1 %v18567_v62  ;;  %v18612_v62 = vld [vmem:[#allocation3 + $0xd0] ss:$8 sps:$4 sm:$0xff]  }
 0x522   :  { %1950 = vmatprep.subr.bf16.mxu1 %v18572_v0  ;;  %v18615_v0 = vld [vmem:[#allocation3 + $0xe0] ss:$8 sps:$4 sm:$0xff]  }
 0x525   :  { %1951 = vmatpush1.bf16.msra.mxu1 %v18570_v63  ;;  %v18617_v63 = vld [vmem:[#allocation3 + $0xe4] ss:$8 sps:$4 sm:$0xff]  }
 0x5bb   :  { %v1444_v32 = vpop.f32.mrb[8].mxu1 }
 0x5bc   :  { %v1453_v33 = vrot.slane %v1444_v32, 6  ;;  %v1446_v1 = vpop.f32.mrb[9].mxu1  ;;  %v18620_v32 = vld [vmem:[#allocation3 + $0xf4] ss:$8 sps:$4 sm:$0xff]  }
 0x5bd   :  { %v1454_v3 = vrot.slane %v1446_v1, 6  ;;  %v1448_v4 = vpop.f32.mrb[10].mxu1  ;;  %v20582_v1 = vld [vmem:[#allocation5] ss:$8 sps:$4 sm:$0xff]  }
 0x5be   :  { %v1457_v6 = vadd.f32 %v1453_v33, %v1214_v2  ;;  %v1449_v7 = vpop.f32.mrb[11].mxu1  ;;  %v18618_v33 = vld [vmem:[#allocation3 + $0xf0] ss:$8 sps:$4 sm:$0xff]   ;;  %v20584_v2 = vld [vmem:[#allocation5 + $0x4] ss:$8 sps:$4 sm:$0xff]  }
 0x5bf   :  { %v1458_v8 = vadd.f32 %v1454_v3, %v1215_v5  ;;  %v20586_v3 = vld [vmem:[#allocation5 + $0x14] ss:$8 sps:$4 sm:$0xff]   ;;  %2432 = vmatprep.subr.bf16.mxu1 %v20584_v2  ;;  %v20591_v4 = vld [vmem:[#allocation5 + $0x10] ss:$8 sps:$4 sm:$0xff]   ;;  %v20594_v5 = vld [vmem:[#allocation5 + $0x24] ss:$8 sps:$4 sm:$0xff]  }
 0x5c0   :  { %19617 = vtanh.f32 %v1457_v6  ;;  %v20597_v6 = vld [vmem:[#allocation5 + $0x20] ss:$8 sps:$4 sm:$0xff]   ;;  %v20600_v7 = vld [vmem:[#allocation5 + $0x34] ss:$8 sps:$4 sm:$0xff]  }
 0x5c1   :  { %19619 = vtanh.f32 %v1458_v8  ;;  %v20603_v8 = vld [vmem:[#allocation5 + $0x30] ss:$8 sps:$4 sm:$0xff]  }
 0x5ca   :  { %v19618_v9 = vpop.eup %19617 }
 0x5cb   :  { %v19620_v10 = vpop.eup %19619  ;;  %1461 = vst [vmem:[#allocation2 + $0x10] sm:$0xc] %v19618_v9  ;;  %v1465_v11 = vpack.c.bf16 %v19618_v9, %v19618_v9  ;;  %v20606_v9 = vld [vmem:[#allocation5 + $0x44] ss:$8 sps:$4 sm:$0xff]  }
 0x5cc   :  { %1462 = vst [vmem:[#allocation2 + $0x18] sm:$0xc] %v19620_v10  ;;  %v1466_v12 = vpack.c.bf16 %v19620_v10, %v19620_v10  ;;  %v20609_v10 = vld [vmem:[#allocation5 + $0x40] ss:$8 sps:$4 sm:$0xff]  }
 0x5cd   :  { %v1501_v14 = vrot.slane %v1465_v11, 1  ;;  %v20612_v11 = vld [vmem:[#allocation5 + $0x54] ss:$8 sps:$4 sm:$0xff]  }
 0x5ce   :  { %v1502_v13 = vrot.slane %v1466_v12, 1  ;;  %v20615_v12 = vld [vmem:[#allocation5 + $0x50] ss:$8 sps:$4 sm:$0xff]  }
 0x5d0   :  { %1697 = vmatprep.mubr.bf16.mxu0 %v1502_v13  ;;  %v20618_v13 = vld [vmem:[#allocation5 + $0x64] ss:$8 sps:$4 sm:$0xff]  }
 0x5d1   :  { %1698 = vmatmul.mubr.bf16.vlgmr.msra.gmra.mrb[12].mxu0 %v1501_v14  ;;  %v20621_v14 = vld [vmem:[#allocation5 + $0x60] ss:$8 sps:$4 sm:$0xff]  }
 0x5d2   :  { %2184 = vmatpush1.bf16.msra.mxu0 %v18573_v15  ;;  %v20624_v15 = vld [vmem:[#allocation5 + $0x74] ss:$8 sps:$4 sm:$0xff]  }
 0x5d3   :  { %2185 = vmatprep.subr.bf16.mxu0 %v18578_v17  ;;  %v20630_v17 = vld [vmem:[#allocation5 + $0x84] ss:$8 sps:$4 sm:$0xff]  }
 0x5d6   :  { %2186 = vmatpush1.bf16.msra.mxu0 %v18576_v18  ;;  %v20633_v18 = vld [vmem:[#allocation5 + $0x80] ss:$8 sps:$4 sm:$0xff]  }
 0x5d7   :  { %2187 = vmatprep.subr.bf16.mxu0 %v18581_v19  ;;  %v20636_v19 = vld [vmem:[#allocation5 + $0x94] ss:$8 sps:$4 sm:$0xff]  }
 0x5da   :  { %2188 = vmatpush1.bf16.msra.mxu0 %v18579_v20  ;;  %v20639_v20 = vld [vmem:[#allocation5 + $0x90] ss:$8 sps:$4 sm:$0xff]  }
 0x5db   :  { %2189 = vmatprep.subr.bf16.mxu0 %v18584_v21 }
 0x5de   :  { %2190 = vmatpush1.bf16.msra.mxu0 %v18582_v22 }
 0x5df   :  { %2191 = vmatprep.subr.bf16.mxu0 %v18587_v23 }
 0x5e2   :  { %2192 = vmatpush1.bf16.msra.mxu0 %v18585_v24  ;;  %v1718_v24 = vld [vmem:[#allocation2 + $0x10] sm:$0xc0] }
 0x5e3   :  { %2193 = vmatprep.subr.bf16.mxu0 %v18590_v25 }
 0x5e6   :  { %2194 = vmatpush1.bf16.msra.mxu0 %v18588_v26 }
 0x5e7   :  { %2195 = vmatprep.subr.bf16.mxu0 %v18593_v27  ;;  %v1719_v27 = vld [vmem:[#allocation2 + $0x18] sm:$0xc0] }
 0x5ea   :  { %2196 = vmatpush1.bf16.msra.mxu0 %v18591_v28 }
 0x5eb   :  { %2197 = vmatprep.subr.bf16.mxu0 %v18596_v29 }
 0x5ee   :  { %2198 = vmatpush1.bf16.msra.mxu0 %v18594_v30 }
 0x5ef   :  { %2199 = vmatprep.subr.bf16.mxu0 %v18599_v31 }
 0x5f2   :  { %2200 = vmatpush1.bf16.msra.mxu0 %v18597_v34 }
 0x5f3   :  { %2201 = vmatprep.subr.bf16.mxu0 %v18602_v53  ;;  %v20699_v53 = vld [vmem:[#allocation5 + $0xf4] ss:$8 sps:$4 sm:$0xff]  }
 0x5f6   :  { %2202 = vmatpush1.bf16.msra.mxu0 %v18600_v54  ;;  %v20703_v54 = vld [vmem:[#allocation5 + $0xf0] ss:$8 sps:$4 sm:$0xff]  }
 0x5f7   :  { %2203 = vmatprep.subr.bf16.mxu0 %v18605_v55  ;;  %v2011_v55 = vld [vmem:[#allocation7] sm:$0x3] }
 0x5fa   :  { %2204 = vmatpush1.bf16.msra.mxu0 %v18603_v56  ;;  %v2016_v56 = vrot.slane %v2011_v55, %v20229_v47 }
 0x5fb   :  { %2205 = vmatprep.subr.bf16.mxu0 %v18608_v57  ;;  %v2020_v57 = vrot.slane %v2011_v55, %v20231_v48 }
 0x5fe   :  { %2206 = vmatpush1.bf16.msra.mxu0 %v18606_v58 }
 0x5ff   :  { %2207 = vmatprep.subr.bf16.mxu0 %v18611_v59 }
 0x602   :  { %2208 = vmatpush1.bf16.msra.mxu0 %v18609_v60 }
 0x603   :  { %2209 = vmatprep.subr.bf16.mxu0 %v18614_v61 }
 0x606   :  { %2210 = vmatpush1.bf16.msra.mxu0 %v18612_v62 }
 0x607   :  { %2211 = vmatprep.subr.bf16.mxu0 %v18617_v63 }
 0x60a   :  { %2212 = vmatpush1.bf16.msra.mxu0 %v18615_v0 }
 0x60b   :  { %2213 = vmatprep.subr.bf16.mxu0 %v18620_v32 }
 0x60e   :  { %2214 = vmatpush1.bf16.msra.mxu0 %v18618_v33 }
 0x60f   :  { %2687 = vmatprep.subr.bf16.mxu0 %v20584_v2 }
 0x6a4   :  { %v1699_v35 = vpop.f32.mrb[12].mxu0 }
 0x6a5   :  { %v1708_v36 = vrot.slane %v1699_v35, 4  ;;  %v1701_v37 = vpop.f32.mrb[13].mxu0 }
 0x6a6   :  { %v1709_v39 = vrot.slane %v1701_v37, 4  ;;  %v1703_v40 = vpop.f32.mrb[14].mxu0 }
 0x6a7   :  { %v1712_v42 = vadd.f32 %v1708_v36, %v1463_v38  ;;  %v1704_v43 = vpop.f32.mrb[15].mxu0  ;;  %v1974_v36 = vld [vmem:[#allocation2 + $0x8] sm:$0xff] }
 0x6a8   :  { %v1713_v44 = vadd.f32 %v1709_v39, %v1464_v41  ;;  %v1973_v39 = vld [vmem:[#allocation2] sm:$0xff]  ;;  %v20670_v43 = vld [vmem:[#allocation5 + $0xb0] ss:$8 sps:$4 sm:$0xff]  }
 0x6a9   :  { %19621 = vtanh.f32 %v1712_v42  ;;  %v20662_v41 = vld [vmem:[#allocation5 + $0xa4] ss:$8 sps:$4 sm:$0xff]   ;;  %v20664_v42 = vld [vmem:[#allocation5 + $0xa0] ss:$8 sps:$4 sm:$0xff]  }
 0x6aa   :  { %19623 = vtanh.f32 %v1713_v44  ;;  %v20672_v44 = vld [vmem:[#allocation5 + $0xb4] ss:$8 sps:$4 sm:$0xff]  }
 0x6b3   :  { %v19622_v45 = vpop.eup %19621 }
 0x6b4   :  { %v19624_v46 = vpop.eup %19623  ;;  %1716 = vst [vmem:[#allocation2 + $0x10] sm:$0x30] %v19622_v45  ;;  %v1720_v49 = vpack.c.bf16 %v19622_v45, %v19622_v45  ;;  %v20674_v45 = vld [vmem:[#allocation5 + $0xc4] ss:$8 sps:$4 sm:$0xff]  }
 0x6b5   :  { %1717 = vst [vmem:[#allocation2 + $0x18] sm:$0x30] %v19624_v46  ;;  %v1721_v50 = vpack.c.bf16 %v19624_v46, %v19624_v46  ;;  %v20679_v46 = vld [vmem:[#allocation5 + $0xc0] ss:$8 sps:$4 sm:$0xff]  }
 0x6b6   :  { %v1756_v52 = vrot.slane %v1720_v49, 2  ;;  %v20683_v49 = vld [vmem:[#allocation5 + $0xd4] ss:$8 sps:$4 sm:$0xff]  }
 0x6b7   :  { %v1757_v51 = vrot.slane %v1721_v50, 2  ;;  %v20687_v50 = vld [vmem:[#allocation5 + $0xd0] ss:$8 sps:$4 sm:$0xff]  }
 0x6b9   :  { %1952 = vmatprep.mubr.bf16.mxu1 %v1757_v51  ;;  %v20691_v51 = vld [vmem:[#allocation5 + $0xe4] ss:$8 sps:$4 sm:$0xff]  }
 0x6ba   :  { %1953 = vmatmul.mubr.bf16.vlgmr.msra.gmra.mrb[12].mxu1 %v1756_v52  ;;  %v20695_v52 = vld [vmem:[#allocation5 + $0xe0] ss:$8 sps:$4 sm:$0xff]  }
 0x6bb   :  { %2433 = vmatpush1.bf16.msra.mxu1 %v20582_v1 }
 0x6bc   :  { %2434 = vmatprep.subr.bf16.mxu1 %v20586_v3 }
 0x6bf   :  { %2435 = vmatpush1.bf16.msra.mxu1 %v20591_v4 }
 0x6c0   :  { %2436 = vmatprep.subr.bf16.mxu1 %v20594_v5 }
 0x6c3   :  { %2437 = vmatpush1.bf16.msra.mxu1 %v20597_v6 }
 0x6c4   :  { %2438 = vmatprep.subr.bf16.mxu1 %v20600_v7 }
 0x6c7   :  { %2439 = vmatpush1.bf16.msra.mxu1 %v20603_v8 }
 0x6c8   :  { %2440 = vmatprep.subr.bf16.mxu1 %v20606_v9 }
 0x6cb   :  { %2441 = vmatpush1.bf16.msra.mxu1 %v20609_v10 }
 0x6cc   :  { %2442 = vmatprep.subr.bf16.mxu1 %v20612_v11 }
 0x6cf   :  { %2443 = vmatpush1.bf16.msra.mxu1 %v20615_v12 }
 0x6d0   :  { %2444 = vmatprep.subr.bf16.mxu1 %v20618_v13 }
 0x6d3   :  { %2445 = vmatpush1.bf16.msra.mxu1 %v20621_v14 }
 0x6d4   :  { %2446 = vmatprep.subr.bf16.mxu1 %v20624_v15 }
 0x6d7   :  { %2447 = vmatpush1.bf16.msra.mxu1 %v20627_v16 }
 0x6d8   :  { %2448 = vmatprep.subr.bf16.mxu1 %v20630_v17 }
 0x6db   :  { %2449 = vmatpush1.bf16.msra.mxu1 %v20633_v18 }
 0x6dc   :  { %2450 = vmatprep.subr.bf16.mxu1 %v20636_v19 }
 0x6df   :  { %2451 = vmatpush1.bf16.msra.mxu1 %v20639_v20 }
 0x6e0   :  { %2452 = vmatprep.subr.bf16.mxu1 %v20662_v41 }
 0x6e3   :  { %2453 = vmatpush1.bf16.msra.mxu1 %v20664_v42 }
 0x6e4   :  { %2454 = vmatprep.subr.bf16.mxu1 %v20672_v44 }
 0x6e7   :  { %2455 = vmatpush1.bf16.msra.mxu1 %v20670_v43 }
 0x6e8   :  { %2456 = vmatprep.subr.bf16.mxu1 %v20674_v45 }
 0x6eb   :  { %2457 = vmatpush1.bf16.msra.mxu1 %v20679_v46 }
 0x6ec   :  { %2458 = vmatprep.subr.bf16.mxu1 %v20683_v49 }
 0x6ef   :  { %2459 = vmatpush1.bf16.msra.mxu1 %v20687_v50 }
 0x6f0   :  { %2460 = vmatprep.subr.bf16.mxu1 %v20691_v51 }
 0x6f3   :  { %2461 = vmatpush1.bf16.msra.mxu1 %v20695_v52 }
 0x6f4   :  { %2462 = vmatprep.subr.bf16.mxu1 %v20699_v53 }
 0x6f7   :  { %2463 = vmatpush1.bf16.msra.mxu1 %v20703_v54 }
 0x6f8   :  { %2942 = vmatprep.subr.bf16.mxu1 %v20584_v2 }
 0x78d   :  { %v1954_v21 = vpop.f32.mrb[12].mxu1 }
 0x78e   :  { %v1963_v22 = vrot.slane %v1954_v21, 2  ;;  %v1956_v23 = vpop.f32.mrb[13].mxu1 }
 0x78f   :  { %v1964_v25 = vrot.slane %v1956_v23, 2  ;;  %v1958_v26 = vpop.f32.mrb[14].mxu1 }
 0x790   :  { %v1967_v28 = vadd.f32 %v1963_v22, %v1718_v24  ;;  %v1959_v29 = vpop.f32.mrb[15].mxu1 }
 0x791   :  { %v1968_v30 = vadd.f32 %v1964_v25, %v1719_v27 }
 0x792   :  { %19625 = vtanh.f32 %v1967_v28 }
 0x793   :  { %19627 = vtanh.f32 %v1968_v30 }
 0x79c   :  { %v19626_v31 = vpop.eup %19625 }
 0x79d   :  { %v19628_v34 = vpop.eup %19627  ;;  %1971 = vst [vmem:[#allocation2 + $0x10] sm:$0xc0] %v19626_v31 }
 0x79e   :  { %1972 = vst [vmem:[#allocation2 + $0x18] sm:$0xc0] %v19628_v34 }
 0x7a4   :  { %v1975_v35 = vld [vmem:[#allocation2 + $0x10] sm:$0xff] }
 0x7a5   :  { %v1976_v37 = vld [vmem:[#allocation2 + $0x18] sm:$0xff]  ;;  %v1977_v40 = vpack.c.bf16 %v1975_v35, %v1973_v39 }
 0x7a6   :  { %v1978_v38 = vpack.c.bf16 %v1976_v37, %v1974_v36 }
 0x7a8   :  { %2215 = vmatprep.mubr.bf16.mxu0 %v1978_v38 }
 0x7a9   :  { %2216 = vmatmul.mubr.bf16.vlgmr.msra.gmra.mrb[16].mxu0 %v1977_v40 }
 0x7aa   :  { %2688 = vmatpush1.bf16.msra.mxu0 %v20582_v1 }
 0x7ab   :  { %2689 = vmatprep.subr.bf16.mxu0 %v20586_v3 }
 0x7ae   :  { %2690 = vmatpush1.bf16.msra.mxu0 %v20591_v4 }
 0x7af   :  { %2691 = vmatprep.subr.bf16.mxu0 %v20594_v5 }
 0x7b2   :  { %2692 = vmatpush1.bf16.msra.mxu0 %v20597_v6 }
 0x7b3   :  { %2693 = vmatprep.subr.bf16.mxu0 %v20600_v7 }
 0x7b6   :  { %2694 = vmatpush1.bf16.msra.mxu0 %v20603_v8 }
 0x7b7   :  { %2695 = vmatprep.subr.bf16.mxu0 %v20606_v9 }
 0x7ba   :  { %2696 = vmatpush1.bf16.msra.mxu0 %v20609_v10 }
 0x7bb   :  { %2697 = vmatprep.subr.bf16.mxu0 %v20612_v11 }
 0x7be   :  { %2698 = vmatpush1.bf16.msra.mxu0 %v20615_v12 }
 0x7bf   :  { %2699 = vmatprep.subr.bf16.mxu0 %v20618_v13 }
 0x7c2   :  { %2700 = vmatpush1.bf16.msra.mxu0 %v20621_v14 }
 0x7c3   :  { %2701 = vmatprep.subr.bf16.mxu0 %v20624_v15 }
 0x7c6   :  { %2702 = vmatpush1.bf16.msra.mxu0 %v20627_v16 }
 0x7c7   :  { %2703 = vmatprep.subr.bf16.mxu0 %v20630_v17 }
 0x7ca   :  { %2704 = vmatpush1.bf16.msra.mxu0 %v20633_v18 }
 0x7cb   :  { %2705 = vmatprep.subr.bf16.mxu0 %v20636_v19 }
 0x7ce   :  { %2706 = vmatpush1.bf16.msra.mxu0 %v20639_v20 }
 0x7cf   :  { %2707 = vmatprep.subr.bf16.mxu0 %v20662_v41 }
 0x7d2   :  { %2708 = vmatpush1.bf16.msra.mxu0 %v20664_v42 }
 0x7d3   :  { %2709 = vmatprep.subr.bf16.mxu0 %v20672_v44 }
 0x7d6   :  { %2710 = vmatpush1.bf16.msra.mxu0 %v20670_v43 }
 0x7d7   :  { %2711 = vmatprep.subr.bf16.mxu0 %v20674_v45 }
 0x7da   :  { %2712 = vmatpush1.bf16.msra.mxu0 %v20679_v46 }
 0x7db   :  { %2713 = vmatprep.subr.bf16.mxu0 %v20683_v49 }
 0x7de   :  { %2714 = vmatpush1.bf16.msra.mxu0 %v20687_v50 }
 0x7df   :  { %2715 = vmatprep.subr.bf16.mxu0 %v20691_v51 }
 0x7e2   :  { %2716 = vmatpush1.bf16.msra.mxu0 %v20695_v52 }
 0x7e3   :  { %2717 = vmatprep.subr.bf16.mxu0 %v20699_v53 }
 0x7e6   :  { %2718 = vmatpush1.bf16.msra.mxu0 %v20703_v54 }
 0x7e7   :  { %3197 = vmatprep.subr.bf16.mxu0 %v20584_v2 }
 0x87c   :  { %v2217_v58 = vpop.f32.mrb[16].mxu0 }
 0x87d   :  { %v2218_v59 = vadd.f32 %v2217_v58, %v2016_v56  ;;  %v2219_v60 = vpop.f32.mrb[17].mxu0 }
 0x87e   :  { %v2220_v61 = vadd.f32 %v2219_v60, %v2020_v57  ;;  %v2221_v62 = vpop.f32.mrb[18].mxu0 }
 0x87f   :  { %2226 = vst [vmem:[#allocation2] sm:$0xff] %v2218_v59  ;;  %v2222_v63 = vadd.f32 %v2221_v62, %v2016_v56  ;;  %v2223_v0 = vpop.f32.mrb[19].mxu0 }
 0x880   :  { %2227 = vst [vmem:[#allocation2 + $0x8] sm:$0xff] %v2220_v61  ;;  %v2224_v32 = vadd.f32 %v2223_v0, %v2020_v57 }
 0x881   :  { %2228 = vst [vmem:[#allocation2 + $0x10] sm:$0xff] %v2222_v63 }
 0x882   :  { %2229 = vst [vmem:[#allocation2 + $0x18] sm:$0xff] %v2224_v32 }
 0x886   :  { %v2230_v33 = vld [vmem:[#allocation2] sm:$0x3]  ;;  %v2236_v29 = vld [vmem:[#allocation2] sm:$0xc]  ;;  %v2485_v60 = vld [vmem:[#allocation2] sm:$0x30] }
 0x887   :  { %v2231_v21 = vld [vmem:[#allocation2 + $0x8] sm:$0x3]  ;;  %19629 = vtanh.f32 %v2230_v33  ;;  %v2237_v35 = vld [vmem:[#allocation2 + $0x8] sm:$0xc]  ;;  %v2486_v0 = vld [vmem:[#allocation2 + $0x8] sm:$0x30] }
 0x888   :  { %19631 = vtanh.f32 %v2231_v21 }
 0x891   :  { %v19630_v22 = vpop.eup %19629 }
 0x892   :  { %v19632_v23 = vpop.eup %19631  ;;  %2234 = vst [vmem:[#allocation2] sm:$0x3] %v19630_v22  ;;  %v2238_v25 = vpack.c.bf16 %v19630_v22, %v19630_v22 }
 0x893   :  { %2235 = vst [vmem:[#allocation2 + $0x8] sm:$0x3] %v19632_v23  ;;  %v2239_v24 = vpack.c.bf16 %v19632_v23, %v19632_v23 }
 0x895   :  { %2464 = vmatprep.mubr.bf16.mxu1 %v2239_v24 }
 0x896   :  { %2465 = vmatmul.mubr.bf16.vlgmr.msra.gmra.mrb[16].mxu1 %v2238_v25 }
 0x897   :  { %2943 = vmatpush1.bf16.msra.mxu1 %v20582_v1 }
 0x898   :  { %2944 = vmatprep.subr.bf16.mxu1 %v20586_v3 }
 0x89b   :  { %2945 = vmatpush1.bf16.msra.mxu1 %v20591_v4 }
 0x89c   :  { %2946 = vmatprep.subr.bf16.mxu1 %v20594_v5 }
 0x89f   :  { %2947 = vmatpush1.bf16.msra.mxu1 %v20597_v6 }
 0x8a0   :  { %2948 = vmatprep.subr.bf16.mxu1 %v20600_v7 }
 0x8a3   :  { %2949 = vmatpush1.bf16.msra.mxu1 %v20603_v8 }
 0x8a4   :  { %2950 = vmatprep.subr.bf16.mxu1 %v20606_v9 }
 0x8a7   :  { %2951 = vmatpush1.bf16.msra.mxu1 %v20609_v10 }
 0x8a8   :  { %2952 = vmatprep.subr.bf16.mxu1 %v20612_v11 }
 0x8ab   :  { %2953 = vmatpush1.bf16.msra.mxu1 %v20615_v12 }
 0x8ac   :  { %2954 = vmatprep.subr.bf16.mxu1 %v20618_v13 }
 0x8af   :  { %2955 = vmatpush1.bf16.msra.mxu1 %v20621_v14 }
 0x8b0   :  { %2956 = vmatprep.subr.bf16.mxu1 %v20624_v15 }
 0x8b3   :  { %2957 = vmatpush1.bf16.msra.mxu1 %v20627_v16 }
 0x8b4   :  { %2958 = vmatprep.subr.bf16.mxu1 %v20630_v17 }
 0x8b7   :  { %2959 = vmatpush1.bf16.msra.mxu1 %v20633_v18 }
 0x8b8   :  { %2960 = vmatprep.subr.bf16.mxu1 %v20636_v19 }
 0x8bb   :  { %2961 = vmatpush1.bf16.msra.mxu1 %v20639_v20 }
 0x8bc   :  { %2962 = vmatprep.subr.bf16.mxu1 %v20662_v41 }
 0x8bf   :  { %2963 = vmatpush1.bf16.msra.mxu1 %v20664_v42 }
 0x8c0   :  { %2964 = vmatprep.subr.bf16.mxu1 %v20672_v44 }
 0x8c3   :  { %2965 = vmatpush1.bf16.msra.mxu1 %v20670_v43 }
 0x8c4   :  { %2966 = vmatprep.subr.bf16.mxu1 %v20674_v45 }
 0x8c7   :  { %2967 = vmatpush1.bf16.msra.mxu1 %v20679_v46 }
 0x8c8   :  { %2968 = vmatprep.subr.bf16.mxu1 %v20683_v49 }
 0x8cb   :  { %2969 = vmatpush1.bf16.msra.mxu1 %v20687_v50 }
 0x8cc   :  { %2970 = vmatprep.subr.bf16.mxu1 %v20691_v51 }
 0x8cf   :  { %2971 = vmatpush1.bf16.msra.mxu1 %v20695_v52 }
 0x8d0   :  { %2972 = vmatprep.subr.bf16.mxu1 %v20699_v53 }
 0x8d3   :  { %2973 = vmatpush1.bf16.msra.mxu1 %v20703_v54 }
 0x8d4   :  { %3440 = vmatprep.subr.bf16.mxu1 %v20584_v2 }
 0x969   :  { %v2466_v26 = vpop.f32.mrb[16].mxu1 }
 0x96a   :  { %v2475_v27 = vrot.slane %v2466_v26, 6  ;;  %v2468_v28 = vpop.f32.mrb[17].mxu1 }
 0x96b   :  { %v2476_v30 = vrot.slane %v2468_v28, 6  ;;  %v2470_v31 = vpop.f32.mrb[18].mxu1  ;;  %v18695_v28 = vld [vmem:[#allocation5 + $0x84] ss:$8 sps:$4 sm:$0xff]  }
 0x96c   :  { %v2479_v34 = vadd.f32 %v2475_v27, %v2236_v29  ;;  %v2471_v36 = vpop.f32.mrb[19].mxu1  ;;  %v18690_v27 = vld [vmem:[#allocation5 + $0x70] ss:$8 sps:$4 sm:$0xff]   ;;  %v18693_v29 = vld [vmem:[#allocation5 + $0x80] ss:$8 sps:$4 sm:$0xff]  }
 0x96d   :  { %v2480_v37 = vadd.f32 %v2476_v30, %v2237_v35  ;;  %v18698_v30 = vld [vmem:[#allocation5 + $0x94] ss:$8 sps:$4 sm:$0xff]   ;;  %v18696_v31 = vld [vmem:[#allocation5 + $0x90] ss:$8 sps:$4 sm:$0xff]   ;;  %v18699_v35 = vld [vmem:[#allocation5 + $0xa0] ss:$8 sps:$4 sm:$0xff]  }
 0x96e   :  { %19633 = vtanh.f32 %v2479_v34  ;;  %v18701_v34 = vld [vmem:[#allocation5 + $0xa4] ss:$8 sps:$4 sm:$0xff]   ;;  %v2995_v36 = vld [vmem:[#allocation2 + $0x10] sm:$0x3] }
 0x96f   :  { %19635 = vtanh.f32 %v2480_v37 }
 0x978   :  { %v19634_v38 = vpop.eup %19633 }
 0x979   :  { %v19636_v39 = vpop.eup %19635  ;;  %2483 = vst [vmem:[#allocation2] sm:$0xc] %v19634_v38  ;;  %v2487_v40 = vpack.c.bf16 %v19634_v38, %v19634_v38 }
 0x97a   :  { %2484 = vst [vmem:[#allocation2 + $0x8] sm:$0xc] %v19636_v39  ;;  %v2488_v55 = vpack.c.bf16 %v19636_v39, %v19636_v39  ;;  %v2996_v39 = vld [vmem:[#allocation2 + $0x18] sm:$0x3] }
 0x97b   :  { %v2523_v2 = vrot.slane %v2487_v40, 1 }
 0x97c   :  { %v2524_v56 = vrot.slane %v2488_v55, 1 }
 0x97e   :  { %2719 = vmatprep.mubr.bf16.mxu0 %v2524_v56 }
 0x97f   :  { %2720 = vmatmul.mubr.bf16.vlgmr.msra.gmra.mrb[20].mxu0 %v2523_v2 }
 0x980   :  { %3198 = vmatpush1.bf16.msra.mxu0 %v20582_v1 }
 0x981   :  { %3199 = vmatprep.subr.bf16.mxu0 %v20586_v3 }
 0x984   :  { %3200 = vmatpush1.bf16.msra.mxu0 %v20591_v4 }
 0x985   :  { %3201 = vmatprep.subr.bf16.mxu0 %v20594_v5 }
 0x988   :  { %3202 = vmatpush1.bf16.msra.mxu0 %v20597_v6 }
 0x989   :  { %3203 = vmatprep.subr.bf16.mxu0 %v20600_v7 }
 0x98c   :  { %3204 = vmatpush1.bf16.msra.mxu0 %v20603_v8 }
 0x98d   :  { %3205 = vmatprep.subr.bf16.mxu0 %v20606_v9 }
 0x990   :  { %3206 = vmatpush1.bf16.msra.mxu0 %v20609_v10 }
 0x991   :  { %3207 = vmatprep.subr.bf16.mxu0 %v20612_v11 }
 0x994   :  { %3208 = vmatpush1.bf16.msra.mxu0 %v20615_v12 }
 0x995   :  { %3209 = vmatprep.subr.bf16.mxu0 %v20618_v13 }
 0x998   :  { %3210 = vmatpush1.bf16.msra.mxu0 %v20621_v14 }
 0x999   :  { %3211 = vmatprep.subr.bf16.mxu0 %v20624_v15 }
 0x99c   :  { %3212 = vmatpush1.bf16.msra.mxu0 %v20627_v16 }
 0x99d   :  { %3213 = vmatprep.subr.bf16.mxu0 %v20630_v17 }
 0x9a0   :  { %3214 = vmatpush1.bf16.msra.mxu0 %v20633_v18 }
 0x9a1   :  { %3215 = vmatprep.subr.bf16.mxu0 %v20636_v19 }
 0x9a4   :  { %3216 = vmatpush1.bf16.msra.mxu0 %v20639_v20 }
 0x9a5   :  { %3217 = vmatprep.subr.bf16.mxu0 %v20662_v41 }
 0x9a8   :  { %3218 = vmatpush1.bf16.msra.mxu0 %v20664_v42 }
 0x9a9   :  { %3219 = vmatprep.subr.bf16.mxu0 %v20672_v44 }
 0x9ac   :  { %3220 = vmatpush1.bf16.msra.mxu0 %v20670_v43 }
 0x9ad   :  { %3221 = vmatprep.subr.bf16.mxu0 %v20674_v45 }
 0x9b0   :  { %3222 = vmatpush1.bf16.msra.mxu0 %v20679_v46 }
 0x9b1   :  { %3223 = vmatprep.subr.bf16.mxu0 %v20683_v49 }
 0x9b4   :  { %3224 = vmatpush1.bf16.msra.mxu0 %v20687_v50 }
 0x9b5   :  { %3225 = vmatprep.subr.bf16.mxu0 %v20691_v51 }
 0x9b8   :  { %3226 = vmatpush1.bf16.msra.mxu0 %v20695_v52 }
 0x9b9   :  { %3227 = vmatprep.subr.bf16.mxu0 %v20699_v53 }
 0x9bc   :  { %3228 = vmatpush1.bf16.msra.mxu0 %v20703_v54 }
 0xa52   :  { %v2721_v57 = vpop.f32.mrb[20].mxu0 }
 0xa53   :  { %v2730_v58 = vrot.slane %v2721_v57, 4  ;;  %v2723_v59 = vpop.f32.mrb[21].mxu0 }
 0xa54   :  { %v2731_v61 = vrot.slane %v2723_v59, 4  ;;  %v2725_v62 = vpop.f32.mrb[22].mxu0 }
 0xa55   :  { %v2734_v63 = vadd.f32 %v2730_v58, %v2485_v60  ;;  %v2726_v32 = vpop.f32.mrb[23].mxu0  ;;  %v18702_v62 = vld [vmem:[#allocation5 + $0xb0] ss:$8 sps:$4 sm:$0xff]  }
 0xa56   :  { %v2735_v33 = vadd.f32 %v2731_v61, %v2486_v0  ;;  %v18704_v61 = vld [vmem:[#allocation5 + $0xb4] ss:$8 sps:$4 sm:$0xff]   ;;  %v18705_v0 = vld [vmem:[#allocation5 + $0xc0] ss:$8 sps:$4 sm:$0xff]  }
 0xa57   :  { %19637 = vtanh.f32 %v2734_v63  ;;  %v18707_v63 = vld [vmem:[#allocation5 + $0xc4] ss:$8 sps:$4 sm:$0xff]   ;;  %v18710_v32 = vld [vmem:[#allocation5 + $0xd4] ss:$8 sps:$4 sm:$0xff]  }
 0xa58   :  { %19639 = vtanh.f32 %v2735_v33  ;;  %v18708_v33 = vld [vmem:[#allocation5 + $0xd0] ss:$8 sps:$4 sm:$0xff]  }
 0xa61   :  { %v19638_v21 = vpop.eup %19637 }
 0xa62   :  { %v19640_v22 = vpop.eup %19639  ;;  %2738 = vst [vmem:[#allocation2] sm:$0x30] %v19638_v21  ;;  %v2742_v23 = vpack.c.bf16 %v19638_v21, %v19638_v21  ;;  %v18713_v21 = vld [vmem:[#allocation5 + $0xe4] ss:$8 sps:$4 sm:$0xff]  }
 0xa63   :  { %2739 = vst [vmem:[#allocation2 + $0x8] sm:$0x30] %v19640_v22  ;;  %v2743_v24 = vpack.c.bf16 %v19640_v22, %v19640_v22  ;;  %v18711_v22 = vld [vmem:[#allocation5 + $0xe0] ss:$8 sps:$4 sm:$0xff]  }
 0xa64   :  { %v2778_v26 = vrot.slane %v2742_v23, 2  ;;  %v18714_v23 = vld [vmem:[#allocation5 + $0xf0] ss:$8 sps:$4 sm:$0xff]  }
 0xa65   :  { %v2779_v25 = vrot.slane %v2743_v24, 2  ;;  %v18716_v24 = vld [vmem:[#allocation5 + $0xf4] ss:$8 sps:$4 sm:$0xff]  }
 0xa67   :  { %2974 = vmatprep.mubr.bf16.mxu1 %v2779_v25 }
 0xa68   :  { %2975 = vmatmul.mubr.bf16.vlgmr.msra.gmra.mrb[20].mxu1 %v2778_v26 }
 0xa69   :  { %3441 = vmatpush1.bf16.msra.mxu1 %v20582_v1 }
 0xa6a   :  { %3442 = vmatprep.subr.bf16.mxu1 %v20586_v3 }
 0xa6d   :  { %3443 = vmatpush1.bf16.msra.mxu1 %v20591_v4 }
 0xa6e   :  { %3444 = vmatprep.subr.bf16.mxu1 %v20594_v5  ;;  %v2740_v5 = vld [vmem:[#allocation2] sm:$0xc0] }
 0xa71   :  { %3445 = vmatpush1.bf16.msra.mxu1 %v20597_v6 }
 0xa72   :  { %3446 = vmatprep.subr.bf16.mxu1 %v20600_v7 }
 0xa75   :  { %3447 = vmatpush1.bf16.msra.mxu1 %v20603_v8 }
 0xa76   :  { %3448 = vmatprep.subr.bf16.mxu1 %v20606_v9  ;;  %v2741_v9 = vld [vmem:[#allocation2 + $0x8] sm:$0xc0] }
 0xa79   :  { %3449 = vmatpush1.bf16.msra.mxu1 %v20609_v10 }
 0xa7a   :  { %3450 = vmatprep.subr.bf16.mxu1 %v20612_v11 }
 0xa7d   :  { %3451 = vmatpush1.bf16.msra.mxu1 %v20615_v12 }
 0xa7e   :  { %3452 = vmatprep.subr.bf16.mxu1 %v20618_v13 }
 0xa81   :  { %3453 = vmatpush1.bf16.msra.mxu1 %v20621_v14 }
 0xa82   :  { %3454 = vmatprep.subr.bf16.mxu1 %v20624_v15 }
 0xa85   :  { %3455 = vmatpush1.bf16.msra.mxu1 %v20627_v16 }
 0xa86   :  { %3456 = vmatprep.subr.bf16.mxu1 %v20630_v17 }
 0xa89   :  { %3457 = vmatpush1.bf16.msra.mxu1 %v20633_v18  ;;  %v18669_v18 = vld [vmem:[#allocation5] ss:$8 sps:$4 sm:$0xff]  }
 0xa8a   :  { %3458 = vmatprep.subr.bf16.mxu1 %v20636_v19  ;;  %v18671_v19 = vld [vmem:[#allocation5 + $0x4] ss:$8 sps:$4 sm:$0xff]  }
 0xa8b   :  { %3695 = vmatprep.subr.bf16.mxu0 %v18671_v19 }
 0xa8d   :  { %3459 = vmatpush1.bf16.msra.mxu1 %v20639_v20  ;;  %v18674_v20 = vld [vmem:[#allocation5 + $0x14] ss:$8 sps:$4 sm:$0xff]  }
 0xa8e   :  { %3460 = vmatprep.subr.bf16.mxu1 %v20662_v41  ;;  %v18672_v41 = vld [vmem:[#allocation5 + $0x10] ss:$8 sps:$4 sm:$0xff]  }
 0xa91   :  { %3461 = vmatpush1.bf16.msra.mxu1 %v20664_v42  ;;  %v18677_v42 = vld [vmem:[#allocation5 + $0x24] ss:$8 sps:$4 sm:$0xff]  }
 0xa92   :  { %3462 = vmatprep.subr.bf16.mxu1 %v20672_v44  ;;  %v18680_v44 = vld [vmem:[#allocation5 + $0x34] ss:$8 sps:$4 sm:$0xff]  }
 0xa95   :  { %3463 = vmatpush1.bf16.msra.mxu1 %v20670_v43  ;;  %v18675_v43 = vld [vmem:[#allocation5 + $0x20] ss:$8 sps:$4 sm:$0xff]  }
 0xa96   :  { %3464 = vmatprep.subr.bf16.mxu1 %v20674_v45  ;;  %v18678_v45 = vld [vmem:[#allocation5 + $0x30] ss:$8 sps:$4 sm:$0xff]  }
 0xa99   :  { %3465 = vmatpush1.bf16.msra.mxu1 %v20679_v46  ;;  %v18683_v46 = vld [vmem:[#allocation5 + $0x44] ss:$8 sps:$4 sm:$0xff]  }
 0xa9a   :  { %3466 = vmatprep.subr.bf16.mxu1 %v20683_v49  ;;  %v18681_v49 = vld [vmem:[#allocation5 + $0x40] ss:$8 sps:$4 sm:$0xff]  }
 0xa9d   :  { %3467 = vmatpush1.bf16.msra.mxu1 %v20687_v50  ;;  %v18686_v50 = vld [vmem:[#allocation5 + $0x54] ss:$8 sps:$4 sm:$0xff]  }
 0xa9e   :  { %3468 = vmatprep.subr.bf16.mxu1 %v20691_v51  ;;  %v18684_v51 = vld [vmem:[#allocation5 + $0x50] ss:$8 sps:$4 sm:$0xff]  }
 0xaa1   :  { %3469 = vmatpush1.bf16.msra.mxu1 %v20695_v52  ;;  %v18689_v52 = vld [vmem:[#allocation5 + $0x64] ss:$8 sps:$4 sm:$0xff]  }
 0xaa2   :  { %3470 = vmatprep.subr.bf16.mxu1 %v20699_v53  ;;  %v18687_v53 = vld [vmem:[#allocation5 + $0x60] ss:$8 sps:$4 sm:$0xff]  }
 0xaa5   :  { %3471 = vmatpush1.bf16.msra.mxu1 %v20703_v54  ;;  %v18692_v54 = vld [vmem:[#allocation5 + $0x74] ss:$8 sps:$4 sm:$0xff]  }
 0xaa6   :  { %3950 = vmatprep.subr.bf16.mxu1 %v18671_v19  ;;  %v18720_v19 = vld [vmem:[#allocation3 + $0x110] ss:$8 sps:$4 sm:$0xff]  }
 0xb3b   :  { %v2976_v1 = vpop.f32.mrb[20].mxu1 }
 0xb3c   :  { %v2985_v3 = vrot.slane %v2976_v1, 2  ;;  %v2978_v4 = vpop.f32.mrb[21].mxu1 }
 0xb3d   :  { %v2986_v6 = vrot.slane %v2978_v4, 2  ;;  %v2980_v7 = vpop.f32.mrb[22].mxu1 }
 0xb3e   :  { %v2989_v8 = vadd.f32 %v2985_v3, %v2740_v5  ;;  %v2981_v10 = vpop.f32.mrb[23].mxu1  ;;  %v3244_v3 = vld [vmem:[#allocation2 + $0x10] sm:$0xc]  ;;  %v3245_v7 = vld [vmem:[#allocation2 + $0x18] sm:$0xc] }
 0xb3f   :  { %v2990_v11 = vadd.f32 %v2986_v6, %v2741_v9 }
 0xb40   :  { %19641 = vtanh.f32 %v2989_v8 }
 0xb41   :  { %19643 = vtanh.f32 %v2990_v11 }
 0xb4a   :  { %v19642_v12 = vpop.eup %19641 }
 0xb4b   :  { %v19644_v13 = vpop.eup %19643  ;;  %2993 = vst [vmem:[#allocation2] sm:$0xc0] %v19642_v12  ;;  %v2997_v14 = vpack.c.bf16 %v19642_v12, %v19642_v12 }
 0xb4c   :  { %2994 = vst [vmem:[#allocation2 + $0x8] sm:$0xc0] %v19644_v13  ;;  %v2998_v15 = vpack.c.bf16 %v19644_v13, %v19644_v13 }
 0xb4d   :  { %v3033_v17 = vrot.slane %v2997_v14, 3 }
 0xb4e   :  { %v3034_v16 = vrot.slane %v2998_v15, 3 }
 0xb50   :  { %3229 = vmatprep.mubr.bf16.mxu0 %v3034_v16  ;;  %v18717_v16 = vld [vmem:[#allocation3 + $0x100] ss:$8 sps:$4 sm:$0xff]  }
 0xb51   :  { %3230 = vmatmul.mubr.bf16.vlgmr.msra.gmra.mrb[24].mxu0 %v3033_v17  ;;  %v18719_v17 = vld [vmem:[#allocation3 + $0x104] ss:$8 sps:$4 sm:$0xff]  }
 0xb52   :  { %3696 = vmatpush1.bf16.msra.mxu0 %v18669_v18 }
 0xb53   :  { %3697 = vmatprep.subr.bf16.mxu0 %v18674_v20 }
 0xb56   :  { %3698 = vmatpush1.bf16.msra.mxu0 %v18672_v41 }
 0xb57   :  { %3699 = vmatprep.subr.bf16.mxu0 %v18677_v42 }
 0xb5a   :  { %3700 = vmatpush1.bf16.msra.mxu0 %v18675_v43 }
 0xb5b   :  { %3701 = vmatprep.subr.bf16.mxu0 %v18680_v44 }
 0xb5e   :  { %3702 = vmatpush1.bf16.msra.mxu0 %v18678_v45 }
 0xb5f   :  { %3703 = vmatprep.subr.bf16.mxu0 %v18683_v46 }
 0xb62   :  { %3704 = vmatpush1.bf16.msra.mxu0 %v18681_v49 }
 0xb63   :  { %3705 = vmatprep.subr.bf16.mxu0 %v18686_v50 }
 0xb66   :  { %3706 = vmatpush1.bf16.msra.mxu0 %v18684_v51 }
 0xb67   :  { %3707 = vmatprep.subr.bf16.mxu0 %v18689_v52 }
 0xb6a   :  { %3708 = vmatpush1.bf16.msra.mxu0 %v18687_v53 }
 0xb6b   :  { %3709 = vmatprep.subr.bf16.mxu0 %v18692_v54 }
 0xb6e   :  { %3710 = vmatpush1.bf16.msra.mxu0 %v18690_v27 }
 0xb6f   :  { %3711 = vmatprep.subr.bf16.mxu0 %v18695_v28 }
 0xb72   :  { %3712 = vmatpush1.bf16.msra.mxu0 %v18693_v29 }
 0xb73   :  { %3713 = vmatprep.subr.bf16.mxu0 %v18698_v30 }
 0xb76   :  { %3714 = vmatpush1.bf16.msra.mxu0 %v18696_v31 }
 0xb77   :  { %3715 = vmatprep.subr.bf16.mxu0 %v18701_v34 }
 0xb7a   :  { %3716 = vmatpush1.bf16.msra.mxu0 %v18699_v35 }
 0xb7b   :  { %3717 = vmatprep.subr.bf16.mxu0 %v18704_v61 }
 0xb7e   :  { %3718 = vmatpush1.bf16.msra.mxu0 %v18702_v62 }
 0xb7f   :  { %3719 = vmatprep.subr.bf16.mxu0 %v18707_v63 }
 0xb82   :  { %3720 = vmatpush1.bf16.msra.mxu0 %v18705_v0 }
 0xb83   :  { %3721 = vmatprep.subr.bf16.mxu0 %v18710_v32 }
 0xb86   :  { %3722 = vmatpush1.bf16.msra.mxu0 %v18708_v33 }
 0xb87   :  { %3723 = vmatprep.subr.bf16.mxu0 %v18713_v21 }
 0xb8a   :  { %3724 = vmatpush1.bf16.msra.mxu0 %v18711_v22 }
 0xb8b   :  { %3725 = vmatprep.subr.bf16.mxu0 %v18716_v24 }
 0xb8e   :  { %3726 = vmatpush1.bf16.msra.mxu0 %v18714_v23 }
 0xb8f   :  { %4215 = vmatprep.subr.bf16.mxu0 %v18719_v17  ;;  %v20853_v17 = vld [vmem:[#allocation5 + $0x170] ss:$8 sps:$4 sm:$0xff]  }
 0xc24   :  { %v3231_v37 = vpop.f32.mrb[24].mxu0 }
 0xc25   :  { %v3238_v38 = vadd.f32 %v3231_v37, %v2995_v36  ;;  %v3233_v40 = vpop.f32.mrb[25].mxu0  ;;  %v3494_v37 = vld [vmem:[#allocation2 + $0x18] sm:$0x30] }
 0xc26   :  { %v3239_v55 = vadd.f32 %v3233_v40, %v2996_v39  ;;  %v3235_v56 = vpop.f32.mrb[26].mxu0 }
 0xc27   :  { %19645 = vtanh.f32 %v3238_v38  ;;  %v3236_v2 = vpop.f32.mrb[27].mxu0 }
 0xc28   :  { %19647 = vtanh.f32 %v3239_v55 }
 0xc31   :  { %v19646_v57 = vpop.eup %19645 }
 0xc32   :  { %v19648_v58 = vpop.eup %19647  ;;  %3242 = vst [vmem:[#allocation2 + $0x10] sm:$0x3] %v19646_v57  ;;  %v3246_v60 = vpack.c.bf16 %v19646_v57, %v19646_v57 }
 0xc33   :  { %3243 = vst [vmem:[#allocation2 + $0x18] sm:$0x3] %v19648_v58  ;;  %v3247_v59 = vpack.c.bf16 %v19648_v58, %v19648_v58 }
 0xc35   :  { %3472 = vmatprep.mubr.bf16.mxu1 %v3247_v59  ;;  %v18746_v59 = vld [vmem:[#allocation3 + $0x194] ss:$8 sps:$4 sm:$0xff]  }
 0xc36   :  { %3473 = vmatmul.mubr.bf16.vlgmr.msra.gmra.mrb[24].mxu1 %v3246_v60  ;;  %v18744_v60 = vld [vmem:[#allocation3 + $0x190] ss:$8 sps:$4 sm:$0xff]  }
 0xc37   :  { %3951 = vmatpush1.bf16.msra.mxu1 %v18669_v18  ;;  %v18722_v18 = vld [vmem:[#allocation3 + $0x114] ss:$8 sps:$4 sm:$0xff]  }
 0xc38   :  { %3952 = vmatprep.subr.bf16.mxu1 %v18674_v20  ;;  %v18725_v20 = vld [vmem:[#allocation3 + $0x124] ss:$8 sps:$4 sm:$0xff]  }
 0xc3b   :  { %3953 = vmatpush1.bf16.msra.mxu1 %v18672_v41  ;;  %v18723_v41 = vld [vmem:[#allocation3 + $0x120] ss:$8 sps:$4 sm:$0xff]  }
 0xc3c   :  { %3954 = vmatprep.subr.bf16.mxu1 %v18677_v42  ;;  %v18728_v42 = vld [vmem:[#allocation3 + $0x134] ss:$8 sps:$4 sm:$0xff]  }
 0xc3f   :  { %3955 = vmatpush1.bf16.msra.mxu1 %v18675_v43  ;;  %v18726_v43 = vld [vmem:[#allocation3 + $0x130] ss:$8 sps:$4 sm:$0xff]  }
 0xc40   :  { %3956 = vmatprep.subr.bf16.mxu1 %v18680_v44  ;;  %v18731_v44 = vld [vmem:[#allocation3 + $0x144] ss:$8 sps:$4 sm:$0xff]  }
 0xc43   :  { %3957 = vmatpush1.bf16.msra.mxu1 %v18678_v45  ;;  %v18729_v45 = vld [vmem:[#allocation3 + $0x140] ss:$8 sps:$4 sm:$0xff]  }
 0xc44   :  { %3958 = vmatprep.subr.bf16.mxu1 %v18683_v46  ;;  %v18734_v46 = vld [vmem:[#allocation3 + $0x154] ss:$8 sps:$4 sm:$0xff]  }
 0xc47   :  { %3959 = vmatpush1.bf16.msra.mxu1 %v18681_v49  ;;  %v18732_v49 = vld [vmem:[#allocation3 + $0x150] ss:$8 sps:$4 sm:$0xff]  }
 0xc48   :  { %3960 = vmatprep.subr.bf16.mxu1 %v18686_v50  ;;  %v18737_v50 = vld [vmem:[#allocation3 + $0x164] ss:$8 sps:$4 sm:$0xff]  }
 0xc4b   :  { %3961 = vmatpush1.bf16.msra.mxu1 %v18684_v51  ;;  %v18735_v51 = vld [vmem:[#allocation3 + $0x160] ss:$8 sps:$4 sm:$0xff]  }
 0xc4c   :  { %3962 = vmatprep.subr.bf16.mxu1 %v18689_v52  ;;  %v18740_v52 = vld [vmem:[#allocation3 + $0x174] ss:$8 sps:$4 sm:$0xff]  }
 0xc4f   :  { %3963 = vmatpush1.bf16.msra.mxu1 %v18687_v53  ;;  %v18738_v53 = vld [vmem:[#allocation3 + $0x170] ss:$8 sps:$4 sm:$0xff]  }
 0xc50   :  { %3964 = vmatprep.subr.bf16.mxu1 %v18692_v54  ;;  %v18743_v54 = vld [vmem:[#allocation3 + $0x184] ss:$8 sps:$4 sm:$0xff]  }
 0xc53   :  { %3965 = vmatpush1.bf16.msra.mxu1 %v18690_v27  ;;  %v18741_v27 = vld [vmem:[#allocation3 + $0x180] ss:$8 sps:$4 sm:$0xff]  }
 0xc54   :  { %3966 = vmatprep.subr.bf16.mxu1 %v18695_v28 }
 0xc57   :  { %3967 = vmatpush1.bf16.msra.mxu1 %v18693_v29 }
 0xc58   :  { %3968 = vmatprep.subr.bf16.mxu1 %v18698_v30 }
 0xc5b   :  { %3969 = vmatpush1.bf16.msra.mxu1 %v18696_v31  ;;  %v3493_v31 = vld [vmem:[#allocation2 + $0x10] sm:$0x30] }
 0xc5c   :  { %3970 = vmatprep.subr.bf16.mxu1 %v18701_v34 }
 0xc5f   :  { %3971 = vmatpush1.bf16.msra.mxu1 %v18699_v35 }
 0xc60   :  { %3972 = vmatprep.subr.bf16.mxu1 %v18704_v61  ;;  %v18749_v61 = vld [vmem:[#allocation3 + $0x1a4] ss:$8 sps:$4 sm:$0xff]  }
 0xc63   :  { %3973 = vmatpush1.bf16.msra.mxu1 %v18702_v62  ;;  %v18747_v62 = vld [vmem:[#allocation3 + $0x1a0] ss:$8 sps:$4 sm:$0xff]  }
 0xc64   :  { %3974 = vmatprep.subr.bf16.mxu1 %v18707_v63  ;;  %v18752_v63 = vld [vmem:[#allocation3 + $0x1b4] ss:$8 sps:$4 sm:$0xff]  }
 0xc67   :  { %3975 = vmatpush1.bf16.msra.mxu1 %v18705_v0  ;;  %v18750_v0 = vld [vmem:[#allocation3 + $0x1b0] ss:$8 sps:$4 sm:$0xff]  }
 0xc68   :  { %3976 = vmatprep.subr.bf16.mxu1 %v18710_v32  ;;  %v18755_v32 = vld [vmem:[#allocation3 + $0x1c4] ss:$8 sps:$4 sm:$0xff]  }
 0xc6b   :  { %3977 = vmatpush1.bf16.msra.mxu1 %v18708_v33  ;;  %v18753_v33 = vld [vmem:[#allocation3 + $0x1c0] ss:$8 sps:$4 sm:$0xff]  }
 0xc6c   :  { %3978 = vmatprep.subr.bf16.mxu1 %v18713_v21  ;;  %v18758_v21 = vld [vmem:[#allocation3 + $0x1d4] ss:$8 sps:$4 sm:$0xff]  }
 0xc6f   :  { %3979 = vmatpush1.bf16.msra.mxu1 %v18711_v22  ;;  %v18756_v22 = vld [vmem:[#allocation3 + $0x1d0] ss:$8 sps:$4 sm:$0xff]  }
 0xc70   :  { %3980 = vmatprep.subr.bf16.mxu1 %v18716_v24  ;;  %v18759_v24 = vld [vmem:[#allocation3 + $0x1e0] ss:$8 sps:$4 sm:$0xff]  }
 0xc73   :  { %3981 = vmatpush1.bf16.msra.mxu1 %v18714_v23  ;;  %v18761_v23 = vld [vmem:[#allocation3 + $0x1e4] ss:$8 sps:$4 sm:$0xff]  }
 0xd09   :  { %v3474_v25 = vpop.f32.mrb[24].mxu1 }
 0xd0a   :  { %v3483_v26 = vrot.slane %v3474_v25, 6  ;;  %v3476_v1 = vpop.f32.mrb[25].mxu1  ;;  %v18764_v25 = vld [vmem:[#allocation3 + $0x1f4] ss:$8 sps:$4 sm:$0xff]  }
 0xd0b   :  { %v3484_v4 = vrot.slane %v3476_v1, 6  ;;  %v3478_v5 = vpop.f32.mrb[26].mxu1  ;;  %v20808_v1 = vld [vmem:[#allocation5 + $0x100] ss:$8 sps:$4 sm:$0xff]  }
 0xd0c   :  { %v3487_v6 = vadd.f32 %v3483_v26, %v3244_v3  ;;  %v3479_v8 = vpop.f32.mrb[27].mxu1  ;;  %v18762_v26 = vld [vmem:[#allocation3 + $0x1f0] ss:$8 sps:$4 sm:$0xff]   ;;  %v20810_v3 = vld [vmem:[#allocation5 + $0x104] ss:$8 sps:$4 sm:$0xff]  }
 0xd0d   :  { %v3488_v9 = vadd.f32 %v3484_v4, %v3245_v7  ;;  %v20812_v4 = vld [vmem:[#allocation5 + $0x114] ss:$8 sps:$4 sm:$0xff]   ;;  %4465 = vmatprep.subr.bf16.mxu1 %v20810_v3  ;;  %v20817_v5 = vld [vmem:[#allocation5 + $0x110] ss:$8 sps:$4 sm:$0xff]   ;;  %v20823_v7 = vld [vmem:[#allocation5 + $0x120] ss:$8 sps:$4 sm:$0xff]  }
 0xd0e   :  { %19649 = vtanh.f32 %v3487_v6  ;;  %v20820_v6 = vld [vmem:[#allocation5 + $0x124] ss:$8 sps:$4 sm:$0xff]   ;;  %v20826_v8 = vld [vmem:[#allocation5 + $0x134] ss:$8 sps:$4 sm:$0xff]  }
 0xd0f   :  { %19651 = vtanh.f32 %v3488_v9  ;;  %v20829_v9 = vld [vmem:[#allocation5 + $0x130] ss:$8 sps:$4 sm:$0xff]  }
 0xd18   :  { %v19650_v10 = vpop.eup %19649 }
 0xd19   :  { %v19652_v11 = vpop.eup %19651  ;;  %3491 = vst [vmem:[#allocation2 + $0x10] sm:$0xc] %v19650_v10  ;;  %v3495_v12 = vpack.c.bf16 %v19650_v10, %v19650_v10  ;;  %v20832_v10 = vld [vmem:[#allocation5 + $0x144] ss:$8 sps:$4 sm:$0xff]  }
 0xd1a   :  { %3492 = vst [vmem:[#allocation2 + $0x18] sm:$0xc] %v19652_v11  ;;  %v3496_v13 = vpack.c.bf16 %v19652_v11, %v19652_v11  ;;  %v20835_v11 = vld [vmem:[#allocation5 + $0x140] ss:$8 sps:$4 sm:$0xff]  }
 0xd1b   :  { %v3531_v15 = vrot.slane %v3495_v12, 1  ;;  %v20838_v12 = vld [vmem:[#allocation5 + $0x154] ss:$8 sps:$4 sm:$0xff]  }
 0xd1c   :  { %v3532_v14 = vrot.slane %v3496_v13, 1  ;;  %v20841_v13 = vld [vmem:[#allocation5 + $0x150] ss:$8 sps:$4 sm:$0xff]  }
 0xd1e   :  { %3727 = vmatprep.mubr.bf16.mxu0 %v3532_v14  ;;  %v20844_v14 = vld [vmem:[#allocation5 + $0x164] ss:$8 sps:$4 sm:$0xff]  }
 0xd1f   :  { %3728 = vmatmul.mubr.bf16.vlgmr.msra.gmra.mrb[28].mxu0 %v3531_v15  ;;  %v20847_v15 = vld [vmem:[#allocation5 + $0x160] ss:$8 sps:$4 sm:$0xff]  }
 0xd20   :  { %4216 = vmatpush1.bf16.msra.mxu0 %v18717_v16  ;;  %v20850_v16 = vld [vmem:[#allocation5 + $0x174] ss:$8 sps:$4 sm:$0xff]  }
 0xd21   :  { %4217 = vmatprep.subr.bf16.mxu0 %v18722_v18  ;;  %v20856_v18 = vld [vmem:[#allocation5 + $0x184] ss:$8 sps:$4 sm:$0xff]  }
 0xd24   :  { %4218 = vmatpush1.bf16.msra.mxu0 %v18720_v19  ;;  %v20859_v19 = vld [vmem:[#allocation5 + $0x180] ss:$8 sps:$4 sm:$0xff]  }
 0xd25   :  { %4219 = vmatprep.subr.bf16.mxu0 %v18725_v20  ;;  %v20862_v20 = vld [vmem:[#allocation5 + $0x194] ss:$8 sps:$4 sm:$0xff]  }
 0xd28   :  { %4220 = vmatpush1.bf16.msra.mxu0 %v18723_v41  ;;  %v20865_v41 = vld [vmem:[#allocation5 + $0x190] ss:$8 sps:$4 sm:$0xff]  }
 0xd29   :  { %4221 = vmatprep.subr.bf16.mxu0 %v18728_v42 }
 0xd2c   :  { %4222 = vmatpush1.bf16.msra.mxu0 %v18726_v43 }
 0xd2d   :  { %4223 = vmatprep.subr.bf16.mxu0 %v18731_v44 }
 0xd30   :  { %4224 = vmatpush1.bf16.msra.mxu0 %v18729_v45  ;;  %v3748_v45 = vld [vmem:[#allocation2 + $0x10] sm:$0xc0] }
 0xd31   :  { %4225 = vmatprep.subr.bf16.mxu0 %v18734_v46 }
 0xd34   :  { %4226 = vmatpush1.bf16.msra.mxu0 %v18732_v49 }
 0xd35   :  { %4227 = vmatprep.subr.bf16.mxu0 %v18737_v50 }
 0xd38   :  { %4228 = vmatpush1.bf16.msra.mxu0 %v18735_v51  ;;  %v3749_v51 = vld [vmem:[#allocation2 + $0x18] sm:$0xc0] }
 0xd39   :  { %4229 = vmatprep.subr.bf16.mxu0 %v18740_v52 }
 0xd3c   :  { %4230 = vmatpush1.bf16.msra.mxu0 %v18738_v53 }
 0xd3d   :  { %4231 = vmatprep.subr.bf16.mxu0 %v18743_v54 }
 0xd40   :  { %4232 = vmatpush1.bf16.msra.mxu0 %v18741_v27 }
 0xd41   :  { %4233 = vmatprep.subr.bf16.mxu0 %v18746_v59  ;;  %v20925_v59 = vld [vmem:[#allocation5 + $0x1f4] ss:$8 sps:$4 sm:$0xff]  }
 0xd44   :  { %4234 = vmatpush1.bf16.msra.mxu0 %v18744_v60  ;;  %v20929_v60 = vld [vmem:[#allocation5 + $0x1f0] ss:$8 sps:$4 sm:$0xff]  }
 0xd45   :  { %4235 = vmatprep.subr.bf16.mxu0 %v18749_v61  ;;  %v4043_v61 = vld [vmem:[#allocation7 + $0x2] sm:$0x3] }
 0xd48   :  { %4236 = vmatpush1.bf16.msra.mxu0 %v18747_v62  ;;  %v4048_v62 = vrot.slane %v4043_v61, %v20229_v47 }
 0xd49   :  { %4237 = vmatprep.subr.bf16.mxu0 %v18752_v63  ;;  %v4052_v63 = vrot.slane %v4043_v61, %v20231_v48 }
 0xd4c   :  { %4238 = vmatpush1.bf16.msra.mxu0 %v18750_v0 }
 0xd4d   :  { %4239 = vmatprep.subr.bf16.mxu0 %v18755_v32 }
 0xd50   :  { %4240 = vmatpush1.bf16.msra.mxu0 %v18753_v33 }
 0xd51   :  { %4241 = vmatprep.subr.bf16.mxu0 %v18758_v21 }
 0xd54   :  { %4242 = vmatpush1.bf16.msra.mxu0 %v18756_v22 }
 0xd55   :  { %4243 = vmatprep.subr.bf16.mxu0 %v18761_v23 }
 0xd58   :  { %4244 = vmatpush1.bf16.msra.mxu0 %v18759_v24 }
 0xd59   :  { %4245 = vmatprep.subr.bf16.mxu0 %v18764_v25 }
 0xd5c   :  { %4246 = vmatpush1.bf16.msra.mxu0 %v18762_v26 }
 0xd5d   :  { %4720 = vmatprep.subr.bf16.mxu0 %v20810_v3 }
 0xdf2   :  { %v3729_v28 = vpop.f32.mrb[28].mxu0 }
 0xdf3   :  { %v3738_v29 = vrot.slane %v3729_v28, 4  ;;  %v3731_v30 = vpop.f32.mrb[29].mxu0 }
 0xdf4   :  { %v3739_v34 = vrot.slane %v3731_v30, 4  ;;  %v3733_v35 = vpop.f32.mrb[30].mxu0 }
 0xdf5   :  { %v3742_v36 = vadd.f32 %v3738_v29, %v3493_v31  ;;  %v3734_v38 = vpop.f32.mrb[31].mxu0  ;;  %v4004_v29 = vld [vmem:[#allocation2 + $0x8] sm:$0xff] }
 0xdf6   :  { %v3743_v39 = vadd.f32 %v3739_v34, %v3494_v37  ;;  %v4003_v34 = vld [vmem:[#allocation2] sm:$0xff]  ;;  %v20896_v38 = vld [vmem:[#allocation5 + $0x1b0] ss:$8 sps:$4 sm:$0xff]  }
 0xdf7   :  { %19653 = vtanh.f32 %v3742_v36  ;;  %v20888_v36 = vld [vmem:[#allocation5 + $0x1a4] ss:$8 sps:$4 sm:$0xff]   ;;  %v20890_v37 = vld [vmem:[#allocation5 + $0x1a0] ss:$8 sps:$4 sm:$0xff]  }
 0xdf8   :  { %19655 = vtanh.f32 %v3743_v39  ;;  %v20898_v39 = vld [vmem:[#allocation5 + $0x1b4] ss:$8 sps:$4 sm:$0xff]  }
 0xe01   :  { %v19654_v40 = vpop.eup %19653 }
 0xe02   :  { %v19656_v55 = vpop.eup %19655  ;;  %3746 = vst [vmem:[#allocation2 + $0x10] sm:$0x30] %v19654_v40  ;;  %v3750_v56 = vpack.c.bf16 %v19654_v40, %v19654_v40  ;;  %v20900_v40 = vld [vmem:[#allocation5 + $0x1c4] ss:$8 sps:$4 sm:$0xff]  }
 0xe03   :  { %3747 = vst [vmem:[#allocation2 + $0x18] sm:$0x30] %v19656_v55  ;;  %v3751_v2 = vpack.c.bf16 %v19656_v55, %v19656_v55  ;;  %v20905_v55 = vld [vmem:[#allocation5 + $0x1c0] ss:$8 sps:$4 sm:$0xff]  }
 0xe04   :  { %v3786_v58 = vrot.slane %v3750_v56, 2  ;;  %v20909_v56 = vld [vmem:[#allocation5 + $0x1d4] ss:$8 sps:$4 sm:$0xff]  }
 0xe05   :  { %v3787_v57 = vrot.slane %v3751_v2, 2  ;;  %v20913_v2 = vld [vmem:[#allocation5 + $0x1d0] ss:$8 sps:$4 sm:$0xff]  }
 0xe07   :  { %3982 = vmatprep.mubr.bf16.mxu1 %v3787_v57  ;;  %v20917_v57 = vld [vmem:[#allocation5 + $0x1e4] ss:$8 sps:$4 sm:$0xff]  }
 0xe08   :  { %3983 = vmatmul.mubr.bf16.vlgmr.msra.gmra.mrb[28].mxu1 %v3786_v58  ;;  %v20921_v58 = vld [vmem:[#allocation5 + $0x1e0] ss:$8 sps:$4 sm:$0xff]  }
 0xe09   :  { %4466 = vmatpush1.bf16.msra.mxu1 %v20808_v1 }
 0xe0a   :  { %4467 = vmatprep.subr.bf16.mxu1 %v20812_v4 }
 0xe0d   :  { %4468 = vmatpush1.bf16.msra.mxu1 %v20817_v5 }
 0xe0e   :  { %4469 = vmatprep.subr.bf16.mxu1 %v20820_v6 }
 0xe11   :  { %4470 = vmatpush1.bf16.msra.mxu1 %v20823_v7 }
 0xe12   :  { %4471 = vmatprep.subr.bf16.mxu1 %v20826_v8 }
 0xe15   :  { %4472 = vmatpush1.bf16.msra.mxu1 %v20829_v9 }
 0xe16   :  { %4473 = vmatprep.subr.bf16.mxu1 %v20832_v10 }
 0xe19   :  { %4474 = vmatpush1.bf16.msra.mxu1 %v20835_v11 }
 0xe1a   :  { %4475 = vmatprep.subr.bf16.mxu1 %v20838_v12 }
 0xe1d   :  { %4476 = vmatpush1.bf16.msra.mxu1 %v20841_v13 }
 0xe1e   :  { %4477 = vmatprep.subr.bf16.mxu1 %v20844_v14 }
 0xe21   :  { %4478 = vmatpush1.bf16.msra.mxu1 %v20847_v15 }
 0xe22   :  { %4479 = vmatprep.subr.bf16.mxu1 %v20850_v16 }
 0xe25   :  { %4480 = vmatpush1.bf16.msra.mxu1 %v20853_v17 }
 0xe26   :  { %4481 = vmatprep.subr.bf16.mxu1 %v20856_v18 }
 0xe29   :  { %4482 = vmatpush1.bf16.msra.mxu1 %v20859_v19 }
 0xe2a   :  { %4483 = vmatprep.subr.bf16.mxu1 %v20862_v20 }
 0xe2d   :  { %4484 = vmatpush1.bf16.msra.mxu1 %v20865_v41 }
 0xe2e   :  { %4485 = vmatprep.subr.bf16.mxu1 %v20888_v36 }
 0xe31   :  { %4486 = vmatpush1.bf16.msra.mxu1 %v20890_v37 }
 0xe32   :  { %4487 = vmatprep.subr.bf16.mxu1 %v20898_v39 }
 0xe35   :  { %4488 = vmatpush1.bf16.msra.mxu1 %v20896_v38 }
 0xe36   :  { %4489 = vmatprep.subr.bf16.mxu1 %v20900_v40 }
 0xe39   :  { %4490 = vmatpush1.bf16.msra.mxu1 %v20905_v55 }
 0xe3a   :  { %4491 = vmatprep.subr.bf16.mxu1 %v20909_v56 }
 0xe3d   :  { %4492 = vmatpush1.bf16.msra.mxu1 %v20913_v2 }
 0xe3e   :  { %4493 = vmatprep.subr.bf16.mxu1 %v20917_v57 }
 0xe41   :  { %4494 = vmatpush1.bf16.msra.mxu1 %v20921_v58 }
 0xe42   :  { %4495 = vmatprep.subr.bf16.mxu1 %v20925_v59 }
 0xe45   :  { %4496 = vmatpush1.bf16.msra.mxu1 %v20929_v60 }
 0xe46   :  { %4975 = vmatprep.subr.bf16.mxu1 %v20810_v3 }
 0xedb   :  { %v3984_v42 = vpop.f32.mrb[28].mxu1 }
 0xedc   :  { %v3993_v43 = vrot.slane %v3984_v42, 2  ;;  %v3986_v44 = vpop.f32.mrb[29].mxu1 }
 0xedd   :  { %v3994_v46 = vrot.slane %v3986_v44, 2  ;;  %v3988_v49 = vpop.f32.mrb[30].mxu1 }
 0xede   :  { %v3997_v50 = vadd.f32 %v3993_v43, %v3748_v45  ;;  %v3989_v52 = vpop.f32.mrb[31].mxu1 }
 0xedf   :  { %v3998_v53 = vadd.f32 %v3994_v46, %v3749_v51 }
 0xee0   :  { %19657 = vtanh.f32 %v3997_v50 }
 0xee1   :  { %19659 = vtanh.f32 %v3998_v53 }
 0xeea   :  { %v19658_v54 = vpop.eup %19657 }
 0xeeb   :  { %v19660_v27 = vpop.eup %19659  ;;  %4001 = vst [vmem:[#allocation2 + $0x10] sm:$0xc0] %v19658_v54 }
 0xeec   :  { %4002 = vst [vmem:[#allocation2 + $0x18] sm:$0xc0] %v19660_v27 }
 0xef2   :  { %v4005_v28 = vld [vmem:[#allocation2 + $0x10] sm:$0xff] }
 0xef3   :  { %v4006_v30 = vld [vmem:[#allocation2 + $0x18] sm:$0xff]  ;;  %v4007_v35 = vpack.c.bf16 %v4005_v28, %v4003_v34 }
 0xef4   :  { %v4008_v31 = vpack.c.bf16 %v4006_v30, %v4004_v29 }
 0xef6   :  { %4247 = vmatprep.mubr.bf16.mxu0 %v4008_v31 }
 0xef7   :  { %4248 = vmatmul.mubr.bf16.vlgmr.msra.gmra.mrb[32].mxu0 %v4007_v35 }
 0xef8   :  { %4721 = vmatpush1.bf16.msra.mxu0 %v20808_v1 }
 0xef9   :  { %4722 = vmatprep.subr.bf16.mxu0 %v20812_v4 }
 0xefc   :  { %4723 = vmatpush1.bf16.msra.mxu0 %v20817_v5 }
 0xefd   :  { %4724 = vmatprep.subr.bf16.mxu0 %v20820_v6 }
 0xf00   :  { %4725 = vmatpush1.bf16.msra.mxu0 %v20823_v7 }
 0xf01   :  { %4726 = vmatprep.subr.bf16.mxu0 %v20826_v8 }
 0xf04   :  { %4727 = vmatpush1.bf16.msra.mxu0 %v20829_v9 }
 0xf05   :  { %4728 = vmatprep.subr.bf16.mxu0 %v20832_v10 }
 0xf08   :  { %4729 = vmatpush1.bf16.msra.mxu0 %v20835_v11 }
 0xf09   :  { %4730 = vmatprep.subr.bf16.mxu0 %v20838_v12 }
 0xf0c   :  { %4731 = vmatpush1.bf16.msra.mxu0 %v20841_v13 }
 0xf0d   :  { %4732 = vmatprep.subr.bf16.mxu0 %v20844_v14 }
 0xf10   :  { %4733 = vmatpush1.bf16.msra.mxu0 %v20847_v15 }
 0xf11   :  { %4734 = vmatprep.subr.bf16.mxu0 %v20850_v16 }
 0xf14   :  { %4735 = vmatpush1.bf16.msra.mxu0 %v20853_v17 }
 0xf15   :  { %4736 = vmatprep.subr.bf16.mxu0 %v20856_v18 }
 0xf18   :  { %4737 = vmatpush1.bf16.msra.mxu0 %v20859_v19 }
 0xf19   :  { %4738 = vmatprep.subr.bf16.mxu0 %v20862_v20 }
 0xf1c   :  { %4739 = vmatpush1.bf16.msra.mxu0 %v20865_v41 }
 0xf1d   :  { %4740 = vmatprep.subr.bf16.mxu0 %v20888_v36 }
 0xf20   :  { %4741 = vmatpush1.bf16.msra.mxu0 %v20890_v37 }
 0xf21   :  { %4742 = vmatprep.subr.bf16.mxu0 %v20898_v39 }
 0xf24   :  { %4743 = vmatpush1.bf16.msra.mxu0 %v20896_v38 }
 0xf25   :  { %4744 = vmatprep.subr.bf16.mxu0 %v20900_v40 }
 0xf28   :  { %4745 = vmatpush1.bf16.msra.mxu0 %v20905_v55 }
 0xf29   :  { %4746 = vmatprep.subr.bf16.mxu0 %v20909_v56 }
 0xf2c   :  { %4747 = vmatpush1.bf16.msra.mxu0 %v20913_v2 }
 0xf2d   :  { %4748 = vmatprep.subr.bf16.mxu0 %v20917_v57 }
 0xf30   :  { %4749 = vmatpush1.bf16.msra.mxu0 %v20921_v58 }
 0xf31   :  { %4750 = vmatprep.subr.bf16.mxu0 %v20925_v59 }
 0xf34   :  { %4751 = vmatpush1.bf16.msra.mxu0 %v20929_v60 }
 0xf35   :  { %5230 = vmatprep.subr.bf16.mxu0 %v20810_v3 }
 0xfca   :  { %v4249_v0 = vpop.f32.mrb[32].mxu0 }
 0xfcb   :  { %v4250_v32 = vadd.f32 %v4249_v0, %v4048_v62  ;;  %v4251_v33 = vpop.f32.mrb[33].mxu0 }
 0xfcc   :  { %v4252_v21 = vadd.f32 %v4251_v33, %v4052_v63  ;;  %v4253_v22 = vpop.f32.mrb[34].mxu0 }
 0xfcd   :  { %4258 = vst [vmem:[#allocation2] sm:$0xff] %v4250_v32  ;;  %v4254_v23 = vadd.f32 %v4253_v22, %v4048_v62  ;;  %v4255_v24 = vpop.f32.mrb[35].mxu0 }
 0xfce   :  { %4259 = vst [vmem:[#allocation2 + $0x8] sm:$0xff] %v4252_v21  ;;  %v4256_v25 = vadd.f32 %v4255_v24, %v4052_v63 }
 0xfcf   :  { %4260 = vst [vmem:[#allocation2 + $0x10] sm:$0xff] %v4254_v23 }
 0xfd0   :  { %4261 = vst [vmem:[#allocation2 + $0x18] sm:$0xff] %v4256_v25 }
 0xfd4   :  { %v4262_v26 = vld [vmem:[#allocation2] sm:$0x3]  ;;  %v4268_v52 = vld [vmem:[#allocation2] sm:$0xc]  ;;  %v4518_v33 = vld [vmem:[#allocation2] sm:$0x30] }
 0xfd5   :  { %v4263_v42 = vld [vmem:[#allocation2 + $0x8] sm:$0x3]  ;;  %19661 = vtanh.f32 %v4262_v26  ;;  %v4269_v28 = vld [vmem:[#allocation2 + $0x8] sm:$0xc]  ;;  %v4519_v24 = vld [vmem:[#allocation2 + $0x8] sm:$0x30] }
 0xfd6   :  { %19663 = vtanh.f32 %v4263_v42 }
 0xfdf   :  { %v19662_v43 = vpop.eup %19661 }
 0xfe0   :  { %v19664_v44 = vpop.eup %19663  ;;  %4266 = vst [vmem:[#allocation2] sm:$0x3] %v19662_v43  ;;  %v4270_v46 = vpack.c.bf16 %v19662_v43, %v19662_v43 }
 0xfe1   :  { %4267 = vst [vmem:[#allocation2 + $0x8] sm:$0x3] %v19664_v44  ;;  %v4271_v45 = vpack.c.bf16 %v19664_v44, %v19664_v44 }
 0xfe3   :  { %4497 = vmatprep.mubr.bf16.mxu1 %v4271_v45 }
 0xfe4   :  { %4498 = vmatmul.mubr.bf16.vlgmr.msra.gmra.mrb[32].mxu1 %v4270_v46 }
 0xfe5   :  { %4976 = vmatpush1.bf16.msra.mxu1 %v20808_v1 }
 0xfe6   :  { %4977 = vmatprep.subr.bf16.mxu1 %v20812_v4 }
 0xfe9   :  { %4978 = vmatpush1.bf16.msra.mxu1 %v20817_v5 }
 0xfea   :  { %4979 = vmatprep.subr.bf16.mxu1 %v20820_v6 }
 0xfed   :  { %4980 = vmatpush1.bf16.msra.mxu1 %v20823_v7 }
 0xfee   :  { %4981 = vmatprep.subr.bf16.mxu1 %v20826_v8 }
 0xff1   :  { %4982 = vmatpush1.bf16.msra.mxu1 %v20829_v9 }
 0xff2   :  { %4983 = vmatprep.subr.bf16.mxu1 %v20832_v10 }
 0xff5   :  { %4984 = vmatpush1.bf16.msra.mxu1 %v20835_v11 }
 0xff6   :  { %4985 = vmatprep.subr.bf16.mxu1 %v20838_v12 }
 0xff9   :  { %4986 = vmatpush1.bf16.msra.mxu1 %v20841_v13 }
 0xffa   :  { %4987 = vmatprep.subr.bf16.mxu1 %v20844_v14 }
 0xffd   :  { %4988 = vmatpush1.bf16.msra.mxu1 %v20847_v15 }
 0xffe   :  { %4989 = vmatprep.subr.bf16.mxu1 %v20850_v16 }
0x1001   :  { %4990 = vmatpush1.bf16.msra.mxu1 %v20853_v17 }
0x1002   :  { %4991 = vmatprep.subr.bf16.mxu1 %v20856_v18 }
0x1005   :  { %4992 = vmatpush1.bf16.msra.mxu1 %v20859_v19 }
0x1006   :  { %4993 = vmatprep.subr.bf16.mxu1 %v20862_v20 }
0x1009   :  { %4994 = vmatpush1.bf16.msra.mxu1 %v20865_v41 }
0x100a   :  { %4995 = vmatprep.subr.bf16.mxu1 %v20888_v36 }
0x100d   :  { %4996 = vmatpush1.bf16.msra.mxu1 %v20890_v37 }
0x100e   :  { %4997 = vmatprep.subr.bf16.mxu1 %v20898_v39 }
0x1011   :  { %4998 = vmatpush1.bf16.msra.mxu1 %v20896_v38 }
0x1012   :  { %4999 = vmatprep.subr.bf16.mxu1 %v20900_v40 }
0x1015   :  { %5000 = vmatpush1.bf16.msra.mxu1 %v20905_v55 }
0x1016   :  { %5001 = vmatprep.subr.bf16.mxu1 %v20909_v56 }
0x1019   :  { %5002 = vmatpush1.bf16.msra.mxu1 %v20913_v2 }
0x101a   :  { %5003 = vmatprep.subr.bf16.mxu1 %v20917_v57 }
0x101d   :  { %5004 = vmatpush1.bf16.msra.mxu1 %v20921_v58 }
0x101e   :  { %5005 = vmatprep.subr.bf16.mxu1 %v20925_v59 }
0x1021   :  { %5006 = vmatpush1.bf16.msra.mxu1 %v20929_v60 }
0x1022   :  { %5473 = vmatprep.subr.bf16.mxu1 %v20810_v3 }
0x10b7   :  { %v4499_v49 = vpop.f32.mrb[32].mxu1 }
0x10b8   :  { %v4508_v50 = vrot.slane %v4499_v49, 6  ;;  %v4501_v51 = vpop.f32.mrb[33].mxu1 }
0x10b9   :  { %v4509_v53 = vrot.slane %v4501_v51, 6  ;;  %v4503_v54 = vpop.f32.mrb[34].mxu1  ;;  %v18839_v51 = vld [vmem:[#allocation5 + $0x184] ss:$8 sps:$4 sm:$0xff]  }
0x10ba   :  { %v4512_v27 = vadd.f32 %v4508_v50, %v4268_v52  ;;  %v4504_v29 = vpop.f32.mrb[35].mxu1  ;;  %v18834_v50 = vld [vmem:[#allocation5 + $0x170] ss:$8 sps:$4 sm:$0xff]   ;;  %v18837_v52 = vld [vmem:[#allocation5 + $0x180] ss:$8 sps:$4 sm:$0xff]  }
0x10bb   :  { %v4513_v30 = vadd.f32 %v4509_v53, %v4269_v28  ;;  %v18842_v53 = vld [vmem:[#allocation5 + $0x194] ss:$8 sps:$4 sm:$0xff]   ;;  %v18840_v54 = vld [vmem:[#allocation5 + $0x190] ss:$8 sps:$4 sm:$0xff]   ;;  %v18843_v28 = vld [vmem:[#allocation5 + $0x1a0] ss:$8 sps:$4 sm:$0xff]  }
0x10bc   :  { %19665 = vtanh.f32 %v4512_v27  ;;  %v18845_v27 = vld [vmem:[#allocation5 + $0x1a4] ss:$8 sps:$4 sm:$0xff]   ;;  %v5028_v29 = vld [vmem:[#allocation2 + $0x10] sm:$0x3] }
0x10bd   :  { %19667 = vtanh.f32 %v4513_v30 }
0x10c6   :  { %v19666_v31 = vpop.eup %19665 }
0x10c7   :  { %v19668_v34 = vpop.eup %19667  ;;  %4516 = vst [vmem:[#allocation2] sm:$0xc] %v19666_v31  ;;  %v4520_v35 = vpack.c.bf16 %v19666_v31, %v19666_v31 }
0x10c8   :  { %4517 = vst [vmem:[#allocation2 + $0x8] sm:$0xc] %v19668_v34  ;;  %v4521_v61 = vpack.c.bf16 %v19668_v34, %v19668_v34  ;;  %v5029_v34 = vld [vmem:[#allocation2 + $0x18] sm:$0x3] }
0x10c9   :  { %v4556_v3 = vrot.slane %v4520_v35, 1 }
0x10ca   :  { %v4557_v62 = vrot.slane %v4521_v61, 1 }
0x10cc   :  { %4752 = vmatprep.mubr.bf16.mxu0 %v4557_v62 }
0x10cd   :  { %4753 = vmatmul.mubr.bf16.vlgmr.msra.gmra.mrb[36].mxu0 %v4556_v3 }
0x10ce   :  { %5231 = vmatpush1.bf16.msra.mxu0 %v20808_v1 }
0x10cf   :  { %5232 = vmatprep.subr.bf16.mxu0 %v20812_v4 }
0x10d2   :  { %5233 = vmatpush1.bf16.msra.mxu0 %v20817_v5 }
0x10d3   :  { %5234 = vmatprep.subr.bf16.mxu0 %v20820_v6 }
0x10d6   :  { %5235 = vmatpush1.bf16.msra.mxu0 %v20823_v7 }
0x10d7   :  { %5236 = vmatprep.subr.bf16.mxu0 %v20826_v8 }
0x10da   :  { %5237 = vmatpush1.bf16.msra.mxu0 %v20829_v9 }
0x10db   :  { %5238 = vmatprep.subr.bf16.mxu0 %v20832_v10 }
0x10de   :  { %5239 = vmatpush1.bf16.msra.mxu0 %v20835_v11 }
0x10df   :  { %5240 = vmatprep.subr.bf16.mxu0 %v20838_v12 }
0x10e2   :  { %5241 = vmatpush1.bf16.msra.mxu0 %v20841_v13 }
0x10e3   :  { %5242 = vmatprep.subr.bf16.mxu0 %v20844_v14 }
0x10e6   :  { %5243 = vmatpush1.bf16.msra.mxu0 %v20847_v15 }
0x10e7   :  { %5244 = vmatprep.subr.bf16.mxu0 %v20850_v16 }
0x10ea   :  { %5245 = vmatpush1.bf16.msra.mxu0 %v20853_v17 }
0x10eb   :  { %5246 = vmatprep.subr.bf16.mxu0 %v20856_v18 }
0x10ee   :  { %5247 = vmatpush1.bf16.msra.mxu0 %v20859_v19 }
0x10ef   :  { %5248 = vmatprep.subr.bf16.mxu0 %v20862_v20 }
0x10f2   :  { %5249 = vmatpush1.bf16.msra.mxu0 %v20865_v41 }
0x10f3   :  { %5250 = vmatprep.subr.bf16.mxu0 %v20888_v36 }
0x10f6   :  { %5251 = vmatpush1.bf16.msra.mxu0 %v20890_v37 }
0x10f7   :  { %5252 = vmatprep.subr.bf16.mxu0 %v20898_v39 }
0x10fa   :  { %5253 = vmatpush1.bf16.msra.mxu0 %v20896_v38 }
0x10fb   :  { %5254 = vmatprep.subr.bf16.mxu0 %v20900_v40 }
0x10fe   :  { %5255 = vmatpush1.bf16.msra.mxu0 %v20905_v55 }
0x10ff   :  { %5256 = vmatprep.subr.bf16.mxu0 %v20909_v56 }
0x1102   :  { %5257 = vmatpush1.bf16.msra.mxu0 %v20913_v2 }
0x1103   :  { %5258 = vmatprep.subr.bf16.mxu0 %v20917_v57 }
0x1106   :  { %5259 = vmatpush1.bf16.msra.mxu0 %v20921_v58 }
0x1107   :  { %5260 = vmatprep.subr.bf16.mxu0 %v20925_v59 }
0x110a   :  { %5261 = vmatpush1.bf16.msra.mxu0 %v20929_v60 }
0x11a0   :  { %v4754_v63 = vpop.f32.mrb[36].mxu0 }
0x11a1   :  { %v4763_v0 = vrot.slane %v4754_v63, 4  ;;  %v4756_v32 = vpop.f32.mrb[37].mxu0 }
0x11a2   :  { %v4764_v21 = vrot.slane %v4756_v32, 4  ;;  %v4758_v22 = vpop.f32.mrb[38].mxu0 }
0x11a3   :  { %v4767_v23 = vadd.f32 %v4763_v0, %v4518_v33  ;;  %v4759_v25 = vpop.f32.mrb[39].mxu0  ;;  %v18846_v22 = vld [vmem:[#allocation5 + $0x1b0] ss:$8 sps:$4 sm:$0xff]  }
0x11a4   :  { %v4768_v26 = vadd.f32 %v4764_v21, %v4519_v24  ;;  %v18848_v21 = vld [vmem:[#allocation5 + $0x1b4] ss:$8 sps:$4 sm:$0xff]   ;;  %v18849_v24 = vld [vmem:[#allocation5 + $0x1c0] ss:$8 sps:$4 sm:$0xff]  }
0x11a5   :  { %19669 = vtanh.f32 %v4767_v23  ;;  %v18851_v23 = vld [vmem:[#allocation5 + $0x1c4] ss:$8 sps:$4 sm:$0xff]   ;;  %v18854_v25 = vld [vmem:[#allocation5 + $0x1d4] ss:$8 sps:$4 sm:$0xff]  }
0x11a6   :  { %19671 = vtanh.f32 %v4768_v26  ;;  %v18852_v26 = vld [vmem:[#allocation5 + $0x1d0] ss:$8 sps:$4 sm:$0xff]  }
0x11af   :  { %v19670_v42 = vpop.eup %19669 }
0x11b0   :  { %v19672_v43 = vpop.eup %19671  ;;  %4771 = vst [vmem:[#allocation2] sm:$0x30] %v19670_v42  ;;  %v4775_v44 = vpack.c.bf16 %v19670_v42, %v19670_v42  ;;  %v18857_v42 = vld [vmem:[#allocation5 + $0x1e4] ss:$8 sps:$4 sm:$0xff]  }
0x11b1   :  { %4772 = vst [vmem:[#allocation2 + $0x8] sm:$0x30] %v19672_v43  ;;  %v4776_v45 = vpack.c.bf16 %v19672_v43, %v19672_v43  ;;  %v18855_v43 = vld [vmem:[#allocation5 + $0x1e0] ss:$8 sps:$4 sm:$0xff]  }
0x11b2   :  { %v4811_v49 = vrot.slane %v4775_v44, 2  ;;  %v18858_v44 = vld [vmem:[#allocation5 + $0x1f0] ss:$8 sps:$4 sm:$0xff]  }
0x11b3   :  { %v4812_v46 = vrot.slane %v4776_v45, 2  ;;  %v18860_v45 = vld [vmem:[#allocation5 + $0x1f4] ss:$8 sps:$4 sm:$0xff]  }
0x11b5   :  { %5007 = vmatprep.mubr.bf16.mxu1 %v4812_v46 }
0x11b6   :  { %5008 = vmatmul.mubr.bf16.vlgmr.msra.gmra.mrb[36].mxu1 %v4811_v49 }
0x11b7   :  { %5474 = vmatpush1.bf16.msra.mxu1 %v20808_v1 }
0x11b8   :  { %5475 = vmatprep.subr.bf16.mxu1 %v20812_v4 }
0x11bb   :  { %5476 = vmatpush1.bf16.msra.mxu1 %v20817_v5 }
0x11bc   :  { %5477 = vmatprep.subr.bf16.mxu1 %v20820_v6  ;;  %v4773_v6 = vld [vmem:[#allocation2] sm:$0xc0] }
0x11bf   :  { %5478 = vmatpush1.bf16.msra.mxu1 %v20823_v7 }
0x11c0   :  { %5479 = vmatprep.subr.bf16.mxu1 %v20826_v8 }
0x11c3   :  { %5480 = vmatpush1.bf16.msra.mxu1 %v20829_v9 }
0x11c4   :  { %5481 = vmatprep.subr.bf16.mxu1 %v20832_v10  ;;  %v4774_v10 = vld [vmem:[#allocation2 + $0x8] sm:$0xc0] }
0x11c7   :  { %5482 = vmatpush1.bf16.msra.mxu1 %v20835_v11 }
0x11c8   :  { %5483 = vmatprep.subr.bf16.mxu1 %v20838_v12 }
0x11cb   :  { %5484 = vmatpush1.bf16.msra.mxu1 %v20841_v13 }
0x11cc   :  { %5485 = vmatprep.subr.bf16.mxu1 %v20844_v14 }
0x11cf   :  { %5486 = vmatpush1.bf16.msra.mxu1 %v20847_v15 }
0x11d0   :  { %5487 = vmatprep.subr.bf16.mxu1 %v20850_v16 }
0x11d3   :  { %5488 = vmatpush1.bf16.msra.mxu1 %v20853_v17 }
0x11d4   :  { %5489 = vmatprep.subr.bf16.mxu1 %v20856_v18 }
0x11d7   :  { %5490 = vmatpush1.bf16.msra.mxu1 %v20859_v19  ;;  %v18813_v19 = vld [vmem:[#allocation5 + $0x100] ss:$8 sps:$4 sm:$0xff]  }
0x11d8   :  { %5491 = vmatprep.subr.bf16.mxu1 %v20862_v20  ;;  %v18815_v20 = vld [vmem:[#allocation5 + $0x104] ss:$8 sps:$4 sm:$0xff]  }
0x11d9   :  { %5728 = vmatprep.subr.bf16.mxu0 %v18815_v20 }
0x11db   :  { %5492 = vmatpush1.bf16.msra.mxu1 %v20865_v41  ;;  %v18818_v41 = vld [vmem:[#allocation5 + $0x114] ss:$8 sps:$4 sm:$0xff]  }
0x11dc   :  { %5493 = vmatprep.subr.bf16.mxu1 %v20888_v36  ;;  %v18816_v36 = vld [vmem:[#allocation5 + $0x110] ss:$8 sps:$4 sm:$0xff]  }
0x11df   :  { %5494 = vmatpush1.bf16.msra.mxu1 %v20890_v37  ;;  %v18821_v37 = vld [vmem:[#allocation5 + $0x124] ss:$8 sps:$4 sm:$0xff]  }
0x11e0   :  { %5495 = vmatprep.subr.bf16.mxu1 %v20898_v39  ;;  %v18824_v39 = vld [vmem:[#allocation5 + $0x134] ss:$8 sps:$4 sm:$0xff]  }
0x11e3   :  { %5496 = vmatpush1.bf16.msra.mxu1 %v20896_v38  ;;  %v18819_v38 = vld [vmem:[#allocation5 + $0x120] ss:$8 sps:$4 sm:$0xff]  }
0x11e4   :  { %5497 = vmatprep.subr.bf16.mxu1 %v20900_v40  ;;  %v18822_v40 = vld [vmem:[#allocation5 + $0x130] ss:$8 sps:$4 sm:$0xff]  }
0x11e7   :  { %5498 = vmatpush1.bf16.msra.mxu1 %v20905_v55  ;;  %v18827_v55 = vld [vmem:[#allocation5 + $0x144] ss:$8 sps:$4 sm:$0xff]  }
0x11e8   :  { %5499 = vmatprep.subr.bf16.mxu1 %v20909_v56  ;;  %v18825_v56 = vld [vmem:[#allocation5 + $0x140] ss:$8 sps:$4 sm:$0xff]  }
0x11eb   :  { %5500 = vmatpush1.bf16.msra.mxu1 %v20913_v2  ;;  %v18830_v2 = vld [vmem:[#allocation5 + $0x154] ss:$8 sps:$4 sm:$0xff]  }
0x11ec   :  { %5501 = vmatprep.subr.bf16.mxu1 %v20917_v57  ;;  %v18828_v57 = vld [vmem:[#allocation5 + $0x150] ss:$8 sps:$4 sm:$0xff]  }
0x11ef   :  { %5502 = vmatpush1.bf16.msra.mxu1 %v20921_v58  ;;  %v18833_v58 = vld [vmem:[#allocation5 + $0x164] ss:$8 sps:$4 sm:$0xff]  }
0x11f0   :  { %5503 = vmatprep.subr.bf16.mxu1 %v20925_v59  ;;  %v18831_v59 = vld [vmem:[#allocation5 + $0x160] ss:$8 sps:$4 sm:$0xff]  }
0x11f3   :  { %5504 = vmatpush1.bf16.msra.mxu1 %v20929_v60  ;;  %v18836_v60 = vld [vmem:[#allocation5 + $0x174] ss:$8 sps:$4 sm:$0xff]  }
0x11f4   :  { %5983 = vmatprep.subr.bf16.mxu1 %v18815_v20  ;;  %v18864_v20 = vld [vmem:[#allocation3 + $0x210] ss:$8 sps:$4 sm:$0xff]  }
0x1289   :  { %v5009_v1 = vpop.f32.mrb[36].mxu1 }
0x128a   :  { %v5018_v4 = vrot.slane %v5009_v1, 2  ;;  %v5011_v5 = vpop.f32.mrb[37].mxu1 }
0x128b   :  { %v5019_v7 = vrot.slane %v5011_v5, 2  ;;  %v5013_v8 = vpop.f32.mrb[38].mxu1 }
0x128c   :  { %v5022_v9 = vadd.f32 %v5018_v4, %v4773_v6  ;;  %v5014_v11 = vpop.f32.mrb[39].mxu1  ;;  %v5277_v4 = vld [vmem:[#allocation2 + $0x10] sm:$0xc]  ;;  %v5278_v8 = vld [vmem:[#allocation2 + $0x18] sm:$0xc] }
0x128d   :  { %v5023_v12 = vadd.f32 %v5019_v7, %v4774_v10 }
0x128e   :  { %19673 = vtanh.f32 %v5022_v9 }
0x128f   :  { %19675 = vtanh.f32 %v5023_v12 }
0x1298   :  { %v19674_v13 = vpop.eup %19673 }
0x1299   :  { %v19676_v14 = vpop.eup %19675  ;;  %5026 = vst [vmem:[#allocation2] sm:$0xc0] %v19674_v13  ;;  %v5030_v15 = vpack.c.bf16 %v19674_v13, %v19674_v13 }
0x129a   :  { %5027 = vst [vmem:[#allocation2 + $0x8] sm:$0xc0] %v19676_v14  ;;  %v5031_v16 = vpack.c.bf16 %v19676_v14, %v19676_v14 }
0x129b   :  { %v5066_v18 = vrot.slane %v5030_v15, 3 }
0x129c   :  { %v5067_v17 = vrot.slane %v5031_v16, 3 }
0x129e   :  { %5262 = vmatprep.mubr.bf16.mxu0 %v5067_v17  ;;  %v18861_v17 = vld [vmem:[#allocation3 + $0x200] ss:$8 sps:$4 sm:$0xff]  }
0x129f   :  { %5263 = vmatmul.mubr.bf16.vlgmr.msra.gmra.mrb[40].mxu0 %v5066_v18  ;;  %v18863_v18 = vld [vmem:[#allocation3 + $0x204] ss:$8 sps:$4 sm:$0xff]  }
0x12a0   :  { %5729 = vmatpush1.bf16.msra.mxu0 %v18813_v19 }
0x12a1   :  { %5730 = vmatprep.subr.bf16.mxu0 %v18818_v41 }
0x12a4   :  { %5731 = vmatpush1.bf16.msra.mxu0 %v18816_v36 }
0x12a5   :  { %5732 = vmatprep.subr.bf16.mxu0 %v18821_v37 }
0x12a8   :  { %5733 = vmatpush1.bf16.msra.mxu0 %v18819_v38 }
0x12a9   :  { %5734 = vmatprep.subr.bf16.mxu0 %v18824_v39 }
0x12ac   :  { %5735 = vmatpush1.bf16.msra.mxu0 %v18822_v40 }
0x12ad   :  { %5736 = vmatprep.subr.bf16.mxu0 %v18827_v55 }
0x12b0   :  { %5737 = vmatpush1.bf16.msra.mxu0 %v18825_v56 }
0x12b1   :  { %5738 = vmatprep.subr.bf16.mxu0 %v18830_v2 }
0x12b4   :  { %5739 = vmatpush1.bf16.msra.mxu0 %v18828_v57 }
0x12b5   :  { %5740 = vmatprep.subr.bf16.mxu0 %v18833_v58 }
0x12b8   :  { %5741 = vmatpush1.bf16.msra.mxu0 %v18831_v59 }
0x12b9   :  { %5742 = vmatprep.subr.bf16.mxu0 %v18836_v60 }
0x12bc   :  { %5743 = vmatpush1.bf16.msra.mxu0 %v18834_v50 }
0x12bd   :  { %5744 = vmatprep.subr.bf16.mxu0 %v18839_v51 }
0x12c0   :  { %5745 = vmatpush1.bf16.msra.mxu0 %v18837_v52 }
0x12c1   :  { %5746 = vmatprep.subr.bf16.mxu0 %v18842_v53 }
0x12c4   :  { %5747 = vmatpush1.bf16.msra.mxu0 %v18840_v54 }
0x12c5   :  { %5748 = vmatprep.subr.bf16.mxu0 %v18845_v27 }
0x12c8   :  { %5749 = vmatpush1.bf16.msra.mxu0 %v18843_v28 }
0x12c9   :  { %5750 = vmatprep.subr.bf16.mxu0 %v18848_v21 }
0x12cc   :  { %5751 = vmatpush1.bf16.msra.mxu0 %v18846_v22 }
0x12cd   :  { %5752 = vmatprep.subr.bf16.mxu0 %v18851_v23 }
0x12d0   :  { %5753 = vmatpush1.bf16.msra.mxu0 %v18849_v24 }
0x12d1   :  { %5754 = vmatprep.subr.bf16.mxu0 %v18854_v25 }
0x12d4   :  { %5755 = vmatpush1.bf16.msra.mxu0 %v18852_v26 }
0x12d5   :  { %5756 = vmatprep.subr.bf16.mxu0 %v18857_v42 }
0x12d8   :  { %5757 = vmatpush1.bf16.msra.mxu0 %v18855_v43 }
0x12d9   :  { %5758 = vmatprep.subr.bf16.mxu0 %v18860_v45 }
0x12dc   :  { %5759 = vmatpush1.bf16.msra.mxu0 %v18858_v44 }
0x12dd   :  { %6248 = vmatprep.subr.bf16.mxu0 %v18863_v18  ;;  %v21079_v18 = vld [vmem:[#allocation5 + $0x270] ss:$8 sps:$4 sm:$0xff]  }
0x1372   :  { %v5264_v30 = vpop.f32.mrb[40].mxu0 }
0x1373   :  { %v5271_v31 = vadd.f32 %v5264_v30, %v5028_v29  ;;  %v5266_v35 = vpop.f32.mrb[41].mxu0  ;;  %v5527_v30 = vld [vmem:[#allocation2 + $0x18] sm:$0x30] }
0x1374   :  { %v5272_v61 = vadd.f32 %v5266_v35, %v5029_v34  ;;  %v5268_v62 = vpop.f32.mrb[42].mxu0 }
0x1375   :  { %19677 = vtanh.f32 %v5271_v31  ;;  %v5269_v3 = vpop.f32.mrb[43].mxu0 }
0x1376   :  { %19679 = vtanh.f32 %v5272_v61 }
0x137f   :  { %v19678_v63 = vpop.eup %19677 }
0x1380   :  { %v19680_v0 = vpop.eup %19679  ;;  %5275 = vst [vmem:[#allocation2 + $0x10] sm:$0x3] %v19678_v63  ;;  %v5279_v33 = vpack.c.bf16 %v19678_v63, %v19678_v63 }
0x1381   :  { %5276 = vst [vmem:[#allocation2 + $0x18] sm:$0x3] %v19680_v0  ;;  %v5280_v32 = vpack.c.bf16 %v19680_v0, %v19680_v0 }
0x1383   :  { %5505 = vmatprep.mubr.bf16.mxu1 %v5280_v32  ;;  %v18890_v32 = vld [vmem:[#allocation3 + $0x294] ss:$8 sps:$4 sm:$0xff]  }
0x1384   :  { %5506 = vmatmul.mubr.bf16.vlgmr.msra.gmra.mrb[40].mxu1 %v5279_v33  ;;  %v18888_v33 = vld [vmem:[#allocation3 + $0x290] ss:$8 sps:$4 sm:$0xff]  }
0x1385   :  { %5984 = vmatpush1.bf16.msra.mxu1 %v18813_v19  ;;  %v18866_v19 = vld [vmem:[#allocation3 + $0x214] ss:$8 sps:$4 sm:$0xff]  }
0x1386   :  { %5985 = vmatprep.subr.bf16.mxu1 %v18818_v41  ;;  %v18869_v41 = vld [vmem:[#allocation3 + $0x224] ss:$8 sps:$4 sm:$0xff]  }
0x1389   :  { %5986 = vmatpush1.bf16.msra.mxu1 %v18816_v36  ;;  %v18867_v36 = vld [vmem:[#allocation3 + $0x220] ss:$8 sps:$4 sm:$0xff]  }
0x138a   :  { %5987 = vmatprep.subr.bf16.mxu1 %v18821_v37  ;;  %v18872_v37 = vld [vmem:[#allocation3 + $0x234] ss:$8 sps:$4 sm:$0xff]  }
0x138d   :  { %5988 = vmatpush1.bf16.msra.mxu1 %v18819_v38  ;;  %v18870_v38 = vld [vmem:[#allocation3 + $0x230] ss:$8 sps:$4 sm:$0xff]  }
0x138e   :  { %5989 = vmatprep.subr.bf16.mxu1 %v18824_v39  ;;  %v18875_v39 = vld [vmem:[#allocation3 + $0x244] ss:$8 sps:$4 sm:$0xff]  }
0x1391   :  { %5990 = vmatpush1.bf16.msra.mxu1 %v18822_v40  ;;  %v18873_v40 = vld [vmem:[#allocation3 + $0x240] ss:$8 sps:$4 sm:$0xff]  }
0x1392   :  { %5991 = vmatprep.subr.bf16.mxu1 %v18827_v55  ;;  %v18878_v55 = vld [vmem:[#allocation3 + $0x254] ss:$8 sps:$4 sm:$0xff]  }
0x1395   :  { %5992 = vmatpush1.bf16.msra.mxu1 %v18825_v56  ;;  %v18876_v56 = vld [vmem:[#allocation3 + $0x250] ss:$8 sps:$4 sm:$0xff]  }
0x1396   :  { %5993 = vmatprep.subr.bf16.mxu1 %v18830_v2  ;;  %v18881_v2 = vld [vmem:[#allocation3 + $0x264] ss:$8 sps:$4 sm:$0xff]  }
0x1399   :  { %5994 = vmatpush1.bf16.msra.mxu1 %v18828_v57  ;;  %v18879_v57 = vld [vmem:[#allocation3 + $0x260] ss:$8 sps:$4 sm:$0xff]  }
0x139a   :  { %5995 = vmatprep.subr.bf16.mxu1 %v18833_v58  ;;  %v18884_v58 = vld [vmem:[#allocation3 + $0x274] ss:$8 sps:$4 sm:$0xff]  }
0x139d   :  { %5996 = vmatpush1.bf16.msra.mxu1 %v18831_v59  ;;  %v18882_v59 = vld [vmem:[#allocation3 + $0x270] ss:$8 sps:$4 sm:$0xff]  }
0x139e   :  { %5997 = vmatprep.subr.bf16.mxu1 %v18836_v60  ;;  %v18887_v60 = vld [vmem:[#allocation3 + $0x284] ss:$8 sps:$4 sm:$0xff]  }
0x13a1   :  { %5998 = vmatpush1.bf16.msra.mxu1 %v18834_v50  ;;  %v18885_v50 = vld [vmem:[#allocation3 + $0x280] ss:$8 sps:$4 sm:$0xff]  }
0x13a2   :  { %5999 = vmatprep.subr.bf16.mxu1 %v18839_v51 }
0x13a5   :  { %6000 = vmatpush1.bf16.msra.mxu1 %v18837_v52 }
0x13a6   :  { %6001 = vmatprep.subr.bf16.mxu1 %v18842_v53 }
0x13a9   :  { %6002 = vmatpush1.bf16.msra.mxu1 %v18840_v54  ;;  %v5526_v54 = vld [vmem:[#allocation2 + $0x10] sm:$0x30] }
0x13aa   :  { %6003 = vmatprep.subr.bf16.mxu1 %v18845_v27 }
0x13ad   :  { %6004 = vmatpush1.bf16.msra.mxu1 %v18843_v28 }
0x13ae   :  { %6005 = vmatprep.subr.bf16.mxu1 %v18848_v21  ;;  %v18893_v21 = vld [vmem:[#allocation3 + $0x2a4] ss:$8 sps:$4 sm:$0xff]  }
0x13b1   :  { %6006 = vmatpush1.bf16.msra.mxu1 %v18846_v22  ;;  %v18891_v22 = vld [vmem:[#allocation3 + $0x2a0] ss:$8 sps:$4 sm:$0xff]  }
0x13b2   :  { %6007 = vmatprep.subr.bf16.mxu1 %v18851_v23  ;;  %v18896_v23 = vld [vmem:[#allocation3 + $0x2b4] ss:$8 sps:$4 sm:$0xff]  }
0x13b5   :  { %6008 = vmatpush1.bf16.msra.mxu1 %v18849_v24  ;;  %v18894_v24 = vld [vmem:[#allocation3 + $0x2b0] ss:$8 sps:$4 sm:$0xff]  }
0x13b6   :  { %6009 = vmatprep.subr.bf16.mxu1 %v18854_v25  ;;  %v18899_v25 = vld [vmem:[#allocation3 + $0x2c4] ss:$8 sps:$4 sm:$0xff]  }
0x13b9   :  { %6010 = vmatpush1.bf16.msra.mxu1 %v18852_v26  ;;  %v18897_v26 = vld [vmem:[#allocation3 + $0x2c0] ss:$8 sps:$4 sm:$0xff]  }
0x13ba   :  { %6011 = vmatprep.subr.bf16.mxu1 %v18857_v42  ;;  %v18902_v42 = vld [vmem:[#allocation3 + $0x2d4] ss:$8 sps:$4 sm:$0xff]  }
0x13bd   :  { %6012 = vmatpush1.bf16.msra.mxu1 %v18855_v43  ;;  %v18900_v43 = vld [vmem:[#allocation3 + $0x2d0] ss:$8 sps:$4 sm:$0xff]  }
0x13be   :  { %6013 = vmatprep.subr.bf16.mxu1 %v18860_v45  ;;  %v18903_v45 = vld [vmem:[#allocation3 + $0x2e0] ss:$8 sps:$4 sm:$0xff]  }
0x13c1   :  { %6014 = vmatpush1.bf16.msra.mxu1 %v18858_v44  ;;  %v18905_v44 = vld [vmem:[#allocation3 + $0x2e4] ss:$8 sps:$4 sm:$0xff]  }
0x1457   :  { %v5507_v46 = vpop.f32.mrb[40].mxu1 }
0x1458   :  { %v5516_v49 = vrot.slane %v5507_v46, 6  ;;  %v5509_v1 = vpop.f32.mrb[41].mxu1  ;;  %v18908_v46 = vld [vmem:[#allocation3 + $0x2f4] ss:$8 sps:$4 sm:$0xff]  }
0x1459   :  { %v5517_v5 = vrot.slane %v5509_v1, 6  ;;  %v5511_v6 = vpop.f32.mrb[42].mxu1  ;;  %v21034_v1 = vld [vmem:[#allocation5 + $0x200] ss:$8 sps:$4 sm:$0xff]  }
0x145a   :  { %v5520_v7 = vadd.f32 %v5516_v49, %v5277_v4  ;;  %v5512_v9 = vpop.f32.mrb[43].mxu1  ;;  %v18906_v49 = vld [vmem:[#allocation3 + $0x2f0] ss:$8 sps:$4 sm:$0xff]   ;;  %v21036_v4 = vld [vmem:[#allocation5 + $0x204] ss:$8 sps:$4 sm:$0xff]  }
0x145b   :  { %v5521_v10 = vadd.f32 %v5517_v5, %v5278_v8  ;;  %v21038_v5 = vld [vmem:[#allocation5 + $0x214] ss:$8 sps:$4 sm:$0xff]   ;;  %6498 = vmatprep.subr.bf16.mxu1 %v21036_v4  ;;  %v21043_v6 = vld [vmem:[#allocation5 + $0x210] ss:$8 sps:$4 sm:$0xff]   ;;  %v21049_v8 = vld [vmem:[#allocation5 + $0x220] ss:$8 sps:$4 sm:$0xff]  }
0x145c   :  { %19681 = vtanh.f32 %v5520_v7  ;;  %v21046_v7 = vld [vmem:[#allocation5 + $0x224] ss:$8 sps:$4 sm:$0xff]   ;;  %v21052_v9 = vld [vmem:[#allocation5 + $0x234] ss:$8 sps:$4 sm:$0xff]  }
0x145d   :  { %19683 = vtanh.f32 %v5521_v10  ;;  %v21055_v10 = vld [vmem:[#allocation5 + $0x230] ss:$8 sps:$4 sm:$0xff]  }
0x1466   :  { %v19682_v11 = vpop.eup %19681 }
0x1467   :  { %v19684_v12 = vpop.eup %19683  ;;  %5524 = vst [vmem:[#allocation2 + $0x10] sm:$0xc] %v19682_v11  ;;  %v5528_v13 = vpack.c.bf16 %v19682_v11, %v19682_v11  ;;  %v21058_v11 = vld [vmem:[#allocation5 + $0x244] ss:$8 sps:$4 sm:$0xff]  }
0x1468   :  { %5525 = vst [vmem:[#allocation2 + $0x18] sm:$0xc] %v19684_v12  ;;  %v5529_v14 = vpack.c.bf16 %v19684_v12, %v19684_v12  ;;  %v21061_v12 = vld [vmem:[#allocation5 + $0x240] ss:$8 sps:$4 sm:$0xff]  }
0x1469   :  { %v5564_v16 = vrot.slane %v5528_v13, 1  ;;  %v21064_v13 = vld [vmem:[#allocation5 + $0x254] ss:$8 sps:$4 sm:$0xff]  }
0x146a   :  { %v5565_v15 = vrot.slane %v5529_v14, 1  ;;  %v21067_v14 = vld [vmem:[#allocation5 + $0x250] ss:$8 sps:$4 sm:$0xff]  }
0x146c   :  { %5760 = vmatprep.mubr.bf16.mxu0 %v5565_v15  ;;  %v21070_v15 = vld [vmem:[#allocation5 + $0x264] ss:$8 sps:$4 sm:$0xff]  }
0x146d   :  { %5761 = vmatmul.mubr.bf16.vlgmr.msra.gmra.mrb[44].mxu0 %v5564_v16  ;;  %v21073_v16 = vld [vmem:[#allocation5 + $0x260] ss:$8 sps:$4 sm:$0xff]  }
0x146e   :  { %6249 = vmatpush1.bf16.msra.mxu0 %v18861_v17  ;;  %v21076_v17 = vld [vmem:[#allocation5 + $0x274] ss:$8 sps:$4 sm:$0xff]  }
0x146f   :  { %6250 = vmatprep.subr.bf16.mxu0 %v18866_v19  ;;  %v21082_v19 = vld [vmem:[#allocation5 + $0x284] ss:$8 sps:$4 sm:$0xff]  }
0x1472   :  { %6251 = vmatpush1.bf16.msra.mxu0 %v18864_v20  ;;  %v21085_v20 = vld [vmem:[#allocation5 + $0x280] ss:$8 sps:$4 sm:$0xff]  }
0x1473   :  { %6252 = vmatprep.subr.bf16.mxu0 %v18869_v41  ;;  %v21088_v41 = vld [vmem:[#allocation5 + $0x294] ss:$8 sps:$4 sm:$0xff]  }
0x1476   :  { %6253 = vmatpush1.bf16.msra.mxu0 %v18867_v36  ;;  %v21091_v36 = vld [vmem:[#allocation5 + $0x290] ss:$8 sps:$4 sm:$0xff]  }
0x1477   :  { %6254 = vmatprep.subr.bf16.mxu0 %v18872_v37 }
0x147a   :  { %6255 = vmatpush1.bf16.msra.mxu0 %v18870_v38 }
0x147b   :  { %6256 = vmatprep.subr.bf16.mxu0 %v18875_v39 }
0x147e   :  { %6257 = vmatpush1.bf16.msra.mxu0 %v18873_v40  ;;  %v5781_v40 = vld [vmem:[#allocation2 + $0x10] sm:$0xc0] }
0x147f   :  { %6258 = vmatprep.subr.bf16.mxu0 %v18878_v55 }
0x1482   :  { %6259 = vmatpush1.bf16.msra.mxu0 %v18876_v56 }
0x1483   :  { %6260 = vmatprep.subr.bf16.mxu0 %v18881_v2 }
0x1486   :  { %6261 = vmatpush1.bf16.msra.mxu0 %v18879_v57  ;;  %v5782_v57 = vld [vmem:[#allocation2 + $0x18] sm:$0xc0] }
0x1487   :  { %6262 = vmatprep.subr.bf16.mxu0 %v18884_v58 }
0x148a   :  { %6263 = vmatpush1.bf16.msra.mxu0 %v18882_v59 }
0x148b   :  { %6264 = vmatprep.subr.bf16.mxu0 %v18887_v60 }
0x148e   :  { %6265 = vmatpush1.bf16.msra.mxu0 %v18885_v50 }
0x148f   :  { %6266 = vmatprep.subr.bf16.mxu0 %v18890_v32  ;;  %v21151_v32 = vld [vmem:[#allocation5 + $0x2f4] ss:$8 sps:$4 sm:$0xff]  }
0x1492   :  { %6267 = vmatpush1.bf16.msra.mxu0 %v18888_v33  ;;  %v21155_v33 = vld [vmem:[#allocation5 + $0x2f0] ss:$8 sps:$4 sm:$0xff]  }
0x1493   :  { %6268 = vmatprep.subr.bf16.mxu0 %v18893_v21  ;;  %v6076_v21 = vld [vmem:[#allocation7 + $0x4] sm:$0x3] }
0x1496   :  { %6269 = vmatpush1.bf16.msra.mxu0 %v18891_v22  ;;  %v6081_v22 = vrot.slane %v6076_v21, %v20229_v47 }
0x1497   :  { %6270 = vmatprep.subr.bf16.mxu0 %v18896_v23  ;;  %v6085_v23 = vrot.slane %v6076_v21, %v20231_v48 }
0x149a   :  { %6271 = vmatpush1.bf16.msra.mxu0 %v18894_v24 }
0x149b   :  { %6272 = vmatprep.subr.bf16.mxu0 %v18899_v25 }
0x149e   :  { %6273 = vmatpush1.bf16.msra.mxu0 %v18897_v26 }
0x149f   :  { %6274 = vmatprep.subr.bf16.mxu0 %v18902_v42 }
0x14a2   :  { %6275 = vmatpush1.bf16.msra.mxu0 %v18900_v43 }
0x14a3   :  { %6276 = vmatprep.subr.bf16.mxu0 %v18905_v44 }
0x14a6   :  { %6277 = vmatpush1.bf16.msra.mxu0 %v18903_v45 }
0x14a7   :  { %6278 = vmatprep.subr.bf16.mxu0 %v18908_v46 }
0x14aa   :  { %6279 = vmatpush1.bf16.msra.mxu0 %v18906_v49 }
0x14ab   :  { %6753 = vmatprep.subr.bf16.mxu0 %v21036_v4 }
0x1540   :  { %v5762_v51 = vpop.f32.mrb[44].mxu0 }
0x1541   :  { %v5771_v52 = vrot.slane %v5762_v51, 4  ;;  %v5764_v53 = vpop.f32.mrb[45].mxu0 }
0x1542   :  { %v5772_v27 = vrot.slane %v5764_v53, 4  ;;  %v5766_v28 = vpop.f32.mrb[46].mxu0 }
0x1543   :  { %v5775_v29 = vadd.f32 %v5771_v52, %v5526_v54  ;;  %v5767_v31 = vpop.f32.mrb[47].mxu0  ;;  %v6037_v52 = vld [vmem:[#allocation2 + $0x8] sm:$0xff] }
0x1544   :  { %v5776_v34 = vadd.f32 %v5772_v27, %v5527_v30  ;;  %v6036_v27 = vld [vmem:[#allocation2] sm:$0xff]  ;;  %v21122_v31 = vld [vmem:[#allocation5 + $0x2b0] ss:$8 sps:$4 sm:$0xff]  }
0x1545   :  { %19685 = vtanh.f32 %v5775_v29  ;;  %v21114_v29 = vld [vmem:[#allocation5 + $0x2a4] ss:$8 sps:$4 sm:$0xff]   ;;  %v21116_v30 = vld [vmem:[#allocation5 + $0x2a0] ss:$8 sps:$4 sm:$0xff]  }
0x1546   :  { %19687 = vtanh.f32 %v5776_v34  ;;  %v21124_v34 = vld [vmem:[#allocation5 + $0x2b4] ss:$8 sps:$4 sm:$0xff]  }
0x154f   :  { %v19686_v35 = vpop.eup %19685 }
0x1550   :  { %v19688_v61 = vpop.eup %19687  ;;  %5779 = vst [vmem:[#allocation2 + $0x10] sm:$0x30] %v19686_v35  ;;  %v5783_v62 = vpack.c.bf16 %v19686_v35, %v19686_v35  ;;  %v21126_v35 = vld [vmem:[#allocation5 + $0x2c4] ss:$8 sps:$4 sm:$0xff]  }
0x1551   :  { %5780 = vst [vmem:[#allocation2 + $0x18] sm:$0x30] %v19688_v61  ;;  %v5784_v3 = vpack.c.bf16 %v19688_v61, %v19688_v61  ;;  %v21131_v61 = vld [vmem:[#allocation5 + $0x2c0] ss:$8 sps:$4 sm:$0xff]  }
0x1552   :  { %v5819_v0 = vrot.slane %v5783_v62, 2  ;;  %v21135_v62 = vld [vmem:[#allocation5 + $0x2d4] ss:$8 sps:$4 sm:$0xff]  }
0x1553   :  { %v5820_v63 = vrot.slane %v5784_v3, 2  ;;  %v21139_v3 = vld [vmem:[#allocation5 + $0x2d0] ss:$8 sps:$4 sm:$0xff]  }
0x1555   :  { %6015 = vmatprep.mubr.bf16.mxu1 %v5820_v63  ;;  %v21143_v63 = vld [vmem:[#allocation5 + $0x2e4] ss:$8 sps:$4 sm:$0xff]  }
0x1556   :  { %6016 = vmatmul.mubr.bf16.vlgmr.msra.gmra.mrb[44].mxu1 %v5819_v0  ;;  %v21147_v0 = vld [vmem:[#allocation5 + $0x2e0] ss:$8 sps:$4 sm:$0xff]  }
0x1557   :  { %6499 = vmatpush1.bf16.msra.mxu1 %v21034_v1 }
0x1558   :  { %6500 = vmatprep.subr.bf16.mxu1 %v21038_v5 }
0x155b   :  { %6501 = vmatpush1.bf16.msra.mxu1 %v21043_v6 }
0x155c   :  { %6502 = vmatprep.subr.bf16.mxu1 %v21046_v7 }
0x155f   :  { %6503 = vmatpush1.bf16.msra.mxu1 %v21049_v8 }
0x1560   :  { %6504 = vmatprep.subr.bf16.mxu1 %v21052_v9 }
0x1563   :  { %6505 = vmatpush1.bf16.msra.mxu1 %v21055_v10 }
0x1564   :  { %6506 = vmatprep.subr.bf16.mxu1 %v21058_v11 }
0x1567   :  { %6507 = vmatpush1.bf16.msra.mxu1 %v21061_v12 }
0x1568   :  { %6508 = vmatprep.subr.bf16.mxu1 %v21064_v13 }
0x156b   :  { %6509 = vmatpush1.bf16.msra.mxu1 %v21067_v14 }
0x156c   :  { %6510 = vmatprep.subr.bf16.mxu1 %v21070_v15 }
0x156f   :  { %6511 = vmatpush1.bf16.msra.mxu1 %v21073_v16 }
0x1570   :  { %6512 = vmatprep.subr.bf16.mxu1 %v21076_v17 }
0x1573   :  { %6513 = vmatpush1.bf16.msra.mxu1 %v21079_v18 }
0x1574   :  { %6514 = vmatprep.subr.bf16.mxu1 %v21082_v19 }
0x1577   :  { %6515 = vmatpush1.bf16.msra.mxu1 %v21085_v20 }
0x1578   :  { %6516 = vmatprep.subr.bf16.mxu1 %v21088_v41 }
0x157b   :  { %6517 = vmatpush1.bf16.msra.mxu1 %v21091_v36 }
0x157c   :  { %6518 = vmatprep.subr.bf16.mxu1 %v21114_v29 }
0x157f   :  { %6519 = vmatpush1.bf16.msra.mxu1 %v21116_v30 }
0x1580   :  { %6520 = vmatprep.subr.bf16.mxu1 %v21124_v34 }
0x1583   :  { %6521 = vmatpush1.bf16.msra.mxu1 %v21122_v31 }
0x1584   :  { %6522 = vmatprep.subr.bf16.mxu1 %v21126_v35 }
0x1587   :  { %6523 = vmatpush1.bf16.msra.mxu1 %v21131_v61 }
0x1588   :  { %6524 = vmatprep.subr.bf16.mxu1 %v21135_v62 }
0x158b   :  { %6525 = vmatpush1.bf16.msra.mxu1 %v21139_v3 }
0x158c   :  { %6526 = vmatprep.subr.bf16.mxu1 %v21143_v63 }
0x158f   :  { %6527 = vmatpush1.bf16.msra.mxu1 %v21147_v0 }
0x1590   :  { %6528 = vmatprep.subr.bf16.mxu1 %v21151_v32 }
0x1593   :  { %6529 = vmatpush1.bf16.msra.mxu1 %v21155_v33 }
0x1594   :  { %7008 = vmatprep.subr.bf16.mxu1 %v21036_v4 }
0x1629   :  { %v6017_v37 = vpop.f32.mrb[44].mxu1 }
0x162a   :  { %v6026_v38 = vrot.slane %v6017_v37, 2  ;;  %v6019_v39 = vpop.f32.mrb[45].mxu1 }
0x162b   :  { %v6027_v55 = vrot.slane %v6019_v39, 2  ;;  %v6021_v56 = vpop.f32.mrb[46].mxu1 }
0x162c   :  { %v6030_v2 = vadd.f32 %v6026_v38, %v5781_v40  ;;  %v6022_v58 = vpop.f32.mrb[47].mxu1 }
0x162d   :  { %v6031_v59 = vadd.f32 %v6027_v55, %v5782_v57 }
0x162e   :  { %19689 = vtanh.f32 %v6030_v2 }
0x162f   :  { %19691 = vtanh.f32 %v6031_v59 }
0x1638   :  { %v19690_v60 = vpop.eup %19689 }
0x1639   :  { %v19692_v50 = vpop.eup %19691  ;;  %6034 = vst [vmem:[#allocation2 + $0x10] sm:$0xc0] %v19690_v60 }
0x163a   :  { %6035 = vst [vmem:[#allocation2 + $0x18] sm:$0xc0] %v19692_v50 }
0x1640   :  { %v6038_v51 = vld [vmem:[#allocation2 + $0x10] sm:$0xff] }
0x1641   :  { %v6039_v53 = vld [vmem:[#allocation2 + $0x18] sm:$0xff]  ;;  %v6040_v28 = vpack.c.bf16 %v6038_v51, %v6036_v27 }
0x1642   :  { %v6041_v54 = vpack.c.bf16 %v6039_v53, %v6037_v52 }
0x1644   :  { %6280 = vmatprep.mubr.bf16.mxu0 %v6041_v54 }
0x1645   :  { %6281 = vmatmul.mubr.bf16.vlgmr.msra.gmra.mrb[48].mxu0 %v6040_v28 }
0x1646   :  { %6754 = vmatpush1.bf16.msra.mxu0 %v21034_v1 }
0x1647   :  { %6755 = vmatprep.subr.bf16.mxu0 %v21038_v5 }
0x164a   :  { %6756 = vmatpush1.bf16.msra.mxu0 %v21043_v6 }
0x164b   :  { %6757 = vmatprep.subr.bf16.mxu0 %v21046_v7 }
0x164e   :  { %6758 = vmatpush1.bf16.msra.mxu0 %v21049_v8 }
0x164f   :  { %6759 = vmatprep.subr.bf16.mxu0 %v21052_v9 }
0x1652   :  { %6760 = vmatpush1.bf16.msra.mxu0 %v21055_v10 }
0x1653   :  { %6761 = vmatprep.subr.bf16.mxu0 %v21058_v11 }
0x1656   :  { %6762 = vmatpush1.bf16.msra.mxu0 %v21061_v12 }
0x1657   :  { %6763 = vmatprep.subr.bf16.mxu0 %v21064_v13 }
0x165a   :  { %6764 = vmatpush1.bf16.msra.mxu0 %v21067_v14 }
0x165b   :  { %6765 = vmatprep.subr.bf16.mxu0 %v21070_v15 }
0x165e   :  { %6766 = vmatpush1.bf16.msra.mxu0 %v21073_v16 }
0x165f   :  { %6767 = vmatprep.subr.bf16.mxu0 %v21076_v17 }
0x1662   :  { %6768 = vmatpush1.bf16.msra.mxu0 %v21079_v18 }
0x1663   :  { %6769 = vmatprep.subr.bf16.mxu0 %v21082_v19 }
0x1666   :  { %6770 = vmatpush1.bf16.msra.mxu0 %v21085_v20 }
0x1667   :  { %6771 = vmatprep.subr.bf16.mxu0 %v21088_v41 }
0x166a   :  { %6772 = vmatpush1.bf16.msra.mxu0 %v21091_v36 }
0x166b   :  { %6773 = vmatprep.subr.bf16.mxu0 %v21114_v29 }
0x166e   :  { %6774 = vmatpush1.bf16.msra.mxu0 %v21116_v30 }
0x166f   :  { %6775 = vmatprep.subr.bf16.mxu0 %v21124_v34 }
0x1672   :  { %6776 = vmatpush1.bf16.msra.mxu0 %v21122_v31 }
0x1673   :  { %6777 = vmatprep.subr.bf16.mxu0 %v21126_v35 }
0x1676   :  { %6778 = vmatpush1.bf16.msra.mxu0 %v21131_v61 }
0x1677   :  { %6779 = vmatprep.subr.bf16.mxu0 %v21135_v62 }
0x167a   :  { %6780 = vmatpush1.bf16.msra.mxu0 %v21139_v3 }
0x167b   :  { %6781 = vmatprep.subr.bf16.mxu0 %v21143_v63 }
0x167e   :  { %6782 = vmatpush1.bf16.msra.mxu0 %v21147_v0 }
0x167f   :  { %6783 = vmatprep.subr.bf16.mxu0 %v21151_v32 }
0x1682   :  { %6784 = vmatpush1.bf16.msra.mxu0 %v21155_v33 }
0x1683   :  { %7263 = vmatprep.subr.bf16.mxu0 %v21036_v4 }
0x1718   :  { %v6282_v24 = vpop.f32.mrb[48].mxu0 }
0x1719   :  { %v6283_v25 = vadd.f32 %v6282_v24, %v6081_v22  ;;  %v6284_v26 = vpop.f32.mrb[49].mxu0 }
0x171a   :  { %v6285_v42 = vadd.f32 %v6284_v26, %v6085_v23  ;;  %v6286_v43 = vpop.f32.mrb[50].mxu0 }
0x171b   :  { %6291 = vst [vmem:[#allocation2] sm:$0xff] %v6283_v25  ;;  %v6287_v44 = vadd.f32 %v6286_v43, %v6081_v22  ;;  %v6288_v45 = vpop.f32.mrb[51].mxu0 }
0x171c   :  { %6292 = vst [vmem:[#allocation2 + $0x8] sm:$0xff] %v6285_v42  ;;  %v6289_v46 = vadd.f32 %v6288_v45, %v6085_v23 }
0x171d   :  { %6293 = vst [vmem:[#allocation2 + $0x10] sm:$0xff] %v6287_v44 }
0x171e   :  { %6294 = vst [vmem:[#allocation2 + $0x18] sm:$0xff] %v6289_v46 }
0x1722   :  { %v6295_v49 = vld [vmem:[#allocation2] sm:$0x3]  ;;  %v6301_v58 = vld [vmem:[#allocation2] sm:$0xc]  ;;  %v6551_v26 = vld [vmem:[#allocation2] sm:$0x30] }
0x1723   :  { %v6296_v37 = vld [vmem:[#allocation2 + $0x8] sm:$0x3]  ;;  %19693 = vtanh.f32 %v6295_v49  ;;  %v6302_v51 = vld [vmem:[#allocation2 + $0x8] sm:$0xc]  ;;  %v6552_v45 = vld [vmem:[#allocation2 + $0x8] sm:$0x30] }
0x1724   :  { %19695 = vtanh.f32 %v6296_v37 }
0x172d   :  { %v19694_v38 = vpop.eup %19693 }
0x172e   :  { %v19696_v39 = vpop.eup %19695  ;;  %6299 = vst [vmem:[#allocation2] sm:$0x3] %v19694_v38  ;;  %v6303_v55 = vpack.c.bf16 %v19694_v38, %v19694_v38 }
0x172f   :  { %6300 = vst [vmem:[#allocation2 + $0x8] sm:$0x3] %v19696_v39  ;;  %v6304_v40 = vpack.c.bf16 %v19696_v39, %v19696_v39 }
0x1731   :  { %6530 = vmatprep.mubr.bf16.mxu1 %v6304_v40 }
0x1732   :  { %6531 = vmatmul.mubr.bf16.vlgmr.msra.gmra.mrb[48].mxu1 %v6303_v55 }
0x1733   :  { %7009 = vmatpush1.bf16.msra.mxu1 %v21034_v1 }
0x1734   :  { %7010 = vmatprep.subr.bf16.mxu1 %v21038_v5 }
0x1737   :  { %7011 = vmatpush1.bf16.msra.mxu1 %v21043_v6 }
0x1738   :  { %7012 = vmatprep.subr.bf16.mxu1 %v21046_v7 }
0x173b   :  { %7013 = vmatpush1.bf16.msra.mxu1 %v21049_v8 }
0x173c   :  { %7014 = vmatprep.subr.bf16.mxu1 %v21052_v9 }
0x173f   :  { %7015 = vmatpush1.bf16.msra.mxu1 %v21055_v10 }
0x1740   :  { %7016 = vmatprep.subr.bf16.mxu1 %v21058_v11 }
0x1743   :  { %7017 = vmatpush1.bf16.msra.mxu1 %v21061_v12 }
0x1744   :  { %7018 = vmatprep.subr.bf16.mxu1 %v21064_v13 }
0x1747   :  { %7019 = vmatpush1.bf16.msra.mxu1 %v21067_v14 }
0x1748   :  { %7020 = vmatprep.subr.bf16.mxu1 %v21070_v15 }
0x174b   :  { %7021 = vmatpush1.bf16.msra.mxu1 %v21073_v16 }
0x174c   :  { %7022 = vmatprep.subr.bf16.mxu1 %v21076_v17 }
0x174f   :  { %7023 = vmatpush1.bf16.msra.mxu1 %v21079_v18 }
0x1750   :  { %7024 = vmatprep.subr.bf16.mxu1 %v21082_v19 }
0x1753   :  { %7025 = vmatpush1.bf16.msra.mxu1 %v21085_v20 }
0x1754   :  { %7026 = vmatprep.subr.bf16.mxu1 %v21088_v41 }
0x1757   :  { %7027 = vmatpush1.bf16.msra.mxu1 %v21091_v36 }
0x1758   :  { %7028 = vmatprep.subr.bf16.mxu1 %v21114_v29 }
0x175b   :  { %7029 = vmatpush1.bf16.msra.mxu1 %v21116_v30 }
0x175c   :  { %7030 = vmatprep.subr.bf16.mxu1 %v21124_v34 }
0x175f   :  { %7031 = vmatpush1.bf16.msra.mxu1 %v21122_v31 }
0x1760   :  { %7032 = vmatprep.subr.bf16.mxu1 %v21126_v35 }
0x1763   :  { %7033 = vmatpush1.bf16.msra.mxu1 %v21131_v61 }
0x1764   :  { %7034 = vmatprep.subr.bf16.mxu1 %v21135_v62 }
0x1767   :  { %7035 = vmatpush1.bf16.msra.mxu1 %v21139_v3 }
0x1768   :  { %7036 = vmatprep.subr.bf16.mxu1 %v21143_v63 }
0x176b   :  { %7037 = vmatpush1.bf16.msra.mxu1 %v21147_v0 }
0x176c   :  { %7038 = vmatprep.subr.bf16.mxu1 %v21151_v32 }
0x176f   :  { %7039 = vmatpush1.bf16.msra.mxu1 %v21155_v33 }
0x1770   :  { %7506 = vmatprep.subr.bf16.mxu1 %v21036_v4 }
0x1805   :  { %v6532_v56 = vpop.f32.mrb[48].mxu1 }
0x1806   :  { %v6541_v2 = vrot.slane %v6532_v56, 6  ;;  %v6534_v57 = vpop.f32.mrb[49].mxu1 }
0x1807   :  { %v6542_v59 = vrot.slane %v6534_v57, 6  ;;  %v6536_v60 = vpop.f32.mrb[50].mxu1  ;;  %v18983_v57 = vld [vmem:[#allocation5 + $0x284] ss:$8 sps:$4 sm:$0xff]  }
0x1808   :  { %v6545_v50 = vadd.f32 %v6541_v2, %v6301_v58  ;;  %v6537_v52 = vpop.f32.mrb[51].mxu1  ;;  %v18978_v2 = vld [vmem:[#allocation5 + $0x270] ss:$8 sps:$4 sm:$0xff]   ;;  %v18981_v58 = vld [vmem:[#allocation5 + $0x280] ss:$8 sps:$4 sm:$0xff]  }
0x1809   :  { %v6546_v53 = vadd.f32 %v6542_v59, %v6302_v51  ;;  %v18986_v59 = vld [vmem:[#allocation5 + $0x294] ss:$8 sps:$4 sm:$0xff]   ;;  %v18984_v60 = vld [vmem:[#allocation5 + $0x290] ss:$8 sps:$4 sm:$0xff]   ;;  %v18987_v51 = vld [vmem:[#allocation5 + $0x2a0] ss:$8 sps:$4 sm:$0xff]  }
0x180a   :  { %19697 = vtanh.f32 %v6545_v50  ;;  %v18989_v50 = vld [vmem:[#allocation5 + $0x2a4] ss:$8 sps:$4 sm:$0xff]   ;;  %v7061_v52 = vld [vmem:[#allocation2 + $0x10] sm:$0x3] }
0x180b   :  { %19699 = vtanh.f32 %v6546_v53 }
0x1814   :  { %v19698_v54 = vpop.eup %19697 }
0x1815   :  { %v19700_v27 = vpop.eup %19699  ;;  %6549 = vst [vmem:[#allocation2] sm:$0xc] %v19698_v54  ;;  %v6553_v28 = vpack.c.bf16 %v19698_v54, %v19698_v54 }
0x1816   :  { %6550 = vst [vmem:[#allocation2 + $0x8] sm:$0xc] %v19700_v27  ;;  %v6554_v21 = vpack.c.bf16 %v19700_v27, %v19700_v27  ;;  %v7062_v27 = vld [vmem:[#allocation2 + $0x18] sm:$0x3] }
0x1817   :  { %v6589_v4 = vrot.slane %v6553_v28, 1 }
0x1818   :  { %v6590_v22 = vrot.slane %v6554_v21, 1 }
0x181a   :  { %6785 = vmatprep.mubr.bf16.mxu0 %v6590_v22 }
0x181b   :  { %6786 = vmatmul.mubr.bf16.vlgmr.msra.gmra.mrb[52].mxu0 %v6589_v4 }
0x181c   :  { %7264 = vmatpush1.bf16.msra.mxu0 %v21034_v1 }
0x181d   :  { %7265 = vmatprep.subr.bf16.mxu0 %v21038_v5 }
0x1820   :  { %7266 = vmatpush1.bf16.msra.mxu0 %v21043_v6 }
0x1821   :  { %7267 = vmatprep.subr.bf16.mxu0 %v21046_v7 }
0x1824   :  { %7268 = vmatpush1.bf16.msra.mxu0 %v21049_v8 }
0x1825   :  { %7269 = vmatprep.subr.bf16.mxu0 %v21052_v9 }
0x1828   :  { %7270 = vmatpush1.bf16.msra.mxu0 %v21055_v10 }
0x1829   :  { %7271 = vmatprep.subr.bf16.mxu0 %v21058_v11 }
0x182c   :  { %7272 = vmatpush1.bf16.msra.mxu0 %v21061_v12 }
0x182d   :  { %7273 = vmatprep.subr.bf16.mxu0 %v21064_v13 }
0x1830   :  { %7274 = vmatpush1.bf16.msra.mxu0 %v21067_v14 }
0x1831   :  { %7275 = vmatprep.subr.bf16.mxu0 %v21070_v15 }
0x1834   :  { %7276 = vmatpush1.bf16.msra.mxu0 %v21073_v16 }
0x1835   :  { %7277 = vmatprep.subr.bf16.mxu0 %v21076_v17 }
0x1838   :  { %7278 = vmatpush1.bf16.msra.mxu0 %v21079_v18 }
0x1839   :  { %7279 = vmatprep.subr.bf16.mxu0 %v21082_v19 }
0x183c   :  { %7280 = vmatpush1.bf16.msra.mxu0 %v21085_v20 }
0x183d   :  { %7281 = vmatprep.subr.bf16.mxu0 %v21088_v41 }
0x1840   :  { %7282 = vmatpush1.bf16.msra.mxu0 %v21091_v36 }
0x1841   :  { %7283 = vmatprep.subr.bf16.mxu0 %v21114_v29 }
0x1844   :  { %7284 = vmatpush1.bf16.msra.mxu0 %v21116_v30 }
0x1845   :  { %7285 = vmatprep.subr.bf16.mxu0 %v21124_v34 }
0x1848   :  { %7286 = vmatpush1.bf16.msra.mxu0 %v21122_v31 }
0x1849   :  { %7287 = vmatprep.subr.bf16.mxu0 %v21126_v35 }
0x184c   :  { %7288 = vmatpush1.bf16.msra.mxu0 %v21131_v61 }
0x184d   :  { %7289 = vmatprep.subr.bf16.mxu0 %v21135_v62 }
0x1850   :  { %7290 = vmatpush1.bf16.msra.mxu0 %v21139_v3 }
0x1851   :  { %7291 = vmatprep.subr.bf16.mxu0 %v21143_v63 }
0x1854   :  { %7292 = vmatpush1.bf16.msra.mxu0 %v21147_v0 }
0x1855   :  { %7293 = vmatprep.subr.bf16.mxu0 %v21151_v32 }
0x1858   :  { %7294 = vmatpush1.bf16.msra.mxu0 %v21155_v33 }
0x18ee   :  { %v6787_v23 = vpop.f32.mrb[52].mxu0 }
0x18ef   :  { %v6796_v24 = vrot.slane %v6787_v23, 4  ;;  %v6789_v25 = vpop.f32.mrb[53].mxu0 }
0x18f0   :  { %v6797_v42 = vrot.slane %v6789_v25, 4  ;;  %v6791_v43 = vpop.f32.mrb[54].mxu0 }
0x18f1   :  { %v6800_v44 = vadd.f32 %v6796_v24, %v6551_v26  ;;  %v6792_v46 = vpop.f32.mrb[55].mxu0  ;;  %v18990_v43 = vld [vmem:[#allocation5 + $0x2b0] ss:$8 sps:$4 sm:$0xff]  }
0x18f2   :  { %v6801_v49 = vadd.f32 %v6797_v42, %v6552_v45  ;;  %v18992_v42 = vld [vmem:[#allocation5 + $0x2b4] ss:$8 sps:$4 sm:$0xff]   ;;  %v18993_v45 = vld [vmem:[#allocation5 + $0x2c0] ss:$8 sps:$4 sm:$0xff]  }
0x18f3   :  { %19701 = vtanh.f32 %v6800_v44  ;;  %v18995_v44 = vld [vmem:[#allocation5 + $0x2c4] ss:$8 sps:$4 sm:$0xff]   ;;  %v18998_v46 = vld [vmem:[#allocation5 + $0x2d4] ss:$8 sps:$4 sm:$0xff]  }
0x18f4   :  { %19703 = vtanh.f32 %v6801_v49  ;;  %v18996_v49 = vld [vmem:[#allocation5 + $0x2d0] ss:$8 sps:$4 sm:$0xff]  }
0x18fd   :  { %v19702_v37 = vpop.eup %19701 }
0x18fe   :  { %v19704_v38 = vpop.eup %19703  ;;  %6804 = vst [vmem:[#allocation2] sm:$0x30] %v19702_v37  ;;  %v6808_v39 = vpack.c.bf16 %v19702_v37, %v19702_v37  ;;  %v19001_v37 = vld [vmem:[#allocation5 + $0x2e4] ss:$8 sps:$4 sm:$0xff]  }
0x18ff   :  { %6805 = vst [vmem:[#allocation2 + $0x8] sm:$0x30] %v19704_v38  ;;  %v6809_v40 = vpack.c.bf16 %v19704_v38, %v19704_v38  ;;  %v18999_v38 = vld [vmem:[#allocation5 + $0x2e0] ss:$8 sps:$4 sm:$0xff]  }
0x1900   :  { %v6844_v56 = vrot.slane %v6808_v39, 2  ;;  %v19002_v39 = vld [vmem:[#allocation5 + $0x2f0] ss:$8 sps:$4 sm:$0xff]  }
0x1901   :  { %v6845_v55 = vrot.slane %v6809_v40, 2  ;;  %v19004_v40 = vld [vmem:[#allocation5 + $0x2f4] ss:$8 sps:$4 sm:$0xff]  }
0x1903   :  { %7040 = vmatprep.mubr.bf16.mxu1 %v6845_v55 }
0x1904   :  { %7041 = vmatmul.mubr.bf16.vlgmr.msra.gmra.mrb[52].mxu1 %v6844_v56 }
0x1905   :  { %7507 = vmatpush1.bf16.msra.mxu1 %v21034_v1 }
0x1906   :  { %7508 = vmatprep.subr.bf16.mxu1 %v21038_v5 }
0x1909   :  { %7509 = vmatpush1.bf16.msra.mxu1 %v21043_v6 }
0x190a   :  { %7510 = vmatprep.subr.bf16.mxu1 %v21046_v7  ;;  %v6806_v7 = vld [vmem:[#allocation2] sm:$0xc0] }
0x190d   :  { %7511 = vmatpush1.bf16.msra.mxu1 %v21049_v8 }
0x190e   :  { %7512 = vmatprep.subr.bf16.mxu1 %v21052_v9 }
0x1911   :  { %7513 = vmatpush1.bf16.msra.mxu1 %v21055_v10 }
0x1912   :  { %7514 = vmatprep.subr.bf16.mxu1 %v21058_v11  ;;  %v6807_v11 = vld [vmem:[#allocation2 + $0x8] sm:$0xc0] }
0x1915   :  { %7515 = vmatpush1.bf16.msra.mxu1 %v21061_v12 }
0x1916   :  { %7516 = vmatprep.subr.bf16.mxu1 %v21064_v13 }
0x1919   :  { %7517 = vmatpush1.bf16.msra.mxu1 %v21067_v14 }
0x191a   :  { %7518 = vmatprep.subr.bf16.mxu1 %v21070_v15 }
0x191d   :  { %7519 = vmatpush1.bf16.msra.mxu1 %v21073_v16 }
0x191e   :  { %7520 = vmatprep.subr.bf16.mxu1 %v21076_v17 }
0x1921   :  { %7521 = vmatpush1.bf16.msra.mxu1 %v21079_v18 }
0x1922   :  { %7522 = vmatprep.subr.bf16.mxu1 %v21082_v19 }
0x1925   :  { %7523 = vmatpush1.bf16.msra.mxu1 %v21085_v20  ;;  %v18957_v20 = vld [vmem:[#allocation5 + $0x200] ss:$8 sps:$4 sm:$0xff]  }
0x1926   :  { %7524 = vmatprep.subr.bf16.mxu1 %v21088_v41  ;;  %v18959_v41 = vld [vmem:[#allocation5 + $0x204] ss:$8 sps:$4 sm:$0xff]  }
0x1927   :  { %7761 = vmatprep.subr.bf16.mxu0 %v18959_v41 }
0x1929   :  { %7525 = vmatpush1.bf16.msra.mxu1 %v21091_v36  ;;  %v18962_v36 = vld [vmem:[#allocation5 + $0x214] ss:$8 sps:$4 sm:$0xff]  }
0x192a   :  { %7526 = vmatprep.subr.bf16.mxu1 %v21114_v29  ;;  %v18960_v29 = vld [vmem:[#allocation5 + $0x210] ss:$8 sps:$4 sm:$0xff]  }
0x192d   :  { %7527 = vmatpush1.bf16.msra.mxu1 %v21116_v30  ;;  %v18965_v30 = vld [vmem:[#allocation5 + $0x224] ss:$8 sps:$4 sm:$0xff]  }
0x192e   :  { %7528 = vmatprep.subr.bf16.mxu1 %v21124_v34  ;;  %v18968_v34 = vld [vmem:[#allocation5 + $0x234] ss:$8 sps:$4 sm:$0xff]  }
0x1931   :  { %7529 = vmatpush1.bf16.msra.mxu1 %v21122_v31  ;;  %v18963_v31 = vld [vmem:[#allocation5 + $0x220] ss:$8 sps:$4 sm:$0xff]  }
0x1932   :  { %7530 = vmatprep.subr.bf16.mxu1 %v21126_v35  ;;  %v18966_v35 = vld [vmem:[#allocation5 + $0x230] ss:$8 sps:$4 sm:$0xff]  }
0x1935   :  { %7531 = vmatpush1.bf16.msra.mxu1 %v21131_v61  ;;  %v18971_v61 = vld [vmem:[#allocation5 + $0x244] ss:$8 sps:$4 sm:$0xff]  }
0x1936   :  { %7532 = vmatprep.subr.bf16.mxu1 %v21135_v62  ;;  %v18969_v62 = vld [vmem:[#allocation5 + $0x240] ss:$8 sps:$4 sm:$0xff]  }
0x1939   :  { %7533 = vmatpush1.bf16.msra.mxu1 %v21139_v3  ;;  %v18974_v3 = vld [vmem:[#allocation5 + $0x254] ss:$8 sps:$4 sm:$0xff]  }
0x193a   :  { %7534 = vmatprep.subr.bf16.mxu1 %v21143_v63  ;;  %v18972_v63 = vld [vmem:[#allocation5 + $0x250] ss:$8 sps:$4 sm:$0xff]  }
0x193d   :  { %7535 = vmatpush1.bf16.msra.mxu1 %v21147_v0  ;;  %v18977_v0 = vld [vmem:[#allocation5 + $0x264] ss:$8 sps:$4 sm:$0xff]  }
0x193e   :  { %7536 = vmatprep.subr.bf16.mxu1 %v21151_v32  ;;  %v18975_v32 = vld [vmem:[#allocation5 + $0x260] ss:$8 sps:$4 sm:$0xff]  }
0x1941   :  { %7537 = vmatpush1.bf16.msra.mxu1 %v21155_v33  ;;  %v18980_v33 = vld [vmem:[#allocation5 + $0x274] ss:$8 sps:$4 sm:$0xff]  }
0x1942   :  { %8016 = vmatprep.subr.bf16.mxu1 %v18959_v41  ;;  %v19008_v41 = vld [vmem:[#allocation3 + $0x310] ss:$8 sps:$4 sm:$0xff]  }
0x19d7   :  { %v7042_v1 = vpop.f32.mrb[52].mxu1 }
0x19d8   :  { %v7051_v5 = vrot.slane %v7042_v1, 2  ;;  %v7044_v6 = vpop.f32.mrb[53].mxu1 }
0x19d9   :  { %v7052_v8 = vrot.slane %v7044_v6, 2  ;;  %v7046_v9 = vpop.f32.mrb[54].mxu1 }
0x19da   :  { %v7055_v10 = vadd.f32 %v7051_v5, %v6806_v7  ;;  %v7047_v12 = vpop.f32.mrb[55].mxu1  ;;  %v7310_v5 = vld [vmem:[#allocation2 + $0x10] sm:$0xc]  ;;  %v7311_v9 = vld [vmem:[#allocation2 + $0x18] sm:$0xc] }
0x19db   :  { %v7056_v13 = vadd.f32 %v7052_v8, %v6807_v11 }
0x19dc   :  { %19705 = vtanh.f32 %v7055_v10 }
0x19dd   :  { %19707 = vtanh.f32 %v7056_v13 }
0x19e6   :  { %v19706_v14 = vpop.eup %19705 }
0x19e7   :  { %v19708_v15 = vpop.eup %19707  ;;  %7059 = vst [vmem:[#allocation2] sm:$0xc0] %v19706_v14  ;;  %v7063_v16 = vpack.c.bf16 %v19706_v14, %v19706_v14 }
0x19e8   :  { %7060 = vst [vmem:[#allocation2 + $0x8] sm:$0xc0] %v19708_v15  ;;  %v7064_v17 = vpack.c.bf16 %v19708_v15, %v19708_v15 }
0x19e9   :  { %v7099_v19 = vrot.slane %v7063_v16, 3 }
0x19ea   :  { %v7100_v18 = vrot.slane %v7064_v17, 3 }
0x19ec   :  { %7295 = vmatprep.mubr.bf16.mxu0 %v7100_v18  ;;  %v19005_v18 = vld [vmem:[#allocation3 + $0x300] ss:$8 sps:$4 sm:$0xff]  }
0x19ed   :  { %7296 = vmatmul.mubr.bf16.vlgmr.msra.gmra.mrb[56].mxu0 %v7099_v19  ;;  %v19007_v19 = vld [vmem:[#allocation3 + $0x304] ss:$8 sps:$4 sm:$0xff]  }
0x19ee   :  { %7762 = vmatpush1.bf16.msra.mxu0 %v18957_v20 }
0x19ef   :  { %7763 = vmatprep.subr.bf16.mxu0 %v18962_v36 }
0x19f2   :  { %7764 = vmatpush1.bf16.msra.mxu0 %v18960_v29 }
0x19f3   :  { %7765 = vmatprep.subr.bf16.mxu0 %v18965_v30 }
0x19f6   :  { %7766 = vmatpush1.bf16.msra.mxu0 %v18963_v31 }
0x19f7   :  { %7767 = vmatprep.subr.bf16.mxu0 %v18968_v34 }
0x19fa   :  { %7768 = vmatpush1.bf16.msra.mxu0 %v18966_v35 }
0x19fb   :  { %7769 = vmatprep.subr.bf16.mxu0 %v18971_v61 }
0x19fe   :  { %7770 = vmatpush1.bf16.msra.mxu0 %v18969_v62 }
0x19ff   :  { %7771 = vmatprep.subr.bf16.mxu0 %v18974_v3 }
0x1a02   :  { %7772 = vmatpush1.bf16.msra.mxu0 %v18972_v63 }
0x1a03   :  { %7773 = vmatprep.subr.bf16.mxu0 %v18977_v0 }
0x1a06   :  { %7774 = vmatpush1.bf16.msra.mxu0 %v18975_v32 }
0x1a07   :  { %7775 = vmatprep.subr.bf16.mxu0 %v18980_v33 }
0x1a0a   :  { %7776 = vmatpush1.bf16.msra.mxu0 %v18978_v2 }
0x1a0b   :  { %7777 = vmatprep.subr.bf16.mxu0 %v18983_v57 }
0x1a0e   :  { %7778 = vmatpush1.bf16.msra.mxu0 %v18981_v58 }
0x1a0f   :  { %7779 = vmatprep.subr.bf16.mxu0 %v18986_v59 }
0x1a12   :  { %7780 = vmatpush1.bf16.msra.mxu0 %v18984_v60 }
0x1a13   :  { %7781 = vmatprep.subr.bf16.mxu0 %v18989_v50 }
0x1a16   :  { %7782 = vmatpush1.bf16.msra.mxu0 %v18987_v51 }
0x1a17   :  { %7783 = vmatprep.subr.bf16.mxu0 %v18992_v42 }
0x1a1a   :  { %7784 = vmatpush1.bf16.msra.mxu0 %v18990_v43 }
0x1a1b   :  { %7785 = vmatprep.subr.bf16.mxu0 %v18995_v44 }
0x1a1e   :  { %7786 = vmatpush1.bf16.msra.mxu0 %v18993_v45 }
0x1a1f   :  { %7787 = vmatprep.subr.bf16.mxu0 %v18998_v46 }
0x1a22   :  { %7788 = vmatpush1.bf16.msra.mxu0 %v18996_v49 }
0x1a23   :  { %7789 = vmatprep.subr.bf16.mxu0 %v19001_v37 }
0x1a26   :  { %7790 = vmatpush1.bf16.msra.mxu0 %v18999_v38 }
0x1a27   :  { %7791 = vmatprep.subr.bf16.mxu0 %v19004_v40 }
0x1a2a   :  { %7792 = vmatpush1.bf16.msra.mxu0 %v19002_v39 }
0x1a2b   :  { %8281 = vmatprep.subr.bf16.mxu0 %v19007_v19  ;;  %v21305_v19 = vld [vmem:[#allocation5 + $0x370] ss:$8 sps:$4 sm:$0xff]  }
0x1ac0   :  { %v7297_v53 = vpop.f32.mrb[56].mxu0 }
0x1ac1   :  { %v7304_v54 = vadd.f32 %v7297_v53, %v7061_v52  ;;  %v7299_v28 = vpop.f32.mrb[57].mxu0  ;;  %v7560_v53 = vld [vmem:[#allocation2 + $0x18] sm:$0x30] }
0x1ac2   :  { %v7305_v21 = vadd.f32 %v7299_v28, %v7062_v27  ;;  %v7301_v22 = vpop.f32.mrb[58].mxu0 }
0x1ac3   :  { %19709 = vtanh.f32 %v7304_v54  ;;  %v7302_v4 = vpop.f32.mrb[59].mxu0 }
0x1ac4   :  { %19711 = vtanh.f32 %v7305_v21 }
0x1acd   :  { %v19710_v23 = vpop.eup %19709 }
0x1ace   :  { %v19712_v24 = vpop.eup %19711  ;;  %7308 = vst [vmem:[#allocation2 + $0x10] sm:$0x3] %v19710_v23  ;;  %v7312_v26 = vpack.c.bf16 %v19710_v23, %v19710_v23 }
0x1acf   :  { %7309 = vst [vmem:[#allocation2 + $0x18] sm:$0x3] %v19712_v24  ;;  %v7313_v25 = vpack.c.bf16 %v19712_v24, %v19712_v24 }
0x1ad1   :  { %7538 = vmatprep.mubr.bf16.mxu1 %v7313_v25  ;;  %v19034_v25 = vld [vmem:[#allocation3 + $0x394] ss:$8 sps:$4 sm:$0xff]  }
0x1ad2   :  { %7539 = vmatmul.mubr.bf16.vlgmr.msra.gmra.mrb[56].mxu1 %v7312_v26  ;;  %v19032_v26 = vld [vmem:[#allocation3 + $0x390] ss:$8 sps:$4 sm:$0xff]  }
0x1ad3   :  { %8017 = vmatpush1.bf16.msra.mxu1 %v18957_v20  ;;  %v19010_v20 = vld [vmem:[#allocation3 + $0x314] ss:$8 sps:$4 sm:$0xff]  }
0x1ad4   :  { %8018 = vmatprep.subr.bf16.mxu1 %v18962_v36  ;;  %v19013_v36 = vld [vmem:[#allocation3 + $0x324] ss:$8 sps:$4 sm:$0xff]  }
0x1ad7   :  { %8019 = vmatpush1.bf16.msra.mxu1 %v18960_v29  ;;  %v19011_v29 = vld [vmem:[#allocation3 + $0x320] ss:$8 sps:$4 sm:$0xff]  }
0x1ad8   :  { %8020 = vmatprep.subr.bf16.mxu1 %v18965_v30  ;;  %v19016_v30 = vld [vmem:[#allocation3 + $0x334] ss:$8 sps:$4 sm:$0xff]  }
0x1adb   :  { %8021 = vmatpush1.bf16.msra.mxu1 %v18963_v31  ;;  %v19014_v31 = vld [vmem:[#allocation3 + $0x330] ss:$8 sps:$4 sm:$0xff]  }
0x1adc   :  { %8022 = vmatprep.subr.bf16.mxu1 %v18968_v34  ;;  %v19019_v34 = vld [vmem:[#allocation3 + $0x344] ss:$8 sps:$4 sm:$0xff]  }
0x1adf   :  { %8023 = vmatpush1.bf16.msra.mxu1 %v18966_v35  ;;  %v19017_v35 = vld [vmem:[#allocation3 + $0x340] ss:$8 sps:$4 sm:$0xff]  }
0x1ae0   :  { %8024 = vmatprep.subr.bf16.mxu1 %v18971_v61  ;;  %v19022_v61 = vld [vmem:[#allocation3 + $0x354] ss:$8 sps:$4 sm:$0xff]  }
0x1ae3   :  { %8025 = vmatpush1.bf16.msra.mxu1 %v18969_v62  ;;  %v19020_v62 = vld [vmem:[#allocation3 + $0x350] ss:$8 sps:$4 sm:$0xff]  }
0x1ae4   :  { %8026 = vmatprep.subr.bf16.mxu1 %v18974_v3  ;;  %v19025_v3 = vld [vmem:[#allocation3 + $0x364] ss:$8 sps:$4 sm:$0xff]  }
0x1ae7   :  { %8027 = vmatpush1.bf16.msra.mxu1 %v18972_v63  ;;  %v19023_v63 = vld [vmem:[#allocation3 + $0x360] ss:$8 sps:$4 sm:$0xff]  }
0x1ae8   :  { %8028 = vmatprep.subr.bf16.mxu1 %v18977_v0  ;;  %v19028_v0 = vld [vmem:[#allocation3 + $0x374] ss:$8 sps:$4 sm:$0xff]  }
0x1aeb   :  { %8029 = vmatpush1.bf16.msra.mxu1 %v18975_v32  ;;  %v19026_v32 = vld [vmem:[#allocation3 + $0x370] ss:$8 sps:$4 sm:$0xff]  }
0x1aec   :  { %8030 = vmatprep.subr.bf16.mxu1 %v18980_v33  ;;  %v19031_v33 = vld [vmem:[#allocation3 + $0x384] ss:$8 sps:$4 sm:$0xff]  }
0x1aef   :  { %8031 = vmatpush1.bf16.msra.mxu1 %v18978_v2  ;;  %v19029_v2 = vld [vmem:[#allocation3 + $0x380] ss:$8 sps:$4 sm:$0xff]  }
0x1af0   :  { %8032 = vmatprep.subr.bf16.mxu1 %v18983_v57 }
0x1af3   :  { %8033 = vmatpush1.bf16.msra.mxu1 %v18981_v58 }
0x1af4   :  { %8034 = vmatprep.subr.bf16.mxu1 %v18986_v59 }
0x1af7   :  { %8035 = vmatpush1.bf16.msra.mxu1 %v18984_v60  ;;  %v7559_v60 = vld [vmem:[#allocation2 + $0x10] sm:$0x30] }
0x1af8   :  { %8036 = vmatprep.subr.bf16.mxu1 %v18989_v50 }
0x1afb   :  { %8037 = vmatpush1.bf16.msra.mxu1 %v18987_v51 }
0x1afc   :  { %8038 = vmatprep.subr.bf16.mxu1 %v18992_v42  ;;  %v19037_v42 = vld [vmem:[#allocation3 + $0x3a4] ss:$8 sps:$4 sm:$0xff]  }
0x1aff   :  { %8039 = vmatpush1.bf16.msra.mxu1 %v18990_v43  ;;  %v19035_v43 = vld [vmem:[#allocation3 + $0x3a0] ss:$8 sps:$4 sm:$0xff]  }
0x1b00   :  { %8040 = vmatprep.subr.bf16.mxu1 %v18995_v44  ;;  %v19040_v44 = vld [vmem:[#allocation3 + $0x3b4] ss:$8 sps:$4 sm:$0xff]  }
0x1b03   :  { %8041 = vmatpush1.bf16.msra.mxu1 %v18993_v45  ;;  %v19038_v45 = vld [vmem:[#allocation3 + $0x3b0] ss:$8 sps:$4 sm:$0xff]  }
0x1b04   :  { %8042 = vmatprep.subr.bf16.mxu1 %v18998_v46  ;;  %v19043_v46 = vld [vmem:[#allocation3 + $0x3c4] ss:$8 sps:$4 sm:$0xff]  }
0x1b07   :  { %8043 = vmatpush1.bf16.msra.mxu1 %v18996_v49  ;;  %v19041_v49 = vld [vmem:[#allocation3 + $0x3c0] ss:$8 sps:$4 sm:$0xff]  }
0x1b08   :  { %8044 = vmatprep.subr.bf16.mxu1 %v19001_v37  ;;  %v19046_v37 = vld [vmem:[#allocation3 + $0x3d4] ss:$8 sps:$4 sm:$0xff]  }
0x1b0b   :  { %8045 = vmatpush1.bf16.msra.mxu1 %v18999_v38  ;;  %v19044_v38 = vld [vmem:[#allocation3 + $0x3d0] ss:$8 sps:$4 sm:$0xff]  }
0x1b0c   :  { %8046 = vmatprep.subr.bf16.mxu1 %v19004_v40  ;;  %v19047_v40 = vld [vmem:[#allocation3 + $0x3e0] ss:$8 sps:$4 sm:$0xff]  }
0x1b0f   :  { %8047 = vmatpush1.bf16.msra.mxu1 %v19002_v39  ;;  %v19049_v39 = vld [vmem:[#allocation3 + $0x3e4] ss:$8 sps:$4 sm:$0xff]  }
0x1ba5   :  { %v7540_v55 = vpop.f32.mrb[56].mxu1 }
0x1ba6   :  { %v7549_v56 = vrot.slane %v7540_v55, 6  ;;  %v7542_v1 = vpop.f32.mrb[57].mxu1  ;;  %v19052_v55 = vld [vmem:[#allocation3 + $0x3f4] ss:$8 sps:$4 sm:$0xff]  }
0x1ba7   :  { %v7550_v6 = vrot.slane %v7542_v1, 6  ;;  %v7544_v7 = vpop.f32.mrb[58].mxu1  ;;  %v21260_v1 = vld [vmem:[#allocation5 + $0x300] ss:$8 sps:$4 sm:$0xff]  }
0x1ba8   :  { %v7553_v8 = vadd.f32 %v7549_v56, %v7310_v5  ;;  %v7545_v10 = vpop.f32.mrb[59].mxu1  ;;  %v19050_v56 = vld [vmem:[#allocation3 + $0x3f0] ss:$8 sps:$4 sm:$0xff]   ;;  %v21262_v5 = vld [vmem:[#allocation5 + $0x304] ss:$8 sps:$4 sm:$0xff]  }
0x1ba9   :  { %v7554_v11 = vadd.f32 %v7550_v6, %v7311_v9  ;;  %v21264_v6 = vld [vmem:[#allocation5 + $0x314] ss:$8 sps:$4 sm:$0xff]   ;;  %8531 = vmatprep.subr.bf16.mxu1 %v21262_v5  ;;  %v21269_v7 = vld [vmem:[#allocation5 + $0x310] ss:$8 sps:$4 sm:$0xff]   ;;  %v21275_v9 = vld [vmem:[#allocation5 + $0x320] ss:$8 sps:$4 sm:$0xff]  }
0x1baa   :  { %19713 = vtanh.f32 %v7553_v8  ;;  %v21272_v8 = vld [vmem:[#allocation5 + $0x324] ss:$8 sps:$4 sm:$0xff]   ;;  %v21278_v10 = vld [vmem:[#allocation5 + $0x334] ss:$8 sps:$4 sm:$0xff]  }
0x1bab   :  { %19715 = vtanh.f32 %v7554_v11  ;;  %v21281_v11 = vld [vmem:[#allocation5 + $0x330] ss:$8 sps:$4 sm:$0xff]  }
0x1bb4   :  { %v19714_v12 = vpop.eup %19713 }
0x1bb5   :  { %v19716_v13 = vpop.eup %19715  ;;  %7557 = vst [vmem:[#allocation2 + $0x10] sm:$0xc] %v19714_v12  ;;  %v7561_v14 = vpack.c.bf16 %v19714_v12, %v19714_v12  ;;  %v21284_v12 = vld [vmem:[#allocation5 + $0x344] ss:$8 sps:$4 sm:$0xff]  }
0x1bb6   :  { %7558 = vst [vmem:[#allocation2 + $0x18] sm:$0xc] %v19716_v13  ;;  %v7562_v15 = vpack.c.bf16 %v19716_v13, %v19716_v13  ;;  %v21287_v13 = vld [vmem:[#allocation5 + $0x340] ss:$8 sps:$4 sm:$0xff]  }
0x1bb7   :  { %v7597_v17 = vrot.slane %v7561_v14, 1  ;;  %v21290_v14 = vld [vmem:[#allocation5 + $0x354] ss:$8 sps:$4 sm:$0xff]  }
0x1bb8   :  { %v7598_v16 = vrot.slane %v7562_v15, 1  ;;  %v21293_v15 = vld [vmem:[#allocation5 + $0x350] ss:$8 sps:$4 sm:$0xff]  }
0x1bba   :  { %7793 = vmatprep.mubr.bf16.mxu0 %v7598_v16  ;;  %v21296_v16 = vld [vmem:[#allocation5 + $0x364] ss:$8 sps:$4 sm:$0xff]  }
0x1bbb   :  { %7794 = vmatmul.mubr.bf16.vlgmr.msra.gmra.mrb[60].mxu0 %v7597_v17  ;;  %v21299_v17 = vld [vmem:[#allocation5 + $0x360] ss:$8 sps:$4 sm:$0xff]  }
0x1bbc   :  { %8282 = vmatpush1.bf16.msra.mxu0 %v19005_v18  ;;  %v21302_v18 = vld [vmem:[#allocation5 + $0x374] ss:$8 sps:$4 sm:$0xff]  }
0x1bbd   :  { %8283 = vmatprep.subr.bf16.mxu0 %v19010_v20  ;;  %v21308_v20 = vld [vmem:[#allocation5 + $0x384] ss:$8 sps:$4 sm:$0xff]  }
0x1bc0   :  { %8284 = vmatpush1.bf16.msra.mxu0 %v19008_v41  ;;  %v21311_v41 = vld [vmem:[#allocation5 + $0x380] ss:$8 sps:$4 sm:$0xff]  }
0x1bc1   :  { %8285 = vmatprep.subr.bf16.mxu0 %v19013_v36  ;;  %v21314_v36 = vld [vmem:[#allocation5 + $0x394] ss:$8 sps:$4 sm:$0xff]  }
0x1bc4   :  { %8286 = vmatpush1.bf16.msra.mxu0 %v19011_v29  ;;  %v21317_v29 = vld [vmem:[#allocation5 + $0x390] ss:$8 sps:$4 sm:$0xff]  }
0x1bc5   :  { %8287 = vmatprep.subr.bf16.mxu0 %v19016_v30 }
0x1bc8   :  { %8288 = vmatpush1.bf16.msra.mxu0 %v19014_v31 }
0x1bc9   :  { %8289 = vmatprep.subr.bf16.mxu0 %v19019_v34 }
0x1bcc   :  { %8290 = vmatpush1.bf16.msra.mxu0 %v19017_v35  ;;  %v7814_v35 = vld [vmem:[#allocation2 + $0x10] sm:$0xc0] }
0x1bcd   :  { %8291 = vmatprep.subr.bf16.mxu0 %v19022_v61 }
0x1bd0   :  { %8292 = vmatpush1.bf16.msra.mxu0 %v19020_v62 }
0x1bd1   :  { %8293 = vmatprep.subr.bf16.mxu0 %v19025_v3 }
0x1bd4   :  { %8294 = vmatpush1.bf16.msra.mxu0 %v19023_v63  ;;  %v7815_v63 = vld [vmem:[#allocation2 + $0x18] sm:$0xc0] }
0x1bd5   :  { %8295 = vmatprep.subr.bf16.mxu0 %v19028_v0 }
0x1bd8   :  { %8296 = vmatpush1.bf16.msra.mxu0 %v19026_v32 }
0x1bd9   :  { %8297 = vmatprep.subr.bf16.mxu0 %v19031_v33 }
0x1bdc   :  { %8298 = vmatpush1.bf16.msra.mxu0 %v19029_v2 }
0x1bdd   :  { %8299 = vmatprep.subr.bf16.mxu0 %v19034_v25  ;;  %v21377_v25 = vld [vmem:[#allocation5 + $0x3f4] ss:$8 sps:$4 sm:$0xff]  }
0x1be0   :  { %8300 = vmatpush1.bf16.msra.mxu0 %v19032_v26  ;;  %v21381_v26 = vld [vmem:[#allocation5 + $0x3f0] ss:$8 sps:$4 sm:$0xff]  }
0x1be1   :  { %8301 = vmatprep.subr.bf16.mxu0 %v19037_v42  ;;  %v8109_v42 = vld [vmem:[#allocation7 + $0x6] sm:$0x3] }
0x1be4   :  { %8302 = vmatpush1.bf16.msra.mxu0 %v19035_v43  ;;  %v8114_v43 = vrot.slane %v8109_v42, %v20229_v47 }
0x1be5   :  { %8303 = vmatprep.subr.bf16.mxu0 %v19040_v44  ;;  %v8118_v44 = vrot.slane %v8109_v42, %v20231_v48 }
0x1be8   :  { %8304 = vmatpush1.bf16.msra.mxu0 %v19038_v45 }
0x1be9   :  { %8305 = vmatprep.subr.bf16.mxu0 %v19043_v46 }
0x1bec   :  { %8306 = vmatpush1.bf16.msra.mxu0 %v19041_v49 }
0x1bed   :  { %8307 = vmatprep.subr.bf16.mxu0 %v19046_v37 }
0x1bf0   :  { %8308 = vmatpush1.bf16.msra.mxu0 %v19044_v38 }
0x1bf1   :  { %8309 = vmatprep.subr.bf16.mxu0 %v19049_v39 }
0x1bf4   :  { %8310 = vmatpush1.bf16.msra.mxu0 %v19047_v40 }
0x1bf5   :  { %8311 = vmatprep.subr.bf16.mxu0 %v19052_v55 }
0x1bf8   :  { %8312 = vmatpush1.bf16.msra.mxu0 %v19050_v56 }
0x1bf9   :  { %8786 = vmatprep.subr.bf16.mxu0 %v21262_v5 }
0x1c8e   :  { %v7795_v57 = vpop.f32.mrb[60].mxu0 }
0x1c8f   :  { %v7804_v58 = vrot.slane %v7795_v57, 4  ;;  %v7797_v59 = vpop.f32.mrb[61].mxu0 }
0x1c90   :  { %v7805_v50 = vrot.slane %v7797_v59, 4  ;;  %v7799_v51 = vpop.f32.mrb[62].mxu0 }
0x1c91   :  { %v7808_v52 = vadd.f32 %v7804_v58, %v7559_v60  ;;  %v7800_v54 = vpop.f32.mrb[63].mxu0  ;;  %v8070_v58 = vld [vmem:[#allocation2 + $0x8] sm:$0xff] }
0x1c92   :  { %v7809_v27 = vadd.f32 %v7805_v50, %v7560_v53  ;;  %v8069_v50 = vld [vmem:[#allocation2] sm:$0xff]  ;;  %v21348_v54 = vld [vmem:[#allocation5 + $0x3b0] ss:$8 sps:$4 sm:$0xff]  }
0x1c93   :  { %19717 = vtanh.f32 %v7808_v52  ;;  %v21340_v52 = vld [vmem:[#allocation5 + $0x3a4] ss:$8 sps:$4 sm:$0xff]   ;;  %v21342_v53 = vld [vmem:[#allocation5 + $0x3a0] ss:$8 sps:$4 sm:$0xff]  }
0x1c94   :  { %19719 = vtanh.f32 %v7809_v27  ;;  %v21350_v27 = vld [vmem:[#allocation5 + $0x3b4] ss:$8 sps:$4 sm:$0xff]  }
0x1c9d   :  { %v19718_v28 = vpop.eup %19717 }
0x1c9e   :  { %v19720_v21 = vpop.eup %19719  ;;  %7812 = vst [vmem:[#allocation2 + $0x10] sm:$0x30] %v19718_v28  ;;  %v7816_v22 = vpack.c.bf16 %v19718_v28, %v19718_v28  ;;  %v21352_v28 = vld [vmem:[#allocation5 + $0x3c4] ss:$8 sps:$4 sm:$0xff]  }
0x1c9f   :  { %7813 = vst [vmem:[#allocation2 + $0x18] sm:$0x30] %v19720_v21  ;;  %v7817_v4 = vpack.c.bf16 %v19720_v21, %v19720_v21  ;;  %v21357_v21 = vld [vmem:[#allocation5 + $0x3c0] ss:$8 sps:$4 sm:$0xff]  }
0x1ca0   :  { %v7852_v24 = vrot.slane %v7816_v22, 2  ;;  %v21361_v22 = vld [vmem:[#allocation5 + $0x3d4] ss:$8 sps:$4 sm:$0xff]  }
0x1ca1   :  { %v7853_v23 = vrot.slane %v7817_v4, 2  ;;  %v21365_v4 = vld [vmem:[#allocation5 + $0x3d0] ss:$8 sps:$4 sm:$0xff]  }
0x1ca3   :  { %8048 = vmatprep.mubr.bf16.mxu1 %v7853_v23  ;;  %v21369_v23 = vld [vmem:[#allocation5 + $0x3e4] ss:$8 sps:$4 sm:$0xff]  }
0x1ca4   :  { %8049 = vmatmul.mubr.bf16.vlgmr.msra.gmra.mrb[60].mxu1 %v7852_v24  ;;  %v21373_v24 = vld [vmem:[#allocation5 + $0x3e0] ss:$8 sps:$4 sm:$0xff]  }
0x1ca5   :  { %8532 = vmatpush1.bf16.msra.mxu1 %v21260_v1 }
0x1ca6   :  { %8533 = vmatprep.subr.bf16.mxu1 %v21264_v6 }
0x1ca9   :  { %8534 = vmatpush1.bf16.msra.mxu1 %v21269_v7 }
0x1caa   :  { %8535 = vmatprep.subr.bf16.mxu1 %v21272_v8 }
0x1cad   :  { %8536 = vmatpush1.bf16.msra.mxu1 %v21275_v9 }
0x1cae   :  { %8537 = vmatprep.subr.bf16.mxu1 %v21278_v10 }
0x1cb1   :  { %8538 = vmatpush1.bf16.msra.mxu1 %v21281_v11 }
0x1cb2   :  { %8539 = vmatprep.subr.bf16.mxu1 %v21284_v12 }
0x1cb5   :  { %8540 = vmatpush1.bf16.msra.mxu1 %v21287_v13 }
0x1cb6   :  { %8541 = vmatprep.subr.bf16.mxu1 %v21290_v14 }
0x1cb9   :  { %8542 = vmatpush1.bf16.msra.mxu1 %v21293_v15 }
0x1cba   :  { %8543 = vmatprep.subr.bf16.mxu1 %v21296_v16 }
0x1cbd   :  { %8544 = vmatpush1.bf16.msra.mxu1 %v21299_v17 }
0x1cbe   :  { %8545 = vmatprep.subr.bf16.mxu1 %v21302_v18 }
0x1cc1   :  { %8546 = vmatpush1.bf16.msra.mxu1 %v21305_v19 }
0x1cc2   :  { %8547 = vmatprep.subr.bf16.mxu1 %v21308_v20 }
0x1cc5   :  { %8548 = vmatpush1.bf16.msra.mxu1 %v21311_v41 }
0x1cc6   :  { %8549 = vmatprep.subr.bf16.mxu1 %v21314_v36 }
0x1cc9   :  { %8550 = vmatpush1.bf16.msra.mxu1 %v21317_v29 }
0x1cca   :  { %8551 = vmatprep.subr.bf16.mxu1 %v21340_v52 }
0x1ccd   :  { %8552 = vmatpush1.bf16.msra.mxu1 %v21342_v53 }
0x1cce   :  { %8553 = vmatprep.subr.bf16.mxu1 %v21350_v27 }
0x1cd1   :  { %8554 = vmatpush1.bf16.msra.mxu1 %v21348_v54 }
0x1cd2   :  { %8555 = vmatprep.subr.bf16.mxu1 %v21352_v28 }
0x1cd5   :  { %8556 = vmatpush1.bf16.msra.mxu1 %v21357_v21 }
0x1cd6   :  { %8557 = vmatprep.subr.bf16.mxu1 %v21361_v22 }
0x1cd9   :  { %8558 = vmatpush1.bf16.msra.mxu1 %v21365_v4 }
0x1cda   :  { %8559 = vmatprep.subr.bf16.mxu1 %v21369_v23 }
0x1cdd   :  { %8560 = vmatpush1.bf16.msra.mxu1 %v21373_v24 }
0x1cde   :  { %8561 = vmatprep.subr.bf16.mxu1 %v21377_v25 }
0x1ce1   :  { %8562 = vmatpush1.bf16.msra.mxu1 %v21381_v26 }
0x1ce2   :  { %9041 = vmatprep.subr.bf16.mxu1 %v21262_v5 }
0x1d77   :  { %v8050_v30 = vpop.f32.mrb[60].mxu1 }
0x1d78   :  { %v8059_v31 = vrot.slane %v8050_v30, 2  ;;  %v8052_v34 = vpop.f32.mrb[61].mxu1 }
0x1d79   :  { %v8060_v61 = vrot.slane %v8052_v34, 2  ;;  %v8054_v62 = vpop.f32.mrb[62].mxu1 }
0x1d7a   :  { %v8063_v3 = vadd.f32 %v8059_v31, %v7814_v35  ;;  %v8055_v0 = vpop.f32.mrb[63].mxu1 }
0x1d7b   :  { %v8064_v32 = vadd.f32 %v8060_v61, %v7815_v63 }
0x1d7c   :  { %19721 = vtanh.f32 %v8063_v3 }
0x1d7d   :  { %19723 = vtanh.f32 %v8064_v32 }
0x1d86   :  { %v19722_v33 = vpop.eup %19721 }
0x1d87   :  { %v19724_v2 = vpop.eup %19723  ;;  %8067 = vst [vmem:[#allocation2 + $0x10] sm:$0xc0] %v19722_v33 }
0x1d88   :  { %8068 = vst [vmem:[#allocation2 + $0x18] sm:$0xc0] %v19724_v2 }
0x1d8e   :  { %v8071_v57 = vld [vmem:[#allocation2 + $0x10] sm:$0xff] }
0x1d8f   :  { %v8072_v59 = vld [vmem:[#allocation2 + $0x18] sm:$0xff]  ;;  %v8073_v51 = vpack.c.bf16 %v8071_v57, %v8069_v50 }
0x1d90   :  { %v8074_v60 = vpack.c.bf16 %v8072_v59, %v8070_v58 }
0x1d92   :  { %8313 = vmatprep.mubr.bf16.mxu0 %v8074_v60 }
0x1d93   :  { %8314 = vmatmul.mubr.bf16.vlgmr.msra.gmra.mrb[64].mxu0 %v8073_v51 }
0x1d94   :  { %8787 = vmatpush1.bf16.msra.mxu0 %v21260_v1 }
0x1d95   :  { %8788 = vmatprep.subr.bf16.mxu0 %v21264_v6 }
0x1d98   :  { %8789 = vmatpush1.bf16.msra.mxu0 %v21269_v7 }
0x1d99   :  { %8790 = vmatprep.subr.bf16.mxu0 %v21272_v8 }
0x1d9c   :  { %8791 = vmatpush1.bf16.msra.mxu0 %v21275_v9 }
0x1d9d   :  { %8792 = vmatprep.subr.bf16.mxu0 %v21278_v10 }
0x1da0   :  { %8793 = vmatpush1.bf16.msra.mxu0 %v21281_v11 }
0x1da1   :  { %8794 = vmatprep.subr.bf16.mxu0 %v21284_v12 }
0x1da4   :  { %8795 = vmatpush1.bf16.msra.mxu0 %v21287_v13 }
0x1da5   :  { %8796 = vmatprep.subr.bf16.mxu0 %v21290_v14 }
0x1da8   :  { %8797 = vmatpush1.bf16.msra.mxu0 %v21293_v15 }
0x1da9   :  { %8798 = vmatprep.subr.bf16.mxu0 %v21296_v16 }
0x1dac   :  { %8799 = vmatpush1.bf16.msra.mxu0 %v21299_v17 }
0x1dad   :  { %8800 = vmatprep.subr.bf16.mxu0 %v21302_v18 }
0x1db0   :  { %8801 = vmatpush1.bf16.msra.mxu0 %v21305_v19 }
0x1db1   :  { %8802 = vmatprep.subr.bf16.mxu0 %v21308_v20 }
0x1db4   :  { %8803 = vmatpush1.bf16.msra.mxu0 %v21311_v41 }
0x1db5   :  { %8804 = vmatprep.subr.bf16.mxu0 %v21314_v36 }
0x1db8   :  { %8805 = vmatpush1.bf16.msra.mxu0 %v21317_v29 }
0x1db9   :  { %8806 = vmatprep.subr.bf16.mxu0 %v21340_v52 }
0x1dbc   :  { %8807 = vmatpush1.bf16.msra.mxu0 %v21342_v53 }
0x1dbd   :  { %8808 = vmatprep.subr.bf16.mxu0 %v21350_v27 }
0x1dc0   :  { %8809 = vmatpush1.bf16.msra.mxu0 %v21348_v54 }
0x1dc1   :  { %8810 = vmatprep.subr.bf16.mxu0 %v21352_v28 }
0x1dc4   :  { %8811 = vmatpush1.bf16.msra.mxu0 %v21357_v21 }
0x1dc5   :  { %8812 = vmatprep.subr.bf16.mxu0 %v21361_v22 }
0x1dc8   :  { %8813 = vmatpush1.bf16.msra.mxu0 %v21365_v4 }
0x1dc9   :  { %8814 = vmatprep.subr.bf16.mxu0 %v21369_v23 }
0x1dcc   :  { %8815 = vmatpush1.bf16.msra.mxu0 %v21373_v24 }
0x1dcd   :  { %8816 = vmatprep.subr.bf16.mxu0 %v21377_v25 }
0x1dd0   :  { %8817 = vmatpush1.bf16.msra.mxu0 %v21381_v26 }
0x1dd1   :  { %9296 = vmatprep.subr.bf16.mxu0 %v21262_v5 }
0x1e66   :  { %v8315_v45 = vpop.f32.mrb[64].mxu0 }
0x1e67   :  { %v8316_v46 = vadd.f32 %v8315_v45, %v8114_v43  ;;  %v8317_v49 = vpop.f32.mrb[65].mxu0 }
0x1e68   :  { %v8318_v37 = vadd.f32 %v8317_v49, %v8118_v44  ;;  %v8319_v38 = vpop.f32.mrb[66].mxu0 }
0x1e69   :  { %8324 = vst [vmem:[#allocation2] sm:$0xff] %v8316_v46  ;;  %v8320_v39 = vadd.f32 %v8319_v38, %v8114_v43  ;;  %v8321_v40 = vpop.f32.mrb[67].mxu0 }
0x1e6a   :  { %8325 = vst [vmem:[#allocation2 + $0x8] sm:$0xff] %v8318_v37  ;;  %v8322_v55 = vadd.f32 %v8321_v40, %v8118_v44 }
0x1e6b   :  { %8326 = vst [vmem:[#allocation2 + $0x10] sm:$0xff] %v8320_v39 }
0x1e6c   :  { %8327 = vst [vmem:[#allocation2 + $0x18] sm:$0xff] %v8322_v55 }
0x1e70   :  { %v8328_v56 = vld [vmem:[#allocation2] sm:$0x3]  ;;  %v8334_v0 = vld [vmem:[#allocation2] sm:$0xc]  ;;  %v8584_v49 = vld [vmem:[#allocation2] sm:$0x30] }
0x1e71   :  { %v8329_v30 = vld [vmem:[#allocation2 + $0x8] sm:$0x3]  ;;  %19725 = vtanh.f32 %v8328_v56  ;;  %v8335_v57 = vld [vmem:[#allocation2 + $0x8] sm:$0xc]  ;;  %v8585_v40 = vld [vmem:[#allocation2 + $0x8] sm:$0x30] }
0x1e72   :  { %19727 = vtanh.f32 %v8329_v30 }
0x1e7b   :  { %v19726_v31 = vpop.eup %19725 }
0x1e7c   :  { %v19728_v34 = vpop.eup %19727  ;;  %8332 = vst [vmem:[#allocation2] sm:$0x3] %v19726_v31  ;;  %v8336_v61 = vpack.c.bf16 %v19726_v31, %v19726_v31 }
0x1e7d   :  { %8333 = vst [vmem:[#allocation2 + $0x8] sm:$0x3] %v19728_v34  ;;  %v8337_v35 = vpack.c.bf16 %v19728_v34, %v19728_v34 }
0x1e7f   :  { %8563 = vmatprep.mubr.bf16.mxu1 %v8337_v35 }
0x1e80   :  { %8564 = vmatmul.mubr.bf16.vlgmr.msra.gmra.mrb[64].mxu1 %v8336_v61 }
0x1e81   :  { %9042 = vmatpush1.bf16.msra.mxu1 %v21260_v1 }
0x1e82   :  { %9043 = vmatprep.subr.bf16.mxu1 %v21264_v6 }
0x1e85   :  { %9044 = vmatpush1.bf16.msra.mxu1 %v21269_v7 }
0x1e86   :  { %9045 = vmatprep.subr.bf16.mxu1 %v21272_v8 }
0x1e89   :  { %9046 = vmatpush1.bf16.msra.mxu1 %v21275_v9 }
0x1e8a   :  { %9047 = vmatprep.subr.bf16.mxu1 %v21278_v10 }
0x1e8d   :  { %9048 = vmatpush1.bf16.msra.mxu1 %v21281_v11 }
0x1e8e   :  { %9049 = vmatprep.subr.bf16.mxu1 %v21284_v12 }
0x1e91   :  { %9050 = vmatpush1.bf16.msra.mxu1 %v21287_v13 }
0x1e92   :  { %9051 = vmatprep.subr.bf16.mxu1 %v21290_v14 }
0x1e95   :  { %9052 = vmatpush1.bf16.msra.mxu1 %v21293_v15 }
0x1e96   :  { %9053 = vmatprep.subr.bf16.mxu1 %v21296_v16 }
0x1e99   :  { %9054 = vmatpush1.bf16.msra.mxu1 %v21299_v17 }
0x1e9a   :  { %9055 = vmatprep.subr.bf16.mxu1 %v21302_v18 }
0x1e9d   :  { %9056 = vmatpush1.bf16.msra.mxu1 %v21305_v19 }
0x1e9e   :  { %9057 = vmatprep.subr.bf16.mxu1 %v21308_v20 }
0x1ea1   :  { %9058 = vmatpush1.bf16.msra.mxu1 %v21311_v41 }
0x1ea2   :  { %9059 = vmatprep.subr.bf16.mxu1 %v21314_v36 }
0x1ea5   :  { %9060 = vmatpush1.bf16.msra.mxu1 %v21317_v29 }
0x1ea6   :  { %9061 = vmatprep.subr.bf16.mxu1 %v21340_v52 }
0x1ea9   :  { %9062 = vmatpush1.bf16.msra.mxu1 %v21342_v53 }
0x1eaa   :  { %9063 = vmatprep.subr.bf16.mxu1 %v21350_v27 }
0x1ead   :  { %9064 = vmatpush1.bf16.msra.mxu1 %v21348_v54 }
0x1eae   :  { %9065 = vmatprep.subr.bf16.mxu1 %v21352_v28 }
0x1eb1   :  { %9066 = vmatpush1.bf16.msra.mxu1 %v21357_v21 }
0x1eb2   :  { %9067 = vmatprep.subr.bf16.mxu1 %v21361_v22 }
0x1eb5   :  { %9068 = vmatpush1.bf16.msra.mxu1 %v21365_v4 }
0x1eb6   :  { %9069 = vmatprep.subr.bf16.mxu1 %v21369_v23 }
0x1eb9   :  { %9070 = vmatpush1.bf16.msra.mxu1 %v21373_v24 }
0x1eba   :  { %9071 = vmatprep.subr.bf16.mxu1 %v21377_v25 }
0x1ebd   :  { %9072 = vmatpush1.bf16.msra.mxu1 %v21381_v26 }
0x1ebe   :  { %9539 = vmatprep.subr.bf16.mxu1 %v21262_v5 }
0x1f53   :  { %v8565_v62 = vpop.f32.mrb[64].mxu1 }
0x1f54   :  { %v8574_v3 = vrot.slane %v8565_v62, 6  ;;  %v8567_v63 = vpop.f32.mrb[65].mxu1 }
0x1f55   :  { %v8575_v32 = vrot.slane %v8567_v63, 6  ;;  %v8569_v33 = vpop.f32.mrb[66].mxu1  ;;  %v19127_v63 = vld [vmem:[#allocation5 + $0x384] ss:$8 sps:$4 sm:$0xff]  }
0x1f56   :  { %v8578_v2 = vadd.f32 %v8574_v3, %v8334_v0  ;;  %v8570_v58 = vpop.f32.mrb[67].mxu1  ;;  %v19122_v3 = vld [vmem:[#allocation5 + $0x370] ss:$8 sps:$4 sm:$0xff]   ;;  %v19125_v0 = vld [vmem:[#allocation5 + $0x380] ss:$8 sps:$4 sm:$0xff]  }
0x1f57   :  { %v8579_v59 = vadd.f32 %v8575_v32, %v8335_v57  ;;  %v19130_v32 = vld [vmem:[#allocation5 + $0x394] ss:$8 sps:$4 sm:$0xff]   ;;  %v19128_v33 = vld [vmem:[#allocation5 + $0x390] ss:$8 sps:$4 sm:$0xff]   ;;  %v19131_v57 = vld [vmem:[#allocation5 + $0x3a0] ss:$8 sps:$4 sm:$0xff]  }
0x1f58   :  { %19729 = vtanh.f32 %v8578_v2  ;;  %v19133_v2 = vld [vmem:[#allocation5 + $0x3a4] ss:$8 sps:$4 sm:$0xff]   ;;  %v9094_v58 = vld [vmem:[#allocation2 + $0x10] sm:$0x3] }
0x1f59   :  { %19731 = vtanh.f32 %v8579_v59 }
0x1f62   :  { %v19730_v60 = vpop.eup %19729 }
0x1f63   :  { %v19732_v50 = vpop.eup %19731  ;;  %8582 = vst [vmem:[#allocation2] sm:$0xc] %v19730_v60  ;;  %v8586_v51 = vpack.c.bf16 %v19730_v60, %v19730_v60 }
0x1f64   :  { %8583 = vst [vmem:[#allocation2 + $0x8] sm:$0xc] %v19732_v50  ;;  %v8587_v42 = vpack.c.bf16 %v19732_v50, %v19732_v50  ;;  %v9095_v50 = vld [vmem:[#allocation2 + $0x18] sm:$0x3] }
0x1f65   :  { %v8622_v5 = vrot.slane %v8586_v51, 1 }
0x1f66   :  { %v8623_v43 = vrot.slane %v8587_v42, 1 }
0x1f68   :  { %8818 = vmatprep.mubr.bf16.mxu0 %v8623_v43 }
0x1f69   :  { %8819 = vmatmul.mubr.bf16.vlgmr.msra.gmra.mrb[68].mxu0 %v8622_v5 }
0x1f6a   :  { %9297 = vmatpush1.bf16.msra.mxu0 %v21260_v1 }
0x1f6b   :  { %9298 = vmatprep.subr.bf16.mxu0 %v21264_v6 }
0x1f6e   :  { %9299 = vmatpush1.bf16.msra.mxu0 %v21269_v7 }
0x1f6f   :  { %9300 = vmatprep.subr.bf16.mxu0 %v21272_v8 }
0x1f72   :  { %9301 = vmatpush1.bf16.msra.mxu0 %v21275_v9 }
0x1f73   :  { %9302 = vmatprep.subr.bf16.mxu0 %v21278_v10 }
0x1f76   :  { %9303 = vmatpush1.bf16.msra.mxu0 %v21281_v11 }
0x1f77   :  { %9304 = vmatprep.subr.bf16.mxu0 %v21284_v12 }
0x1f7a   :  { %9305 = vmatpush1.bf16.msra.mxu0 %v21287_v13 }
0x1f7b   :  { %9306 = vmatprep.subr.bf16.mxu0 %v21290_v14 }
0x1f7e   :  { %9307 = vmatpush1.bf16.msra.mxu0 %v21293_v15 }
0x1f7f   :  { %9308 = vmatprep.subr.bf16.mxu0 %v21296_v16 }
0x1f82   :  { %9309 = vmatpush1.bf16.msra.mxu0 %v21299_v17 }
0x1f83   :  { %9310 = vmatprep.subr.bf16.mxu0 %v21302_v18 }
0x1f86   :  { %9311 = vmatpush1.bf16.msra.mxu0 %v21305_v19 }
0x1f87   :  { %9312 = vmatprep.subr.bf16.mxu0 %v21308_v20 }
0x1f8a   :  { %9313 = vmatpush1.bf16.msra.mxu0 %v21311_v41 }
0x1f8b   :  { %9314 = vmatprep.subr.bf16.mxu0 %v21314_v36 }
0x1f8e   :  { %9315 = vmatpush1.bf16.msra.mxu0 %v21317_v29 }
0x1f8f   :  { %9316 = vmatprep.subr.bf16.mxu0 %v21340_v52 }
0x1f92   :  { %9317 = vmatpush1.bf16.msra.mxu0 %v21342_v53 }
0x1f93   :  { %9318 = vmatprep.subr.bf16.mxu0 %v21350_v27 }
0x1f96   :  { %9319 = vmatpush1.bf16.msra.mxu0 %v21348_v54 }
0x1f97   :  { %9320 = vmatprep.subr.bf16.mxu0 %v21352_v28 }
0x1f9a   :  { %9321 = vmatpush1.bf16.msra.mxu0 %v21357_v21 }
0x1f9b   :  { %9322 = vmatprep.subr.bf16.mxu0 %v21361_v22 }
0x1f9e   :  { %9323 = vmatpush1.bf16.msra.mxu0 %v21365_v4 }
0x1f9f   :  { %9324 = vmatprep.subr.bf16.mxu0 %v21369_v23 }
0x1fa2   :  { %9325 = vmatpush1.bf16.msra.mxu0 %v21373_v24 }
0x1fa3   :  { %9326 = vmatprep.subr.bf16.mxu0 %v21377_v25 }
0x1fa6   :  { %9327 = vmatpush1.bf16.msra.mxu0 %v21381_v26 }
0x203c   :  { %v8820_v44 = vpop.f32.mrb[68].mxu0 }
0x203d   :  { %v8829_v45 = vrot.slane %v8820_v44, 4  ;;  %v8822_v46 = vpop.f32.mrb[69].mxu0 }
0x203e   :  { %v8830_v37 = vrot.slane %v8822_v46, 4  ;;  %v8824_v38 = vpop.f32.mrb[70].mxu0 }
0x203f   :  { %v8833_v39 = vadd.f32 %v8829_v45, %v8584_v49  ;;  %v8825_v55 = vpop.f32.mrb[71].mxu0  ;;  %v19134_v38 = vld [vmem:[#allocation5 + $0x3b0] ss:$8 sps:$4 sm:$0xff]  }
0x2040   :  { %v8834_v56 = vadd.f32 %v8830_v37, %v8585_v40  ;;  %v19136_v37 = vld [vmem:[#allocation5 + $0x3b4] ss:$8 sps:$4 sm:$0xff]   ;;  %v19137_v40 = vld [vmem:[#allocation5 + $0x3c0] ss:$8 sps:$4 sm:$0xff]  }
0x2041   :  { %19733 = vtanh.f32 %v8833_v39  ;;  %v19139_v39 = vld [vmem:[#allocation5 + $0x3c4] ss:$8 sps:$4 sm:$0xff]   ;;  %v19142_v55 = vld [vmem:[#allocation5 + $0x3d4] ss:$8 sps:$4 sm:$0xff]  }
0x2042   :  { %19735 = vtanh.f32 %v8834_v56  ;;  %v19140_v56 = vld [vmem:[#allocation5 + $0x3d0] ss:$8 sps:$4 sm:$0xff]  }
0x204b   :  { %v19734_v30 = vpop.eup %19733 }
0x204c   :  { %v19736_v31 = vpop.eup %19735  ;;  %8837 = vst [vmem:[#allocation2] sm:$0x30] %v19734_v30  ;;  %v8841_v34 = vpack.c.bf16 %v19734_v30, %v19734_v30  ;;  %v19145_v30 = vld [vmem:[#allocation5 + $0x3e4] ss:$8 sps:$4 sm:$0xff]  }
0x204d   :  { %8838 = vst [vmem:[#allocation2 + $0x8] sm:$0x30] %v19736_v31  ;;  %v8842_v35 = vpack.c.bf16 %v19736_v31, %v19736_v31  ;;  %v19143_v31 = vld [vmem:[#allocation5 + $0x3e0] ss:$8 sps:$4 sm:$0xff]  }
0x204e   :  { %v8877_v62 = vrot.slane %v8841_v34, 2  ;;  %v19146_v34 = vld [vmem:[#allocation5 + $0x3f0] ss:$8 sps:$4 sm:$0xff]  }
0x204f   :  { %v8878_v61 = vrot.slane %v8842_v35, 2  ;;  %v19148_v35 = vld [vmem:[#allocation5 + $0x3f4] ss:$8 sps:$4 sm:$0xff]  }
0x2051   :  { %9073 = vmatprep.mubr.bf16.mxu1 %v8878_v61 }
0x2052   :  { %9074 = vmatmul.mubr.bf16.vlgmr.msra.gmra.mrb[68].mxu1 %v8877_v62 }
0x2053   :  { %9540 = vmatpush1.bf16.msra.mxu1 %v21260_v1 }
0x2054   :  { %9541 = vmatprep.subr.bf16.mxu1 %v21264_v6 }
0x2057   :  { %9542 = vmatpush1.bf16.msra.mxu1 %v21269_v7 }
0x2058   :  { %9543 = vmatprep.subr.bf16.mxu1 %v21272_v8  ;;  %v8839_v8 = vld [vmem:[#allocation2] sm:$0xc0] }
0x205b   :  { %9544 = vmatpush1.bf16.msra.mxu1 %v21275_v9 }
0x205c   :  { %9545 = vmatprep.subr.bf16.mxu1 %v21278_v10 }
0x205f   :  { %9546 = vmatpush1.bf16.msra.mxu1 %v21281_v11 }
0x2060   :  { %9547 = vmatprep.subr.bf16.mxu1 %v21284_v12  ;;  %v8840_v12 = vld [vmem:[#allocation2 + $0x8] sm:$0xc0] }
0x2063   :  { %9548 = vmatpush1.bf16.msra.mxu1 %v21287_v13 }
0x2064   :  { %9549 = vmatprep.subr.bf16.mxu1 %v21290_v14 }
0x2067   :  { %9550 = vmatpush1.bf16.msra.mxu1 %v21293_v15 }
0x2068   :  { %9551 = vmatprep.subr.bf16.mxu1 %v21296_v16 }
0x206b   :  { %9552 = vmatpush1.bf16.msra.mxu1 %v21299_v17 }
0x206c   :  { %9553 = vmatprep.subr.bf16.mxu1 %v21302_v18 }
0x206f   :  { %9554 = vmatpush1.bf16.msra.mxu1 %v21305_v19 }
0x2070   :  { %9555 = vmatprep.subr.bf16.mxu1 %v21308_v20 }
0x2073   :  { %9556 = vmatpush1.bf16.msra.mxu1 %v21311_v41  ;;  %v19101_v41 = vld [vmem:[#allocation5 + $0x300] ss:$8 sps:$4 sm:$0xff]  }
0x2074   :  { %9557 = vmatprep.subr.bf16.mxu1 %v21314_v36  ;;  %v19103_v36 = vld [vmem:[#allocation5 + $0x304] ss:$8 sps:$4 sm:$0xff]  }
0x2075   :  { %9794 = vmatprep.subr.bf16.mxu0 %v19103_v36 }
0x2077   :  { %9558 = vmatpush1.bf16.msra.mxu1 %v21317_v29  ;;  %v19106_v29 = vld [vmem:[#allocation5 + $0x314] ss:$8 sps:$4 sm:$0xff]  }
0x2078   :  { %9559 = vmatprep.subr.bf16.mxu1 %v21340_v52  ;;  %v19104_v52 = vld [vmem:[#allocation5 + $0x310] ss:$8 sps:$4 sm:$0xff]  }
0x207b   :  { %9560 = vmatpush1.bf16.msra.mxu1 %v21342_v53  ;;  %v19109_v53 = vld [vmem:[#allocation5 + $0x324] ss:$8 sps:$4 sm:$0xff]  }
0x207c   :  { %9561 = vmatprep.subr.bf16.mxu1 %v21350_v27  ;;  %v19112_v27 = vld [vmem:[#allocation5 + $0x334] ss:$8 sps:$4 sm:$0xff]  }
0x207f   :  { %9562 = vmatpush1.bf16.msra.mxu1 %v21348_v54  ;;  %v19107_v54 = vld [vmem:[#allocation5 + $0x320] ss:$8 sps:$4 sm:$0xff]  }
0x2080   :  { %9563 = vmatprep.subr.bf16.mxu1 %v21352_v28  ;;  %v19110_v28 = vld [vmem:[#allocation5 + $0x330] ss:$8 sps:$4 sm:$0xff]  }
0x2083   :  { %9564 = vmatpush1.bf16.msra.mxu1 %v21357_v21  ;;  %v19115_v21 = vld [vmem:[#allocation5 + $0x344] ss:$8 sps:$4 sm:$0xff]  }
0x2084   :  { %9565 = vmatprep.subr.bf16.mxu1 %v21361_v22  ;;  %v19113_v22 = vld [vmem:[#allocation5 + $0x340] ss:$8 sps:$4 sm:$0xff]  }
0x2087   :  { %9566 = vmatpush1.bf16.msra.mxu1 %v21365_v4  ;;  %v19118_v4 = vld [vmem:[#allocation5 + $0x354] ss:$8 sps:$4 sm:$0xff]  }
0x2088   :  { %9567 = vmatprep.subr.bf16.mxu1 %v21369_v23  ;;  %v19116_v23 = vld [vmem:[#allocation5 + $0x350] ss:$8 sps:$4 sm:$0xff]  }
0x208b   :  { %9568 = vmatpush1.bf16.msra.mxu1 %v21373_v24  ;;  %v19121_v24 = vld [vmem:[#allocation5 + $0x364] ss:$8 sps:$4 sm:$0xff]  }
0x208c   :  { %9569 = vmatprep.subr.bf16.mxu1 %v21377_v25  ;;  %v19119_v25 = vld [vmem:[#allocation5 + $0x360] ss:$8 sps:$4 sm:$0xff]  }
0x208f   :  { %9570 = vmatpush1.bf16.msra.mxu1 %v21381_v26  ;;  %v19124_v26 = vld [vmem:[#allocation5 + $0x374] ss:$8 sps:$4 sm:$0xff]  }
0x2090   :  { %10049 = vmatprep.subr.bf16.mxu1 %v19103_v36  ;;  %v19152_v36 = vld [vmem:[#allocation3 + $0x410] ss:$8 sps:$4 sm:$0xff]  }
0x2125   :  { %v9075_v1 = vpop.f32.mrb[68].mxu1 }
0x2126   :  { %v9084_v6 = vrot.slane %v9075_v1, 2  ;;  %v9077_v7 = vpop.f32.mrb[69].mxu1 }
0x2127   :  { %v9085_v9 = vrot.slane %v9077_v7, 2  ;;  %v9079_v10 = vpop.f32.mrb[70].mxu1 }
0x2128   :  { %v9088_v11 = vadd.f32 %v9084_v6, %v8839_v8  ;;  %v9080_v13 = vpop.f32.mrb[71].mxu1  ;;  %v9343_v6 = vld [vmem:[#allocation2 + $0x10] sm:$0xc]  ;;  %v9344_v10 = vld [vmem:[#allocation2 + $0x18] sm:$0xc] }
0x2129   :  { %v9089_v14 = vadd.f32 %v9085_v9, %v8840_v12 }
0x212a   :  { %19737 = vtanh.f32 %v9088_v11 }
0x212b   :  { %19739 = vtanh.f32 %v9089_v14 }
0x2134   :  { %v19738_v15 = vpop.eup %19737 }
0x2135   :  { %v19740_v16 = vpop.eup %19739  ;;  %9092 = vst [vmem:[#allocation2] sm:$0xc0] %v19738_v15  ;;  %v9096_v17 = vpack.c.bf16 %v19738_v15, %v19738_v15 }
0x2136   :  { %9093 = vst [vmem:[#allocation2 + $0x8] sm:$0xc0] %v19740_v16  ;;  %v9097_v18 = vpack.c.bf16 %v19740_v16, %v19740_v16 }
0x2137   :  { %v9132_v20 = vrot.slane %v9096_v17, 3 }
0x2138   :  { %v9133_v19 = vrot.slane %v9097_v18, 3 }
0x213a   :  { %9328 = vmatprep.mubr.bf16.mxu0 %v9133_v19  ;;  %v19149_v19 = vld [vmem:[#allocation3 + $0x400] ss:$8 sps:$4 sm:$0xff]  }
0x213b   :  { %9329 = vmatmul.mubr.bf16.vlgmr.msra.gmra.mrb[72].mxu0 %v9132_v20  ;;  %v19151_v20 = vld [vmem:[#allocation3 + $0x404] ss:$8 sps:$4 sm:$0xff]  }
0x213c   :  { %9795 = vmatpush1.bf16.msra.mxu0 %v19101_v41 }
0x213d   :  { %9796 = vmatprep.subr.bf16.mxu0 %v19106_v29 }
0x2140   :  { %9797 = vmatpush1.bf16.msra.mxu0 %v19104_v52 }
0x2141   :  { %9798 = vmatprep.subr.bf16.mxu0 %v19109_v53 }
0x2144   :  { %9799 = vmatpush1.bf16.msra.mxu0 %v19107_v54 }
0x2145   :  { %9800 = vmatprep.subr.bf16.mxu0 %v19112_v27 }
0x2148   :  { %9801 = vmatpush1.bf16.msra.mxu0 %v19110_v28 }
0x2149   :  { %9802 = vmatprep.subr.bf16.mxu0 %v19115_v21 }
0x214c   :  { %9803 = vmatpush1.bf16.msra.mxu0 %v19113_v22 }
0x214d   :  { %9804 = vmatprep.subr.bf16.mxu0 %v19118_v4 }
0x2150   :  { %9805 = vmatpush1.bf16.msra.mxu0 %v19116_v23 }
0x2151   :  { %9806 = vmatprep.subr.bf16.mxu0 %v19121_v24 }
0x2154   :  { %9807 = vmatpush1.bf16.msra.mxu0 %v19119_v25 }
0x2155   :  { %9808 = vmatprep.subr.bf16.mxu0 %v19124_v26 }
0x2158   :  { %9809 = vmatpush1.bf16.msra.mxu0 %v19122_v3 }
0x2159   :  { %9810 = vmatprep.subr.bf16.mxu0 %v19127_v63 }
0x215c   :  { %9811 = vmatpush1.bf16.msra.mxu0 %v19125_v0 }
0x215d   :  { %9812 = vmatprep.subr.bf16.mxu0 %v19130_v32 }
0x2160   :  { %9813 = vmatpush1.bf16.msra.mxu0 %v19128_v33 }
0x2161   :  { %9814 = vmatprep.subr.bf16.mxu0 %v19133_v2 }
0x2164   :  { %9815 = vmatpush1.bf16.msra.mxu0 %v19131_v57 }
0x2165   :  { %9816 = vmatprep.subr.bf16.mxu0 %v19136_v37 }
0x2168   :  { %9817 = vmatpush1.bf16.msra.mxu0 %v19134_v38 }
0x2169   :  { %9818 = vmatprep.subr.bf16.mxu0 %v19139_v39 }
0x216c   :  { %9819 = vmatpush1.bf16.msra.mxu0 %v19137_v40 }
0x216d   :  { %9820 = vmatprep.subr.bf16.mxu0 %v19142_v55 }
0x2170   :  { %9821 = vmatpush1.bf16.msra.mxu0 %v19140_v56 }
0x2171   :  { %9822 = vmatprep.subr.bf16.mxu0 %v19145_v30 }
0x2174   :  { %9823 = vmatpush1.bf16.msra.mxu0 %v19143_v31 }
0x2175   :  { %9824 = vmatprep.subr.bf16.mxu0 %v19148_v35 }
0x2178   :  { %9825 = vmatpush1.bf16.msra.mxu0 %v19146_v34 }
0x2179   :  { %10314 = vmatprep.subr.bf16.mxu0 %v19151_v20  ;;  %v21531_v20 = vld [vmem:[#allocation5 + $0x470] ss:$8 sps:$4 sm:$0xff]  }
0x220e   :  { %v9330_v59 = vpop.f32.mrb[72].mxu0 }
0x220f   :  { %v9337_v60 = vadd.f32 %v9330_v59, %v9094_v58  ;;  %v9332_v51 = vpop.f32.mrb[73].mxu0  ;;  %v9593_v59 = vld [vmem:[#allocation2 + $0x18] sm:$0x30] }
0x2210   :  { %v9338_v42 = vadd.f32 %v9332_v51, %v9095_v50  ;;  %v9334_v43 = vpop.f32.mrb[74].mxu0 }
0x2211   :  { %19741 = vtanh.f32 %v9337_v60  ;;  %v9335_v5 = vpop.f32.mrb[75].mxu0 }
0x2212   :  { %19743 = vtanh.f32 %v9338_v42 }
0x221b   :  { %v19742_v44 = vpop.eup %19741 }
0x221c   :  { %v19744_v45 = vpop.eup %19743  ;;  %9341 = vst [vmem:[#allocation2 + $0x10] sm:$0x3] %v19742_v44  ;;  %v9345_v49 = vpack.c.bf16 %v19742_v44, %v19742_v44 }
0x221d   :  { %9342 = vst [vmem:[#allocation2 + $0x18] sm:$0x3] %v19744_v45  ;;  %v9346_v46 = vpack.c.bf16 %v19744_v45, %v19744_v45 }
0x221f   :  { %9571 = vmatprep.mubr.bf16.mxu1 %v9346_v46  ;;  %v19178_v46 = vld [vmem:[#allocation3 + $0x494] ss:$8 sps:$4 sm:$0xff]  }
0x2220   :  { %9572 = vmatmul.mubr.bf16.vlgmr.msra.gmra.mrb[72].mxu1 %v9345_v49  ;;  %v19176_v49 = vld [vmem:[#allocation3 + $0x490] ss:$8 sps:$4 sm:$0xff]  }
0x2221   :  { %10050 = vmatpush1.bf16.msra.mxu1 %v19101_v41  ;;  %v19154_v41 = vld [vmem:[#allocation3 + $0x414] ss:$8 sps:$4 sm:$0xff]  }
0x2222   :  { %10051 = vmatprep.subr.bf16.mxu1 %v19106_v29  ;;  %v19157_v29 = vld [vmem:[#allocation3 + $0x424] ss:$8 sps:$4 sm:$0xff]  }
0x2225   :  { %10052 = vmatpush1.bf16.msra.mxu1 %v19104_v52  ;;  %v19155_v52 = vld [vmem:[#allocation3 + $0x420] ss:$8 sps:$4 sm:$0xff]  }
0x2226   :  { %10053 = vmatprep.subr.bf16.mxu1 %v19109_v53  ;;  %v19160_v53 = vld [vmem:[#allocation3 + $0x434] ss:$8 sps:$4 sm:$0xff]  }
0x2229   :  { %10054 = vmatpush1.bf16.msra.mxu1 %v19107_v54  ;;  %v19158_v54 = vld [vmem:[#allocation3 + $0x430] ss:$8 sps:$4 sm:$0xff]  }
0x222a   :  { %10055 = vmatprep.subr.bf16.mxu1 %v19112_v27  ;;  %v19163_v27 = vld [vmem:[#allocation3 + $0x444] ss:$8 sps:$4 sm:$0xff]  }
0x222d   :  { %10056 = vmatpush1.bf16.msra.mxu1 %v19110_v28  ;;  %v19161_v28 = vld [vmem:[#allocation3 + $0x440] ss:$8 sps:$4 sm:$0xff]  }
0x222e   :  { %10057 = vmatprep.subr.bf16.mxu1 %v19115_v21  ;;  %v19166_v21 = vld [vmem:[#allocation3 + $0x454] ss:$8 sps:$4 sm:$0xff]  }
0x2231   :  { %10058 = vmatpush1.bf16.msra.mxu1 %v19113_v22  ;;  %v19164_v22 = vld [vmem:[#allocation3 + $0x450] ss:$8 sps:$4 sm:$0xff]  }
0x2232   :  { %10059 = vmatprep.subr.bf16.mxu1 %v19118_v4  ;;  %v19169_v4 = vld [vmem:[#allocation3 + $0x464] ss:$8 sps:$4 sm:$0xff]  }
0x2235   :  { %10060 = vmatpush1.bf16.msra.mxu1 %v19116_v23  ;;  %v19167_v23 = vld [vmem:[#allocation3 + $0x460] ss:$8 sps:$4 sm:$0xff]  }
0x2236   :  { %10061 = vmatprep.subr.bf16.mxu1 %v19121_v24  ;;  %v19172_v24 = vld [vmem:[#allocation3 + $0x474] ss:$8 sps:$4 sm:$0xff]  }
0x2239   :  { %10062 = vmatpush1.bf16.msra.mxu1 %v19119_v25  ;;  %v19170_v25 = vld [vmem:[#allocation3 + $0x470] ss:$8 sps:$4 sm:$0xff]  }
0x223a   :  { %10063 = vmatprep.subr.bf16.mxu1 %v19124_v26  ;;  %v19175_v26 = vld [vmem:[#allocation3 + $0x484] ss:$8 sps:$4 sm:$0xff]  }
0x223d   :  { %10064 = vmatpush1.bf16.msra.mxu1 %v19122_v3  ;;  %v19173_v3 = vld [vmem:[#allocation3 + $0x480] ss:$8 sps:$4 sm:$0xff]  }
0x223e   :  { %10065 = vmatprep.subr.bf16.mxu1 %v19127_v63 }
0x2241   :  { %10066 = vmatpush1.bf16.msra.mxu1 %v19125_v0 }
0x2242   :  { %10067 = vmatprep.subr.bf16.mxu1 %v19130_v32 }
0x2245   :  { %10068 = vmatpush1.bf16.msra.mxu1 %v19128_v33  ;;  %v9592_v33 = vld [vmem:[#allocation2 + $0x10] sm:$0x30] }
0x2246   :  { %10069 = vmatprep.subr.bf16.mxu1 %v19133_v2 }
0x2249   :  { %10070 = vmatpush1.bf16.msra.mxu1 %v19131_v57 }
0x224a   :  { %10071 = vmatprep.subr.bf16.mxu1 %v19136_v37  ;;  %v19181_v37 = vld [vmem:[#allocation3 + $0x4a4] ss:$8 sps:$4 sm:$0xff]  }
0x224d   :  { %10072 = vmatpush1.bf16.msra.mxu1 %v19134_v38  ;;  %v19179_v38 = vld [vmem:[#allocation3 + $0x4a0] ss:$8 sps:$4 sm:$0xff]  }
0x224e   :  { %10073 = vmatprep.subr.bf16.mxu1 %v19139_v39  ;;  %v19184_v39 = vld [vmem:[#allocation3 + $0x4b4] ss:$8 sps:$4 sm:$0xff]  }
0x2251   :  { %10074 = vmatpush1.bf16.msra.mxu1 %v19137_v40  ;;  %v19182_v40 = vld [vmem:[#allocation3 + $0x4b0] ss:$8 sps:$4 sm:$0xff]  }
0x2252   :  { %10075 = vmatprep.subr.bf16.mxu1 %v19142_v55  ;;  %v19187_v55 = vld [vmem:[#allocation3 + $0x4c4] ss:$8 sps:$4 sm:$0xff]  }
0x2255   :  { %10076 = vmatpush1.bf16.msra.mxu1 %v19140_v56  ;;  %v19185_v56 = vld [vmem:[#allocation3 + $0x4c0] ss:$8 sps:$4 sm:$0xff]  }
0x2256   :  { %10077 = vmatprep.subr.bf16.mxu1 %v19145_v30  ;;  %v19190_v30 = vld [vmem:[#allocation3 + $0x4d4] ss:$8 sps:$4 sm:$0xff]  }
0x2259   :  { %10078 = vmatpush1.bf16.msra.mxu1 %v19143_v31  ;;  %v19188_v31 = vld [vmem:[#allocation3 + $0x4d0] ss:$8 sps:$4 sm:$0xff]  }
0x225a   :  { %10079 = vmatprep.subr.bf16.mxu1 %v19148_v35  ;;  %v19191_v35 = vld [vmem:[#allocation3 + $0x4e0] ss:$8 sps:$4 sm:$0xff]  }
0x225d   :  { %10080 = vmatpush1.bf16.msra.mxu1 %v19146_v34  ;;  %v19193_v34 = vld [vmem:[#allocation3 + $0x4e4] ss:$8 sps:$4 sm:$0xff]  }
0x22f3   :  { %v9573_v61 = vpop.f32.mrb[72].mxu1 }
0x22f4   :  { %v9582_v62 = vrot.slane %v9573_v61, 6  ;;  %v9575_v1 = vpop.f32.mrb[73].mxu1  ;;  %v19196_v61 = vld [vmem:[#allocation3 + $0x4f4] ss:$8 sps:$4 sm:$0xff]  }
0x22f5   :  { %v9583_v7 = vrot.slane %v9575_v1, 6  ;;  %v9577_v8 = vpop.f32.mrb[74].mxu1  ;;  %v21486_v1 = vld [vmem:[#allocation5 + $0x400] ss:$8 sps:$4 sm:$0xff]  }
0x22f6   :  { %v9586_v9 = vadd.f32 %v9582_v62, %v9343_v6  ;;  %v9578_v11 = vpop.f32.mrb[75].mxu1  ;;  %v19194_v62 = vld [vmem:[#allocation3 + $0x4f0] ss:$8 sps:$4 sm:$0xff]   ;;  %v21488_v6 = vld [vmem:[#allocation5 + $0x404] ss:$8 sps:$4 sm:$0xff]  }
0x22f7   :  { %v9587_v12 = vadd.f32 %v9583_v7, %v9344_v10  ;;  %v21490_v7 = vld [vmem:[#allocation5 + $0x414] ss:$8 sps:$4 sm:$0xff]   ;;  %10564 = vmatprep.subr.bf16.mxu1 %v21488_v6  ;;  %v21495_v8 = vld [vmem:[#allocation5 + $0x410] ss:$8 sps:$4 sm:$0xff]   ;;  %v21501_v10 = vld [vmem:[#allocation5 + $0x420] ss:$8 sps:$4 sm:$0xff]  }
0x22f8   :  { %19745 = vtanh.f32 %v9586_v9  ;;  %v21498_v9 = vld [vmem:[#allocation5 + $0x424] ss:$8 sps:$4 sm:$0xff]   ;;  %v21504_v11 = vld [vmem:[#allocation5 + $0x434] ss:$8 sps:$4 sm:$0xff]  }
0x22f9   :  { %19747 = vtanh.f32 %v9587_v12  ;;  %v21507_v12 = vld [vmem:[#allocation5 + $0x430] ss:$8 sps:$4 sm:$0xff]  }
0x2302   :  { %v19746_v13 = vpop.eup %19745 }
0x2303   :  { %v19748_v14 = vpop.eup %19747  ;;  %9590 = vst [vmem:[#allocation2 + $0x10] sm:$0xc] %v19746_v13  ;;  %v9594_v15 = vpack.c.bf16 %v19746_v13, %v19746_v13  ;;  %v21510_v13 = vld [vmem:[#allocation5 + $0x444] ss:$8 sps:$4 sm:$0xff]  }
0x2304   :  { %9591 = vst [vmem:[#allocation2 + $0x18] sm:$0xc] %v19748_v14  ;;  %v9595_v16 = vpack.c.bf16 %v19748_v14, %v19748_v14  ;;  %v21513_v14 = vld [vmem:[#allocation5 + $0x440] ss:$8 sps:$4 sm:$0xff]  }
0x2305   :  { %v9630_v18 = vrot.slane %v9594_v15, 1  ;;  %v21516_v15 = vld [vmem:[#allocation5 + $0x454] ss:$8 sps:$4 sm:$0xff]  }
0x2306   :  { %v9631_v17 = vrot.slane %v9595_v16, 1  ;;  %v21519_v16 = vld [vmem:[#allocation5 + $0x450] ss:$8 sps:$4 sm:$0xff]  }
0x2308   :  { %9826 = vmatprep.mubr.bf16.mxu0 %v9631_v17  ;;  %v21522_v17 = vld [vmem:[#allocation5 + $0x464] ss:$8 sps:$4 sm:$0xff]  }
0x2309   :  { %9827 = vmatmul.mubr.bf16.vlgmr.msra.gmra.mrb[76].mxu0 %v9630_v18  ;;  %v21525_v18 = vld [vmem:[#allocation5 + $0x460] ss:$8 sps:$4 sm:$0xff]  }
0x230a   :  { %10315 = vmatpush1.bf16.msra.mxu0 %v19149_v19  ;;  %v21528_v19 = vld [vmem:[#allocation5 + $0x474] ss:$8 sps:$4 sm:$0xff]  }
0x230b   :  { %10316 = vmatprep.subr.bf16.mxu0 %v19154_v41  ;;  %v21534_v41 = vld [vmem:[#allocation5 + $0x484] ss:$8 sps:$4 sm:$0xff]  }
0x230e   :  { %10317 = vmatpush1.bf16.msra.mxu0 %v19152_v36  ;;  %v21537_v36 = vld [vmem:[#allocation5 + $0x480] ss:$8 sps:$4 sm:$0xff]  }
0x230f   :  { %10318 = vmatprep.subr.bf16.mxu0 %v19157_v29  ;;  %v21540_v29 = vld [vmem:[#allocation5 + $0x494] ss:$8 sps:$4 sm:$0xff]  }
0x2312   :  { %10319 = vmatpush1.bf16.msra.mxu0 %v19155_v52  ;;  %v21543_v52 = vld [vmem:[#allocation5 + $0x490] ss:$8 sps:$4 sm:$0xff]  }
0x2313   :  { %10320 = vmatprep.subr.bf16.mxu0 %v19160_v53 }
0x2316   :  { %10321 = vmatpush1.bf16.msra.mxu0 %v19158_v54 }
0x2317   :  { %10322 = vmatprep.subr.bf16.mxu0 %v19163_v27 }
0x231a   :  { %10323 = vmatpush1.bf16.msra.mxu0 %v19161_v28  ;;  %v9847_v28 = vld [vmem:[#allocation2 + $0x10] sm:$0xc0] }
0x231b   :  { %10324 = vmatprep.subr.bf16.mxu0 %v19166_v21 }
0x231e   :  { %10325 = vmatpush1.bf16.msra.mxu0 %v19164_v22 }
0x231f   :  { %10326 = vmatprep.subr.bf16.mxu0 %v19169_v4 }
0x2322   :  { %10327 = vmatpush1.bf16.msra.mxu0 %v19167_v23  ;;  %v9848_v23 = vld [vmem:[#allocation2 + $0x18] sm:$0xc0] }
0x2323   :  { %10328 = vmatprep.subr.bf16.mxu0 %v19172_v24 }
0x2326   :  { %10329 = vmatpush1.bf16.msra.mxu0 %v19170_v25 }
0x2327   :  { %10330 = vmatprep.subr.bf16.mxu0 %v19175_v26 }
0x232a   :  { %10331 = vmatpush1.bf16.msra.mxu0 %v19173_v3 }
0x232b   :  { %10332 = vmatprep.subr.bf16.mxu0 %v19178_v46  ;;  %v21603_v46 = vld [vmem:[#allocation5 + $0x4f4] ss:$8 sps:$4 sm:$0xff]  }
0x232e   :  { %10333 = vmatpush1.bf16.msra.mxu0 %v19176_v49  ;;  %v21607_v49 = vld [vmem:[#allocation5 + $0x4f0] ss:$8 sps:$4 sm:$0xff]  }
0x232f   :  { %10334 = vmatprep.subr.bf16.mxu0 %v19181_v37  ;;  %v10142_v37 = vld [vmem:[#allocation7 + $0x8] sm:$0x3] }
0x2332   :  { %10335 = vmatpush1.bf16.msra.mxu0 %v19179_v38  ;;  %v10147_v38 = vrot.slane %v10142_v37, %v20229_v47 }
0x2333   :  { %10336 = vmatprep.subr.bf16.mxu0 %v19184_v39  ;;  %v10151_v39 = vrot.slane %v10142_v37, %v20231_v48 }
0x2336   :  { %10337 = vmatpush1.bf16.msra.mxu0 %v19182_v40 }
0x2337   :  { %10338 = vmatprep.subr.bf16.mxu0 %v19187_v55 }
0x233a   :  { %10339 = vmatpush1.bf16.msra.mxu0 %v19185_v56 }
0x233b   :  { %10340 = vmatprep.subr.bf16.mxu0 %v19190_v30 }
0x233e   :  { %10341 = vmatpush1.bf16.msra.mxu0 %v19188_v31 }
0x233f   :  { %10342 = vmatprep.subr.bf16.mxu0 %v19193_v34 }
0x2342   :  { %10343 = vmatpush1.bf16.msra.mxu0 %v19191_v35 }
0x2343   :  { %10344 = vmatprep.subr.bf16.mxu0 %v19196_v61 }
0x2346   :  { %10345 = vmatpush1.bf16.msra.mxu0 %v19194_v62 }
0x2347   :  { %10819 = vmatprep.subr.bf16.mxu0 %v21488_v6 }
0x23dc   :  { %v9828_v63 = vpop.f32.mrb[76].mxu0 }
0x23dd   :  { %v9837_v0 = vrot.slane %v9828_v63, 4  ;;  %v9830_v32 = vpop.f32.mrb[77].mxu0 }
0x23de   :  { %v9838_v2 = vrot.slane %v9830_v32, 4  ;;  %v9832_v57 = vpop.f32.mrb[78].mxu0 }
0x23df   :  { %v9841_v58 = vadd.f32 %v9837_v0, %v9592_v33  ;;  %v9833_v60 = vpop.f32.mrb[79].mxu0  ;;  %v10103_v0 = vld [vmem:[#allocation2 + $0x8] sm:$0xff] }
0x23e0   :  { %v9842_v50 = vadd.f32 %v9838_v2, %v9593_v59  ;;  %v10102_v2 = vld [vmem:[#allocation2] sm:$0xff]  ;;  %v21574_v60 = vld [vmem:[#allocation5 + $0x4b0] ss:$8 sps:$4 sm:$0xff]  }
0x23e1   :  { %19749 = vtanh.f32 %v9841_v58  ;;  %v21566_v58 = vld [vmem:[#allocation5 + $0x4a4] ss:$8 sps:$4 sm:$0xff]   ;;  %v21568_v59 = vld [vmem:[#allocation5 + $0x4a0] ss:$8 sps:$4 sm:$0xff]  }
0x23e2   :  { %19751 = vtanh.f32 %v9842_v50  ;;  %v21576_v50 = vld [vmem:[#allocation5 + $0x4b4] ss:$8 sps:$4 sm:$0xff]  }
0x23eb   :  { %v19750_v51 = vpop.eup %19749 }
0x23ec   :  { %v19752_v42 = vpop.eup %19751  ;;  %9845 = vst [vmem:[#allocation2 + $0x10] sm:$0x30] %v19750_v51  ;;  %v9849_v43 = vpack.c.bf16 %v19750_v51, %v19750_v51  ;;  %v21578_v51 = vld [vmem:[#allocation5 + $0x4c4] ss:$8 sps:$4 sm:$0xff]  }
0x23ed   :  { %9846 = vst [vmem:[#allocation2 + $0x18] sm:$0x30] %v19752_v42  ;;  %v9850_v5 = vpack.c.bf16 %v19752_v42, %v19752_v42  ;;  %v21583_v42 = vld [vmem:[#allocation5 + $0x4c0] ss:$8 sps:$4 sm:$0xff]  }
0x23ee   :  { %v9885_v45 = vrot.slane %v9849_v43, 2  ;;  %v21587_v43 = vld [vmem:[#allocation5 + $0x4d4] ss:$8 sps:$4 sm:$0xff]  }
0x23ef   :  { %v9886_v44 = vrot.slane %v9850_v5, 2  ;;  %v21591_v5 = vld [vmem:[#allocation5 + $0x4d0] ss:$8 sps:$4 sm:$0xff]  }
0x23f1   :  { %10081 = vmatprep.mubr.bf16.mxu1 %v9886_v44  ;;  %v21595_v44 = vld [vmem:[#allocation5 + $0x4e4] ss:$8 sps:$4 sm:$0xff]  }
0x23f2   :  { %10082 = vmatmul.mubr.bf16.vlgmr.msra.gmra.mrb[76].mxu1 %v9885_v45  ;;  %v21599_v45 = vld [vmem:[#allocation5 + $0x4e0] ss:$8 sps:$4 sm:$0xff]  }
0x23f3   :  { %10565 = vmatpush1.bf16.msra.mxu1 %v21486_v1 }
0x23f4   :  { %10566 = vmatprep.subr.bf16.mxu1 %v21490_v7 }
0x23f7   :  { %10567 = vmatpush1.bf16.msra.mxu1 %v21495_v8 }
0x23f8   :  { %10568 = vmatprep.subr.bf16.mxu1 %v21498_v9 }
0x23fb   :  { %10569 = vmatpush1.bf16.msra.mxu1 %v21501_v10 }
0x23fc   :  { %10570 = vmatprep.subr.bf16.mxu1 %v21504_v11 }
0x23ff   :  { %10571 = vmatpush1.bf16.msra.mxu1 %v21507_v12 }
0x2400   :  { %10572 = vmatprep.subr.bf16.mxu1 %v21510_v13 }
0x2403   :  { %10573 = vmatpush1.bf16.msra.mxu1 %v21513_v14 }
0x2404   :  { %10574 = vmatprep.subr.bf16.mxu1 %v21516_v15 }
0x2407   :  { %10575 = vmatpush1.bf16.msra.mxu1 %v21519_v16 }
0x2408   :  { %10576 = vmatprep.subr.bf16.mxu1 %v21522_v17 }
0x240b   :  { %10577 = vmatpush1.bf16.msra.mxu1 %v21525_v18 }
0x240c   :  { %10578 = vmatprep.subr.bf16.mxu1 %v21528_v19 }
0x240f   :  { %10579 = vmatpush1.bf16.msra.mxu1 %v21531_v20 }
0x2410   :  { %10580 = vmatprep.subr.bf16.mxu1 %v21534_v41 }
0x2413   :  { %10581 = vmatpush1.bf16.msra.mxu1 %v21537_v36 }
0x2414   :  { %10582 = vmatprep.subr.bf16.mxu1 %v21540_v29 }
0x2417   :  { %10583 = vmatpush1.bf16.msra.mxu1 %v21543_v52 }
0x2418   :  { %10584 = vmatprep.subr.bf16.mxu1 %v21566_v58 }
0x241b   :  { %10585 = vmatpush1.bf16.msra.mxu1 %v21568_v59 }
0x241c   :  { %10586 = vmatprep.subr.bf16.mxu1 %v21576_v50 }
0x241f   :  { %10587 = vmatpush1.bf16.msra.mxu1 %v21574_v60 }
0x2420   :  { %10588 = vmatprep.subr.bf16.mxu1 %v21578_v51 }
0x2423   :  { %10589 = vmatpush1.bf16.msra.mxu1 %v21583_v42 }
0x2424   :  { %10590 = vmatprep.subr.bf16.mxu1 %v21587_v43 }
0x2427   :  { %10591 = vmatpush1.bf16.msra.mxu1 %v21591_v5 }
0x2428   :  { %10592 = vmatprep.subr.bf16.mxu1 %v21595_v44 }
0x242b   :  { %10593 = vmatpush1.bf16.msra.mxu1 %v21599_v45 }
0x242c   :  { %10594 = vmatprep.subr.bf16.mxu1 %v21603_v46 }
0x242f   :  { %10595 = vmatpush1.bf16.msra.mxu1 %v21607_v49 }
0x2430   :  { %11074 = vmatprep.subr.bf16.mxu1 %v21488_v6 }
0x24c5   :  { %v10083_v53 = vpop.f32.mrb[76].mxu1 }
0x24c6   :  { %v10092_v54 = vrot.slane %v10083_v53, 2  ;;  %v10085_v27 = vpop.f32.mrb[77].mxu1 }
0x24c7   :  { %v10093_v21 = vrot.slane %v10085_v27, 2  ;;  %v10087_v22 = vpop.f32.mrb[78].mxu1 }
0x24c8   :  { %v10096_v4 = vadd.f32 %v10092_v54, %v9847_v28  ;;  %v10088_v24 = vpop.f32.mrb[79].mxu1 }
0x24c9   :  { %v10097_v25 = vadd.f32 %v10093_v21, %v9848_v23 }
0x24ca   :  { %19753 = vtanh.f32 %v10096_v4 }
0x24cb   :  { %19755 = vtanh.f32 %v10097_v25 }
0x24d4   :  { %v19754_v26 = vpop.eup %19753 }
0x24d5   :  { %v19756_v3 = vpop.eup %19755  ;;  %10100 = vst [vmem:[#allocation2 + $0x10] sm:$0xc0] %v19754_v26 }
0x24d6   :  { %10101 = vst [vmem:[#allocation2 + $0x18] sm:$0xc0] %v19756_v3 }
0x24dc   :  { %v10104_v63 = vld [vmem:[#allocation2 + $0x10] sm:$0xff] }
0x24dd   :  { %v10105_v32 = vld [vmem:[#allocation2 + $0x18] sm:$0xff]  ;;  %v10106_v57 = vpack.c.bf16 %v10104_v63, %v10102_v2 }
0x24de   :  { %v10107_v33 = vpack.c.bf16 %v10105_v32, %v10103_v0 }
0x24e0   :  { %10346 = vmatprep.mubr.bf16.mxu0 %v10107_v33 }
0x24e1   :  { %10347 = vmatmul.mubr.bf16.vlgmr.msra.gmra.mrb[80].mxu0 %v10106_v57 }
0x24e2   :  { %10820 = vmatpush1.bf16.msra.mxu0 %v21486_v1 }
0x24e3   :  { %10821 = vmatprep.subr.bf16.mxu0 %v21490_v7 }
0x24e6   :  { %10822 = vmatpush1.bf16.msra.mxu0 %v21495_v8 }
0x24e7   :  { %10823 = vmatprep.subr.bf16.mxu0 %v21498_v9 }
0x24ea   :  { %10824 = vmatpush1.bf16.msra.mxu0 %v21501_v10 }
0x24eb   :  { %10825 = vmatprep.subr.bf16.mxu0 %v21504_v11 }
0x24ee   :  { %10826 = vmatpush1.bf16.msra.mxu0 %v21507_v12 }
0x24ef   :  { %10827 = vmatprep.subr.bf16.mxu0 %v21510_v13 }
0x24f2   :  { %10828 = vmatpush1.bf16.msra.mxu0 %v21513_v14 }
0x24f3   :  { %10829 = vmatprep.subr.bf16.mxu0 %v21516_v15 }
0x24f6   :  { %10830 = vmatpush1.bf16.msra.mxu0 %v21519_v16 }
0x24f7   :  { %10831 = vmatprep.subr.bf16.mxu0 %v21522_v17 }
0x24fa   :  { %10832 = vmatpush1.bf16.msra.mxu0 %v21525_v18 }
0x24fb   :  { %10833 = vmatprep.subr.bf16.mxu0 %v21528_v19 }
0x24fe   :  { %10834 = vmatpush1.bf16.msra.mxu0 %v21531_v20 }
0x24ff   :  { %10835 = vmatprep.subr.bf16.mxu0 %v21534_v41 }
0x2502   :  { %10836 = vmatpush1.bf16.msra.mxu0 %v21537_v36 }
0x2503   :  { %10837 = vmatprep.subr.bf16.mxu0 %v21540_v29 }
0x2506   :  { %10838 = vmatpush1.bf16.msra.mxu0 %v21543_v52 }
0x2507   :  { %10839 = vmatprep.subr.bf16.mxu0 %v21566_v58 }
0x250a   :  { %10840 = vmatpush1.bf16.msra.mxu0 %v21568_v59 }
0x250b   :  { %10841 = vmatprep.subr.bf16.mxu0 %v21576_v50 }
0x250e   :  { %10842 = vmatpush1.bf16.msra.mxu0 %v21574_v60 }
0x250f   :  { %10843 = vmatprep.subr.bf16.mxu0 %v21578_v51 }
0x2512   :  { %10844 = vmatpush1.bf16.msra.mxu0 %v21583_v42 }
0x2513   :  { %10845 = vmatprep.subr.bf16.mxu0 %v21587_v43 }
0x2516   :  { %10846 = vmatpush1.bf16.msra.mxu0 %v21591_v5 }
0x2517   :  { %10847 = vmatprep.subr.bf16.mxu0 %v21595_v44 }
0x251a   :  { %10848 = vmatpush1.bf16.msra.mxu0 %v21599_v45 }
0x251b   :  { %10849 = vmatprep.subr.bf16.mxu0 %v21603_v46 }
0x251e   :  { %10850 = vmatpush1.bf16.msra.mxu0 %v21607_v49 }
0x251f   :  { %11329 = vmatprep.subr.bf16.mxu0 %v21488_v6 }
0x25b4   :  { %v10348_v40 = vpop.f32.mrb[80].mxu0 }
0x25b5   :  { %v10349_v55 = vadd.f32 %v10348_v40, %v10147_v38  ;;  %v10350_v56 = vpop.f32.mrb[81].mxu0 }
0x25b6   :  { %v10351_v30 = vadd.f32 %v10350_v56, %v10151_v39  ;;  %v10352_v31 = vpop.f32.mrb[82].mxu0 }
0x25b7   :  { %10357 = vst [vmem:[#allocation2] sm:$0xff] %v10349_v55  ;;  %v10353_v34 = vadd.f32 %v10352_v31, %v10147_v38  ;;  %v10354_v35 = vpop.f32.mrb[83].mxu0 }
0x25b8   :  { %10358 = vst [vmem:[#allocation2 + $0x8] sm:$0xff] %v10351_v30  ;;  %v10355_v61 = vadd.f32 %v10354_v35, %v10151_v39 }
0x25b9   :  { %10359 = vst [vmem:[#allocation2 + $0x10] sm:$0xff] %v10353_v34 }
0x25ba   :  { %10360 = vst [vmem:[#allocation2 + $0x18] sm:$0xff] %v10355_v61 }
0x25be   :  { %v10361_v62 = vld [vmem:[#allocation2] sm:$0x3]  ;;  %v10367_v24 = vld [vmem:[#allocation2] sm:$0xc]  ;;  %v10617_v56 = vld [vmem:[#allocation2] sm:$0x30] }
0x25bf   :  { %v10362_v53 = vld [vmem:[#allocation2 + $0x8] sm:$0x3]  ;;  %19757 = vtanh.f32 %v10361_v62  ;;  %v10368_v63 = vld [vmem:[#allocation2 + $0x8] sm:$0xc]  ;;  %v10618_v35 = vld [vmem:[#allocation2 + $0x8] sm:$0x30] }
0x25c0   :  { %19759 = vtanh.f32 %v10362_v53 }
0x25c9   :  { %v19758_v54 = vpop.eup %19757 }
0x25ca   :  { %v19760_v27 = vpop.eup %19759  ;;  %10365 = vst [vmem:[#allocation2] sm:$0x3] %v19758_v54  ;;  %v10369_v21 = vpack.c.bf16 %v19758_v54, %v19758_v54 }
0x25cb   :  { %10366 = vst [vmem:[#allocation2 + $0x8] sm:$0x3] %v19760_v27  ;;  %v10370_v28 = vpack.c.bf16 %v19760_v27, %v19760_v27 }
0x25cd   :  { %10596 = vmatprep.mubr.bf16.mxu1 %v10370_v28 }
0x25ce   :  { %10597 = vmatmul.mubr.bf16.vlgmr.msra.gmra.mrb[80].mxu1 %v10369_v21 }
0x25cf   :  { %11075 = vmatpush1.bf16.msra.mxu1 %v21486_v1 }
0x25d0   :  { %11076 = vmatprep.subr.bf16.mxu1 %v21490_v7 }
0x25d3   :  { %11077 = vmatpush1.bf16.msra.mxu1 %v21495_v8 }
0x25d4   :  { %11078 = vmatprep.subr.bf16.mxu1 %v21498_v9 }
0x25d7   :  { %11079 = vmatpush1.bf16.msra.mxu1 %v21501_v10 }
0x25d8   :  { %11080 = vmatprep.subr.bf16.mxu1 %v21504_v11 }
0x25db   :  { %11081 = vmatpush1.bf16.msra.mxu1 %v21507_v12 }
0x25dc   :  { %11082 = vmatprep.subr.bf16.mxu1 %v21510_v13 }
0x25df   :  { %11083 = vmatpush1.bf16.msra.mxu1 %v21513_v14 }
0x25e0   :  { %11084 = vmatprep.subr.bf16.mxu1 %v21516_v15 }
0x25e3   :  { %11085 = vmatpush1.bf16.msra.mxu1 %v21519_v16 }
0x25e4   :  { %11086 = vmatprep.subr.bf16.mxu1 %v21522_v17 }
0x25e7   :  { %11087 = vmatpush1.bf16.msra.mxu1 %v21525_v18 }
0x25e8   :  { %11088 = vmatprep.subr.bf16.mxu1 %v21528_v19 }
0x25eb   :  { %11089 = vmatpush1.bf16.msra.mxu1 %v21531_v20 }
0x25ec   :  { %11090 = vmatprep.subr.bf16.mxu1 %v21534_v41 }
0x25ef   :  { %11091 = vmatpush1.bf16.msra.mxu1 %v21537_v36 }
0x25f0   :  { %11092 = vmatprep.subr.bf16.mxu1 %v21540_v29 }
0x25f3   :  { %11093 = vmatpush1.bf16.msra.mxu1 %v21543_v52 }
0x25f4   :  { %11094 = vmatprep.subr.bf16.mxu1 %v21566_v58 }
0x25f7   :  { %11095 = vmatpush1.bf16.msra.mxu1 %v21568_v59 }
0x25f8   :  { %11096 = vmatprep.subr.bf16.mxu1 %v21576_v50 }
0x25fb   :  { %11097 = vmatpush1.bf16.msra.mxu1 %v21574_v60 }
0x25fc   :  { %11098 = vmatprep.subr.bf16.mxu1 %v21578_v51 }
0x25ff   :  { %11099 = vmatpush1.bf16.msra.mxu1 %v21583_v42 }
0x2600   :  { %11100 = vmatprep.subr.bf16.mxu1 %v21587_v43 }
0x2603   :  { %11101 = vmatpush1.bf16.msra.mxu1 %v21591_v5 }
0x2604   :  { %11102 = vmatprep.subr.bf16.mxu1 %v21595_v44 }
0x2607   :  { %11103 = vmatpush1.bf16.msra.mxu1 %v21599_v45 }
0x2608   :  { %11104 = vmatprep.subr.bf16.mxu1 %v21603_v46 }
0x260b   :  { %11105 = vmatpush1.bf16.msra.mxu1 %v21607_v49 }
0x260c   :  { %11572 = vmatprep.subr.bf16.mxu1 %v21488_v6 }
0x26a1   :  { %v10598_v22 = vpop.f32.mrb[80].mxu1 }
0x26a2   :  { %v10607_v4 = vrot.slane %v10598_v22, 6  ;;  %v10600_v23 = vpop.f32.mrb[81].mxu1 }
0x26a3   :  { %v10608_v25 = vrot.slane %v10600_v23, 6  ;;  %v10602_v26 = vpop.f32.mrb[82].mxu1  ;;  %v19271_v23 = vld [vmem:[#allocation5 + $0x484] ss:$8 sps:$4 sm:$0xff]  }
0x26a4   :  { %v10611_v3 = vadd.f32 %v10607_v4, %v10367_v24  ;;  %v10603_v0 = vpop.f32.mrb[83].mxu1  ;;  %v19266_v4 = vld [vmem:[#allocation5 + $0x470] ss:$8 sps:$4 sm:$0xff]   ;;  %v19269_v24 = vld [vmem:[#allocation5 + $0x480] ss:$8 sps:$4 sm:$0xff]  }
0x26a5   :  { %v10612_v32 = vadd.f32 %v10608_v25, %v10368_v63  ;;  %v19274_v25 = vld [vmem:[#allocation5 + $0x494] ss:$8 sps:$4 sm:$0xff]   ;;  %v19272_v26 = vld [vmem:[#allocation5 + $0x490] ss:$8 sps:$4 sm:$0xff]   ;;  %v19275_v63 = vld [vmem:[#allocation5 + $0x4a0] ss:$8 sps:$4 sm:$0xff]  }
0x26a6   :  { %19761 = vtanh.f32 %v10611_v3  ;;  %v19277_v3 = vld [vmem:[#allocation5 + $0x4a4] ss:$8 sps:$4 sm:$0xff]   ;;  %v11127_v0 = vld [vmem:[#allocation2 + $0x10] sm:$0x3] }
0x26a7   :  { %19763 = vtanh.f32 %v10612_v32 }
0x26b0   :  { %v19762_v33 = vpop.eup %19761 }
0x26b1   :  { %v19764_v2 = vpop.eup %19763  ;;  %10615 = vst [vmem:[#allocation2] sm:$0xc] %v19762_v33  ;;  %v10619_v57 = vpack.c.bf16 %v19762_v33, %v19762_v33 }
0x26b2   :  { %10616 = vst [vmem:[#allocation2 + $0x8] sm:$0xc] %v19764_v2  ;;  %v10620_v37 = vpack.c.bf16 %v19764_v2, %v19764_v2  ;;  %v11128_v2 = vld [vmem:[#allocation2 + $0x18] sm:$0x3] }
0x26b3   :  { %v10655_v6 = vrot.slane %v10619_v57, 1 }
0x26b4   :  { %v10656_v38 = vrot.slane %v10620_v37, 1 }
0x26b6   :  { %10851 = vmatprep.mubr.bf16.mxu0 %v10656_v38 }
0x26b7   :  { %10852 = vmatmul.mubr.bf16.vlgmr.msra.gmra.mrb[84].mxu0 %v10655_v6 }
0x26b8   :  { %11330 = vmatpush1.bf16.msra.mxu0 %v21486_v1 }
0x26b9   :  { %11331 = vmatprep.subr.bf16.mxu0 %v21490_v7 }
0x26bc   :  { %11332 = vmatpush1.bf16.msra.mxu0 %v21495_v8 }
0x26bd   :  { %11333 = vmatprep.subr.bf16.mxu0 %v21498_v9 }
0x26c0   :  { %11334 = vmatpush1.bf16.msra.mxu0 %v21501_v10 }
0x26c1   :  { %11335 = vmatprep.subr.bf16.mxu0 %v21504_v11 }
0x26c4   :  { %11336 = vmatpush1.bf16.msra.mxu0 %v21507_v12 }
0x26c5   :  { %11337 = vmatprep.subr.bf16.mxu0 %v21510_v13 }
0x26c8   :  { %11338 = vmatpush1.bf16.msra.mxu0 %v21513_v14 }
0x26c9   :  { %11339 = vmatprep.subr.bf16.mxu0 %v21516_v15 }
0x26cc   :  { %11340 = vmatpush1.bf16.msra.mxu0 %v21519_v16 }
0x26cd   :  { %11341 = vmatprep.subr.bf16.mxu0 %v21522_v17 }
0x26d0   :  { %11342 = vmatpush1.bf16.msra.mxu0 %v21525_v18 }
0x26d1   :  { %11343 = vmatprep.subr.bf16.mxu0 %v21528_v19 }
0x26d4   :  { %11344 = vmatpush1.bf16.msra.mxu0 %v21531_v20 }
0x26d5   :  { %11345 = vmatprep.subr.bf16.mxu0 %v21534_v41 }
0x26d8   :  { %11346 = vmatpush1.bf16.msra.mxu0 %v21537_v36 }
0x26d9   :  { %11347 = vmatprep.subr.bf16.mxu0 %v21540_v29 }
0x26dc   :  { %11348 = vmatpush1.bf16.msra.mxu0 %v21543_v52 }
0x26dd   :  { %11349 = vmatprep.subr.bf16.mxu0 %v21566_v58 }
0x26e0   :  { %11350 = vmatpush1.bf16.msra.mxu0 %v21568_v59 }
0x26e1   :  { %11351 = vmatprep.subr.bf16.mxu0 %v21576_v50 }
0x26e4   :  { %11352 = vmatpush1.bf16.msra.mxu0 %v21574_v60 }
0x26e5   :  { %11353 = vmatprep.subr.bf16.mxu0 %v21578_v51 }
0x26e8   :  { %11354 = vmatpush1.bf16.msra.mxu0 %v21583_v42 }
0x26e9   :  { %11355 = vmatprep.subr.bf16.mxu0 %v21587_v43 }
0x26ec   :  { %11356 = vmatpush1.bf16.msra.mxu0 %v21591_v5 }
0x26ed   :  { %11357 = vmatprep.subr.bf16.mxu0 %v21595_v44 }
0x26f0   :  { %11358 = vmatpush1.bf16.msra.mxu0 %v21599_v45 }
0x26f1   :  { %11359 = vmatprep.subr.bf16.mxu0 %v21603_v46 }
0x26f4   :  { %11360 = vmatpush1.bf16.msra.mxu0 %v21607_v49 }
0x278a   :  { %v10853_v39 = vpop.f32.mrb[84].mxu0 }
0x278b   :  { %v10862_v40 = vrot.slane %v10853_v39, 4  ;;  %v10855_v55 = vpop.f32.mrb[85].mxu0 }
0x278c   :  { %v10863_v30 = vrot.slane %v10855_v55, 4  ;;  %v10857_v31 = vpop.f32.mrb[86].mxu0 }
0x278d   :  { %v10866_v34 = vadd.f32 %v10862_v40, %v10617_v56  ;;  %v10858_v61 = vpop.f32.mrb[87].mxu0  ;;  %v19278_v31 = vld [vmem:[#allocation5 + $0x4b0] ss:$8 sps:$4 sm:$0xff]  }
0x278e   :  { %v10867_v62 = vadd.f32 %v10863_v30, %v10618_v35  ;;  %v19280_v30 = vld [vmem:[#allocation5 + $0x4b4] ss:$8 sps:$4 sm:$0xff]   ;;  %v19281_v35 = vld [vmem:[#allocation5 + $0x4c0] ss:$8 sps:$4 sm:$0xff]  }
0x278f   :  { %19765 = vtanh.f32 %v10866_v34  ;;  %v19283_v34 = vld [vmem:[#allocation5 + $0x4c4] ss:$8 sps:$4 sm:$0xff]   ;;  %v19286_v61 = vld [vmem:[#allocation5 + $0x4d4] ss:$8 sps:$4 sm:$0xff]  }
0x2790   :  { %19767 = vtanh.f32 %v10867_v62  ;;  %v19284_v62 = vld [vmem:[#allocation5 + $0x4d0] ss:$8 sps:$4 sm:$0xff]  }
0x2799   :  { %v19766_v53 = vpop.eup %19765 }
0x279a   :  { %v19768_v54 = vpop.eup %19767  ;;  %10870 = vst [vmem:[#allocation2] sm:$0x30] %v19766_v53  ;;  %v10874_v27 = vpack.c.bf16 %v19766_v53, %v19766_v53  ;;  %v19289_v53 = vld [vmem:[#allocation5 + $0x4e4] ss:$8 sps:$4 sm:$0xff]  }
0x279b   :  { %10871 = vst [vmem:[#allocation2 + $0x8] sm:$0x30] %v19768_v54  ;;  %v10875_v28 = vpack.c.bf16 %v19768_v54, %v19768_v54  ;;  %v19287_v54 = vld [vmem:[#allocation5 + $0x4e0] ss:$8 sps:$4 sm:$0xff]  }
0x279c   :  { %v10910_v22 = vrot.slane %v10874_v27, 2  ;;  %v19290_v27 = vld [vmem:[#allocation5 + $0x4f0] ss:$8 sps:$4 sm:$0xff]  }
0x279d   :  { %v10911_v21 = vrot.slane %v10875_v28, 2  ;;  %v19292_v28 = vld [vmem:[#allocation5 + $0x4f4] ss:$8 sps:$4 sm:$0xff]  }
0x279f   :  { %11106 = vmatprep.mubr.bf16.mxu1 %v10911_v21 }
0x27a0   :  { %11107 = vmatmul.mubr.bf16.vlgmr.msra.gmra.mrb[84].mxu1 %v10910_v22 }
0x27a1   :  { %11573 = vmatpush1.bf16.msra.mxu1 %v21486_v1 }
0x27a2   :  { %11574 = vmatprep.subr.bf16.mxu1 %v21490_v7 }
0x27a5   :  { %11575 = vmatpush1.bf16.msra.mxu1 %v21495_v8 }
0x27a6   :  { %11576 = vmatprep.subr.bf16.mxu1 %v21498_v9  ;;  %v10872_v9 = vld [vmem:[#allocation2] sm:$0xc0] }
0x27a9   :  { %11577 = vmatpush1.bf16.msra.mxu1 %v21501_v10 }
0x27aa   :  { %11578 = vmatprep.subr.bf16.mxu1 %v21504_v11 }
0x27ad   :  { %11579 = vmatpush1.bf16.msra.mxu1 %v21507_v12 }
0x27ae   :  { %11580 = vmatprep.subr.bf16.mxu1 %v21510_v13  ;;  %v10873_v13 = vld [vmem:[#allocation2 + $0x8] sm:$0xc0] }
0x27b1   :  { %11581 = vmatpush1.bf16.msra.mxu1 %v21513_v14 }
0x27b2   :  { %11582 = vmatprep.subr.bf16.mxu1 %v21516_v15 }
0x27b5   :  { %11583 = vmatpush1.bf16.msra.mxu1 %v21519_v16 }
0x27b6   :  { %11584 = vmatprep.subr.bf16.mxu1 %v21522_v17 }
0x27b9   :  { %11585 = vmatpush1.bf16.msra.mxu1 %v21525_v18 }
0x27ba   :  { %11586 = vmatprep.subr.bf16.mxu1 %v21528_v19 }
0x27bd   :  { %11587 = vmatpush1.bf16.msra.mxu1 %v21531_v20 }
0x27be   :  { %11588 = vmatprep.subr.bf16.mxu1 %v21534_v41 }
0x27c1   :  { %11589 = vmatpush1.bf16.msra.mxu1 %v21537_v36  ;;  %v19245_v36 = vld [vmem:[#allocation5 + $0x400] ss:$8 sps:$4 sm:$0xff]  }
0x27c2   :  { %11590 = vmatprep.subr.bf16.mxu1 %v21540_v29  ;;  %v19247_v29 = vld [vmem:[#allocation5 + $0x404] ss:$8 sps:$4 sm:$0xff]  }
0x27c3   :  { %11827 = vmatprep.subr.bf16.mxu0 %v19247_v29 }
0x27c5   :  { %11591 = vmatpush1.bf16.msra.mxu1 %v21543_v52  ;;  %v19250_v52 = vld [vmem:[#allocation5 + $0x414] ss:$8 sps:$4 sm:$0xff]  }
0x27c6   :  { %11592 = vmatprep.subr.bf16.mxu1 %v21566_v58  ;;  %v19248_v58 = vld [vmem:[#allocation5 + $0x410] ss:$8 sps:$4 sm:$0xff]  }
0x27c9   :  { %11593 = vmatpush1.bf16.msra.mxu1 %v21568_v59  ;;  %v19253_v59 = vld [vmem:[#allocation5 + $0x424] ss:$8 sps:$4 sm:$0xff]  }
0x27ca   :  { %11594 = vmatprep.subr.bf16.mxu1 %v21576_v50  ;;  %v19256_v50 = vld [vmem:[#allocation5 + $0x434] ss:$8 sps:$4 sm:$0xff]  }
0x27cd   :  { %11595 = vmatpush1.bf16.msra.mxu1 %v21574_v60  ;;  %v19251_v60 = vld [vmem:[#allocation5 + $0x420] ss:$8 sps:$4 sm:$0xff]  }
0x27ce   :  { %11596 = vmatprep.subr.bf16.mxu1 %v21578_v51  ;;  %v19254_v51 = vld [vmem:[#allocation5 + $0x430] ss:$8 sps:$4 sm:$0xff]  }
0x27d1   :  { %11597 = vmatpush1.bf16.msra.mxu1 %v21583_v42  ;;  %v19259_v42 = vld [vmem:[#allocation5 + $0x444] ss:$8 sps:$4 sm:$0xff]  }
0x27d2   :  { %11598 = vmatprep.subr.bf16.mxu1 %v21587_v43  ;;  %v19257_v43 = vld [vmem:[#allocation5 + $0x440] ss:$8 sps:$4 sm:$0xff]  }
0x27d5   :  { %11599 = vmatpush1.bf16.msra.mxu1 %v21591_v5  ;;  %v19262_v5 = vld [vmem:[#allocation5 + $0x454] ss:$8 sps:$4 sm:$0xff]  }
0x27d6   :  { %11600 = vmatprep.subr.bf16.mxu1 %v21595_v44  ;;  %v19260_v44 = vld [vmem:[#allocation5 + $0x450] ss:$8 sps:$4 sm:$0xff]  }
0x27d9   :  { %11601 = vmatpush1.bf16.msra.mxu1 %v21599_v45  ;;  %v19265_v45 = vld [vmem:[#allocation5 + $0x464] ss:$8 sps:$4 sm:$0xff]  }
0x27da   :  { %11602 = vmatprep.subr.bf16.mxu1 %v21603_v46  ;;  %v19263_v46 = vld [vmem:[#allocation5 + $0x460] ss:$8 sps:$4 sm:$0xff]  }
0x27dd   :  { %11603 = vmatpush1.bf16.msra.mxu1 %v21607_v49  ;;  %v19268_v49 = vld [vmem:[#allocation5 + $0x474] ss:$8 sps:$4 sm:$0xff]  }
0x27de   :  { %12082 = vmatprep.subr.bf16.mxu1 %v19247_v29  ;;  %v19296_v29 = vld [vmem:[#allocation3 + $0x510] ss:$8 sps:$4 sm:$0xff]  }
0x2873   :  { %v11108_v1 = vpop.f32.mrb[84].mxu1 }
0x2874   :  { %v11117_v7 = vrot.slane %v11108_v1, 2  ;;  %v11110_v8 = vpop.f32.mrb[85].mxu1 }
0x2875   :  { %v11118_v10 = vrot.slane %v11110_v8, 2  ;;  %v11112_v11 = vpop.f32.mrb[86].mxu1 }
0x2876   :  { %v11121_v12 = vadd.f32 %v11117_v7, %v10872_v9  ;;  %v11113_v14 = vpop.f32.mrb[87].mxu1  ;;  %v11376_v7 = vld [vmem:[#allocation2 + $0x10] sm:$0xc]  ;;  %v11377_v11 = vld [vmem:[#allocation2 + $0x18] sm:$0xc] }
0x2877   :  { %v11122_v15 = vadd.f32 %v11118_v10, %v10873_v13 }
0x2878   :  { %19769 = vtanh.f32 %v11121_v12 }
0x2879   :  { %19771 = vtanh.f32 %v11122_v15 }
0x2882   :  { %v19770_v16 = vpop.eup %19769 }
0x2883   :  { %v19772_v17 = vpop.eup %19771  ;;  %11125 = vst [vmem:[#allocation2] sm:$0xc0] %v19770_v16  ;;  %v11129_v18 = vpack.c.bf16 %v19770_v16, %v19770_v16 }
0x2884   :  { %11126 = vst [vmem:[#allocation2 + $0x8] sm:$0xc0] %v19772_v17  ;;  %v11130_v19 = vpack.c.bf16 %v19772_v17, %v19772_v17 }
0x2885   :  { %v11165_v41 = vrot.slane %v11129_v18, 3 }
0x2886   :  { %v11166_v20 = vrot.slane %v11130_v19, 3 }
0x2888   :  { %11361 = vmatprep.mubr.bf16.mxu0 %v11166_v20  ;;  %v19293_v20 = vld [vmem:[#allocation3 + $0x500] ss:$8 sps:$4 sm:$0xff]  }
0x2889   :  { %11362 = vmatmul.mubr.bf16.vlgmr.msra.gmra.mrb[88].mxu0 %v11165_v41  ;;  %v19295_v41 = vld [vmem:[#allocation3 + $0x504] ss:$8 sps:$4 sm:$0xff]  }
0x288a   :  { %11828 = vmatpush1.bf16.msra.mxu0 %v19245_v36 }
0x288b   :  { %11829 = vmatprep.subr.bf16.mxu0 %v19250_v52 }
0x288e   :  { %11830 = vmatpush1.bf16.msra.mxu0 %v19248_v58 }
0x288f   :  { %11831 = vmatprep.subr.bf16.mxu0 %v19253_v59 }
0x2892   :  { %11832 = vmatpush1.bf16.msra.mxu0 %v19251_v60 }
0x2893   :  { %11833 = vmatprep.subr.bf16.mxu0 %v19256_v50 }
0x2896   :  { %11834 = vmatpush1.bf16.msra.mxu0 %v19254_v51 }
0x2897   :  { %11835 = vmatprep.subr.bf16.mxu0 %v19259_v42 }
0x289a   :  { %11836 = vmatpush1.bf16.msra.mxu0 %v19257_v43 }
0x289b   :  { %11837 = vmatprep.subr.bf16.mxu0 %v19262_v5 }
0x289e   :  { %11838 = vmatpush1.bf16.msra.mxu0 %v19260_v44 }
0x289f   :  { %11839 = vmatprep.subr.bf16.mxu0 %v19265_v45 }
0x28a2   :  { %11840 = vmatpush1.bf16.msra.mxu0 %v19263_v46 }
0x28a3   :  { %11841 = vmatprep.subr.bf16.mxu0 %v19268_v49 }
0x28a6   :  { %11842 = vmatpush1.bf16.msra.mxu0 %v19266_v4 }
0x28a7   :  { %11843 = vmatprep.subr.bf16.mxu0 %v19271_v23 }
0x28aa   :  { %11844 = vmatpush1.bf16.msra.mxu0 %v19269_v24 }
0x28ab   :  { %11845 = vmatprep.subr.bf16.mxu0 %v19274_v25 }
0x28ae   :  { %11846 = vmatpush1.bf16.msra.mxu0 %v19272_v26 }
0x28af   :  { %11847 = vmatprep.subr.bf16.mxu0 %v19277_v3 }
0x28b2   :  { %11848 = vmatpush1.bf16.msra.mxu0 %v19275_v63 }
0x28b3   :  { %11849 = vmatprep.subr.bf16.mxu0 %v19280_v30 }
0x28b6   :  { %11850 = vmatpush1.bf16.msra.mxu0 %v19278_v31 }
0x28b7   :  { %11851 = vmatprep.subr.bf16.mxu0 %v19283_v34 }
0x28ba   :  { %11852 = vmatpush1.bf16.msra.mxu0 %v19281_v35 }
0x28bb   :  { %11853 = vmatprep.subr.bf16.mxu0 %v19286_v61 }
0x28be   :  { %11854 = vmatpush1.bf16.msra.mxu0 %v19284_v62 }
0x28bf   :  { %11855 = vmatprep.subr.bf16.mxu0 %v19289_v53 }
0x28c2   :  { %11856 = vmatpush1.bf16.msra.mxu0 %v19287_v54 }
0x28c3   :  { %11857 = vmatprep.subr.bf16.mxu0 %v19292_v28 }
0x28c6   :  { %11858 = vmatpush1.bf16.msra.mxu0 %v19290_v27 }
0x28c7   :  { %12347 = vmatprep.subr.bf16.mxu0 %v19295_v41  ;;  %v21757_v41 = vld [vmem:[#allocation5 + $0x570] ss:$8 sps:$4 sm:$0xff]  }
0x295c   :  { %v11363_v32 = vpop.f32.mrb[88].mxu0 }
0x295d   :  { %v11370_v33 = vadd.f32 %v11363_v32, %v11127_v0  ;;  %v11365_v57 = vpop.f32.mrb[89].mxu0  ;;  %v11626_v32 = vld [vmem:[#allocation2 + $0x18] sm:$0x30] }
0x295e   :  { %v11371_v37 = vadd.f32 %v11365_v57, %v11128_v2  ;;  %v11367_v38 = vpop.f32.mrb[90].mxu0 }
0x295f   :  { %19773 = vtanh.f32 %v11370_v33  ;;  %v11368_v6 = vpop.f32.mrb[91].mxu0 }
0x2960   :  { %19775 = vtanh.f32 %v11371_v37 }
0x2969   :  { %v19774_v39 = vpop.eup %19773 }
0x296a   :  { %v19776_v40 = vpop.eup %19775  ;;  %11374 = vst [vmem:[#allocation2 + $0x10] sm:$0x3] %v19774_v39  ;;  %v11378_v56 = vpack.c.bf16 %v19774_v39, %v19774_v39 }
0x296b   :  { %11375 = vst [vmem:[#allocation2 + $0x18] sm:$0x3] %v19776_v40  ;;  %v11379_v55 = vpack.c.bf16 %v19776_v40, %v19776_v40 }
0x296d   :  { %11604 = vmatprep.mubr.bf16.mxu1 %v11379_v55  ;;  %v19322_v55 = vld [vmem:[#allocation3 + $0x594] ss:$8 sps:$4 sm:$0xff]  }
0x296e   :  { %11605 = vmatmul.mubr.bf16.vlgmr.msra.gmra.mrb[88].mxu1 %v11378_v56  ;;  %v19320_v56 = vld [vmem:[#allocation3 + $0x590] ss:$8 sps:$4 sm:$0xff]  }
0x296f   :  { %12083 = vmatpush1.bf16.msra.mxu1 %v19245_v36  ;;  %v19298_v36 = vld [vmem:[#allocation3 + $0x514] ss:$8 sps:$4 sm:$0xff]  }
0x2970   :  { %12084 = vmatprep.subr.bf16.mxu1 %v19250_v52  ;;  %v19301_v52 = vld [vmem:[#allocation3 + $0x524] ss:$8 sps:$4 sm:$0xff]  }
0x2973   :  { %12085 = vmatpush1.bf16.msra.mxu1 %v19248_v58  ;;  %v19299_v58 = vld [vmem:[#allocation3 + $0x520] ss:$8 sps:$4 sm:$0xff]  }
0x2974   :  { %12086 = vmatprep.subr.bf16.mxu1 %v19253_v59  ;;  %v19304_v59 = vld [vmem:[#allocation3 + $0x534] ss:$8 sps:$4 sm:$0xff]  }
0x2977   :  { %12087 = vmatpush1.bf16.msra.mxu1 %v19251_v60  ;;  %v19302_v60 = vld [vmem:[#allocation3 + $0x530] ss:$8 sps:$4 sm:$0xff]  }
0x2978   :  { %12088 = vmatprep.subr.bf16.mxu1 %v19256_v50  ;;  %v19307_v50 = vld [vmem:[#allocation3 + $0x544] ss:$8 sps:$4 sm:$0xff]  }
0x297b   :  { %12089 = vmatpush1.bf16.msra.mxu1 %v19254_v51  ;;  %v19305_v51 = vld [vmem:[#allocation3 + $0x540] ss:$8 sps:$4 sm:$0xff]  }
0x297c   :  { %12090 = vmatprep.subr.bf16.mxu1 %v19259_v42  ;;  %v19310_v42 = vld [vmem:[#allocation3 + $0x554] ss:$8 sps:$4 sm:$0xff]  }
0x297f   :  { %12091 = vmatpush1.bf16.msra.mxu1 %v19257_v43  ;;  %v19308_v43 = vld [vmem:[#allocation3 + $0x550] ss:$8 sps:$4 sm:$0xff]  }
0x2980   :  { %12092 = vmatprep.subr.bf16.mxu1 %v19262_v5  ;;  %v19313_v5 = vld [vmem:[#allocation3 + $0x564] ss:$8 sps:$4 sm:$0xff]  }
0x2983   :  { %12093 = vmatpush1.bf16.msra.mxu1 %v19260_v44  ;;  %v19311_v44 = vld [vmem:[#allocation3 + $0x560] ss:$8 sps:$4 sm:$0xff]  }
0x2984   :  { %12094 = vmatprep.subr.bf16.mxu1 %v19265_v45  ;;  %v19316_v45 = vld [vmem:[#allocation3 + $0x574] ss:$8 sps:$4 sm:$0xff]  }
0x2987   :  { %12095 = vmatpush1.bf16.msra.mxu1 %v19263_v46  ;;  %v19314_v46 = vld [vmem:[#allocation3 + $0x570] ss:$8 sps:$4 sm:$0xff]  }
0x2988   :  { %12096 = vmatprep.subr.bf16.mxu1 %v19268_v49  ;;  %v19319_v49 = vld [vmem:[#allocation3 + $0x584] ss:$8 sps:$4 sm:$0xff]  }
0x298b   :  { %12097 = vmatpush1.bf16.msra.mxu1 %v19266_v4  ;;  %v19317_v4 = vld [vmem:[#allocation3 + $0x580] ss:$8 sps:$4 sm:$0xff]  }
0x298c   :  { %12098 = vmatprep.subr.bf16.mxu1 %v19271_v23 }
0x298f   :  { %12099 = vmatpush1.bf16.msra.mxu1 %v19269_v24 }
0x2990   :  { %12100 = vmatprep.subr.bf16.mxu1 %v19274_v25 }
0x2993   :  { %12101 = vmatpush1.bf16.msra.mxu1 %v19272_v26  ;;  %v11625_v26 = vld [vmem:[#allocation2 + $0x10] sm:$0x30] }
0x2994   :  { %12102 = vmatprep.subr.bf16.mxu1 %v19277_v3 }
0x2997   :  { %12103 = vmatpush1.bf16.msra.mxu1 %v19275_v63 }
0x2998   :  { %12104 = vmatprep.subr.bf16.mxu1 %v19280_v30  ;;  %v19325_v30 = vld [vmem:[#allocation3 + $0x5a4] ss:$8 sps:$4 sm:$0xff]  }
0x299b   :  { %12105 = vmatpush1.bf16.msra.mxu1 %v19278_v31  ;;  %v19323_v31 = vld [vmem:[#allocation3 + $0x5a0] ss:$8 sps:$4 sm:$0xff]  }
0x299c   :  { %12106 = vmatprep.subr.bf16.mxu1 %v19283_v34  ;;  %v19328_v34 = vld [vmem:[#allocation3 + $0x5b4] ss:$8 sps:$4 sm:$0xff]  }
0x299f   :  { %12107 = vmatpush1.bf16.msra.mxu1 %v19281_v35  ;;  %v19326_v35 = vld [vmem:[#allocation3 + $0x5b0] ss:$8 sps:$4 sm:$0xff]  }
0x29a0   :  { %12108 = vmatprep.subr.bf16.mxu1 %v19286_v61  ;;  %v19331_v61 = vld [vmem:[#allocation3 + $0x5c4] ss:$8 sps:$4 sm:$0xff]  }
0x29a3   :  { %12109 = vmatpush1.bf16.msra.mxu1 %v19284_v62  ;;  %v19329_v62 = vld [vmem:[#allocation3 + $0x5c0] ss:$8 sps:$4 sm:$0xff]  }
0x29a4   :  { %12110 = vmatprep.subr.bf16.mxu1 %v19289_v53  ;;  %v19334_v53 = vld [vmem:[#allocation3 + $0x5d4] ss:$8 sps:$4 sm:$0xff]  }
0x29a7   :  { %12111 = vmatpush1.bf16.msra.mxu1 %v19287_v54  ;;  %v19332_v54 = vld [vmem:[#allocation3 + $0x5d0] ss:$8 sps:$4 sm:$0xff]  }
0x29a8   :  { %12112 = vmatprep.subr.bf16.mxu1 %v19292_v28  ;;  %v19335_v28 = vld [vmem:[#allocation3 + $0x5e0] ss:$8 sps:$4 sm:$0xff]  }
0x29ab   :  { %12113 = vmatpush1.bf16.msra.mxu1 %v19290_v27  ;;  %v19337_v27 = vld [vmem:[#allocation3 + $0x5e4] ss:$8 sps:$4 sm:$0xff]  }
0x2a41   :  { %v11606_v21 = vpop.f32.mrb[88].mxu1 }
0x2a42   :  { %v11615_v22 = vrot.slane %v11606_v21, 6  ;;  %v11608_v1 = vpop.f32.mrb[89].mxu1  ;;  %v19340_v21 = vld [vmem:[#allocation3 + $0x5f4] ss:$8 sps:$4 sm:$0xff]  }
0x2a43   :  { %v11616_v8 = vrot.slane %v11608_v1, 6  ;;  %v11610_v9 = vpop.f32.mrb[90].mxu1  ;;  %v21712_v1 = vld [vmem:[#allocation5 + $0x500] ss:$8 sps:$4 sm:$0xff]  }
0x2a44   :  { %v11619_v10 = vadd.f32 %v11615_v22, %v11376_v7  ;;  %v11611_v12 = vpop.f32.mrb[91].mxu1  ;;  %v19338_v22 = vld [vmem:[#allocation3 + $0x5f0] ss:$8 sps:$4 sm:$0xff]   ;;  %v21714_v7 = vld [vmem:[#allocation5 + $0x504] ss:$8 sps:$4 sm:$0xff]  }
0x2a45   :  { %v11620_v13 = vadd.f32 %v11616_v8, %v11377_v11  ;;  %v21716_v8 = vld [vmem:[#allocation5 + $0x514] ss:$8 sps:$4 sm:$0xff]   ;;  %12597 = vmatprep.subr.bf16.mxu1 %v21714_v7  ;;  %v21721_v9 = vld [vmem:[#allocation5 + $0x510] ss:$8 sps:$4 sm:$0xff]   ;;  %v21727_v11 = vld [vmem:[#allocation5 + $0x520] ss:$8 sps:$4 sm:$0xff]  }
0x2a46   :  { %19777 = vtanh.f32 %v11619_v10  ;;  %v21724_v10 = vld [vmem:[#allocation5 + $0x524] ss:$8 sps:$4 sm:$0xff]   ;;  %v21730_v12 = vld [vmem:[#allocation5 + $0x534] ss:$8 sps:$4 sm:$0xff]  }
0x2a47   :  { %19779 = vtanh.f32 %v11620_v13  ;;  %v21733_v13 = vld [vmem:[#allocation5 + $0x530] ss:$8 sps:$4 sm:$0xff]  }
0x2a50   :  { %v19778_v14 = vpop.eup %19777 }
0x2a51   :  { %v19780_v15 = vpop.eup %19779  ;;  %11623 = vst [vmem:[#allocation2 + $0x10] sm:$0xc] %v19778_v14  ;;  %v11627_v16 = vpack.c.bf16 %v19778_v14, %v19778_v14  ;;  %v21736_v14 = vld [vmem:[#allocation5 + $0x544] ss:$8 sps:$4 sm:$0xff]  }
0x2a52   :  { %11624 = vst [vmem:[#allocation2 + $0x18] sm:$0xc] %v19780_v15  ;;  %v11628_v17 = vpack.c.bf16 %v19780_v15, %v19780_v15  ;;  %v21739_v15 = vld [vmem:[#allocation5 + $0x540] ss:$8 sps:$4 sm:$0xff]  }
0x2a53   :  { %v11663_v19 = vrot.slane %v11627_v16, 1  ;;  %v21742_v16 = vld [vmem:[#allocation5 + $0x554] ss:$8 sps:$4 sm:$0xff]  }
0x2a54   :  { %v11664_v18 = vrot.slane %v11628_v17, 1  ;;  %v21745_v17 = vld [vmem:[#allocation5 + $0x550] ss:$8 sps:$4 sm:$0xff]  }
0x2a56   :  { %11859 = vmatprep.mubr.bf16.mxu0 %v11664_v18  ;;  %v21748_v18 = vld [vmem:[#allocation5 + $0x564] ss:$8 sps:$4 sm:$0xff]  }
0x2a57   :  { %11860 = vmatmul.mubr.bf16.vlgmr.msra.gmra.mrb[92].mxu0 %v11663_v19  ;;  %v21751_v19 = vld [vmem:[#allocation5 + $0x560] ss:$8 sps:$4 sm:$0xff]  }
0x2a58   :  { %12348 = vmatpush1.bf16.msra.mxu0 %v19293_v20  ;;  %v21754_v20 = vld [vmem:[#allocation5 + $0x574] ss:$8 sps:$4 sm:$0xff]  }
0x2a59   :  { %12349 = vmatprep.subr.bf16.mxu0 %v19298_v36  ;;  %v21760_v36 = vld [vmem:[#allocation5 + $0x584] ss:$8 sps:$4 sm:$0xff]  }
0x2a5c   :  { %12350 = vmatpush1.bf16.msra.mxu0 %v19296_v29  ;;  %v21763_v29 = vld [vmem:[#allocation5 + $0x580] ss:$8 sps:$4 sm:$0xff]  }
0x2a5d   :  { %12351 = vmatprep.subr.bf16.mxu0 %v19301_v52  ;;  %v21766_v52 = vld [vmem:[#allocation5 + $0x594] ss:$8 sps:$4 sm:$0xff]  }
0x2a60   :  { %12352 = vmatpush1.bf16.msra.mxu0 %v19299_v58  ;;  %v21769_v58 = vld [vmem:[#allocation5 + $0x590] ss:$8 sps:$4 sm:$0xff]  }
0x2a61   :  { %12353 = vmatprep.subr.bf16.mxu0 %v19304_v59 }
0x2a64   :  { %12354 = vmatpush1.bf16.msra.mxu0 %v19302_v60 }
0x2a65   :  { %12355 = vmatprep.subr.bf16.mxu0 %v19307_v50 }
0x2a68   :  { %12356 = vmatpush1.bf16.msra.mxu0 %v19305_v51  ;;  %v11880_v51 = vld [vmem:[#allocation2 + $0x10] sm:$0xc0] }
0x2a69   :  { %12357 = vmatprep.subr.bf16.mxu0 %v19310_v42 }
0x2a6c   :  { %12358 = vmatpush1.bf16.msra.mxu0 %v19308_v43 }
0x2a6d   :  { %12359 = vmatprep.subr.bf16.mxu0 %v19313_v5 }
0x2a70   :  { %12360 = vmatpush1.bf16.msra.mxu0 %v19311_v44  ;;  %v11881_v44 = vld [vmem:[#allocation2 + $0x18] sm:$0xc0] }
0x2a71   :  { %12361 = vmatprep.subr.bf16.mxu0 %v19316_v45 }
0x2a74   :  { %12362 = vmatpush1.bf16.msra.mxu0 %v19314_v46 }
0x2a75   :  { %12363 = vmatprep.subr.bf16.mxu0 %v19319_v49 }
0x2a78   :  { %12364 = vmatpush1.bf16.msra.mxu0 %v19317_v4 }
0x2a79   :  { %12365 = vmatprep.subr.bf16.mxu0 %v19322_v55  ;;  %v21829_v55 = vld [vmem:[#allocation5 + $0x5f4] ss:$8 sps:$4 sm:$0xff]  }
0x2a7c   :  { %12366 = vmatpush1.bf16.msra.mxu0 %v19320_v56  ;;  %v21833_v56 = vld [vmem:[#allocation5 + $0x5f0] ss:$8 sps:$4 sm:$0xff]  }
0x2a7d   :  { %12367 = vmatprep.subr.bf16.mxu0 %v19325_v30  ;;  %v12175_v30 = vld [vmem:[#allocation7 + $0xa] sm:$0x3] }
0x2a80   :  { %12368 = vmatpush1.bf16.msra.mxu0 %v19323_v31  ;;  %v12180_v31 = vrot.slane %v12175_v30, %v20229_v47 }
0x2a81   :  { %12369 = vmatprep.subr.bf16.mxu0 %v19328_v34  ;;  %v12184_v34 = vrot.slane %v12175_v30, %v20231_v48 }
0x2a84   :  { %12370 = vmatpush1.bf16.msra.mxu0 %v19326_v35 }
0x2a85   :  { %12371 = vmatprep.subr.bf16.mxu0 %v19331_v61 }
0x2a88   :  { %12372 = vmatpush1.bf16.msra.mxu0 %v19329_v62 }
0x2a89   :  { %12373 = vmatprep.subr.bf16.mxu0 %v19334_v53 }
0x2a8c   :  { %12374 = vmatpush1.bf16.msra.mxu0 %v19332_v54 }
0x2a8d   :  { %12375 = vmatprep.subr.bf16.mxu0 %v19337_v27 }
0x2a90   :  { %12376 = vmatpush1.bf16.msra.mxu0 %v19335_v28 }
0x2a91   :  { %12377 = vmatprep.subr.bf16.mxu0 %v19340_v21 }
0x2a94   :  { %12378 = vmatpush1.bf16.msra.mxu0 %v19338_v22 }
0x2a95   :  { %12852 = vmatprep.subr.bf16.mxu0 %v21714_v7 }
0x2b2a   :  { %v11861_v23 = vpop.f32.mrb[92].mxu0 }
0x2b2b   :  { %v11870_v24 = vrot.slane %v11861_v23, 4  ;;  %v11863_v25 = vpop.f32.mrb[93].mxu0 }
0x2b2c   :  { %v11871_v3 = vrot.slane %v11863_v25, 4  ;;  %v11865_v63 = vpop.f32.mrb[94].mxu0 }
0x2b2d   :  { %v11874_v0 = vadd.f32 %v11870_v24, %v11625_v26  ;;  %v11866_v33 = vpop.f32.mrb[95].mxu0  ;;  %v12136_v24 = vld [vmem:[#allocation2 + $0x8] sm:$0xff] }
0x2b2e   :  { %v11875_v2 = vadd.f32 %v11871_v3, %v11626_v32  ;;  %v12135_v3 = vld [vmem:[#allocation2] sm:$0xff]  ;;  %v21800_v33 = vld [vmem:[#allocation5 + $0x5b0] ss:$8 sps:$4 sm:$0xff]  }
0x2b2f   :  { %19781 = vtanh.f32 %v11874_v0  ;;  %v21792_v0 = vld [vmem:[#allocation5 + $0x5a4] ss:$8 sps:$4 sm:$0xff]   ;;  %v21794_v32 = vld [vmem:[#allocation5 + $0x5a0] ss:$8 sps:$4 sm:$0xff]  }
0x2b30   :  { %19783 = vtanh.f32 %v11875_v2  ;;  %v21802_v2 = vld [vmem:[#allocation5 + $0x5b4] ss:$8 sps:$4 sm:$0xff]  }
0x2b39   :  { %v19782_v57 = vpop.eup %19781 }
0x2b3a   :  { %v19784_v37 = vpop.eup %19783  ;;  %11878 = vst [vmem:[#allocation2 + $0x10] sm:$0x30] %v19782_v57  ;;  %v11882_v38 = vpack.c.bf16 %v19782_v57, %v19782_v57  ;;  %v21804_v57 = vld [vmem:[#allocation5 + $0x5c4] ss:$8 sps:$4 sm:$0xff]  }
0x2b3b   :  { %11879 = vst [vmem:[#allocation2 + $0x18] sm:$0x30] %v19784_v37  ;;  %v11883_v6 = vpack.c.bf16 %v19784_v37, %v19784_v37  ;;  %v21809_v37 = vld [vmem:[#allocation5 + $0x5c0] ss:$8 sps:$4 sm:$0xff]  }
0x2b3c   :  { %v11918_v40 = vrot.slane %v11882_v38, 2  ;;  %v21813_v38 = vld [vmem:[#allocation5 + $0x5d4] ss:$8 sps:$4 sm:$0xff]  }
0x2b3d   :  { %v11919_v39 = vrot.slane %v11883_v6, 2  ;;  %v21817_v6 = vld [vmem:[#allocation5 + $0x5d0] ss:$8 sps:$4 sm:$0xff]  }
0x2b3f   :  { %12114 = vmatprep.mubr.bf16.mxu1 %v11919_v39  ;;  %v21821_v39 = vld [vmem:[#allocation5 + $0x5e4] ss:$8 sps:$4 sm:$0xff]  }
0x2b40   :  { %12115 = vmatmul.mubr.bf16.vlgmr.msra.gmra.mrb[92].mxu1 %v11918_v40  ;;  %v21825_v40 = vld [vmem:[#allocation5 + $0x5e0] ss:$8 sps:$4 sm:$0xff]  }
0x2b41   :  { %12598 = vmatpush1.bf16.msra.mxu1 %v21712_v1 }
0x2b42   :  { %12599 = vmatprep.subr.bf16.mxu1 %v21716_v8 }
0x2b45   :  { %12600 = vmatpush1.bf16.msra.mxu1 %v21721_v9 }
0x2b46   :  { %12601 = vmatprep.subr.bf16.mxu1 %v21724_v10 }
0x2b49   :  { %12602 = vmatpush1.bf16.msra.mxu1 %v21727_v11 }
0x2b4a   :  { %12603 = vmatprep.subr.bf16.mxu1 %v21730_v12 }
0x2b4d   :  { %12604 = vmatpush1.bf16.msra.mxu1 %v21733_v13 }
0x2b4e   :  { %12605 = vmatprep.subr.bf16.mxu1 %v21736_v14 }
0x2b51   :  { %12606 = vmatpush1.bf16.msra.mxu1 %v21739_v15 }
0x2b52   :  { %12607 = vmatprep.subr.bf16.mxu1 %v21742_v16 }
0x2b55   :  { %12608 = vmatpush1.bf16.msra.mxu1 %v21745_v17 }
0x2b56   :  { %12609 = vmatprep.subr.bf16.mxu1 %v21748_v18 }
0x2b59   :  { %12610 = vmatpush1.bf16.msra.mxu1 %v21751_v19 }
0x2b5a   :  { %12611 = vmatprep.subr.bf16.mxu1 %v21754_v20 }
0x2b5d   :  { %12612 = vmatpush1.bf16.msra.mxu1 %v21757_v41 }
0x2b5e   :  { %12613 = vmatprep.subr.bf16.mxu1 %v21760_v36 }
0x2b61   :  { %12614 = vmatpush1.bf16.msra.mxu1 %v21763_v29 }
0x2b62   :  { %12615 = vmatprep.subr.bf16.mxu1 %v21766_v52 }
0x2b65   :  { %12616 = vmatpush1.bf16.msra.mxu1 %v21769_v58 }
0x2b66   :  { %12617 = vmatprep.subr.bf16.mxu1 %v21792_v0 }
0x2b69   :  { %12618 = vmatpush1.bf16.msra.mxu1 %v21794_v32 }
0x2b6a   :  { %12619 = vmatprep.subr.bf16.mxu1 %v21802_v2 }
0x2b6d   :  { %12620 = vmatpush1.bf16.msra.mxu1 %v21800_v33 }
0x2b6e   :  { %12621 = vmatprep.subr.bf16.mxu1 %v21804_v57 }
0x2b71   :  { %12622 = vmatpush1.bf16.msra.mxu1 %v21809_v37 }
0x2b72   :  { %12623 = vmatprep.subr.bf16.mxu1 %v21813_v38 }
0x2b75   :  { %12624 = vmatpush1.bf16.msra.mxu1 %v21817_v6 }
0x2b76   :  { %12625 = vmatprep.subr.bf16.mxu1 %v21821_v39 }
0x2b79   :  { %12626 = vmatpush1.bf16.msra.mxu1 %v21825_v40 }
0x2b7a   :  { %12627 = vmatprep.subr.bf16.mxu1 %v21829_v55 }
0x2b7d   :  { %12628 = vmatpush1.bf16.msra.mxu1 %v21833_v56 }
0x2b7e   :  { %13107 = vmatprep.subr.bf16.mxu1 %v21714_v7 }
0x2c13   :  { %v12116_v59 = vpop.f32.mrb[92].mxu1 }
0x2c14   :  { %v12125_v60 = vrot.slane %v12116_v59, 2  ;;  %v12118_v50 = vpop.f32.mrb[93].mxu1 }
0x2c15   :  { %v12126_v42 = vrot.slane %v12118_v50, 2  ;;  %v12120_v43 = vpop.f32.mrb[94].mxu1 }
0x2c16   :  { %v12129_v5 = vadd.f32 %v12125_v60, %v11880_v51  ;;  %v12121_v45 = vpop.f32.mrb[95].mxu1 }
0x2c17   :  { %v12130_v46 = vadd.f32 %v12126_v42, %v11881_v44 }
0x2c18   :  { %19785 = vtanh.f32 %v12129_v5 }
0x2c19   :  { %19787 = vtanh.f32 %v12130_v46 }
0x2c22   :  { %v19786_v49 = vpop.eup %19785 }
0x2c23   :  { %v19788_v4 = vpop.eup %19787  ;;  %12133 = vst [vmem:[#allocation2 + $0x10] sm:$0xc0] %v19786_v49 }
0x2c24   :  { %12134 = vst [vmem:[#allocation2 + $0x18] sm:$0xc0] %v19788_v4 }
0x2c2a   :  { %v12137_v23 = vld [vmem:[#allocation2 + $0x10] sm:$0xff] }
0x2c2b   :  { %v12138_v25 = vld [vmem:[#allocation2 + $0x18] sm:$0xff]  ;;  %v12139_v63 = vpack.c.bf16 %v12137_v23, %v12135_v3 }
0x2c2c   :  { %v12140_v26 = vpack.c.bf16 %v12138_v25, %v12136_v24 }
0x2c2e   :  { %12379 = vmatprep.mubr.bf16.mxu0 %v12140_v26 }
0x2c2f   :  { %12380 = vmatmul.mubr.bf16.vlgmr.msra.gmra.mrb[96].mxu0 %v12139_v63 }
0x2c30   :  { %12853 = vmatpush1.bf16.msra.mxu0 %v21712_v1 }
0x2c31   :  { %12854 = vmatprep.subr.bf16.mxu0 %v21716_v8 }
0x2c34   :  { %12855 = vmatpush1.bf16.msra.mxu0 %v21721_v9 }
0x2c35   :  { %12856 = vmatprep.subr.bf16.mxu0 %v21724_v10 }
0x2c38   :  { %12857 = vmatpush1.bf16.msra.mxu0 %v21727_v11 }
0x2c39   :  { %12858 = vmatprep.subr.bf16.mxu0 %v21730_v12 }
0x2c3c   :  { %12859 = vmatpush1.bf16.msra.mxu0 %v21733_v13 }
0x2c3d   :  { %12860 = vmatprep.subr.bf16.mxu0 %v21736_v14 }
0x2c40   :  { %12861 = vmatpush1.bf16.msra.mxu0 %v21739_v15 }
0x2c41   :  { %12862 = vmatprep.subr.bf16.mxu0 %v21742_v16 }
0x2c44   :  { %12863 = vmatpush1.bf16.msra.mxu0 %v21745_v17 }
0x2c45   :  { %12864 = vmatprep.subr.bf16.mxu0 %v21748_v18 }
0x2c48   :  { %12865 = vmatpush1.bf16.msra.mxu0 %v21751_v19 }
0x2c49   :  { %12866 = vmatprep.subr.bf16.mxu0 %v21754_v20 }
0x2c4c   :  { %12867 = vmatpush1.bf16.msra.mxu0 %v21757_v41 }
0x2c4d   :  { %12868 = vmatprep.subr.bf16.mxu0 %v21760_v36 }
0x2c50   :  { %12869 = vmatpush1.bf16.msra.mxu0 %v21763_v29 }
0x2c51   :  { %12870 = vmatprep.subr.bf16.mxu0 %v21766_v52 }
0x2c54   :  { %12871 = vmatpush1.bf16.msra.mxu0 %v21769_v58 }
0x2c55   :  { %12872 = vmatprep.subr.bf16.mxu0 %v21792_v0 }
0x2c58   :  { %12873 = vmatpush1.bf16.msra.mxu0 %v21794_v32 }
0x2c59   :  { %12874 = vmatprep.subr.bf16.mxu0 %v21802_v2 }
0x2c5c   :  { %12875 = vmatpush1.bf16.msra.mxu0 %v21800_v33 }
0x2c5d   :  { %12876 = vmatprep.subr.bf16.mxu0 %v21804_v57 }
0x2c60   :  { %12877 = vmatpush1.bf16.msra.mxu0 %v21809_v37 }
0x2c61   :  { %12878 = vmatprep.subr.bf16.mxu0 %v21813_v38 }
0x2c64   :  { %12879 = vmatpush1.bf16.msra.mxu0 %v21817_v6 }
0x2c65   :  { %12880 = vmatprep.subr.bf16.mxu0 %v21821_v39 }
0x2c68   :  { %12881 = vmatpush1.bf16.msra.mxu0 %v21825_v40 }
0x2c69   :  { %12882 = vmatprep.subr.bf16.mxu0 %v21829_v55 }
0x2c6c   :  { %12883 = vmatpush1.bf16.msra.mxu0 %v21833_v56 }
0x2c6d   :  { %13362 = vmatprep.subr.bf16.mxu0 %v21714_v7 }
0x2d02   :  { %v12381_v35 = vpop.f32.mrb[96].mxu0 }
0x2d03   :  { %v12382_v61 = vadd.f32 %v12381_v35, %v12180_v31  ;;  %v12383_v62 = vpop.f32.mrb[97].mxu0 }
0x2d04   :  { %v12384_v53 = vadd.f32 %v12383_v62, %v12184_v34  ;;  %v12385_v54 = vpop.f32.mrb[98].mxu0 }
0x2d05   :  { %12390 = vst [vmem:[#allocation2] sm:$0xff] %v12382_v61  ;;  %v12386_v27 = vadd.f32 %v12385_v54, %v12180_v31  ;;  %v12387_v28 = vpop.f32.mrb[99].mxu0 }
0x2d06   :  { %12391 = vst [vmem:[#allocation2 + $0x8] sm:$0xff] %v12384_v53  ;;  %v12388_v21 = vadd.f32 %v12387_v28, %v12184_v34 }
0x2d07   :  { %12392 = vst [vmem:[#allocation2 + $0x10] sm:$0xff] %v12386_v27 }
0x2d08   :  { %12393 = vst [vmem:[#allocation2 + $0x18] sm:$0xff] %v12388_v21 }
0x2d0c   :  { %v12394_v22 = vld [vmem:[#allocation2] sm:$0x3]  ;;  %v12400_v45 = vld [vmem:[#allocation2] sm:$0xc]  ;;  %v12650_v62 = vld [vmem:[#allocation2] sm:$0x30] }
0x2d0d   :  { %v12395_v59 = vld [vmem:[#allocation2 + $0x8] sm:$0x3]  ;;  %19789 = vtanh.f32 %v12394_v22  ;;  %v12401_v23 = vld [vmem:[#allocation2 + $0x8] sm:$0xc]  ;;  %v12651_v28 = vld [vmem:[#allocation2 + $0x8] sm:$0x30] }
0x2d0e   :  { %19791 = vtanh.f32 %v12395_v59 }
0x2d17   :  { %v19790_v60 = vpop.eup %19789 }
0x2d18   :  { %v19792_v50 = vpop.eup %19791  ;;  %12398 = vst [vmem:[#allocation2] sm:$0x3] %v19790_v60  ;;  %v12402_v42 = vpack.c.bf16 %v19790_v60, %v19790_v60 }
0x2d19   :  { %12399 = vst [vmem:[#allocation2 + $0x8] sm:$0x3] %v19792_v50  ;;  %v12403_v51 = vpack.c.bf16 %v19792_v50, %v19792_v50 }
0x2d1b   :  { %12629 = vmatprep.mubr.bf16.mxu1 %v12403_v51 }
0x2d1c   :  { %12630 = vmatmul.mubr.bf16.vlgmr.msra.gmra.mrb[96].mxu1 %v12402_v42 }
0x2d1d   :  { %13108 = vmatpush1.bf16.msra.mxu1 %v21712_v1 }
0x2d1e   :  { %13109 = vmatprep.subr.bf16.mxu1 %v21716_v8 }
0x2d21   :  { %13110 = vmatpush1.bf16.msra.mxu1 %v21721_v9 }
0x2d22   :  { %13111 = vmatprep.subr.bf16.mxu1 %v21724_v10 }
0x2d25   :  { %13112 = vmatpush1.bf16.msra.mxu1 %v21727_v11 }
0x2d26   :  { %13113 = vmatprep.subr.bf16.mxu1 %v21730_v12 }
0x2d29   :  { %13114 = vmatpush1.bf16.msra.mxu1 %v21733_v13 }
0x2d2a   :  { %13115 = vmatprep.subr.bf16.mxu1 %v21736_v14 }
0x2d2d   :  { %13116 = vmatpush1.bf16.msra.mxu1 %v21739_v15 }
0x2d2e   :  { %13117 = vmatprep.subr.bf16.mxu1 %v21742_v16 }
0x2d31   :  { %13118 = vmatpush1.bf16.msra.mxu1 %v21745_v17 }
0x2d32   :  { %13119 = vmatprep.subr.bf16.mxu1 %v21748_v18 }
0x2d35   :  { %13120 = vmatpush1.bf16.msra.mxu1 %v21751_v19 }
0x2d36   :  { %13121 = vmatprep.subr.bf16.mxu1 %v21754_v20 }
0x2d39   :  { %13122 = vmatpush1.bf16.msra.mxu1 %v21757_v41 }
0x2d3a   :  { %13123 = vmatprep.subr.bf16.mxu1 %v21760_v36 }
0x2d3d   :  { %13124 = vmatpush1.bf16.msra.mxu1 %v21763_v29 }
0x2d3e   :  { %13125 = vmatprep.subr.bf16.mxu1 %v21766_v52 }
0x2d41   :  { %13126 = vmatpush1.bf16.msra.mxu1 %v21769_v58 }
0x2d42   :  { %13127 = vmatprep.subr.bf16.mxu1 %v21792_v0 }
0x2d45   :  { %13128 = vmatpush1.bf16.msra.mxu1 %v21794_v32 }
0x2d46   :  { %13129 = vmatprep.subr.bf16.mxu1 %v21802_v2 }
0x2d49   :  { %13130 = vmatpush1.bf16.msra.mxu1 %v21800_v33 }
0x2d4a   :  { %13131 = vmatprep.subr.bf16.mxu1 %v21804_v57 }
0x2d4d   :  { %13132 = vmatpush1.bf16.msra.mxu1 %v21809_v37 }
0x2d4e   :  { %13133 = vmatprep.subr.bf16.mxu1 %v21813_v38 }
0x2d51   :  { %13134 = vmatpush1.bf16.msra.mxu1 %v21817_v6 }
0x2d52   :  { %13135 = vmatprep.subr.bf16.mxu1 %v21821_v39 }
0x2d55   :  { %13136 = vmatpush1.bf16.msra.mxu1 %v21825_v40 }
0x2d56   :  { %13137 = vmatprep.subr.bf16.mxu1 %v21829_v55 }
0x2d59   :  { %13138 = vmatpush1.bf16.msra.mxu1 %v21833_v56 }
0x2d5a   :  { %13605 = vmatprep.subr.bf16.mxu1 %v21714_v7 }
0x2def   :  { %v12631_v43 = vpop.f32.mrb[96].mxu1 }
0x2df0   :  { %v12640_v5 = vrot.slane %v12631_v43, 6  ;;  %v12633_v44 = vpop.f32.mrb[97].mxu1 }
0x2df1   :  { %v12641_v46 = vrot.slane %v12633_v44, 6  ;;  %v12635_v49 = vpop.f32.mrb[98].mxu1  ;;  %v19415_v44 = vld [vmem:[#allocation5 + $0x584] ss:$8 sps:$4 sm:$0xff]  }
0x2df2   :  { %v12644_v4 = vadd.f32 %v12640_v5, %v12400_v45  ;;  %v12636_v24 = vpop.f32.mrb[99].mxu1  ;;  %v19410_v5 = vld [vmem:[#allocation5 + $0x570] ss:$8 sps:$4 sm:$0xff]   ;;  %v19413_v45 = vld [vmem:[#allocation5 + $0x580] ss:$8 sps:$4 sm:$0xff]  }
0x2df3   :  { %v12645_v25 = vadd.f32 %v12641_v46, %v12401_v23  ;;  %v19418_v46 = vld [vmem:[#allocation5 + $0x594] ss:$8 sps:$4 sm:$0xff]   ;;  %v19416_v49 = vld [vmem:[#allocation5 + $0x590] ss:$8 sps:$4 sm:$0xff]   ;;  %v19419_v23 = vld [vmem:[#allocation5 + $0x5a0] ss:$8 sps:$4 sm:$0xff]  }
0x2df4   :  { %19793 = vtanh.f32 %v12644_v4  ;;  %v19421_v4 = vld [vmem:[#allocation5 + $0x5a4] ss:$8 sps:$4 sm:$0xff]   ;;  %v13160_v24 = vld [vmem:[#allocation2 + $0x10] sm:$0x3] }
0x2df5   :  { %19795 = vtanh.f32 %v12645_v25 }
0x2dfe   :  { %v19794_v26 = vpop.eup %19793 }
0x2dff   :  { %v19796_v3 = vpop.eup %19795  ;;  %12648 = vst [vmem:[#allocation2] sm:$0xc] %v19794_v26  ;;  %v12652_v63 = vpack.c.bf16 %v19794_v26, %v19794_v26 }
0x2e00   :  { %12649 = vst [vmem:[#allocation2 + $0x8] sm:$0xc] %v19796_v3  ;;  %v12653_v30 = vpack.c.bf16 %v19796_v3, %v19796_v3  ;;  %v13161_v3 = vld [vmem:[#allocation2 + $0x18] sm:$0x3] }
0x2e01   :  { %v12688_v7 = vrot.slane %v12652_v63, 1 }
0x2e02   :  { %v12689_v31 = vrot.slane %v12653_v30, 1 }
0x2e04   :  { %12884 = vmatprep.mubr.bf16.mxu0 %v12689_v31 }
0x2e05   :  { %12885 = vmatmul.mubr.bf16.vlgmr.msra.gmra.mrb[100].mxu0 %v12688_v7 }
0x2e06   :  { %13363 = vmatpush1.bf16.msra.mxu0 %v21712_v1 }
0x2e07   :  { %13364 = vmatprep.subr.bf16.mxu0 %v21716_v8 }
0x2e0a   :  { %13365 = vmatpush1.bf16.msra.mxu0 %v21721_v9 }
0x2e0b   :  { %13366 = vmatprep.subr.bf16.mxu0 %v21724_v10 }
0x2e0e   :  { %13367 = vmatpush1.bf16.msra.mxu0 %v21727_v11 }
0x2e0f   :  { %13368 = vmatprep.subr.bf16.mxu0 %v21730_v12 }
0x2e12   :  { %13369 = vmatpush1.bf16.msra.mxu0 %v21733_v13 }
0x2e13   :  { %13370 = vmatprep.subr.bf16.mxu0 %v21736_v14 }
0x2e16   :  { %13371 = vmatpush1.bf16.msra.mxu0 %v21739_v15 }
0x2e17   :  { %13372 = vmatprep.subr.bf16.mxu0 %v21742_v16 }
0x2e1a   :  { %13373 = vmatpush1.bf16.msra.mxu0 %v21745_v17 }
0x2e1b   :  { %13374 = vmatprep.subr.bf16.mxu0 %v21748_v18 }
0x2e1e   :  { %13375 = vmatpush1.bf16.msra.mxu0 %v21751_v19 }
0x2e1f   :  { %13376 = vmatprep.subr.bf16.mxu0 %v21754_v20 }
0x2e22   :  { %13377 = vmatpush1.bf16.msra.mxu0 %v21757_v41 }
0x2e23   :  { %13378 = vmatprep.subr.bf16.mxu0 %v21760_v36 }
0x2e26   :  { %13379 = vmatpush1.bf16.msra.mxu0 %v21763_v29 }
0x2e27   :  { %13380 = vmatprep.subr.bf16.mxu0 %v21766_v52 }
0x2e2a   :  { %13381 = vmatpush1.bf16.msra.mxu0 %v21769_v58 }
0x2e2b   :  { %13382 = vmatprep.subr.bf16.mxu0 %v21792_v0 }
0x2e2e   :  { %13383 = vmatpush1.bf16.msra.mxu0 %v21794_v32 }
0x2e2f   :  { %13384 = vmatprep.subr.bf16.mxu0 %v21802_v2 }
0x2e32   :  { %13385 = vmatpush1.bf16.msra.mxu0 %v21800_v33 }
0x2e33   :  { %13386 = vmatprep.subr.bf16.mxu0 %v21804_v57 }
0x2e36   :  { %13387 = vmatpush1.bf16.msra.mxu0 %v21809_v37 }
0x2e37   :  { %13388 = vmatprep.subr.bf16.mxu0 %v21813_v38 }
0x2e3a   :  { %13389 = vmatpush1.bf16.msra.mxu0 %v21817_v6 }
0x2e3b   :  { %13390 = vmatprep.subr.bf16.mxu0 %v21821_v39 }
0x2e3e   :  { %13391 = vmatpush1.bf16.msra.mxu0 %v21825_v40 }
0x2e3f   :  { %13392 = vmatprep.subr.bf16.mxu0 %v21829_v55 }
0x2e42   :  { %13393 = vmatpush1.bf16.msra.mxu0 %v21833_v56 }
0x2ed8   :  { %v12886_v34 = vpop.f32.mrb[100].mxu0 }
0x2ed9   :  { %v12895_v35 = vrot.slane %v12886_v34, 4  ;;  %v12888_v61 = vpop.f32.mrb[101].mxu0 }
0x2eda   :  { %v12896_v53 = vrot.slane %v12888_v61, 4  ;;  %v12890_v54 = vpop.f32.mrb[102].mxu0 }
0x2edb   :  { %v12899_v27 = vadd.f32 %v12895_v35, %v12650_v62  ;;  %v12891_v21 = vpop.f32.mrb[103].mxu0  ;;  %v19422_v54 = vld [vmem:[#allocation5 + $0x5b0] ss:$8 sps:$4 sm:$0xff]  }
0x2edc   :  { %v12900_v22 = vadd.f32 %v12896_v53, %v12651_v28  ;;  %v19424_v53 = vld [vmem:[#allocation5 + $0x5b4] ss:$8 sps:$4 sm:$0xff]   ;;  %v19425_v28 = vld [vmem:[#allocation5 + $0x5c0] ss:$8 sps:$4 sm:$0xff]  }
0x2edd   :  { %19797 = vtanh.f32 %v12899_v27  ;;  %v19427_v27 = vld [vmem:[#allocation5 + $0x5c4] ss:$8 sps:$4 sm:$0xff]   ;;  %v19430_v21 = vld [vmem:[#allocation5 + $0x5d4] ss:$8 sps:$4 sm:$0xff]  }
0x2ede   :  { %19799 = vtanh.f32 %v12900_v22  ;;  %v19428_v22 = vld [vmem:[#allocation5 + $0x5d0] ss:$8 sps:$4 sm:$0xff]  }
0x2ee7   :  { %v19798_v59 = vpop.eup %19797 }
0x2ee8   :  { %v19800_v60 = vpop.eup %19799  ;;  %12903 = vst [vmem:[#allocation2] sm:$0x30] %v19798_v59  ;;  %v12907_v50 = vpack.c.bf16 %v19798_v59, %v19798_v59  ;;  %v19433_v59 = vld [vmem:[#allocation5 + $0x5e4] ss:$8 sps:$4 sm:$0xff]  }
0x2ee9   :  { %12904 = vst [vmem:[#allocation2 + $0x8] sm:$0x30] %v19800_v60  ;;  %v12908_v51 = vpack.c.bf16 %v19800_v60, %v19800_v60  ;;  %v19431_v60 = vld [vmem:[#allocation5 + $0x5e0] ss:$8 sps:$4 sm:$0xff]  }
0x2eea   :  { %v12943_v43 = vrot.slane %v12907_v50, 2  ;;  %v19434_v50 = vld [vmem:[#allocation5 + $0x5f0] ss:$8 sps:$4 sm:$0xff]  }
0x2eeb   :  { %v12944_v42 = vrot.slane %v12908_v51, 2  ;;  %v19436_v51 = vld [vmem:[#allocation5 + $0x5f4] ss:$8 sps:$4 sm:$0xff]  }
0x2eed   :  { %13139 = vmatprep.mubr.bf16.mxu1 %v12944_v42 }
0x2eee   :  { %13140 = vmatmul.mubr.bf16.vlgmr.msra.gmra.mrb[100].mxu1 %v12943_v43 }
0x2eef   :  { %13606 = vmatpush1.bf16.msra.mxu1 %v21712_v1 }
0x2ef0   :  { %13607 = vmatprep.subr.bf16.mxu1 %v21716_v8 }
0x2ef3   :  { %13608 = vmatpush1.bf16.msra.mxu1 %v21721_v9 }
0x2ef4   :  { %13609 = vmatprep.subr.bf16.mxu1 %v21724_v10  ;;  %v12905_v10 = vld [vmem:[#allocation2] sm:$0xc0] }
0x2ef7   :  { %13610 = vmatpush1.bf16.msra.mxu1 %v21727_v11 }
0x2ef8   :  { %13611 = vmatprep.subr.bf16.mxu1 %v21730_v12 }
0x2efb   :  { %13612 = vmatpush1.bf16.msra.mxu1 %v21733_v13 }
0x2efc   :  { %13613 = vmatprep.subr.bf16.mxu1 %v21736_v14  ;;  %v12906_v14 = vld [vmem:[#allocation2 + $0x8] sm:$0xc0] }
0x2eff   :  { %13614 = vmatpush1.bf16.msra.mxu1 %v21739_v15 }
0x2f00   :  { %13615 = vmatprep.subr.bf16.mxu1 %v21742_v16 }
0x2f03   :  { %13616 = vmatpush1.bf16.msra.mxu1 %v21745_v17 }
0x2f04   :  { %13617 = vmatprep.subr.bf16.mxu1 %v21748_v18 }
0x2f07   :  { %13618 = vmatpush1.bf16.msra.mxu1 %v21751_v19 }
0x2f08   :  { %13619 = vmatprep.subr.bf16.mxu1 %v21754_v20 }
0x2f0b   :  { %13620 = vmatpush1.bf16.msra.mxu1 %v21757_v41 }
0x2f0c   :  { %13621 = vmatprep.subr.bf16.mxu1 %v21760_v36 }
0x2f0f   :  { %13622 = vmatpush1.bf16.msra.mxu1 %v21763_v29  ;;  %v19389_v29 = vld [vmem:[#allocation5 + $0x500] ss:$8 sps:$4 sm:$0xff]  }
0x2f10   :  { %13623 = vmatprep.subr.bf16.mxu1 %v21766_v52  ;;  %v19391_v52 = vld [vmem:[#allocation5 + $0x504] ss:$8 sps:$4 sm:$0xff]  }
0x2f11   :  { %13860 = vmatprep.subr.bf16.mxu0 %v19391_v52 }
0x2f13   :  { %13624 = vmatpush1.bf16.msra.mxu1 %v21769_v58  ;;  %v19394_v58 = vld [vmem:[#allocation5 + $0x514] ss:$8 sps:$4 sm:$0xff]  }
0x2f14   :  { %13625 = vmatprep.subr.bf16.mxu1 %v21792_v0  ;;  %v19392_v0 = vld [vmem:[#allocation5 + $0x510] ss:$8 sps:$4 sm:$0xff]  }
0x2f17   :  { %13626 = vmatpush1.bf16.msra.mxu1 %v21794_v32  ;;  %v19397_v32 = vld [vmem:[#allocation5 + $0x524] ss:$8 sps:$4 sm:$0xff]  }
0x2f18   :  { %13627 = vmatprep.subr.bf16.mxu1 %v21802_v2  ;;  %v19400_v2 = vld [vmem:[#allocation5 + $0x534] ss:$8 sps:$4 sm:$0xff]  }
0x2f1b   :  { %13628 = vmatpush1.bf16.msra.mxu1 %v21800_v33  ;;  %v19395_v33 = vld [vmem:[#allocation5 + $0x520] ss:$8 sps:$4 sm:$0xff]  }
0x2f1c   :  { %13629 = vmatprep.subr.bf16.mxu1 %v21804_v57  ;;  %v19398_v57 = vld [vmem:[#allocation5 + $0x530] ss:$8 sps:$4 sm:$0xff]  }
0x2f1f   :  { %13630 = vmatpush1.bf16.msra.mxu1 %v21809_v37  ;;  %v19403_v37 = vld [vmem:[#allocation5 + $0x544] ss:$8 sps:$4 sm:$0xff]  }
0x2f20   :  { %13631 = vmatprep.subr.bf16.mxu1 %v21813_v38  ;;  %v19401_v38 = vld [vmem:[#allocation5 + $0x540] ss:$8 sps:$4 sm:$0xff]  }
0x2f23   :  { %13632 = vmatpush1.bf16.msra.mxu1 %v21817_v6  ;;  %v19406_v6 = vld [vmem:[#allocation5 + $0x554] ss:$8 sps:$4 sm:$0xff]  }
0x2f24   :  { %13633 = vmatprep.subr.bf16.mxu1 %v21821_v39  ;;  %v19404_v39 = vld [vmem:[#allocation5 + $0x550] ss:$8 sps:$4 sm:$0xff]  }
0x2f27   :  { %13634 = vmatpush1.bf16.msra.mxu1 %v21825_v40  ;;  %v19409_v40 = vld [vmem:[#allocation5 + $0x564] ss:$8 sps:$4 sm:$0xff]  }
0x2f28   :  { %13635 = vmatprep.subr.bf16.mxu1 %v21829_v55  ;;  %v19407_v55 = vld [vmem:[#allocation5 + $0x560] ss:$8 sps:$4 sm:$0xff]  }
0x2f2b   :  { %13636 = vmatpush1.bf16.msra.mxu1 %v21833_v56  ;;  %v19412_v56 = vld [vmem:[#allocation5 + $0x574] ss:$8 sps:$4 sm:$0xff]  }
0x2f2c   :  { %14115 = vmatprep.subr.bf16.mxu1 %v19391_v52  ;;  %v19440_v52 = vld [vmem:[#allocation3 + $0x610] ss:$8 sps:$4 sm:$0xff]  }
0x2fc1   :  { %v13141_v1 = vpop.f32.mrb[100].mxu1 }
0x2fc2   :  { %v13150_v8 = vrot.slane %v13141_v1, 2  ;;  %v13143_v9 = vpop.f32.mrb[101].mxu1 }
0x2fc3   :  { %v13151_v11 = vrot.slane %v13143_v9, 2  ;;  %v13145_v12 = vpop.f32.mrb[102].mxu1 }
0x2fc4   :  { %v13154_v13 = vadd.f32 %v13150_v8, %v12905_v10  ;;  %v13146_v15 = vpop.f32.mrb[103].mxu1  ;;  %v13409_v8 = vld [vmem:[#allocation2 + $0x10] sm:$0xc]  ;;  %v13410_v12 = vld [vmem:[#allocation2 + $0x18] sm:$0xc] }
0x2fc5   :  { %v13155_v16 = vadd.f32 %v13151_v11, %v12906_v14 }
0x2fc6   :  { %19801 = vtanh.f32 %v13154_v13 }
0x2fc7   :  { %19803 = vtanh.f32 %v13155_v16 }
0x2fd0   :  { %v19802_v17 = vpop.eup %19801 }
0x2fd1   :  { %v19804_v18 = vpop.eup %19803  ;;  %13158 = vst [vmem:[#allocation2] sm:$0xc0] %v19802_v17  ;;  %v13162_v19 = vpack.c.bf16 %v19802_v17, %v19802_v17 }
0x2fd2   :  { %13159 = vst [vmem:[#allocation2 + $0x8] sm:$0xc0] %v19804_v18  ;;  %v13163_v20 = vpack.c.bf16 %v19804_v18, %v19804_v18 }
0x2fd3   :  { %v13198_v36 = vrot.slane %v13162_v19, 3 }
0x2fd4   :  { %v13199_v41 = vrot.slane %v13163_v20, 3 }
0x2fd6   :  { %13394 = vmatprep.mubr.bf16.mxu0 %v13199_v41  ;;  %v19437_v41 = vld [vmem:[#allocation3 + $0x600] ss:$8 sps:$4 sm:$0xff]  }
0x2fd7   :  { %13395 = vmatmul.mubr.bf16.vlgmr.msra.gmra.mrb[104].mxu0 %v13198_v36  ;;  %v19439_v36 = vld [vmem:[#allocation3 + $0x604] ss:$8 sps:$4 sm:$0xff]  }
0x2fd8   :  { %13861 = vmatpush1.bf16.msra.mxu0 %v19389_v29 }
0x2fd9   :  { %13862 = vmatprep.subr.bf16.mxu0 %v19394_v58 }
0x2fdc   :  { %13863 = vmatpush1.bf16.msra.mxu0 %v19392_v0 }
0x2fdd   :  { %13864 = vmatprep.subr.bf16.mxu0 %v19397_v32 }
0x2fe0   :  { %13865 = vmatpush1.bf16.msra.mxu0 %v19395_v33 }
0x2fe1   :  { %13866 = vmatprep.subr.bf16.mxu0 %v19400_v2 }
0x2fe4   :  { %13867 = vmatpush1.bf16.msra.mxu0 %v19398_v57 }
0x2fe5   :  { %13868 = vmatprep.subr.bf16.mxu0 %v19403_v37 }
0x2fe8   :  { %13869 = vmatpush1.bf16.msra.mxu0 %v19401_v38 }
0x2fe9   :  { %13870 = vmatprep.subr.bf16.mxu0 %v19406_v6 }
0x2fec   :  { %13871 = vmatpush1.bf16.msra.mxu0 %v19404_v39 }
0x2fed   :  { %13872 = vmatprep.subr.bf16.mxu0 %v19409_v40 }
0x2ff0   :  { %13873 = vmatpush1.bf16.msra.mxu0 %v19407_v55 }
0x2ff1   :  { %13874 = vmatprep.subr.bf16.mxu0 %v19412_v56 }
0x2ff4   :  { %13875 = vmatpush1.bf16.msra.mxu0 %v19410_v5 }
0x2ff5   :  { %13876 = vmatprep.subr.bf16.mxu0 %v19415_v44 }
0x2ff8   :  { %13877 = vmatpush1.bf16.msra.mxu0 %v19413_v45 }
0x2ff9   :  { %13878 = vmatprep.subr.bf16.mxu0 %v19418_v46 }
0x2ffc   :  { %13879 = vmatpush1.bf16.msra.mxu0 %v19416_v49 }
0x2ffd   :  { %13880 = vmatprep.subr.bf16.mxu0 %v19421_v4 }
0x3000   :  { %13881 = vmatpush1.bf16.msra.mxu0 %v19419_v23 }
0x3001   :  { %13882 = vmatprep.subr.bf16.mxu0 %v19424_v53 }
0x3004   :  { %13883 = vmatpush1.bf16.msra.mxu0 %v19422_v54 }
0x3005   :  { %13884 = vmatprep.subr.bf16.mxu0 %v19427_v27 }
0x3008   :  { %13885 = vmatpush1.bf16.msra.mxu0 %v19425_v28 }
0x3009   :  { %13886 = vmatprep.subr.bf16.mxu0 %v19430_v21 }
0x300c   :  { %13887 = vmatpush1.bf16.msra.mxu0 %v19428_v22 }
0x300d   :  { %13888 = vmatprep.subr.bf16.mxu0 %v19433_v59 }
0x3010   :  { %13889 = vmatpush1.bf16.msra.mxu0 %v19431_v60 }
0x3011   :  { %13890 = vmatprep.subr.bf16.mxu0 %v19436_v51 }
0x3014   :  { %13891 = vmatpush1.bf16.msra.mxu0 %v19434_v50 }
0x3015   :  { %14380 = vmatprep.subr.bf16.mxu0 %v19439_v36  ;;  %v21983_v36 = vld [vmem:[#allocation5 + $0x670] ss:$8 sps:$4 sm:$0xff]  }
0x30aa   :  { %v13396_v25 = vpop.f32.mrb[104].mxu0 }
0x30ab   :  { %v13403_v26 = vadd.f32 %v13396_v25, %v13160_v24  ;;  %v13398_v63 = vpop.f32.mrb[105].mxu0  ;;  %v13659_v25 = vld [vmem:[#allocation2 + $0x18] sm:$0x30] }
0x30ac   :  { %v13404_v30 = vadd.f32 %v13398_v63, %v13161_v3  ;;  %v13400_v31 = vpop.f32.mrb[106].mxu0 }
0x30ad   :  { %19805 = vtanh.f32 %v13403_v26  ;;  %v13401_v7 = vpop.f32.mrb[107].mxu0 }
0x30ae   :  { %19807 = vtanh.f32 %v13404_v30 }
0x30b7   :  { %v19806_v34 = vpop.eup %19805 }
0x30b8   :  { %v19808_v35 = vpop.eup %19807  ;;  %13407 = vst [vmem:[#allocation2 + $0x10] sm:$0x3] %v19806_v34  ;;  %v13411_v62 = vpack.c.bf16 %v19806_v34, %v19806_v34 }
0x30b9   :  { %13408 = vst [vmem:[#allocation2 + $0x18] sm:$0x3] %v19808_v35  ;;  %v13412_v61 = vpack.c.bf16 %v19808_v35, %v19808_v35 }
0x30bb   :  { %13637 = vmatprep.mubr.bf16.mxu1 %v13412_v61  ;;  %v19466_v61 = vld [vmem:[#allocation3 + $0x694] ss:$8 sps:$4 sm:$0xff]  }
0x30bc   :  { %13638 = vmatmul.mubr.bf16.vlgmr.msra.gmra.mrb[104].mxu1 %v13411_v62  ;;  %v19464_v62 = vld [vmem:[#allocation3 + $0x690] ss:$8 sps:$4 sm:$0xff]  }
0x30bd   :  { %14116 = vmatpush1.bf16.msra.mxu1 %v19389_v29  ;;  %v19442_v29 = vld [vmem:[#allocation3 + $0x614] ss:$8 sps:$4 sm:$0xff]  }
0x30be   :  { %14117 = vmatprep.subr.bf16.mxu1 %v19394_v58  ;;  %v19445_v58 = vld [vmem:[#allocation3 + $0x624] ss:$8 sps:$4 sm:$0xff]  }
0x30c1   :  { %14118 = vmatpush1.bf16.msra.mxu1 %v19392_v0  ;;  %v19443_v0 = vld [vmem:[#allocation3 + $0x620] ss:$8 sps:$4 sm:$0xff]  }
0x30c2   :  { %14119 = vmatprep.subr.bf16.mxu1 %v19397_v32  ;;  %v19448_v32 = vld [vmem:[#allocation3 + $0x634] ss:$8 sps:$4 sm:$0xff]  }
0x30c5   :  { %14120 = vmatpush1.bf16.msra.mxu1 %v19395_v33  ;;  %v19446_v33 = vld [vmem:[#allocation3 + $0x630] ss:$8 sps:$4 sm:$0xff]  }
0x30c6   :  { %14121 = vmatprep.subr.bf16.mxu1 %v19400_v2  ;;  %v19451_v2 = vld [vmem:[#allocation3 + $0x644] ss:$8 sps:$4 sm:$0xff]  }
0x30c9   :  { %14122 = vmatpush1.bf16.msra.mxu1 %v19398_v57  ;;  %v19449_v57 = vld [vmem:[#allocation3 + $0x640] ss:$8 sps:$4 sm:$0xff]  }
0x30ca   :  { %14123 = vmatprep.subr.bf16.mxu1 %v19403_v37  ;;  %v19454_v37 = vld [vmem:[#allocation3 + $0x654] ss:$8 sps:$4 sm:$0xff]  }
0x30cd   :  { %14124 = vmatpush1.bf16.msra.mxu1 %v19401_v38  ;;  %v19452_v38 = vld [vmem:[#allocation3 + $0x650] ss:$8 sps:$4 sm:$0xff]  }
0x30ce   :  { %14125 = vmatprep.subr.bf16.mxu1 %v19406_v6  ;;  %v19457_v6 = vld [vmem:[#allocation3 + $0x664] ss:$8 sps:$4 sm:$0xff]  }
0x30d1   :  { %14126 = vmatpush1.bf16.msra.mxu1 %v19404_v39  ;;  %v19455_v39 = vld [vmem:[#allocation3 + $0x660] ss:$8 sps:$4 sm:$0xff]  }
0x30d2   :  { %14127 = vmatprep.subr.bf16.mxu1 %v19409_v40  ;;  %v19460_v40 = vld [vmem:[#allocation3 + $0x674] ss:$8 sps:$4 sm:$0xff]  }
0x30d5   :  { %14128 = vmatpush1.bf16.msra.mxu1 %v19407_v55  ;;  %v19458_v55 = vld [vmem:[#allocation3 + $0x670] ss:$8 sps:$4 sm:$0xff]  }
0x30d6   :  { %14129 = vmatprep.subr.bf16.mxu1 %v19412_v56  ;;  %v19463_v56 = vld [vmem:[#allocation3 + $0x684] ss:$8 sps:$4 sm:$0xff]  }
0x30d9   :  { %14130 = vmatpush1.bf16.msra.mxu1 %v19410_v5  ;;  %v19461_v5 = vld [vmem:[#allocation3 + $0x680] ss:$8 sps:$4 sm:$0xff]  }
0x30da   :  { %14131 = vmatprep.subr.bf16.mxu1 %v19415_v44 }
0x30dd   :  { %14132 = vmatpush1.bf16.msra.mxu1 %v19413_v45 }
0x30de   :  { %14133 = vmatprep.subr.bf16.mxu1 %v19418_v46 }
0x30e1   :  { %14134 = vmatpush1.bf16.msra.mxu1 %v19416_v49  ;;  %v13658_v49 = vld [vmem:[#allocation2 + $0x10] sm:$0x30] }
0x30e2   :  { %14135 = vmatprep.subr.bf16.mxu1 %v19421_v4 }
0x30e5   :  { %14136 = vmatpush1.bf16.msra.mxu1 %v19419_v23 }
0x30e6   :  { %14137 = vmatprep.subr.bf16.mxu1 %v19424_v53  ;;  %v19469_v53 = vld [vmem:[#allocation3 + $0x6a4] ss:$8 sps:$4 sm:$0xff]  }
0x30e9   :  { %14138 = vmatpush1.bf16.msra.mxu1 %v19422_v54  ;;  %v19467_v54 = vld [vmem:[#allocation3 + $0x6a0] ss:$8 sps:$4 sm:$0xff]  }
0x30ea   :  { %14139 = vmatprep.subr.bf16.mxu1 %v19427_v27  ;;  %v19472_v27 = vld [vmem:[#allocation3 + $0x6b4] ss:$8 sps:$4 sm:$0xff]  }
0x30ed   :  { %14140 = vmatpush1.bf16.msra.mxu1 %v19425_v28  ;;  %v19470_v28 = vld [vmem:[#allocation3 + $0x6b0] ss:$8 sps:$4 sm:$0xff]  }
0x30ee   :  { %14141 = vmatprep.subr.bf16.mxu1 %v19430_v21  ;;  %v19475_v21 = vld [vmem:[#allocation3 + $0x6c4] ss:$8 sps:$4 sm:$0xff]  }
0x30f1   :  { %14142 = vmatpush1.bf16.msra.mxu1 %v19428_v22  ;;  %v19473_v22 = vld [vmem:[#allocation3 + $0x6c0] ss:$8 sps:$4 sm:$0xff]  }
0x30f2   :  { %14143 = vmatprep.subr.bf16.mxu1 %v19433_v59  ;;  %v19478_v59 = vld [vmem:[#allocation3 + $0x6d4] ss:$8 sps:$4 sm:$0xff]  }
0x30f5   :  { %14144 = vmatpush1.bf16.msra.mxu1 %v19431_v60  ;;  %v19476_v60 = vld [vmem:[#allocation3 + $0x6d0] ss:$8 sps:$4 sm:$0xff]  }
0x30f6   :  { %14145 = vmatprep.subr.bf16.mxu1 %v19436_v51  ;;  %v19479_v51 = vld [vmem:[#allocation3 + $0x6e0] ss:$8 sps:$4 sm:$0xff]  }
0x30f9   :  { %14146 = vmatpush1.bf16.msra.mxu1 %v19434_v50  ;;  %v19481_v50 = vld [vmem:[#allocation3 + $0x6e4] ss:$8 sps:$4 sm:$0xff]  }
0x318f   :  { %v13639_v42 = vpop.f32.mrb[104].mxu1 }
0x3190   :  { %v13648_v43 = vrot.slane %v13639_v42, 6  ;;  %v13641_v1 = vpop.f32.mrb[105].mxu1  ;;  %v19484_v42 = vld [vmem:[#allocation3 + $0x6f4] ss:$8 sps:$4 sm:$0xff]  }
0x3191   :  { %v13649_v9 = vrot.slane %v13641_v1, 6  ;;  %v13643_v10 = vpop.f32.mrb[106].mxu1  ;;  %v21938_v1 = vld [vmem:[#allocation5 + $0x600] ss:$8 sps:$4 sm:$0xff]  }
0x3192   :  { %v13652_v11 = vadd.f32 %v13648_v43, %v13409_v8  ;;  %v13644_v13 = vpop.f32.mrb[107].mxu1  ;;  %v19482_v43 = vld [vmem:[#allocation3 + $0x6f0] ss:$8 sps:$4 sm:$0xff]   ;;  %v21940_v8 = vld [vmem:[#allocation5 + $0x604] ss:$8 sps:$4 sm:$0xff]  }
0x3193   :  { %v13653_v14 = vadd.f32 %v13649_v9, %v13410_v12  ;;  %v21942_v9 = vld [vmem:[#allocation5 + $0x614] ss:$8 sps:$4 sm:$0xff]   ;;  %14630 = vmatprep.subr.bf16.mxu1 %v21940_v8  ;;  %v21947_v10 = vld [vmem:[#allocation5 + $0x610] ss:$8 sps:$4 sm:$0xff]   ;;  %v21953_v12 = vld [vmem:[#allocation5 + $0x620] ss:$8 sps:$4 sm:$0xff]  }
0x3194   :  { %19809 = vtanh.f32 %v13652_v11  ;;  %v21950_v11 = vld [vmem:[#allocation5 + $0x624] ss:$8 sps:$4 sm:$0xff]   ;;  %v21956_v13 = vld [vmem:[#allocation5 + $0x634] ss:$8 sps:$4 sm:$0xff]  }
0x3195   :  { %19811 = vtanh.f32 %v13653_v14  ;;  %v21959_v14 = vld [vmem:[#allocation5 + $0x630] ss:$8 sps:$4 sm:$0xff]  }
0x319e   :  { %v19810_v15 = vpop.eup %19809 }
0x319f   :  { %v19812_v16 = vpop.eup %19811  ;;  %13656 = vst [vmem:[#allocation2 + $0x10] sm:$0xc] %v19810_v15  ;;  %v13660_v17 = vpack.c.bf16 %v19810_v15, %v19810_v15  ;;  %v21962_v15 = vld [vmem:[#allocation5 + $0x644] ss:$8 sps:$4 sm:$0xff]  }
0x31a0   :  { %13657 = vst [vmem:[#allocation2 + $0x18] sm:$0xc] %v19812_v16  ;;  %v13661_v18 = vpack.c.bf16 %v19812_v16, %v19812_v16  ;;  %v21965_v16 = vld [vmem:[#allocation5 + $0x640] ss:$8 sps:$4 sm:$0xff]  }
0x31a1   :  { %v13696_v20 = vrot.slane %v13660_v17, 1  ;;  %v21968_v17 = vld [vmem:[#allocation5 + $0x654] ss:$8 sps:$4 sm:$0xff]  }
0x31a2   :  { %v13697_v19 = vrot.slane %v13661_v18, 1  ;;  %v21971_v18 = vld [vmem:[#allocation5 + $0x650] ss:$8 sps:$4 sm:$0xff]  }
0x31a4   :  { %13892 = vmatprep.mubr.bf16.mxu0 %v13697_v19  ;;  %v21974_v19 = vld [vmem:[#allocation5 + $0x664] ss:$8 sps:$4 sm:$0xff]  }
0x31a5   :  { %13893 = vmatmul.mubr.bf16.vlgmr.msra.gmra.mrb[108].mxu0 %v13696_v20  ;;  %v21977_v20 = vld [vmem:[#allocation5 + $0x660] ss:$8 sps:$4 sm:$0xff]  }
0x31a6   :  { %14381 = vmatpush1.bf16.msra.mxu0 %v19437_v41  ;;  %v21980_v41 = vld [vmem:[#allocation5 + $0x674] ss:$8 sps:$4 sm:$0xff]  }
0x31a7   :  { %14382 = vmatprep.subr.bf16.mxu0 %v19442_v29  ;;  %v21986_v29 = vld [vmem:[#allocation5 + $0x684] ss:$8 sps:$4 sm:$0xff]  }
0x31aa   :  { %14383 = vmatpush1.bf16.msra.mxu0 %v19440_v52  ;;  %v21989_v52 = vld [vmem:[#allocation5 + $0x680] ss:$8 sps:$4 sm:$0xff]  }
0x31ab   :  { %14384 = vmatprep.subr.bf16.mxu0 %v19445_v58  ;;  %v21992_v58 = vld [vmem:[#allocation5 + $0x694] ss:$8 sps:$4 sm:$0xff]  }
0x31ae   :  { %14385 = vmatpush1.bf16.msra.mxu0 %v19443_v0  ;;  %v21995_v0 = vld [vmem:[#allocation5 + $0x690] ss:$8 sps:$4 sm:$0xff]  }
0x31af   :  { %14386 = vmatprep.subr.bf16.mxu0 %v19448_v32 }
0x31b2   :  { %14387 = vmatpush1.bf16.msra.mxu0 %v19446_v33 }
0x31b3   :  { %14388 = vmatprep.subr.bf16.mxu0 %v19451_v2 }
0x31b6   :  { %14389 = vmatpush1.bf16.msra.mxu0 %v19449_v57  ;;  %v13913_v57 = vld [vmem:[#allocation2 + $0x10] sm:$0xc0] }
0x31b7   :  { %14390 = vmatprep.subr.bf16.mxu0 %v19454_v37 }
0x31ba   :  { %14391 = vmatpush1.bf16.msra.mxu0 %v19452_v38 }
0x31bb   :  { %14392 = vmatprep.subr.bf16.mxu0 %v19457_v6 }
0x31be   :  { %14393 = vmatpush1.bf16.msra.mxu0 %v19455_v39  ;;  %v13914_v39 = vld [vmem:[#allocation2 + $0x18] sm:$0xc0] }
0x31bf   :  { %14394 = vmatprep.subr.bf16.mxu0 %v19460_v40 }
0x31c2   :  { %14395 = vmatpush1.bf16.msra.mxu0 %v19458_v55 }
0x31c3   :  { %14396 = vmatprep.subr.bf16.mxu0 %v19463_v56 }
0x31c6   :  { %14397 = vmatpush1.bf16.msra.mxu0 %v19461_v5 }
0x31c7   :  { %14398 = vmatprep.subr.bf16.mxu0 %v19466_v61  ;;  %v22055_v61 = vld [vmem:[#allocation5 + $0x6f4] ss:$8 sps:$4 sm:$0xff]  }
0x31ca   :  { %14399 = vmatpush1.bf16.msra.mxu0 %v19464_v62  ;;  %v22059_v62 = vld [vmem:[#allocation5 + $0x6f0] ss:$8 sps:$4 sm:$0xff]  }
0x31cb   :  { %14400 = vmatprep.subr.bf16.mxu0 %v19469_v53  ;;  %v14208_v53 = vld [vmem:[#allocation7 + $0xc] sm:$0x3] }
0x31ce   :  { %14401 = vmatpush1.bf16.msra.mxu0 %v19467_v54  ;;  %v14213_v54 = vrot.slane %v14208_v53, %v20229_v47 }
0x31cf   :  { %14402 = vmatprep.subr.bf16.mxu0 %v19472_v27  ;;  %v14217_v27 = vrot.slane %v14208_v53, %v20231_v48 }
0x31d2   :  { %14403 = vmatpush1.bf16.msra.mxu0 %v19470_v28 }
0x31d3   :  { %14404 = vmatprep.subr.bf16.mxu0 %v19475_v21 }
0x31d6   :  { %14405 = vmatpush1.bf16.msra.mxu0 %v19473_v22 }
0x31d7   :  { %14406 = vmatprep.subr.bf16.mxu0 %v19478_v59 }
0x31da   :  { %14407 = vmatpush1.bf16.msra.mxu0 %v19476_v60 }
0x31db   :  { %14408 = vmatprep.subr.bf16.mxu0 %v19481_v50 }
0x31de   :  { %14409 = vmatpush1.bf16.msra.mxu0 %v19479_v51 }
0x31df   :  { %14410 = vmatprep.subr.bf16.mxu0 %v19484_v42 }
0x31e2   :  { %14411 = vmatpush1.bf16.msra.mxu0 %v19482_v43 }
0x31e3   :  { %14885 = vmatprep.subr.bf16.mxu0 %v21940_v8 }
0x3278   :  { %v13894_v44 = vpop.f32.mrb[108].mxu0 }
0x3279   :  { %v13903_v45 = vrot.slane %v13894_v44, 4  ;;  %v13896_v46 = vpop.f32.mrb[109].mxu0 }
0x327a   :  { %v13904_v4 = vrot.slane %v13896_v46, 4  ;;  %v13898_v23 = vpop.f32.mrb[110].mxu0 }
0x327b   :  { %v13907_v24 = vadd.f32 %v13903_v45, %v13658_v49  ;;  %v13899_v26 = vpop.f32.mrb[111].mxu0  ;;  %v14169_v45 = vld [vmem:[#allocation2 + $0x8] sm:$0xff] }
0x327c   :  { %v13908_v3 = vadd.f32 %v13904_v4, %v13659_v25  ;;  %v14168_v4 = vld [vmem:[#allocation2] sm:$0xff]  ;;  %v22026_v26 = vld [vmem:[#allocation5 + $0x6b0] ss:$8 sps:$4 sm:$0xff]  }
0x327d   :  { %19813 = vtanh.f32 %v13907_v24  ;;  %v22018_v24 = vld [vmem:[#allocation5 + $0x6a4] ss:$8 sps:$4 sm:$0xff]   ;;  %v22020_v25 = vld [vmem:[#allocation5 + $0x6a0] ss:$8 sps:$4 sm:$0xff]  }
0x327e   :  { %19815 = vtanh.f32 %v13908_v3  ;;  %v22028_v3 = vld [vmem:[#allocation5 + $0x6b4] ss:$8 sps:$4 sm:$0xff]  }
0x3287   :  { %v19814_v63 = vpop.eup %19813 }
0x3288   :  { %v19816_v30 = vpop.eup %19815  ;;  %13911 = vst [vmem:[#allocation2 + $0x10] sm:$0x30] %v19814_v63  ;;  %v13915_v31 = vpack.c.bf16 %v19814_v63, %v19814_v63  ;;  %v22030_v63 = vld [vmem:[#allocation5 + $0x6c4] ss:$8 sps:$4 sm:$0xff]  }
0x3289   :  { %13912 = vst [vmem:[#allocation2 + $0x18] sm:$0x30] %v19816_v30  ;;  %v13916_v7 = vpack.c.bf16 %v19816_v30, %v19816_v30  ;;  %v22035_v30 = vld [vmem:[#allocation5 + $0x6c0] ss:$8 sps:$4 sm:$0xff]  }
0x328a   :  { %v13951_v35 = vrot.slane %v13915_v31, 2  ;;  %v22039_v31 = vld [vmem:[#allocation5 + $0x6d4] ss:$8 sps:$4 sm:$0xff]  }
0x328b   :  { %v13952_v34 = vrot.slane %v13916_v7, 2  ;;  %v22043_v7 = vld [vmem:[#allocation5 + $0x6d0] ss:$8 sps:$4 sm:$0xff]  }
0x328d   :  { %14147 = vmatprep.mubr.bf16.mxu1 %v13952_v34  ;;  %v22047_v34 = vld [vmem:[#allocation5 + $0x6e4] ss:$8 sps:$4 sm:$0xff]  }
0x328e   :  { %14148 = vmatmul.mubr.bf16.vlgmr.msra.gmra.mrb[108].mxu1 %v13951_v35  ;;  %v22051_v35 = vld [vmem:[#allocation5 + $0x6e0] ss:$8 sps:$4 sm:$0xff]  }
0x328f   :  { %14631 = vmatpush1.bf16.msra.mxu1 %v21938_v1 }
0x3290   :  { %14632 = vmatprep.subr.bf16.mxu1 %v21942_v9 }
0x3293   :  { %14633 = vmatpush1.bf16.msra.mxu1 %v21947_v10 }
0x3294   :  { %14634 = vmatprep.subr.bf16.mxu1 %v21950_v11 }
0x3297   :  { %14635 = vmatpush1.bf16.msra.mxu1 %v21953_v12 }
0x3298   :  { %14636 = vmatprep.subr.bf16.mxu1 %v21956_v13 }
0x329b   :  { %14637 = vmatpush1.bf16.msra.mxu1 %v21959_v14 }
0x329c   :  { %14638 = vmatprep.subr.bf16.mxu1 %v21962_v15 }
0x329f   :  { %14639 = vmatpush1.bf16.msra.mxu1 %v21965_v16 }
0x32a0   :  { %14640 = vmatprep.subr.bf16.mxu1 %v21968_v17 }
0x32a3   :  { %14641 = vmatpush1.bf16.msra.mxu1 %v21971_v18 }
0x32a4   :  { %14642 = vmatprep.subr.bf16.mxu1 %v21974_v19 }
0x32a7   :  { %14643 = vmatpush1.bf16.msra.mxu1 %v21977_v20 }
0x32a8   :  { %14644 = vmatprep.subr.bf16.mxu1 %v21980_v41 }
0x32ab   :  { %14645 = vmatpush1.bf16.msra.mxu1 %v21983_v36 }
0x32ac   :  { %14646 = vmatprep.subr.bf16.mxu1 %v21986_v29 }
0x32af   :  { %14647 = vmatpush1.bf16.msra.mxu1 %v21989_v52 }
0x32b0   :  { %14648 = vmatprep.subr.bf16.mxu1 %v21992_v58 }
0x32b3   :  { %14649 = vmatpush1.bf16.msra.mxu1 %v21995_v0 }
0x32b4   :  { %14650 = vmatprep.subr.bf16.mxu1 %v22018_v24 }
0x32b7   :  { %14651 = vmatpush1.bf16.msra.mxu1 %v22020_v25 }
0x32b8   :  { %14652 = vmatprep.subr.bf16.mxu1 %v22028_v3 }
0x32bb   :  { %14653 = vmatpush1.bf16.msra.mxu1 %v22026_v26 }
0x32bc   :  { %14654 = vmatprep.subr.bf16.mxu1 %v22030_v63 }
0x32bf   :  { %14655 = vmatpush1.bf16.msra.mxu1 %v22035_v30 }
0x32c0   :  { %14656 = vmatprep.subr.bf16.mxu1 %v22039_v31 }
0x32c3   :  { %14657 = vmatpush1.bf16.msra.mxu1 %v22043_v7 }
0x32c4   :  { %14658 = vmatprep.subr.bf16.mxu1 %v22047_v34 }
0x32c7   :  { %14659 = vmatpush1.bf16.msra.mxu1 %v22051_v35 }
0x32c8   :  { %14660 = vmatprep.subr.bf16.mxu1 %v22055_v61 }
0x32cb   :  { %14661 = vmatpush1.bf16.msra.mxu1 %v22059_v62 }
0x32cc   :  { %15140 = vmatprep.subr.bf16.mxu1 %v21940_v8 }
0x3361   :  { %v14149_v32 = vpop.f32.mrb[108].mxu1 }
0x3362   :  { %v14158_v33 = vrot.slane %v14149_v32, 2  ;;  %v14151_v2 = vpop.f32.mrb[109].mxu1 }
0x3363   :  { %v14159_v37 = vrot.slane %v14151_v2, 2  ;;  %v14153_v38 = vpop.f32.mrb[110].mxu1 }
0x3364   :  { %v14162_v6 = vadd.f32 %v14158_v33, %v13913_v57  ;;  %v14154_v40 = vpop.f32.mrb[111].mxu1 }
0x3365   :  { %v14163_v55 = vadd.f32 %v14159_v37, %v13914_v39 }
0x3366   :  { %19817 = vtanh.f32 %v14162_v6 }
0x3367   :  { %19819 = vtanh.f32 %v14163_v55 }
0x3370   :  { %v19818_v56 = vpop.eup %19817 }
0x3371   :  { %v19820_v5 = vpop.eup %19819  ;;  %14166 = vst [vmem:[#allocation2 + $0x10] sm:$0xc0] %v19818_v56 }
0x3372   :  { %14167 = vst [vmem:[#allocation2 + $0x18] sm:$0xc0] %v19820_v5 }
0x3378   :  { %v14170_v44 = vld [vmem:[#allocation2 + $0x10] sm:$0xff] }
0x3379   :  { %v14171_v46 = vld [vmem:[#allocation2 + $0x18] sm:$0xff]  ;;  %v14172_v23 = vpack.c.bf16 %v14170_v44, %v14168_v4 }
0x337a   :  { %v14173_v49 = vpack.c.bf16 %v14171_v46, %v14169_v45 }
0x337c   :  { %14412 = vmatprep.mubr.bf16.mxu0 %v14173_v49 }
0x337d   :  { %14413 = vmatmul.mubr.bf16.vlgmr.msra.gmra.mrb[112].mxu0 %v14172_v23 }
0x337e   :  { %14886 = vmatpush1.bf16.msra.mxu0 %v21938_v1 }
0x337f   :  { %14887 = vmatprep.subr.bf16.mxu0 %v21942_v9 }
0x3382   :  { %14888 = vmatpush1.bf16.msra.mxu0 %v21947_v10 }
0x3383   :  { %14889 = vmatprep.subr.bf16.mxu0 %v21950_v11 }
0x3386   :  { %14890 = vmatpush1.bf16.msra.mxu0 %v21953_v12 }
0x3387   :  { %14891 = vmatprep.subr.bf16.mxu0 %v21956_v13 }
0x338a   :  { %14892 = vmatpush1.bf16.msra.mxu0 %v21959_v14 }
0x338b   :  { %14893 = vmatprep.subr.bf16.mxu0 %v21962_v15 }
0x338e   :  { %14894 = vmatpush1.bf16.msra.mxu0 %v21965_v16 }
0x338f   :  { %14895 = vmatprep.subr.bf16.mxu0 %v21968_v17 }
0x3392   :  { %14896 = vmatpush1.bf16.msra.mxu0 %v21971_v18 }
0x3393   :  { %14897 = vmatprep.subr.bf16.mxu0 %v21974_v19 }
0x3396   :  { %14898 = vmatpush1.bf16.msra.mxu0 %v21977_v20 }
0x3397   :  { %14899 = vmatprep.subr.bf16.mxu0 %v21980_v41 }
0x339a   :  { %14900 = vmatpush1.bf16.msra.mxu0 %v21983_v36 }
0x339b   :  { %14901 = vmatprep.subr.bf16.mxu0 %v21986_v29 }
0x339e   :  { %14902 = vmatpush1.bf16.msra.mxu0 %v21989_v52 }
0x339f   :  { %14903 = vmatprep.subr.bf16.mxu0 %v21992_v58 }
0x33a2   :  { %14904 = vmatpush1.bf16.msra.mxu0 %v21995_v0 }
0x33a3   :  { %14905 = vmatprep.subr.bf16.mxu0 %v22018_v24 }
0x33a6   :  { %14906 = vmatpush1.bf16.msra.mxu0 %v22020_v25 }
0x33a7   :  { %14907 = vmatprep.subr.bf16.mxu0 %v22028_v3 }
0x33aa   :  { %14908 = vmatpush1.bf16.msra.mxu0 %v22026_v26 }
0x33ab   :  { %14909 = vmatprep.subr.bf16.mxu0 %v22030_v63 }
0x33ae   :  { %14910 = vmatpush1.bf16.msra.mxu0 %v22035_v30 }
0x33af   :  { %14911 = vmatprep.subr.bf16.mxu0 %v22039_v31 }
0x33b2   :  { %14912 = vmatpush1.bf16.msra.mxu0 %v22043_v7 }
0x33b3   :  { %14913 = vmatprep.subr.bf16.mxu0 %v22047_v34 }
0x33b6   :  { %14914 = vmatpush1.bf16.msra.mxu0 %v22051_v35 }
0x33b7   :  { %14915 = vmatprep.subr.bf16.mxu0 %v22055_v61 }
0x33ba   :  { %14916 = vmatpush1.bf16.msra.mxu0 %v22059_v62 }
0x33bb   :  { %15395 = vmatprep.subr.bf16.mxu0 %v21940_v8 }
0x3450   :  { %v14414_v28 = vpop.f32.mrb[112].mxu0 }
0x3451   :  { %v14415_v21 = vadd.f32 %v14414_v28, %v14213_v54  ;;  %v14416_v22 = vpop.f32.mrb[113].mxu0 }
0x3452   :  { %v14417_v59 = vadd.f32 %v14416_v22, %v14217_v27  ;;  %v14418_v60 = vpop.f32.mrb[114].mxu0 }
0x3453   :  { %14423 = vst [vmem:[#allocation2] sm:$0xff] %v14415_v21  ;;  %v14419_v50 = vadd.f32 %v14418_v60, %v14213_v54  ;;  %v14420_v51 = vpop.f32.mrb[115].mxu0 }
0x3454   :  { %14424 = vst [vmem:[#allocation2 + $0x8] sm:$0xff] %v14417_v59  ;;  %v14421_v42 = vadd.f32 %v14420_v51, %v14217_v27 }
0x3455   :  { %14425 = vst [vmem:[#allocation2 + $0x10] sm:$0xff] %v14419_v50 }
0x3456   :  { %14426 = vst [vmem:[#allocation2 + $0x18] sm:$0xff] %v14421_v42 }
0x345a   :  { %v14427_v43 = vld [vmem:[#allocation2] sm:$0x3]  ;;  %v14433_v6 = vld [vmem:[#allocation2] sm:$0xc]  ;;  %v14683_v28 = vld [vmem:[#allocation2] sm:$0x30] }
0x345b   :  { %v14428_v32 = vld [vmem:[#allocation2 + $0x8] sm:$0x3]  ;;  %19821 = vtanh.f32 %v14427_v43  ;;  %v14434_v56 = vld [vmem:[#allocation2 + $0x8] sm:$0xc]  ;;  %v14684_v60 = vld [vmem:[#allocation2 + $0x8] sm:$0x30] }
0x345c   :  { %19823 = vtanh.f32 %v14428_v32 }
0x3465   :  { %v19822_v33 = vpop.eup %19821 }
0x3466   :  { %v19824_v47 = vpop.eup %19823  ;;  %14431 = vst [vmem:[#allocation2] sm:$0x3] %v19822_v33  ;;  %v14435_v2 = vpack.c.bf16 %v19822_v33, %v19822_v33 }
0x3467   :  { %14432 = vst [vmem:[#allocation2 + $0x8] sm:$0x3] %v19824_v47  ;;  %v14436_v48 = vpack.c.bf16 %v19824_v47, %v19824_v47 }
0x3469   :  { %14662 = vmatprep.mubr.bf16.mxu1 %v14436_v48 }
0x346a   :  { %14663 = vmatmul.mubr.bf16.vlgmr.msra.gmra.mrb[112].mxu1 %v14435_v2  ;;  %v19554_v2 = vld [vmem:[#allocation5 + $0x670] ss:$8 sps:$4 sm:$0xff]  }
0x346b   :  { %15141 = vmatpush1.bf16.msra.mxu1 %v21938_v1 }
0x346c   :  { %15142 = vmatprep.subr.bf16.mxu1 %v21942_v9 }
0x346f   :  { %15143 = vmatpush1.bf16.msra.mxu1 %v21947_v10 }
0x3470   :  { %15144 = vmatprep.subr.bf16.mxu1 %v21950_v11 }
0x3473   :  { %15145 = vmatpush1.bf16.msra.mxu1 %v21953_v12 }
0x3474   :  { %15146 = vmatprep.subr.bf16.mxu1 %v21956_v13 }
0x3477   :  { %15147 = vmatpush1.bf16.msra.mxu1 %v21959_v14 }
0x3478   :  { %15148 = vmatprep.subr.bf16.mxu1 %v21962_v15 }
0x347b   :  { %15149 = vmatpush1.bf16.msra.mxu1 %v21965_v16 }
0x347c   :  { %15150 = vmatprep.subr.bf16.mxu1 %v21968_v17 }
0x347f   :  { %15151 = vmatpush1.bf16.msra.mxu1 %v21971_v18 }
0x3480   :  { %15152 = vmatprep.subr.bf16.mxu1 %v21974_v19 }
0x3483   :  { %15153 = vmatpush1.bf16.msra.mxu1 %v21977_v20 }
0x3484   :  { %15154 = vmatprep.subr.bf16.mxu1 %v21980_v41 }
0x3487   :  { %15155 = vmatpush1.bf16.msra.mxu1 %v21983_v36 }
0x3488   :  { %15156 = vmatprep.subr.bf16.mxu1 %v21986_v29 }
0x348b   :  { %15157 = vmatpush1.bf16.msra.mxu1 %v21989_v52 }
0x348c   :  { %15158 = vmatprep.subr.bf16.mxu1 %v21992_v58 }
0x348f   :  { %15159 = vmatpush1.bf16.msra.mxu1 %v21995_v0 }
0x3490   :  { %15160 = vmatprep.subr.bf16.mxu1 %v22018_v24 }
0x3493   :  { %15161 = vmatpush1.bf16.msra.mxu1 %v22020_v25 }
0x3494   :  { %15162 = vmatprep.subr.bf16.mxu1 %v22028_v3 }
0x3497   :  { %15163 = vmatpush1.bf16.msra.mxu1 %v22026_v26 }
0x3498   :  { %15164 = vmatprep.subr.bf16.mxu1 %v22030_v63 }
0x349b   :  { %15165 = vmatpush1.bf16.msra.mxu1 %v22035_v30 }
0x349c   :  { %15166 = vmatprep.subr.bf16.mxu1 %v22039_v31 }
0x349f   :  { %15167 = vmatpush1.bf16.msra.mxu1 %v22043_v7 }
0x34a0   :  { %15168 = vmatprep.subr.bf16.mxu1 %v22047_v34 }
0x34a3   :  { %15169 = vmatpush1.bf16.msra.mxu1 %v22051_v35 }
0x34a4   :  { %15170 = vmatprep.subr.bf16.mxu1 %v22055_v61 }
0x34a7   :  { %15171 = vmatpush1.bf16.msra.mxu1 %v22059_v62 }
0x34a8   :  { %15638 = vmatprep.subr.bf16.mxu1 %v21940_v8 }
0x353d   :  { %v14664_v57 = vpop.f32.mrb[112].mxu1 }
0x353e   :  { %v14673_v37 = vrot.slane %v14664_v57, 6  ;;  %v14666_v38 = vpop.f32.mrb[113].mxu1  ;;  %v19559_v57 = vld [vmem:[#allocation5 + $0x684] ss:$8 sps:$4 sm:$0xff]  }
0x353f   :  { %v14674_v39 = vrot.slane %v14666_v38, 6  ;;  %v14668_v40 = vpop.f32.mrb[114].mxu1  ;;  %v19562_v38 = vld [vmem:[#allocation5 + $0x694] ss:$8 sps:$4 sm:$0xff]  }
0x3540   :  { %v14677_v55 = vadd.f32 %v14673_v37, %v14433_v6  ;;  %v14669_v5 = vpop.f32.mrb[115].mxu1  ;;  %v19557_v37 = vld [vmem:[#allocation5 + $0x680] ss:$8 sps:$4 sm:$0xff]   ;;  %v19560_v6 = vld [vmem:[#allocation5 + $0x690] ss:$8 sps:$4 sm:$0xff]  }
0x3541   :  { %v14678_v44 = vadd.f32 %v14674_v39, %v14434_v56  ;;  %v19565_v39 = vld [vmem:[#allocation5 + $0x6a4] ss:$8 sps:$4 sm:$0xff]   ;;  %v19563_v40 = vld [vmem:[#allocation5 + $0x6a0] ss:$8 sps:$4 sm:$0xff]  }
0x3542   :  { %19825 = vtanh.f32 %v14677_v55  ;;  %v15193_v55 = vld [vmem:[#allocation2 + $0x10] sm:$0x3] }
0x3543   :  { %19827 = vtanh.f32 %v14678_v44  ;;  %v15194_v44 = vld [vmem:[#allocation2 + $0x18] sm:$0x3] }
0x354c   :  { %v19826_v45 = vpop.eup %19825 }
0x354d   :  { %v19828_v46 = vpop.eup %19827  ;;  %14681 = vst [vmem:[#allocation2] sm:$0xc] %v19826_v45  ;;  %v14685_v49 = vpack.c.bf16 %v19826_v45, %v19826_v45 }
0x354e   :  { %14682 = vst [vmem:[#allocation2 + $0x8] sm:$0xc] %v19828_v46  ;;  %v14686_v4 = vpack.c.bf16 %v19828_v46, %v19828_v46 }
0x354f   :  { %v14721_v8 = vrot.slane %v14685_v49, 1 }
0x3550   :  { %v14722_v23 = vrot.slane %v14686_v4, 1 }
0x3552   :  { %14917 = vmatprep.mubr.bf16.mxu0 %v14722_v23 }
0x3553   :  { %14918 = vmatmul.mubr.bf16.vlgmr.msra.gmra.mrb[116].mxu0 %v14721_v8 }
0x3554   :  { %15396 = vmatpush1.bf16.msra.mxu0 %v21938_v1 }
0x3555   :  { %15397 = vmatprep.subr.bf16.mxu0 %v21942_v9 }
0x3558   :  { %15398 = vmatpush1.bf16.msra.mxu0 %v21947_v10 }
0x3559   :  { %15399 = vmatprep.subr.bf16.mxu0 %v21950_v11 }
0x355c   :  { %15400 = vmatpush1.bf16.msra.mxu0 %v21953_v12 }
0x355d   :  { %15401 = vmatprep.subr.bf16.mxu0 %v21956_v13 }
0x3560   :  { %15402 = vmatpush1.bf16.msra.mxu0 %v21959_v14 }
0x3561   :  { %15403 = vmatprep.subr.bf16.mxu0 %v21962_v15 }
0x3564   :  { %15404 = vmatpush1.bf16.msra.mxu0 %v21965_v16 }
0x3565   :  { %15405 = vmatprep.subr.bf16.mxu0 %v21968_v17 }
0x3568   :  { %15406 = vmatpush1.bf16.msra.mxu0 %v21971_v18 }
0x3569   :  { %15407 = vmatprep.subr.bf16.mxu0 %v21974_v19 }
0x356c   :  { %15408 = vmatpush1.bf16.msra.mxu0 %v21977_v20 }
0x356d   :  { %15409 = vmatprep.subr.bf16.mxu0 %v21980_v41 }
0x3570   :  { %15410 = vmatpush1.bf16.msra.mxu0 %v21983_v36 }
0x3571   :  { %15411 = vmatprep.subr.bf16.mxu0 %v21986_v29 }
0x3574   :  { %15412 = vmatpush1.bf16.msra.mxu0 %v21989_v52 }
0x3575   :  { %15413 = vmatprep.subr.bf16.mxu0 %v21992_v58 }
0x3578   :  { %15414 = vmatpush1.bf16.msra.mxu0 %v21995_v0 }
0x3579   :  { %15415 = vmatprep.subr.bf16.mxu0 %v22018_v24 }
0x357c   :  { %15416 = vmatpush1.bf16.msra.mxu0 %v22020_v25 }
0x357d   :  { %15417 = vmatprep.subr.bf16.mxu0 %v22028_v3 }
0x3580   :  { %15418 = vmatpush1.bf16.msra.mxu0 %v22026_v26 }
0x3581   :  { %15419 = vmatprep.subr.bf16.mxu0 %v22030_v63 }
0x3584   :  { %15420 = vmatpush1.bf16.msra.mxu0 %v22035_v30 }
0x3585   :  { %15421 = vmatprep.subr.bf16.mxu0 %v22039_v31 }
0x3588   :  { %15422 = vmatpush1.bf16.msra.mxu0 %v22043_v7 }
0x3589   :  { %15423 = vmatprep.subr.bf16.mxu0 %v22047_v34 }
0x358c   :  { %15424 = vmatpush1.bf16.msra.mxu0 %v22051_v35 }
0x358d   :  { %15425 = vmatprep.subr.bf16.mxu0 %v22055_v61 }
0x3590   :  { %15426 = vmatpush1.bf16.msra.mxu0 %v22059_v62 }
0x3626   :  { %v14919_v53 = vpop.f32.mrb[116].mxu0 }
0x3627   :  { %v14928_v54 = vrot.slane %v14919_v53, 4  ;;  %v14921_v27 = vpop.f32.mrb[117].mxu0 }
0x3628   :  { %v14929_v21 = vrot.slane %v14921_v27, 4  ;;  %v14923_v22 = vpop.f32.mrb[118].mxu0  ;;  %v19568_v27 = vld [vmem:[#allocation5 + $0x6b4] ss:$8 sps:$4 sm:$0xff]  }
0x3629   :  { %v14932_v59 = vadd.f32 %v14928_v54, %v14683_v28  ;;  %v14924_v50 = vpop.f32.mrb[119].mxu0  ;;  %v19566_v28 = vld [vmem:[#allocation5 + $0x6b0] ss:$8 sps:$4 sm:$0xff]   ;;  %v19569_v22 = vld [vmem:[#allocation5 + $0x6c0] ss:$8 sps:$4 sm:$0xff]  }
0x362a   :  { %v14933_v51 = vadd.f32 %v14929_v21, %v14684_v60  ;;  %v19571_v21 = vld [vmem:[#allocation5 + $0x6c4] ss:$8 sps:$4 sm:$0xff]   ;;  %v19572_v60 = vld [vmem:[#allocation5 + $0x6d0] ss:$8 sps:$4 sm:$0xff]  }
0x362b   :  { %19829 = vtanh.f32 %v14932_v59  ;;  %v19574_v59 = vld [vmem:[#allocation5 + $0x6d4] ss:$8 sps:$4 sm:$0xff]   ;;  %v19577_v50 = vld [vmem:[#allocation5 + $0x6e4] ss:$8 sps:$4 sm:$0xff]  }
0x362c   :  { %19831 = vtanh.f32 %v14933_v51  ;;  %v19575_v51 = vld [vmem:[#allocation5 + $0x6e0] ss:$8 sps:$4 sm:$0xff]  }
0x3635   :  { %v19830_v42 = vpop.eup %19829 }
0x3636   :  { %v19832_v43 = vpop.eup %19831  ;;  %14936 = vst [vmem:[#allocation2] sm:$0x30] %v19830_v42  ;;  %v14940_v32 = vpack.c.bf16 %v19830_v42, %v19830_v42  ;;  %v19578_v42 = vld [vmem:[#allocation5 + $0x6f0] ss:$8 sps:$4 sm:$0xff]  }
0x3637   :  { %14937 = vst [vmem:[#allocation2 + $0x8] sm:$0x30] %v19832_v43  ;;  %v14941_v33 = vpack.c.bf16 %v19832_v43, %v19832_v43  ;;  %v19580_v43 = vld [vmem:[#allocation5 + $0x6f4] ss:$8 sps:$4 sm:$0xff]  }
0x3638   :  { %v14976_v48 = vrot.slane %v14940_v32, 2 }
0x3639   :  { %v14977_v47 = vrot.slane %v14941_v33, 2 }
0x363b   :  { %15172 = vmatprep.mubr.bf16.mxu1 %v14977_v47 }
0x363c   :  { %15173 = vmatmul.mubr.bf16.vlgmr.msra.gmra.mrb[116].mxu1 %v14976_v48  ;;  %v15442_v48 = vld [vmem:[#allocation2 + $0x10] sm:$0xc] }
0x363d   :  { %15639 = vmatpush1.bf16.msra.mxu1 %v21938_v1 }
0x363e   :  { %15640 = vmatprep.subr.bf16.mxu1 %v21942_v9 }
0x3641   :  { %15641 = vmatpush1.bf16.msra.mxu1 %v21947_v10 }
0x3642   :  { %15642 = vmatprep.subr.bf16.mxu1 %v21950_v11  ;;  %v14938_v11 = vld [vmem:[#allocation2] sm:$0xc0] }
0x3645   :  { %15643 = vmatpush1.bf16.msra.mxu1 %v21953_v12 }
0x3646   :  { %15644 = vmatprep.subr.bf16.mxu1 %v21956_v13 }
0x3649   :  { %15645 = vmatpush1.bf16.msra.mxu1 %v21959_v14 }
0x364a   :  { %15646 = vmatprep.subr.bf16.mxu1 %v21962_v15  ;;  %v14939_v15 = vld [vmem:[#allocation2 + $0x8] sm:$0xc0] }
0x364d   :  { %15647 = vmatpush1.bf16.msra.mxu1 %v21965_v16 }
0x364e   :  { %15648 = vmatprep.subr.bf16.mxu1 %v21968_v17 }
0x3651   :  { %15649 = vmatpush1.bf16.msra.mxu1 %v21971_v18 }
0x3652   :  { %15650 = vmatprep.subr.bf16.mxu1 %v21974_v19 }
0x3655   :  { %15651 = vmatpush1.bf16.msra.mxu1 %v21977_v20 }
0x3656   :  { %15652 = vmatprep.subr.bf16.mxu1 %v21980_v41 }
0x3659   :  { %15653 = vmatpush1.bf16.msra.mxu1 %v21983_v36 }
0x365a   :  { %15654 = vmatprep.subr.bf16.mxu1 %v21986_v29 }
0x365d   :  { %15655 = vmatpush1.bf16.msra.mxu1 %v21989_v52  ;;  %v19533_v52 = vld [vmem:[#allocation5 + $0x600] ss:$8 sps:$4 sm:$0xff]  }
0x365e   :  { %15656 = vmatprep.subr.bf16.mxu1 %v21992_v58  ;;  %v19535_v58 = vld [vmem:[#allocation5 + $0x604] ss:$8 sps:$4 sm:$0xff]  }
0x365f   :  { %15893 = vmatprep.subr.bf16.mxu0 %v19535_v58 }
0x3661   :  { %15657 = vmatpush1.bf16.msra.mxu1 %v21995_v0  ;;  %v19538_v0 = vld [vmem:[#allocation5 + $0x614] ss:$8 sps:$4 sm:$0xff]  }
0x3662   :  { %15658 = vmatprep.subr.bf16.mxu1 %v22018_v24  ;;  %v19536_v24 = vld [vmem:[#allocation5 + $0x610] ss:$8 sps:$4 sm:$0xff]  }
0x3665   :  { %15659 = vmatpush1.bf16.msra.mxu1 %v22020_v25  ;;  %v19541_v25 = vld [vmem:[#allocation5 + $0x624] ss:$8 sps:$4 sm:$0xff]  }
0x3666   :  { %15660 = vmatprep.subr.bf16.mxu1 %v22028_v3  ;;  %v19544_v3 = vld [vmem:[#allocation5 + $0x634] ss:$8 sps:$4 sm:$0xff]  }
0x3669   :  { %15661 = vmatpush1.bf16.msra.mxu1 %v22026_v26  ;;  %v19539_v26 = vld [vmem:[#allocation5 + $0x620] ss:$8 sps:$4 sm:$0xff]  }
0x366a   :  { %15662 = vmatprep.subr.bf16.mxu1 %v22030_v63  ;;  %v19542_v63 = vld [vmem:[#allocation5 + $0x630] ss:$8 sps:$4 sm:$0xff]  }
0x366d   :  { %15663 = vmatpush1.bf16.msra.mxu1 %v22035_v30  ;;  %v19547_v30 = vld [vmem:[#allocation5 + $0x644] ss:$8 sps:$4 sm:$0xff]  }
0x366e   :  { %15664 = vmatprep.subr.bf16.mxu1 %v22039_v31  ;;  %v19545_v31 = vld [vmem:[#allocation5 + $0x640] ss:$8 sps:$4 sm:$0xff]  }
0x3671   :  { %15665 = vmatpush1.bf16.msra.mxu1 %v22043_v7  ;;  %v19550_v7 = vld [vmem:[#allocation5 + $0x654] ss:$8 sps:$4 sm:$0xff]  }
0x3672   :  { %15666 = vmatprep.subr.bf16.mxu1 %v22047_v34  ;;  %v19548_v34 = vld [vmem:[#allocation5 + $0x650] ss:$8 sps:$4 sm:$0xff]  }
0x3675   :  { %15667 = vmatpush1.bf16.msra.mxu1 %v22051_v35  ;;  %v19553_v35 = vld [vmem:[#allocation5 + $0x664] ss:$8 sps:$4 sm:$0xff]  }
0x3676   :  { %15668 = vmatprep.subr.bf16.mxu1 %v22055_v61  ;;  %v19551_v61 = vld [vmem:[#allocation5 + $0x660] ss:$8 sps:$4 sm:$0xff]  }
0x3679   :  { %15669 = vmatpush1.bf16.msra.mxu1 %v22059_v62  ;;  %v19556_v62 = vld [vmem:[#allocation5 + $0x674] ss:$8 sps:$4 sm:$0xff]  }
0x367a   :  { %16148 = vmatprep.subr.bf16.mxu1 %v19535_v58  ;;  %v15691_v58 = vld [vmem:[#allocation2 + $0x10] sm:$0x30] }
0x370f   :  { %v15174_v1 = vpop.f32.mrb[116].mxu1 }
0x3710   :  { %v15183_v9 = vrot.slane %v15174_v1, 2  ;;  %v15176_v10 = vpop.f32.mrb[117].mxu1 }
0x3711   :  { %v15184_v12 = vrot.slane %v15176_v10, 2  ;;  %v15178_v13 = vpop.f32.mrb[118].mxu1 }
0x3712   :  { %v15187_v14 = vadd.f32 %v15183_v9, %v14938_v11  ;;  %v15179_v16 = vpop.f32.mrb[119].mxu1  ;;  %v15443_v11 = vld [vmem:[#allocation2 + $0x18] sm:$0xc] }
0x3713   :  { %v15188_v17 = vadd.f32 %v15184_v12, %v14939_v15 }
0x3714   :  { %19833 = vtanh.f32 %v15187_v14 }
0x3715   :  { %19835 = vtanh.f32 %v15188_v17 }
0x371e   :  { %v19834_v18 = vpop.eup %19833 }
0x371f   :  { %v19836_v19 = vpop.eup %19835  ;;  %15191 = vst [vmem:[#allocation2] sm:$0xc0] %v19834_v18  ;;  %v15195_v20 = vpack.c.bf16 %v19834_v18, %v19834_v18 }
0x3720   :  { %15192 = vst [vmem:[#allocation2 + $0x8] sm:$0xc0] %v19836_v19  ;;  %v15196_v41 = vpack.c.bf16 %v19836_v19, %v19836_v19 }
0x3721   :  { %v15231_v29 = vrot.slane %v15195_v20, 3  ;;  %v19581_v20 = vld [vmem:[%s22227_s7 + $0x40] sm:$0xff]  }
0x3722   :  { %v15232_v36 = vrot.slane %v15196_v41, 3  ;;  %v19582_v41 = vld [vmem:[%s22227_s7] sm:$0xff]  }
0x3724   :  { %15427 = vmatprep.mubr.bf16.mxu0 %v15232_v36 }
0x3725   :  { %15428 = vmatmul.mubr.bf16.vlgmr.msra.gmra.mrb[120].mxu0 %v15231_v29 }
0x3726   :  { %15894 = vmatpush1.bf16.msra.mxu0 %v19533_v52 }
0x3727   :  { %15895 = vmatprep.subr.bf16.mxu0 %v19538_v0 }
0x372a   :  { %15896 = vmatpush1.bf16.msra.mxu0 %v19536_v24 }
0x372b   :  { %15897 = vmatprep.subr.bf16.mxu0 %v19541_v25 }
0x372e   :  { %15898 = vmatpush1.bf16.msra.mxu0 %v19539_v26 }
0x372f   :  { %15899 = vmatprep.subr.bf16.mxu0 %v19544_v3 }
0x3732   :  { %15900 = vmatpush1.bf16.msra.mxu0 %v19542_v63 }
0x3733   :  { %15901 = vmatprep.subr.bf16.mxu0 %v19547_v30 }
0x3736   :  { %15902 = vmatpush1.bf16.msra.mxu0 %v19545_v31 }
0x3737   :  { %15903 = vmatprep.subr.bf16.mxu0 %v19550_v7 }
0x373a   :  { %15904 = vmatpush1.bf16.msra.mxu0 %v19548_v34 }
0x373b   :  { %15905 = vmatprep.subr.bf16.mxu0 %v19553_v35 }
0x373e   :  { %15906 = vmatpush1.bf16.msra.mxu0 %v19551_v61 }
0x373f   :  { %15907 = vmatprep.subr.bf16.mxu0 %v19556_v62 }
0x3742   :  { %15908 = vmatpush1.bf16.msra.mxu0 %v19554_v2 }
0x3743   :  { %15909 = vmatprep.subr.bf16.mxu0 %v19559_v57 }
0x3746   :  { %15910 = vmatpush1.bf16.msra.mxu0 %v19557_v37 }
0x3747   :  { %15911 = vmatprep.subr.bf16.mxu0 %v19562_v38 }
0x374a   :  { %15912 = vmatpush1.bf16.msra.mxu0 %v19560_v6 }
0x374b   :  { %15913 = vmatprep.subr.bf16.mxu0 %v19565_v39 }
0x374e   :  { %15914 = vmatpush1.bf16.msra.mxu0 %v19563_v40 }
0x374f   :  { %15915 = vmatprep.subr.bf16.mxu0 %v19568_v27 }
0x3752   :  { %15916 = vmatpush1.bf16.msra.mxu0 %v19566_v28 }
0x3753   :  { %15917 = vmatprep.subr.bf16.mxu0 %v19571_v21 }
0x3756   :  { %15918 = vmatpush1.bf16.msra.mxu0 %v19569_v22 }
0x3757   :  { %15919 = vmatprep.subr.bf16.mxu0 %v19574_v59 }
0x375a   :  { %15920 = vmatpush1.bf16.msra.mxu0 %v19572_v60 }
0x375b   :  { %15921 = vmatprep.subr.bf16.mxu0 %v19577_v50 }
0x375e   :  { %15922 = vmatpush1.bf16.msra.mxu0 %v19575_v51 }
0x375f   :  { %15923 = vmatprep.subr.bf16.mxu0 %v19580_v43 }
0x3762   :  { %15924 = vmatpush1.bf16.msra.mxu0 %v19578_v42 }
0x3763   :  { %18434 = vmatprep.subr.bf16.mxu0 %v19581_v20 }
0x37f8   :  { %v15429_v56 = vpop.f32.mrb[120].mxu0 }
0x37f9   :  { %v15436_v5 = vadd.f32 %v15429_v56, %v15193_v55  ;;  %v15431_v45 = vpop.f32.mrb[121].mxu0  ;;  %v19591_v55 = vld [vmem:[%s22227_s7 + $0x68] sm:$0xff]  }
0x37fa   :  { %v15437_v46 = vadd.f32 %v15431_v45, %v15194_v44  ;;  %v15433_v49 = vpop.f32.mrb[122].mxu0  ;;  %v19592_v56 = vld [vmem:[%s22227_s7 + $0x28] sm:$0xff]   ;;  %v19594_v44 = vld [vmem:[%s22227_s7 + $0x30] sm:$0xff]   ;;  %v19595_v45 = vld [vmem:[%s22227_s7 + $0x78] sm:$0xff]  }
0x37fb   :  { %19837 = vtanh.f32 %v15436_v5  ;;  %v15434_v4 = vpop.f32.mrb[123].mxu0  ;;  %v19593_v5 = vld [vmem:[%s22227_s7 + $0x70] sm:$0xff]  }
0x37fc   :  { %19839 = vtanh.f32 %v15437_v46  ;;  %v19596_v46 = vld [vmem:[%s22227_s7 + $0x38] sm:$0xff]  }
0x3805   :  { %v19838_v23 = vpop.eup %19837 }
0x3806   :  { %v19840_v8 = vpop.eup %19839  ;;  %15440 = vst [vmem:[#allocation2 + $0x10] sm:$0x3] %v19838_v23  ;;  %v15444_v54 = vpack.c.bf16 %v19838_v23, %v19838_v23 }
0x3807   :  { %15441 = vst [vmem:[#allocation2 + $0x18] sm:$0x3] %v19840_v8  ;;  %v15445_v53 = vpack.c.bf16 %v19840_v8, %v19840_v8  ;;  %v15946_v8 = vld [vmem:[#allocation2 + $0x10] sm:$0xc0] }
0x3809   :  { %15670 = vmatprep.mubr.bf16.mxu1 %v15445_v53 }
0x380a   :  { %15671 = vmatmul.mubr.bf16.vlgmr.msra.gmra.mrb[120].mxu1 %v15444_v54 }
0x380b   :  { %16149 = vmatpush1.bf16.msra.mxu1 %v19533_v52 }
0x380c   :  { %16150 = vmatprep.subr.bf16.mxu1 %v19538_v0 }
0x380f   :  { %16151 = vmatpush1.bf16.msra.mxu1 %v19536_v24 }
0x3810   :  { %16152 = vmatprep.subr.bf16.mxu1 %v19541_v25 }
0x3813   :  { %16153 = vmatpush1.bf16.msra.mxu1 %v19539_v26  ;;  %v15692_v26 = vld [vmem:[#allocation2 + $0x18] sm:$0x30] }
0x3814   :  { %16154 = vmatprep.subr.bf16.mxu1 %v19544_v3 }
0x3817   :  { %16155 = vmatpush1.bf16.msra.mxu1 %v19542_v63 }
0x3818   :  { %16156 = vmatprep.subr.bf16.mxu1 %v19547_v30 }
0x381b   :  { %16157 = vmatpush1.bf16.msra.mxu1 %v19545_v31 }
0x381c   :  { %16158 = vmatprep.subr.bf16.mxu1 %v19550_v7 }
0x381f   :  { %16159 = vmatpush1.bf16.msra.mxu1 %v19548_v34 }
0x3820   :  { %16160 = vmatprep.subr.bf16.mxu1 %v19553_v35 }
0x3823   :  { %16161 = vmatpush1.bf16.msra.mxu1 %v19551_v61 }
0x3824   :  { %16162 = vmatprep.subr.bf16.mxu1 %v19556_v62  ;;  %v19583_v62 = vld [vmem:[%s22227_s7 + $0x48] sm:$0xff]  }
0x3827   :  { %16163 = vmatpush1.bf16.msra.mxu1 %v19554_v2  ;;  %v19584_v2 = vld [vmem:[%s22227_s7 + $0x8] sm:$0xff]  }
0x3828   :  { %16164 = vmatprep.subr.bf16.mxu1 %v19559_v57  ;;  %v19585_v57 = vld [vmem:[%s22227_s7 + $0x50] sm:$0xff]  }
0x382b   :  { %16165 = vmatpush1.bf16.msra.mxu1 %v19557_v37  ;;  %v19586_v37 = vld [vmem:[%s22227_s7 + $0x10] sm:$0xff]  }
0x382c   :  { %16166 = vmatprep.subr.bf16.mxu1 %v19562_v38  ;;  %v19587_v38 = vld [vmem:[%s22227_s7 + $0x58] sm:$0xff]  }
0x382f   :  { %16167 = vmatpush1.bf16.msra.mxu1 %v19560_v6  ;;  %v19588_v6 = vld [vmem:[%s22227_s7 + $0x18] sm:$0xff]  }
0x3830   :  { %16168 = vmatprep.subr.bf16.mxu1 %v19565_v39  ;;  %v19589_v39 = vld [vmem:[%s22227_s7 + $0x60] sm:$0xff]  }
0x3833   :  { %16169 = vmatpush1.bf16.msra.mxu1 %v19563_v40  ;;  %v19590_v40 = vld [vmem:[%s22227_s7 + $0x20] sm:$0xff]  }
0x3834   :  { %16170 = vmatprep.subr.bf16.mxu1 %v19568_v27 }
0x3837   :  { %16171 = vmatpush1.bf16.msra.mxu1 %v19566_v28  ;;  %v15947_v28 = vld [vmem:[#allocation2 + $0x18] sm:$0xc0] }
0x3838   :  { %16172 = vmatprep.subr.bf16.mxu1 %v19571_v21 }
0x383b   :  { %16173 = vmatpush1.bf16.msra.mxu1 %v19569_v22 }
0x383c   :  { %16174 = vmatprep.subr.bf16.mxu1 %v19574_v59 }
0x383f   :  { %16175 = vmatpush1.bf16.msra.mxu1 %v19572_v60 }
0x3840   :  { %16176 = vmatprep.subr.bf16.mxu1 %v19577_v50 }
0x3843   :  { %16177 = vmatpush1.bf16.msra.mxu1 %v19575_v51  ;;  %v16202_v51 = vld [vmem:[#allocation2 + $0x8] sm:$0xff] }
0x3844   :  { %16178 = vmatprep.subr.bf16.mxu1 %v19580_v43 }
0x3847   :  { %16179 = vmatpush1.bf16.msra.mxu1 %v19578_v42 }
0x38dd   :  { %v15672_v32 = vpop.f32.mrb[120].mxu1 }
0x38de   :  { %v15681_v33 = vrot.slane %v15672_v32, 6  ;;  %v15674_v47 = vpop.f32.mrb[121].mxu1  ;;  %v16201_v32 = vld [vmem:[#allocation2] sm:$0xff] }
0x38df   :  { %v15682_v1 = vrot.slane %v15674_v47, 6  ;;  %v15676_v9 = vpop.f32.mrb[122].mxu1 }
0x38e0   :  { %v15685_v10 = vadd.f32 %v15681_v33, %v15442_v48  ;;  %v15677_v12 = vpop.f32.mrb[123].mxu1  ;;  %v18417_v48 = vld [vmem:[#allocation8] ss:$0 sm:$0xff] }
0x38e1   :  { %v15686_v13 = vadd.f32 %v15682_v1, %v15443_v11 }
0x38e2   :  { %19841 = vtanh.f32 %v15685_v10 }
0x38e3   :  { %19843 = vtanh.f32 %v15686_v13 }
0x38ec   :  { %v19842_v14 = vpop.eup %19841 }
0x38ed   :  { %v19844_v15 = vpop.eup %19843  ;;  %15689 = vst [vmem:[#allocation2 + $0x10] sm:$0xc] %v19842_v14  ;;  %v15693_v16 = vpack.c.bf16 %v19842_v14, %v19842_v14 }
0x38ee   :  { %15690 = vst [vmem:[#allocation2 + $0x18] sm:$0xc] %v19844_v15  ;;  %v15694_v17 = vpack.c.bf16 %v19844_v15, %v19844_v15 }
0x38ef   :  { %v15729_v19 = vrot.slane %v15693_v16, 1 }
0x38f0   :  { %v15730_v18 = vrot.slane %v15694_v17, 1 }
0x38f2   :  { %15925 = vmatprep.mubr.bf16.mxu0 %v15730_v18 }
0x38f3   :  { %15926 = vmatmul.mubr.bf16.vlgmr.msra.gmra.mrb[124].mxu0 %v15729_v19 }
0x38f4   :  { %18435 = vmatpush3.bf16.msra.mxu0 %v19582_v41 }
0x38f5   :  { %18436 = vmatprep.subr.bf16.mxu0 %v19583_v62 }
0x38f8   :  { %18437 = vmatpush3.bf16.msra.mxu0 %v19584_v2 }
0x38f9   :  { %18438 = vmatprep.subr.bf16.mxu0 %v19585_v57 }
0x38fc   :  { %18439 = vmatpush3.bf16.msra.mxu0 %v19586_v37 }
0x38fd   :  { %18440 = vmatprep.subr.bf16.mxu0 %v19587_v38 }
0x3900   :  { %18441 = vmatpush3.bf16.msra.mxu0 %v19588_v6 }
0x3901   :  { %18442 = vmatprep.subr.bf16.mxu0 %v19589_v39 }
0x3904   :  { %18443 = vmatpush3.bf16.msra.mxu0 %v19590_v40 }
0x3905   :  { %18444 = vmatprep.subr.bf16.mxu0 %v19591_v55 }
0x3908   :  { %18445 = vmatpush3.bf16.msra.mxu0 %v19592_v56 }
0x3909   :  { %18446 = vmatprep.subr.bf16.mxu0 %v19593_v5 }
0x390c   :  { %18447 = vmatpush3.bf16.msra.mxu0 %v19594_v44 }
0x390d   :  { %18448 = vmatprep.subr.bf16.mxu0 %v19595_v45 }
0x3910   :  { %18449 = vmatpush3.bf16.msra.mxu0 %v19596_v46 }
0x39c6   :  { %v15927_v36 = vpop.f32.mrb[124].mxu0 }
0x39c7   :  { %v15936_v29 = vrot.slane %v15927_v36, 4  ;;  %v15929_v52 = vpop.f32.mrb[125].mxu0 }
0x39c8   :  { %v15937_v0 = vrot.slane %v15929_v52, 4  ;;  %v15931_v24 = vpop.f32.mrb[126].mxu0 }
0x39c9   :  { %v15940_v25 = vadd.f32 %v15936_v29, %v15691_v58  ;;  %v15932_v3 = vpop.f32.mrb[127].mxu0 }
0x39ca   :  { %v15941_v63 = vadd.f32 %v15937_v0, %v15692_v26 }
0x39cb   :  { %19845 = vtanh.f32 %v15940_v25 }
0x39cc   :  { %19847 = vtanh.f32 %v15941_v63 }
0x39d5   :  { %v19846_v30 = vpop.eup %19845 }
0x39d6   :  { %v19848_v31 = vpop.eup %19847  ;;  %15944 = vst [vmem:[#allocation2 + $0x10] sm:$0x30] %v19846_v30  ;;  %v15948_v7 = vpack.c.bf16 %v19846_v30, %v19846_v30 }
0x39d7   :  { %15945 = vst [vmem:[#allocation2 + $0x18] sm:$0x30] %v19848_v31  ;;  %v15949_v34 = vpack.c.bf16 %v19848_v31, %v19848_v31 }
0x39d8   :  { %v15984_v61 = vrot.slane %v15948_v7, 2 }
0x39d9   :  { %v15985_v35 = vrot.slane %v15949_v34, 2 }
0x39db   :  { %16180 = vmatprep.mubr.bf16.mxu1 %v15985_v35 }
0x39dc   :  { %16181 = vmatmul.mubr.bf16.vlgmr.msra.gmra.mrb[124].mxu1 %v15984_v61 }
0x3aaf   :  { %v16182_v49 = vpop.f32.mrb[124].mxu1 }
0x3ab0   :  { %v16191_v4 = vrot.slane %v16182_v49, 2  ;;  %v16184_v23 = vpop.f32.mrb[125].mxu1 }
0x3ab1   :  { %v16192_v53 = vrot.slane %v16184_v23, 2  ;;  %v16186_v54 = vpop.f32.mrb[126].mxu1 }
0x3ab2   :  { %v16195_v27 = vadd.f32 %v16191_v4, %v15946_v8  ;;  %v16187_v21 = vpop.f32.mrb[127].mxu1 }
0x3ab3   :  { %v16196_v22 = vadd.f32 %v16192_v53, %v15947_v28 }
0x3ab4   :  { %19849 = vtanh.f32 %v16195_v27 }
0x3ab5   :  { %19851 = vtanh.f32 %v16196_v22 }
0x3abe   :  { %v19850_v59 = vpop.eup %19849 }
0x3abf   :  { %v19852_v60 = vpop.eup %19851  ;;  %16199 = vst [vmem:[#allocation2 + $0x10] sm:$0xc0] %v19850_v59 }
0x3ac0   :  { %16200 = vst [vmem:[#allocation2 + $0x18] sm:$0xc0] %v19852_v60 }
0x3ac6   :  { %v16203_v50 = vld [vmem:[#allocation2 + $0x10] sm:$0xff] }
0x3ac7   :  { %v16204_v42 = vld [vmem:[#allocation2 + $0x18] sm:$0xff]  ;;  %v16205_v33 = vpack.c.bf16 %v16203_v50, %v16201_v32 }
0x3ac8   :  { %v16206_v43 = vpack.c.bf16 %v16204_v42, %v16202_v51 }
0x3aca   :  { %16374 = vmatprep.mubr.bf16.mxu0 %v16206_v43 }
0x3acb   :  { %16375 = vmatmul.mubr.bf16.vlgmr.msra.gmra.mrb[128].mxu0 %v16205_v33 }
0x3b9e   :  { %v18450_v47 = vpop.f32.mrb[128].mxu0 }
0x3b9f   :  { %v18451_v1 = vpop.f32.mrb[129].mxu0 }
0x3ba0   :  { %v18452_v9 = vadd.f32 %v18451_v1, %v18450_v47  ;;  %v18453_v10 = vpop.f32.mrb[130].mxu0 }
0x3ba1   :  { %v18454_v11 = vpop.f32.mrb[131].mxu0 }
0x3ba2   :  { %v16377_v12 = vadd.f32 %v18452_v9, %v18417_v48  ;;  %v18455_v13 = vadd.f32 %v18454_v11, %v18453_v10 }
0x3ba4   :  { %16383 = vst.msk [vmem:[%s22229_s9] sm:$0xff] %vm149_vm0, %v16377_v12  ;;  %v16380_v14 = vadd.f32 %v18455_v13, %v18417_v48 }
0x3ba6   :  { %16384 = vst.msk [vmem:[%s22229_s9 + $0x8] sm:$0xff] %vm149_vm0, %v16380_v14 }
0x3ba7   :  { %16389 = vsyncpa [#allocation4], 1 }
0x3ba8   :  { %16390 = vsyncpa [#allocation6], 1 }
0x3ba9   :  { %16391 = vsyncpa [#allocation9], 1 }

</bundles_post_ra>
